<compile_context>
chip_gen: v7x
topology: tpu7x:2x2x1
jax: 0.10.0
libtpu: 0.0.40
codegen_flags: <defaults>
</compile_context>

<pallas_src>
import functools

import jax
import jax.numpy as jnp
from jax.experimental import pallas as pl
from jax.experimental.pallas import tpu as pltpu

_VMEM_LIMIT = 32 * 1024 * 1024


def _roundup(n, m):
    return ((n + m - 1) // m) * m


def _pick_tile(M, candidates):
    for t in candidates:
        if M >= t and M % t == 0:
            return t
    return None


# ---------------------------------------------------------------------------
# Pallas kernels
# ---------------------------------------------------------------------------
def _matmul_kernel(x_ref, w_ref, b_ref, o_ref, acc_ref, *, act_in, act_out):
    """acc += act_in(x_tile) @ w_tile ; at last K step: o = act_out(acc + bias)."""
    @pl.when(pl.program_id(1) == 0)
    def _():
        acc_ref[...] = jnp.zeros_like(acc_ref)

    x = x_ref[...].astype(jnp.float32)          # elementwise act in f32 (v5e-safe)
    if act_in == "lrelu":
        x = jnp.where(x > 0, x, 0.2 * x)
    elif act_in == "relu":
        x = jnp.maximum(x, 0.0)
    acc_ref[...] += jnp.dot(x.astype(jnp.bfloat16), w_ref[...],
                            preferred_element_type=jnp.float32)

    @pl.when(pl.program_id(1) == pl.num_programs(1) - 1)
    def _():
        y = acc_ref[...] + b_ref[...]
        if act_out == "tanh":
            y = jnp.tanh(y)
        o_ref[...] = y


def matmul_pallas(x2d, w, bias, act_in="none", act_out="none"):
    """x2d: [M, K] bf16, w: [K, Npad] bf16, bias: [1, Npad] f32 -> [M, Npad] f32."""
    M, K = x2d.shape
    Np = w.shape[1]

    tm = _pick_tile(M, (512, 256, 128))
    if tm is None:
        if M > 512:
            Mp = _roundup(M, 512)
            x2d = jnp.pad(x2d, ((0, Mp - M), (0, 0)))
            tm = 512
        else:
            tm = M
    Mp = x2d.shape[0]

    tk = K if K <= 2048 else (_pick_tile(K, (2048, 1024, 512, 256, 128)) or K)
    nm, nk = Mp // tm, K // tk

    kernel = functools.partial(_matmul_kernel, act_in=act_in, act_out=act_out)
    out = pl.pallas_call(
        kernel,
        out_shape=jax.ShapeDtypeStruct((Mp, Np), jnp.float32),
        grid=(nm, nk),
        in_specs=[
            pl.BlockSpec((tm, tk), lambda i, k: (i, k)),
            pl.BlockSpec((tk, Np), lambda i, k: (k, 0)),
            pl.BlockSpec((1, Np), lambda i, k: (0, 0)),
        ],
        out_specs=pl.BlockSpec((tm, Np), lambda i, k: (i, 0)),
        scratch_shapes=[pltpu.VMEM((tm, Np), jnp.float32)],
        compiler_params=pltpu.CompilerParams(
            dimension_semantics=("parallel", "arbitrary"),
            vmem_limit_bytes=_VMEM_LIMIT),
    )(x2d, w, bias)
    return out[:M] if Mp != M else out


def _bn_stats_kernel(x_ref, s_ref, q_ref, acc_s, acc_q):
    """Tiled per-channel sum / sum-of-squares reduction over the row axis."""
    @pl.when(pl.program_id(0) == 0)
    def _():
        acc_s[...] = jnp.zeros_like(acc_s)
        acc_q[...] = jnp.zeros_like(acc_q)

    x = x_ref[...]
    acc_s[...] += jnp.sum(x, axis=0, keepdims=True)
    acc_q[...] += jnp.sum(x * x, axis=0, keepdims=True)

    @pl.when(pl.program_id(0) == pl.num_programs(0) - 1)
    def _():
        s_ref[...] = acc_s[...]
        q_ref[...] = acc_q[...]


def _affine_kernel(x_ref, s_ref, b_ref, o_ref):
    o_ref[...] = x_ref[...] * s_ref[...] + b_ref[...]


def batchnorm(x, gamma, beta, eps=1e-5):
    """BatchNorm2d in training mode: batch mean / biased var, per channel (NHWC)."""
    B, H, W, C = x.shape
    M = B * H * W
    x2 = x.reshape(M, C)
    tm = _pick_tile(M, (1024, 512, 256)) or M
    nm = M // tm

    s, q = pl.pallas_call(
        _bn_stats_kernel,
        out_shape=(jax.ShapeDtypeStruct((1, C), jnp.float32),
                   jax.ShapeDtypeStruct((1, C), jnp.float32)),
        grid=(nm,),
        in_specs=[pl.BlockSpec((tm, C), lambda i: (i, 0))],
        out_specs=(pl.BlockSpec((1, C), lambda i: (0, 0)),
                   pl.BlockSpec((1, C), lambda i: (0, 0))),
        scratch_shapes=[pltpu.VMEM((1, C), jnp.float32),
                        pltpu.VMEM((1, C), jnp.float32)],
        compiler_params=pltpu.CompilerParams(
            dimension_semantics=("arbitrary",),
            vmem_limit_bytes=_VMEM_LIMIT),
    )(x2)

    mean = s / M
    var = q / M - mean * mean                      # biased variance (PyTorch training BN)
    scale = gamma * jax.lax.rsqrt(var + eps)
    shift = beta - mean * scale

    y = pl.pallas_call(
        _affine_kernel,
        out_shape=jax.ShapeDtypeStruct((M, C), jnp.float32),
        grid=(nm,),
        in_specs=[pl.BlockSpec((tm, C), lambda i: (i, 0)),
                  pl.BlockSpec((1, C), lambda i: (0, 0)),
                  pl.BlockSpec((1, C), lambda i: (0, 0))],
        out_specs=pl.BlockSpec((tm, C), lambda i: (i, 0)),
        compiler_params=pltpu.CompilerParams(
            dimension_semantics=("parallel",),
            vmem_limit_bytes=_VMEM_LIMIT),
    )(x2, scale, shift)
    return y.reshape(B, H, W, C)


# ---------------------------------------------------------------------------
# Glue: im2col / space-to-depth / depth-to-space (plain JAX layout transforms)
# ---------------------------------------------------------------------------
def _im2col(x, k, stride=1):
    """x: [B, Hp, Wp, C] -> [B, Ho, Wo, k*k*C], patch idx = (di*k+dj)*C + c."""
    B, Hp, Wp, C = x.shape
    Ho = (Hp - k) // stride + 1
    Wo = (Wp - k) // stride + 1
    cols = []
    for di in range(k):
        for dj in range(k):
            cols.append(
                x[:, di:di + stride * (Ho - 1) + 1:stride,
                     dj:dj + stride * (Wo - 1) + 1:stride, :])
    patches = jnp.stack(cols, axis=-2)  # [B, Ho, Wo, k*k, C]
    return patches.reshape(B, Ho, Wo, k * k * C)


def conv_down(x, w_mat, bias, n_out, act_in):
    """Conv2d(k=4, s=2, p=1, bias=False), with optional fused LeakyReLU pre-activation.

    Space-to-depth turns the stride-2 4x4 conv into a stride-1 2x2 conv over 4C channels
    (4x im2col expansion instead of 16x)."""
    B, H, W, C = x.shape
    Ho, Wo = H // 2, W // 2
    xp = jnp.pad(x, ((0, 0), (1, 1), (1, 1), (0, 0)))
    xsd = xp.reshape(B, Ho + 1, 2, Wo + 1, 2, C)
    xsd = jnp.transpose(xsd, (0, 1, 3, 2, 4, 5)).reshape(B, Ho + 1, Wo + 1, 4 * C)
    patches = _im2col(xsd, 2).reshape(B * Ho * Wo, 16 * C).astype(jnp.bfloat16)
    y = matmul_pallas(patches, w_mat, bias, act_in=act_in)
    return y[:, :n_out].reshape(B, Ho, Wo, n_out)


def conv_up(x, w_mat, bias4, n_out, act_out="none"):
    """ReLU + ConvTranspose2d(k=4, s=2, p=1) via sub-pixel phase decomposition.

    One matmul [M, 9*Cin] @ [9*Cin, 4*Cout] produces all 4 output phases (lane-dense),
    then depth-to-space interleaves them. No zero-dilated intermediate tensor."""
    B, H, W, C = x.shape
    xp = jnp.pad(x, ((0, 0), (1, 1), (1, 1), (0, 0)))
    patches = _im2col(xp, 3).reshape(B * H * W, 9 * C).astype(jnp.bfloat16)
    y4 = matmul_pallas(patches, w_mat, bias4, act_in="relu", act_out=act_out)
    y4 = y4[:, :4 * n_out].reshape(B, H, W, 2, 2, n_out)
    y = jnp.transpose(y4, (0, 1, 3, 2, 4, 5)).reshape(B, 2 * H, 2 * W, n_out)
    return y


# ---------------------------------------------------------------------------
# Weight packing (done once at init)
# ---------------------------------------------------------------------------
def _pad_cols(a, n):
    return jnp.pad(a, ((0, 0), (0, n - a.shape[1])))


def pack_down_weight(w):
    """[Cout, Cin, 4, 4] -> [16*Cin, Cout], K order (ti,tj,phase_a,phase_b,c)."""
    O, C = w.shape[0], w.shape[1]
    w6 = w.reshape(O, C, 2, 2, 2, 2)               # [o, c, ti, a, tj, b]
    w6 = jnp.transpose(w6, (2, 4, 3, 5, 1, 0))     # [ti, tj, a, b, c, o]
    return w6.reshape(16 * C, O)


def pack_up_weight(w_t):
    """ConvTranspose weight [Cin, Cout, 4, 4] -> [9*Cin, 4*Cout] (phase-decomposed)."""
    Cin, Cout = w_t.shape[0], w_t.shape[1]
    m = jnp.zeros((3, 3, Cin, 2, 2, Cout), dtype=w_t.dtype)
    for u in range(3):
        for a in range(2):
            kh = 3 + a - 2 * u
            if not 0 <= kh <= 3:
                continue
            for v in range(3):
                for b in range(2):
                    kw = 3 + b - 2 * v
                    if not 0 <= kw <= 3:
                        continue
                    m = m.at[u, v, :, a, b, :].set(w_t[:, :, kh, kw])
    return m.reshape(9 * Cin, 4 * Cout)


# ---------------------------------------------------------------------------
# UNet construction (mirrors UnetSkipConnectionBlock / UnetGenerator)
# ---------------------------------------------------------------------------
def _uniform(key, shape, fan_in):
    bound = 1.0 / float(fan_in) ** 0.5
    return jax.random.uniform(key, shape, jnp.float32, -bound, bound)


def init_unet(key, input_nc, output_nc, num_downs, ngf):
    # configs ordered outermost -> innermost: (kind, outer_nc, inner_nc, input_nc)
    cfg = [("outermost", output_nc, ngf, input_nc),
           ("mid", ngf, ngf * 2, ngf),
           ("mid", ngf * 2, ngf * 4, ngf * 2),
           ("mid", ngf * 4, ngf * 8, ngf * 4)]
    for _ in range(num_downs - 5):
        cfg.append(("mid", ngf * 8, ngf * 8, ngf * 8))
    cfg.append(("innermost", ngf * 8, ngf * 8, ngf * 8))

    params = []
    for idx, (kind, outer, inner, inp) in enumerate(cfg):
        ks = jax.random.split(jax.random.fold_in(key, idx), 3)
        p = {}
        # downconv: Conv2d(inp -> inner), bias=False (BatchNorm => use_bias False)
        w_down = _uniform(ks[0], (inner, inp, 4, 4), inp * 16)
        nd = _roundup(inner, 128)
        p["w_down"] = _pad_cols(pack_down_weight(w_down), nd).astype(jnp.bfloat16)
        p["b_down"] = jnp.zeros((1, nd), jnp.float32)
        # upconv: ConvTranspose2d(inner or 2*inner -> outer)
        up_in = inner if kind == "innermost" else inner * 2
        w_up = _uniform(ks[1], (up_in, outer, 4, 4), outer * 16)
        nu = _roundup(4 * outer, 128)
        p["w_up"] = _pad_cols(pack_up_weight(w_up), nu).astype(jnp.bfloat16)
        if kind == "outermost":
            b = _uniform(ks[2], (outer,), outer * 16)          # outermost upconv has bias
            p["b_up"] = _pad_cols(jnp.tile(b, 4)[None, :], nu)
        else:
            p["b_up"] = jnp.zeros((1, nu), jnp.float32)
            p["g_up"] = jnp.ones((1, outer), jnp.float32)
            p["be_up"] = jnp.zeros((1, outer), jnp.float32)
        if kind == "mid":
            p["g_down"] = jnp.ones((1, inner), jnp.float32)
            p["be_down"] = jnp.zeros((1, inner), jnp.float32)
        params.append(p)
    return cfg, params


def make_forward(cfg):
    """Static structure (kinds / channel counts) lives in this closure; the jitted
    function only takes arrays, which fixes the previous jit tracing error."""
    kinds = tuple(k for (k, _, _, _) in cfg)
    chans = tuple((outer, inner) for (_, outer, inner, _) in cfg)

    def run(i, x, params):
        kind = kinds[i]
        outer, inner = chans[i]
        p = params[i]
        if kind == "outermost":
            h = run(i + 1, conv_down(x, p["w_down"], p["b_down"], inner, act_in="none"))
            return conv_up(h, p["w_up"], p["b_up"], outer, act_out="tanh")
        elif kind == "innermost":
            h = conv_down(x, p["w_down"], p["b_down"], inner, act_in="lrelu")
            u = conv_up(h, p["w_up"], p["b_up"], outer)
            u = batchnorm(u, p["g_up"], p["be_up"])
            return jnp.concatenate([x, u], axis=-1)
        else:
            h = conv_down(x, p["w_down"], p["b_down"], inner, act_in="lrelu")
            h = batchnorm(h, p["g_down"], p["be_down"])
            h = run(i + 1, h, params)
            u = conv_up(h, p["w_up"], p["b_up"], outer)
            u = batchnorm(u, p["g_up"], p["be_up"])
            return jnp.concatenate([x, u], axis=-1)

    def run(i, x, params=None):  # noqa: F811  (simple recursive dispatcher)
        kind = kinds[i]
        outer, inner = chans[i]
        p = _params[i]
        if kind == "outermost":
            h = conv_down(x, p["w_down"], p["b_down"], inner, act_in="none")
            h = run(i + 1, h)
            return conv_up(h, p["w_up"], p["b_up"], outer, act_out="tanh")
        elif kind == "innermost":
            h = conv_down(x, p["w_down"], p["b_down"], inner, act_in="lrelu")
            u = conv_up(h, p["w_up"], p["b_up"], outer)
            u = batchnorm(u, p["g_up"], p["be_up"])
            return jnp.concatenate([x, u], axis=-1)
        else:
            h = conv_down(x, p["w_down"], p["b_down"], inner, act_in="lrelu")
            h = batchnorm(h, p["g_down"], p["be_down"])
            h = run(i + 1, h)
            u = conv_up(h, p["w_up"], p["b_up"], outer)
            u = batchnorm(u, p["g_up"], p["be_up"])
            return jnp.concatenate([x, u], axis=-1)

    @jax.jit
    def forward(x_nchw, params):
        nonlocal _params
        _params = params
        x = jnp.transpose(x_nchw, (0, 2, 3, 1))       # NCHW -> NHWC for the kernels
        y = run(0, x)
        return jnp.transpose(y, (0, 3, 1, 2))         # back to NCHW

    _params = None
    return forward


# ---------------------------------------------------------------------------
if __name__ == "__main__":
    B, input_nc, output_nc, num_downs, ngf = 2, 3, 3, 5, 8
    H = W = 2 ** num_downs  # 32x32 -> 1x1 at the bottleneck with num_downs=5

    key = jax.random.PRNGKey(0)
    cfg, params = init_unet(key, input_nc, output_nc, num_downs, ngf)
    forward = make_forward(cfg)

    x = jax.random.normal(jax.random.PRNGKey(0), (B, input_nc, H, W), jnp.float32)

    y = forward(x, params)
    y = jax.block_until_ready(y)
    assert y.shape == (B, output_nc, H, W), y.shape
    assert bool(jnp.all(jnp.isfinite(y)))
    # final Tanh => outputs in [-1, 1]
    assert float(jnp.max(jnp.abs(y))) <= 1.0 + 1e-5
    print("KERNEL_OK")
</pallas_src>

<mosaic_0001>
module attributes {stable_mosaic.version = 11 : i64} {
  func.func @_matmul_kernel(%arg0: i32, %arg1: i32, %arg2: memref<512x48xbf16, #tpu.memory_space<vmem>>, %arg3: memref<48x128xbf16, #tpu.memory_space<vmem>>, %arg4: memref<1x128xf32, #tpu.memory_space<vmem>>, %arg5: memref<512x128xf32, #tpu.memory_space<vmem>>, %arg6: memref<512x128xf32, #tpu.memory_space<vmem>>) attributes {dimension_semantics = [#tpu.dimension_semantics<parallel>, #tpu.dimension_semantics<arbitrary>], iteration_bounds = array<i64: 1, 1>, scalar_prefetch = 0 : i64, scratch_operands = 1 : i64, tpu.core_type = #tpu.core_type<tc>, window_params = [{transform_indices = @transform_0, window_bounds = array<i64: 512, 48>}, {transform_indices = @transform_1, window_bounds = array<i64: 48, 128>}, {pipeline_mode = #tpu.pipeline_mode<synchronous>, transform_indices = @transform_2, window_bounds = array<i64: 1, 128>}, {transform_indices = @transform_3, window_bounds = array<i64: 512, 128>}]} {
    %c0_i32 = arith.constant 0 : i32
    %0 = arith.cmpi eq, %arg1, %c0_i32 : i32
    %1 = arith.extui %0 : i1 to i32
    %c0_i32_0 = arith.constant 0 : i32
    %2 = arith.cmpi ne, %1, %c0_i32_0 : i32
    scf.if %2 {
      %cst_10 = arith.constant 0.000000e+00 : f32
      %14 = vector.broadcast %cst_10 : f32 to vector<512x128xf32>
      %c0_11 = arith.constant 0 : index
      %c0_12 = arith.constant 0 : index
      %15 = vector.load %arg6[%c0_11, %c0_12] : memref<512x128xf32, #tpu.memory_space<vmem>>, vector<512x128xf32>
      tpu.vector_store %arg6[%c0_11, %c0_12], %14 {strides = array<i32>} : memref<512x128xf32, #tpu.memory_space<vmem>>, vector<512x128xf32>,
    } else {
    }
    %c0 = arith.constant 0 : index
    %c0_1 = arith.constant 0 : index
    %3 = vector.load %arg2[%c0, %c0_1] : memref<512x48xbf16, #tpu.memory_space<vmem>>, vector<512x48xbf16>
    %4 = arith.extf %3 : vector<512x48xbf16> to vector<512x48xf32>
    %c0_2 = arith.constant 0 : index
    %c0_3 = arith.constant 0 : index
    %5 = vector.load %arg6[%c0_2, %c0_3] : memref<512x128xf32, #tpu.memory_space<vmem>>, vector<512x128xf32>
    %6 = arith.truncf %4 : vector<512x48xf32> to vector<512x48xbf16>
    %c0_4 = arith.constant 0 : index
    %c0_5 = arith.constant 0 : index
    %7 = vector.load %arg3[%c0_4, %c0_5] : memref<48x128xbf16, #tpu.memory_space<vmem>>, vector<48x128xbf16>
    %cst = arith.constant dense<0.000000e+00> : vector<512x128xf32>
    %8 = tpu.matmul %6, %7, %cst {dimension_numbers = #tpu.dot_dimension_numbers<[1], [0], [0], [1], [0, 0, 1, 1], [], []>} : vector<512x48xbf16>, vector<48x128xbf16>, vector<512x128xf32> -> vector<512x128xf32>
    %9 = arith.addf %5, %8 : vector<512x128xf32>
    %c0_6 = arith.constant 0 : index
    %c0_7 = arith.constant 0 : index
    %10 = vector.load %arg6[%c0_6, %c0_7] : memref<512x128xf32, #tpu.memory_space<vmem>>, vector<512x128xf32>
    tpu.vector_store %arg6[%c0_6, %c0_7], %9 {strides = array<i32>} : memref<512x128xf32, #tpu.memory_space<vmem>>, vector<512x128xf32>,
    %c0_i32_8 = arith.constant 0 : i32
    %11 = arith.cmpi eq, %arg1, %c0_i32_8 : i32
    %12 = arith.extui %11 : i1 to i32
    %c0_i32_9 = arith.constant 0 : i32
    %13 = arith.cmpi ne, %12, %c0_i32_9 : i32
    scf.if %13 {
      %c0_10 = arith.constant 0 : index
      %c0_11 = arith.constant 0 : index
      %14 = vector.load %arg6[%c0_10, %c0_11] : memref<512x128xf32, #tpu.memory_space<vmem>>, vector<512x128xf32>
      %c0_12 = arith.constant 0 : index
      %c0_13 = arith.constant 0 : index
      %15 = vector.load %arg4[%c0_12, %c0_13] : memref<1x128xf32, #tpu.memory_space<vmem>>, vector<1x128xf32>
      %16 = vector.broadcast %15 : vector<1x128xf32> to vector<512x128xf32>
      %17 = arith.addf %14, %16 : vector<512x128xf32>
      %c0_14 = arith.constant 0 : index
      %c0_15 = arith.constant 0 : index
      %18 = vector.load %arg5[%c0_14, %c0_15] : memref<512x128xf32, #tpu.memory_space<vmem>>, vector<512x128xf32>
      tpu.vector_store %arg5[%c0_14, %c0_15], %17 {strides = array<i32>} : memref<512x128xf32, #tpu.memory_space<vmem>>, vector<512x128xf32>,
    } else {
    }
    return
  }
  func.func @transform_0(%arg0: i32, %arg1: i32) -> (i32, i32) {
    %c0_i32 = arith.constant 0 : i32
    return %arg0, %arg1 : i32, i32
  }
  func.func @transform_1(%arg0: i32, %arg1: i32) -> (i32, i32) {
    %c0_i32 = arith.constant 0 : i32
    %c0_i32_0 = arith.constant 0 : i32
    return %arg1, %c0_i32 : i32, i32
  }
  func.func @transform_2(%arg0: i32, %arg1: i32) -> (i32, i32) {
    %c0_i32 = arith.constant 0 : i32
    %c0_i32_0 = arith.constant 0 : i32
    %c0_i32_1 = arith.constant 0 : i32
    return %c0_i32, %c0_i32_0 : i32, i32
  }
  func.func @transform_3(%arg0: i32, %arg1: i32) -> (i32, i32) {
    %c0_i32 = arith.constant 0 : i32
    %c0_i32_0 = arith.constant 0 : i32
    return %arg0, %c0_i32 : i32, i32
  }
}

module attributes {stable_mosaic.version = 11 : i64} {
  func.func @_matmul_kernel(%arg0: i32, %arg1: i32, %arg2: memref<128x128xbf16, #tpu.memory_space<vmem>>, %arg3: memref<128x128xbf16, #tpu.memory_space<vmem>>, %arg4: memref<1x128xf32, #tpu.memory_space<vmem>>, %arg5: memref<128x128xf32, #tpu.memory_space<vmem>>, %arg6: memref<128x128xf32, #tpu.memory_space<vmem>>) attributes {dimension_semantics = [#tpu.dimension_semantics<parallel>, #tpu.dimension_semantics<arbitrary>], iteration_bounds = array<i64: 1, 1>, scalar_prefetch = 0 : i64, scratch_operands = 1 : i64, tpu.core_type = #tpu.core_type<tc>, window_params = [{transform_indices = @transform_0, window_bounds = array<i64: 128, 128>}, {transform_indices = @transform_1, window_bounds = array<i64: 128, 128>}, {pipeline_mode = #tpu.pipeline_mode<synchronous>, transform_indices = @transform_2, window_bounds = array<i64: 1, 128>}, {transform_indices = @transform_3, window_bounds = array<i64: 128, 128>}]} {
    %c0_i32 = arith.constant 0 : i32
    %0 = arith.cmpi eq, %arg1, %c0_i32 : i32
    %1 = arith.extui %0 : i1 to i32
    %c0_i32_0 = arith.constant 0 : i32
    %2 = arith.cmpi ne, %1, %c0_i32_0 : i32
    scf.if %2 {
      %cst_12 = arith.constant 0.000000e+00 : f32
      %19 = vector.broadcast %cst_12 : f32 to vector<128x128xf32>
      %c0_13 = arith.constant 0 : index
      %c0_14 = arith.constant 0 : index
      %20 = vector.load %arg6[%c0_13, %c0_14] : memref<128x128xf32, #tpu.memory_space<vmem>>, vector<128x128xf32>
      tpu.vector_store %arg6[%c0_13, %c0_14], %19 {strides = array<i32>} : memref<128x128xf32, #tpu.memory_space<vmem>>, vector<128x128xf32>,
    } else {
    }
    %c0 = arith.constant 0 : index
    %c0_1 = arith.constant 0 : index
    %3 = vector.load %arg2[%c0, %c0_1] : memref<128x128xbf16, #tpu.memory_space<vmem>>, vector<128x128xbf16>
    %4 = arith.extf %3 : vector<128x128xbf16> to vector<128x128xf32>
    %cst = arith.constant 0.000000e+00 : f32
    %5 = vector.broadcast %cst : f32 to vector<128x128xf32>
    %6 = arith.cmpf ogt, %4, %5 : vector<128x128xf32>
    %cst_2 = arith.constant 2.000000e-01 : f32
    %7 = vector.broadcast %cst_2 : f32 to vector<128x128xf32>
    %8 = arith.mulf %7, %4 : vector<128x128xf32>
    %9 = arith.select %6, %4, %8 : vector<128x128xi1>, vector<128x128xf32>
    %c0_3 = arith.constant 0 : index
    %c0_4 = arith.constant 0 : index
    %10 = vector.load %arg6[%c0_3, %c0_4] : memref<128x128xf32, #tpu.memory_space<vmem>>, vector<128x128xf32>
    %11 = arith.truncf %9 : vector<128x128xf32> to vector<128x128xbf16>
    %c0_5 = arith.constant 0 : index
    %c0_6 = arith.constant 0 : index
    %12 = vector.load %arg3[%c0_5, %c0_6] : memref<128x128xbf16, #tpu.memory_space<vmem>>, vector<128x128xbf16>
    %cst_7 = arith.constant dense<0.000000e+00> : vector<128x128xf32>
    %13 = tpu.matmul %11, %12, %cst_7 {dimension_numbers = #tpu.dot_dimension_numbers<[1], [0], [0], [1], [0, 0, 1, 1], [], []>} : vector<128x128xbf16>, vector<128x128xbf16>, vector<128x128xf32> -> vector<128x128xf32>
    %14 = arith.addf %10, %13 : vector<128x128xf32>
    %c0_8 = arith.constant 0 : index
    %c0_9 = arith.constant 0 : index
    %15 = vector.load %arg6[%c0_8, %c0_9] : memref<128x128xf32, #tpu.memory_space<vmem>>, vector<128x128xf32>
    tpu.vector_store %arg6[%c0_8, %c0_9], %14 {strides = array<i32>} : memref<128x128xf32, #tpu.memory_space<vmem>>, vector<128x128xf32>,
    %c0_i32_10 = arith.constant 0 : i32
    %16 = arith.cmpi eq, %arg1, %c0_i32_10 : i32
    %17 = arith.extui %16 : i1 to i32
    %c0_i32_11 = arith.constant 0 : i32
    %18 = arith.cmpi ne, %17, %c0_i32_11 : i32
    scf.if %18 {
      %c0_12 = arith.constant 0 : index
      %c0_13 = arith.constant 0 : index
      %19 = vector.load %arg6[%c0_12, %c0_13] : memref<128x128xf32, #tpu.memory_space<vmem>>, vector<128x128xf32>
      %c0_14 = arith.constant 0 : index
      %c0_15 = arith.constant 0 : index
      %20 = vector.load %arg4[%c0_14, %c0_15] : memref<1x128xf32, #tpu.memory_space<vmem>>, vector<1x128xf32>
      %21 = vector.broadcast %20 : vector<1x128xf32> to vector<128x128xf32>
      %22 = arith.addf %19, %21 : vector<128x128xf32>
      %c0_16 = arith.constant 0 : index
      %c0_17 = arith.constant 0 : index
      %23 = vector.load %arg5[%c0_16, %c0_17] : memref<128x128xf32, #tpu.memory_space<vmem>>, vector<128x128xf32>
      tpu.vector_store %arg5[%c0_16, %c0_17], %22 {strides = array<i32>} : memref<128x128xf32, #tpu.memory_space<vmem>>, vector<128x128xf32>,
    } else {
    }
    return
  }
  func.func @transform_0(%arg0: i32, %arg1: i32) -> (i32, i32) {
    %c0_i32 = arith.constant 0 : i32
    return %arg0, %arg1 : i32, i32
  }
  func.func @transform_1(%arg0: i32, %arg1: i32) -> (i32, i32) {
    %c0_i32 = arith.constant 0 : i32
    %c0_i32_0 = arith.constant 0 : i32
    return %arg1, %c0_i32 : i32, i32
  }
  func.func @transform_2(%arg0: i32, %arg1: i32) -> (i32, i32) {
    %c0_i32 = arith.constant 0 : i32
    %c0_i32_0 = arith.constant 0 : i32
    %c0_i32_1 = arith.constant 0 : i32
    return %c0_i32, %c0_i32_0 : i32, i32
  }
  func.func @transform_3(%arg0: i32, %arg1: i32) -> (i32, i32) {
    %c0_i32 = arith.constant 0 : i32
    %c0_i32_0 = arith.constant 0 : i32
    return %arg0, %c0_i32 : i32, i32
  }
}

module attributes {stable_mosaic.version = 11 : i64} {
  func.func @_bn_stats_kernel(%arg0: i32, %arg1: memref<128x16xf32, #tpu.memory_space<vmem>>, %arg2: memref<1x16xf32, #tpu.memory_space<vmem>>, %arg3: memref<1x16xf32, #tpu.memory_space<vmem>>, %arg4: memref<1x16xf32, #tpu.memory_space<vmem>>, %arg5: memref<1x16xf32, #tpu.memory_space<vmem>>) attributes {dimension_semantics = [#tpu.dimension_semantics<arbitrary>], iteration_bounds = array<i64: 1>, scalar_prefetch = 0 : i64, scratch_operands = 2 : i64, tpu.core_type = #tpu.core_type<tc>, window_params = [{transform_indices = @transform_0, window_bounds = array<i64: 128, 16>}, {pipeline_mode = #tpu.pipeline_mode<synchronous>, transform_indices = @transform_1, window_bounds = array<i64: 1, 16>}, {pipeline_mode = #tpu.pipeline_mode<synchronous>, transform_indices = @transform_2, window_bounds = array<i64: 1, 16>}]} {
    %c0_i32 = arith.constant 0 : i32
    %0 = arith.cmpi eq, %arg0, %c0_i32 : i32
    %1 = arith.extui %0 : i1 to i32
    %c0_i32_0 = arith.constant 0 : i32
    %2 = arith.cmpi ne, %1, %c0_i32_0 : i32
    scf.if %2 {
      %cst_13 = arith.constant 0.000000e+00 : f32
      %18 = vector.broadcast %cst_13 : f32 to vector<1x16xf32>
      %c0_14 = arith.constant 0 : index
      %c0_15 = arith.constant 0 : index
      %19 = vector.load %arg4[%c0_14, %c0_15] : memref<1x16xf32, #tpu.memory_space<vmem>>, vector<1x16xf32>
      tpu.vector_store %arg4[%c0_14, %c0_15], %18 {strides = array<i32>} : memref<1x16xf32, #tpu.memory_space<vmem>>, vector<1x16xf32>,
      %cst_16 = arith.constant 0.000000e+00 : f32
      %20 = vector.broadcast %cst_16 : f32 to vector<1x16xf32>
      %c0_17 = arith.constant 0 : index
      %c0_18 = arith.constant 0 : index
      %21 = vector.load %arg5[%c0_17, %c0_18] : memref<1x16xf32, #tpu.memory_space<vmem>>, vector<1x16xf32>
      tpu.vector_store %arg5[%c0_17, %c0_18], %20 {strides = array<i32>} : memref<1x16xf32, #tpu.memory_space<vmem>>, vector<1x16xf32>,
    } else {
    }
    %c0 = arith.constant 0 : index
    %c0_1 = arith.constant 0 : index
    %3 = vector.load %arg1[%c0, %c0_1] : memref<128x16xf32, #tpu.memory_space<vmem>>, vector<128x16xf32>
    %c0_2 = arith.constant 0 : index
    %c0_3 = arith.constant 0 : index
    %4 = vector.load %arg4[%c0_2, %c0_3] : memref<1x16xf32, #tpu.memory_space<vmem>>, vector<1x16xf32>
    %cst = arith.constant dense<0.000000e+00> : vector<16xf32>
    %5 = vector.multi_reduction <add>, %3, %cst [0] : vector<128x16xf32> to vector<16xf32>
    %6 = vector.shape_cast %5 : vector<16xf32> to vector<1x16xf32>
    %7 = arith.addf %4, %6 : vector<1x16xf32>
    %c0_4 = arith.constant 0 : index
    %c0_5 = arith.constant 0 : index
    %8 = vector.load %arg4[%c0_4, %c0_5] : memref<1x16xf32, #tpu.memory_space<vmem>>, vector<1x16xf32>
    tpu.vector_store %arg4[%c0_4, %c0_5], %7 {strides = array<i32>} : memref<1x16xf32, #tpu.memory_space<vmem>>, vector<1x16xf32>,
    %c0_6 = arith.constant 0 : index
    %c0_7 = arith.constant 0 : index
    %9 = vector.load %arg5[%c0_6, %c0_7] : memref<1x16xf32, #tpu.memory_space<vmem>>, vector<1x16xf32>
    %10 = arith.mulf %3, %3 : vector<128x16xf32>
    %cst_8 = arith.constant dense<0.000000e+00> : vector<16xf32>
    %11 = vector.multi_reduction <add>, %10, %cst_8 [0] : vector<128x16xf32> to vector<16xf32>
    %12 = vector.shape_cast %11 : vector<16xf32> to vector<1x16xf32>
    %13 = arith.addf %9, %12 : vector<1x16xf32>
    %c0_9 = arith.constant 0 : index
    %c0_10 = arith.constant 0 : index
    %14 = vector.load %arg5[%c0_9, %c0_10] : memref<1x16xf32, #tpu.memory_space<vmem>>, vector<1x16xf32>
    tpu.vector_store %arg5[%c0_9, %c0_10], %13 {strides = array<i32>} : memref<1x16xf32, #tpu.memory_space<vmem>>, vector<1x16xf32>,
    %c0_i32_11 = arith.constant 0 : i32
    %15 = arith.cmpi eq, %arg0, %c0_i32_11 : i32
    %16 = arith.extui %15 : i1 to i32
    %c0_i32_12 = arith.constant 0 : i32
    %17 = arith.cmpi ne, %16, %c0_i32_12 : i32
    scf.if %17 {
      %c0_13 = arith.constant 0 : index
      %c0_14 = arith.constant 0 : index
      %18 = vector.load %arg4[%c0_13, %c0_14] : memref<1x16xf32, #tpu.memory_space<vmem>>, vector<1x16xf32>
      %c0_15 = arith.constant 0 : index
      %c0_16 = arith.constant 0 : index
      %19 = vector.load %arg2[%c0_15, %c0_16] : memref<1x16xf32, #tpu.memory_space<vmem>>, vector<1x16xf32>
      tpu.vector_store %arg2[%c0_15, %c0_16], %18 {strides = array<i32>} : memref<1x16xf32, #tpu.memory_space<vmem>>, vector<1x16xf32>,
      %c0_17 = arith.constant 0 : index
      %c0_18 = arith.constant 0 : index
      %20 = vector.load %arg5[%c0_17, %c0_18] : memref<1x16xf32, #tpu.memory_space<vmem>>, vector<1x16xf32>
      %c0_19 = arith.constant 0 : index
      %c0_20 = arith.constant 0 : index
      %21 = vector.load %arg3[%c0_19, %c0_20] : memref<1x16xf32, #tpu.memory_space<vmem>>, vector<1x16xf32>
      tpu.vector_store %arg3[%c0_19, %c0_20], %20 {strides = array<i32>} : memref<1x16xf32, #tpu.memory_space<vmem>>, vector<1x16xf32>,
    } else {
    }
    return
  }
  func.func @transform_0(%arg0: i32) -> (i32, i32) {
    %c0_i32 = arith.constant 0 : i32
    %c0_i32_0 = arith.constant 0 : i32
    return %arg0, %c0_i32 : i32, i32
  }
  func.func @transform_1(%arg0: i32) -> (i32, i32) {
    %c0_i32 = arith.constant 0 : i32
    %c0_i32_0 = arith.constant 0 : i32
    %c0_i32_1 = arith.constant 0 : i32
    return %c0_i32, %c0_i32_0 : i32, i32
  }
  func.func @transform_2(%arg0: i32) -> (i32, i32) {
    %c0_i32 = arith.constant 0 : i32
    %c0_i32_0 = arith.constant 0 : i32
    %c0_i32_1 = arith.constant 0 : i32
    return %c0_i32, %c0_i32_0 : i32, i32
  }
}

module attributes {stable_mosaic.version = 11 : i64} {
  func.func @_affine_kernel(%arg0: i32, %arg1: memref<128x16xf32, #tpu.memory_space<vmem>>, %arg2: memref<1x16xf32, #tpu.memory_space<vmem>>, %arg3: memref<1x16xf32, #tpu.memory_space<vmem>>, %arg4: memref<128x16xf32, #tpu.memory_space<vmem>>) attributes {dimension_semantics = [#tpu.dimension_semantics<parallel>], iteration_bounds = array<i64: 1>, scalar_prefetch = 0 : i64, scratch_operands = 0 : i64, tpu.core_type = #tpu.core_type<tc>, window_params = [{transform_indices = @transform_0, window_bounds = array<i64: 128, 16>}, {pipeline_mode = #tpu.pipeline_mode<synchronous>, transform_indices = @transform_1, window_bounds = array<i64: 1, 16>}, {pipeline_mode = #tpu.pipeline_mode<synchronous>, transform_indices = @transform_2, window_bounds = array<i64: 1, 16>}, {transform_indices = @transform_3, window_bounds = array<i64: 128, 16>}]} {
    %c0 = arith.constant 0 : index
    %c0_0 = arith.constant 0 : index
    %0 = vector.load %arg1[%c0, %c0_0] : memref<128x16xf32, #tpu.memory_space<vmem>>, vector<128x16xf32>
    %c0_1 = arith.constant 0 : index
    %c0_2 = arith.constant 0 : index
    %1 = vector.load %arg2[%c0_1, %c0_2] : memref<1x16xf32, #tpu.memory_space<vmem>>, vector<1x16xf32>
    %2 = vector.broadcast %1 : vector<1x16xf32> to vector<128x16xf32>
    %3 = arith.mulf %0, %2 : vector<128x16xf32>
    %c0_3 = arith.constant 0 : index
    %c0_4 = arith.constant 0 : index
    %4 = vector.load %arg3[%c0_3, %c0_4] : memref<1x16xf32, #tpu.memory_space<vmem>>, vector<1x16xf32>
    %5 = vector.broadcast %4 : vector<1x16xf32> to vector<128x16xf32>
    %6 = arith.addf %3, %5 : vector<128x16xf32>
    %c0_5 = arith.constant 0 : index
    %c0_6 = arith.constant 0 : index
    %7 = vector.load %arg4[%c0_5, %c0_6] : memref<128x16xf32, #tpu.memory_space<vmem>>, vector<128x16xf32>
    tpu.vector_store %arg4[%c0_5, %c0_6], %6 {strides = array<i32>} : memref<128x16xf32, #tpu.memory_space<vmem>>, vector<128x16xf32>,
    return
  }
  func.func @transform_0(%arg0: i32) -> (i32, i32) {
    %c0_i32 = arith.constant 0 : i32
    %c0_i32_0 = arith.constant 0 : i32
    return %arg0, %c0_i32 : i32, i32
  }
  func.func @transform_1(%arg0: i32) -> (i32, i32) {
    %c0_i32 = arith.constant 0 : i32
    %c0_i32_0 = arith.constant 0 : i32
    %c0_i32_1 = arith.constant 0 : i32
    return %c0_i32, %c0_i32_0 : i32, i32
  }
  func.func @transform_2(%arg0: i32) -> (i32, i32) {
    %c0_i32 = arith.constant 0 : i32
    %c0_i32_0 = arith.constant 0 : i32
    %c0_i32_1 = arith.constant 0 : i32
    return %c0_i32, %c0_i32_0 : i32, i32
  }
  func.func @transform_3(%arg0: i32) -> (i32, i32) {
    %c0_i32 = arith.constant 0 : i32
    %c0_i32_0 = arith.constant 0 : i32
    return %arg0, %c0_i32 : i32, i32
  }
}

module attributes {stable_mosaic.version = 11 : i64} {
  func.func @_bn_stats_kernel(%arg0: i32, %arg1: memref<32x32xf32, #tpu.memory_space<vmem>>, %arg2: memref<1x32xf32, #tpu.memory_space<vmem>>, %arg3: memref<1x32xf32, #tpu.memory_space<vmem>>, %arg4: memref<1x32xf32, #tpu.memory_space<vmem>>, %arg5: memref<1x32xf32, #tpu.memory_space<vmem>>) attributes {dimension_semantics = [#tpu.dimension_semantics<arbitrary>], iteration_bounds = array<i64: 1>, scalar_prefetch = 0 : i64, scratch_operands = 2 : i64, tpu.core_type = #tpu.core_type<tc>, window_params = [{transform_indices = @transform_0, window_bounds = array<i64: 32, 32>}, {pipeline_mode = #tpu.pipeline_mode<synchronous>, transform_indices = @transform_1, window_bounds = array<i64: 1, 32>}, {pipeline_mode = #tpu.pipeline_mode<synchronous>, transform_indices = @transform_2, window_bounds = array<i64: 1, 32>}]} {
    %c0_i32 = arith.constant 0 : i32
    %0 = arith.cmpi eq, %arg0, %c0_i32 : i32
    %1 = arith.extui %0 : i1 to i32
    %c0_i32_0 = arith.constant 0 : i32
    %2 = arith.cmpi ne, %1, %c0_i32_0 : i32
    scf.if %2 {
      %cst_13 = arith.constant 0.000000e+00 : f32
      %18 = vector.broadcast %cst_13 : f32 to vector<1x32xf32>
      %c0_14 = arith.constant 0 : index
      %c0_15 = arith.constant 0 : index
      %19 = vector.load %arg4[%c0_14, %c0_15] : memref<1x32xf32, #tpu.memory_space<vmem>>, vector<1x32xf32>
      tpu.vector_store %arg4[%c0_14, %c0_15], %18 {strides = array<i32>} : memref<1x32xf32, #tpu.memory_space<vmem>>, vector<1x32xf32>,
      %cst_16 = arith.constant 0.000000e+00 : f32
      %20 = vector.broadcast %cst_16 : f32 to vector<1x32xf32>
      %c0_17 = arith.constant 0 : index
      %c0_18 = arith.constant 0 : index
      %21 = vector.load %arg5[%c0_17, %c0_18] : memref<1x32xf32, #tpu.memory_space<vmem>>, vector<1x32xf32>
      tpu.vector_store %arg5[%c0_17, %c0_18], %20 {strides = array<i32>} : memref<1x32xf32, #tpu.memory_space<vmem>>, vector<1x32xf32>,
    } else {
    }
    %c0 = arith.constant 0 : index
    %c0_1 = arith.constant 0 : index
    %3 = vector.load %arg1[%c0, %c0_1] : memref<32x32xf32, #tpu.memory_space<vmem>>, vector<32x32xf32>
    %c0_2 = arith.constant 0 : index
    %c0_3 = arith.constant 0 : index
    %4 = vector.load %arg4[%c0_2, %c0_3] : memref<1x32xf32, #tpu.memory_space<vmem>>, vector<1x32xf32>
    %cst = arith.constant dense<0.000000e+00> : vector<32xf32>
    %5 = vector.multi_reduction <add>, %3, %cst [0] : vector<32x32xf32> to vector<32xf32>
    %6 = vector.shape_cast %5 : vector<32xf32> to vector<1x32xf32>
    %7 = arith.addf %4, %6 : vector<1x32xf32>
    %c0_4 = arith.constant 0 : index
    %c0_5 = arith.constant 0 : index
    %8 = vector.load %arg4[%c0_4, %c0_5] : memref<1x32xf32, #tpu.memory_space<vmem>>, vector<1x32xf32>
    tpu.vector_store %arg4[%c0_4, %c0_5], %7 {strides = array<i32>} : memref<1x32xf32, #tpu.memory_space<vmem>>, vector<1x32xf32>,
    %c0_6 = arith.constant 0 : index
    %c0_7 = arith.constant 0 : index
    %9 = vector.load %arg5[%c0_6, %c0_7] : memref<1x32xf32, #tpu.memory_space<vmem>>, vector<1x32xf32>
    %10 = arith.mulf %3, %3 : vector<32x32xf32>
    %cst_8 = arith.constant dense<0.000000e+00> : vector<32xf32>
    %11 = vector.multi_reduction <add>, %10, %cst_8 [0] : vector<32x32xf32> to vector<32xf32>
    %12 = vector.shape_cast %11 : vector<32xf32> to vector<1x32xf32>
    %13 = arith.addf %9, %12 : vector<1x32xf32>
    %c0_9 = arith.constant 0 : index
    %c0_10 = arith.constant 0 : index
    %14 = vector.load %arg5[%c0_9, %c0_10] : memref<1x32xf32, #tpu.memory_space<vmem>>, vector<1x32xf32>
    tpu.vector_store %arg5[%c0_9, %c0_10], %13 {strides = array<i32>} : memref<1x32xf32, #tpu.memory_space<vmem>>, vector<1x32xf32>,
    %c0_i32_11 = arith.constant 0 : i32
    %15 = arith.cmpi eq, %arg0, %c0_i32_11 : i32
    %16 = arith.extui %15 : i1 to i32
    %c0_i32_12 = arith.constant 0 : i32
    %17 = arith.cmpi ne, %16, %c0_i32_12 : i32
    scf.if %17 {
      %c0_13 = arith.constant 0 : index
      %c0_14 = arith.constant 0 : index
      %18 = vector.load %arg4[%c0_13, %c0_14] : memref<1x32xf32, #tpu.memory_space<vmem>>, vector<1x32xf32>
      %c0_15 = arith.constant 0 : index
      %c0_16 = arith.constant 0 : index
      %19 = vector.load %arg2[%c0_15, %c0_16] : memref<1x32xf32, #tpu.memory_space<vmem>>, vector<1x32xf32>
      tpu.vector_store %arg2[%c0_15, %c0_16], %18 {strides = array<i32>} : memref<1x32xf32, #tpu.memory_space<vmem>>, vector<1x32xf32>,
      %c0_17 = arith.constant 0 : index
      %c0_18 = arith.constant 0 : index
      %20 = vector.load %arg5[%c0_17, %c0_18] : memref<1x32xf32, #tpu.memory_space<vmem>>, vector<1x32xf32>
      %c0_19 = arith.constant 0 : index
      %c0_20 = arith.constant 0 : index
      %21 = vector.load %arg3[%c0_19, %c0_20] : memref<1x32xf32, #tpu.memory_space<vmem>>, vector<1x32xf32>
      tpu.vector_store %arg3[%c0_19, %c0_20], %20 {strides = array<i32>} : memref<1x32xf32, #tpu.memory_space<vmem>>, vector<1x32xf32>,
    } else {
    }
    return
  }
  func.func @transform_0(%arg0: i32) -> (i32, i32) {
    %c0_i32 = arith.constant 0 : i32
    %c0_i32_0 = arith.constant 0 : i32
    return %arg0, %c0_i32 : i32, i32
  }
  func.func @transform_1(%arg0: i32) -> (i32, i32) {
    %c0_i32 = arith.constant 0 : i32
    %c0_i32_0 = arith.constant 0 : i32
    %c0_i32_1 = arith.constant 0 : i32
    return %c0_i32, %c0_i32_0 : i32, i32
  }
  func.func @transform_2(%arg0: i32) -> (i32, i32) {
    %c0_i32 = arith.constant 0 : i32
    %c0_i32_0 = arith.constant 0 : i32
    %c0_i32_1 = arith.constant 0 : i32
    return %c0_i32, %c0_i32_0 : i32, i32
  }
}

module attributes {stable_mosaic.version = 11 : i64} {
  func.func @_affine_kernel(%arg0: i32, %arg1: memref<32x32xf32, #tpu.memory_space<vmem>>, %arg2: memref<1x32xf32, #tpu.memory_space<vmem>>, %arg3: memref<1x32xf32, #tpu.memory_space<vmem>>, %arg4: memref<32x32xf32, #tpu.memory_space<vmem>>) attributes {dimension_semantics = [#tpu.dimension_semantics<parallel>], iteration_bounds = array<i64: 1>, scalar_prefetch = 0 : i64, scratch_operands = 0 : i64, tpu.core_type = #tpu.core_type<tc>, window_params = [{transform_indices = @transform_0, window_bounds = array<i64: 32, 32>}, {pipeline_mode = #tpu.pipeline_mode<synchronous>, transform_indices = @transform_1, window_bounds = array<i64: 1, 32>}, {pipeline_mode = #tpu.pipeline_mode<synchronous>, transform_indices = @transform_2, window_bounds = array<i64: 1, 32>}, {transform_indices = @transform_3, window_bounds = array<i64: 32, 32>}]} {
    %c0 = arith.constant 0 : index
    %c0_0 = arith.constant 0 : index
    %0 = vector.load %arg1[%c0, %c0_0] : memref<32x32xf32, #tpu.memory_space<vmem>>, vector<32x32xf32>
    %c0_1 = arith.constant 0 : index
    %c0_2 = arith.constant 0 : index
    %1 = vector.load %arg2[%c0_1, %c0_2] : memref<1x32xf32, #tpu.memory_space<vmem>>, vector<1x32xf32>
    %2 = vector.broadcast %1 : vector<1x32xf32> to vector<32x32xf32>
    %3 = arith.mulf %0, %2 : vector<32x32xf32>
    %c0_3 = arith.constant 0 : index
    %c0_4 = arith.constant 0 : index
    %4 = vector.load %arg3[%c0_3, %c0_4] : memref<1x32xf32, #tpu.memory_space<vmem>>, vector<1x32xf32>
    %5 = vector.broadcast %4 : vector<1x32xf32> to vector<32x32xf32>
    %6 = arith.addf %3, %5 : vector<32x32xf32>
    %c0_5 = arith.constant 0 : index
    %c0_6 = arith.constant 0 : index
    %7 = vector.load %arg4[%c0_5, %c0_6] : memref<32x32xf32, #tpu.memory_space<vmem>>, vector<32x32xf32>
    tpu.vector_store %arg4[%c0_5, %c0_6], %6 {strides = array<i32>} : memref<32x32xf32, #tpu.memory_space<vmem>>, vector<32x32xf32>,
    return
  }
  func.func @transform_0(%arg0: i32) -> (i32, i32) {
    %c0_i32 = arith.constant 0 : i32
    %c0_i32_0 = arith.constant 0 : i32
    return %arg0, %c0_i32 : i32, i32
  }
  func.func @transform_1(%arg0: i32) -> (i32, i32) {
    %c0_i32 = arith.constant 0 : i32
    %c0_i32_0 = arith.constant 0 : i32
    %c0_i32_1 = arith.constant 0 : i32
    return %c0_i32, %c0_i32_0 : i32, i32
  }
  func.func @transform_2(%arg0: i32) -> (i32, i32) {
    %c0_i32 = arith.constant 0 : i32
    %c0_i32_0 = arith.constant 0 : i32
    %c0_i32_1 = arith.constant 0 : i32
    return %c0_i32, %c0_i32_0 : i32, i32
  }
  func.func @transform_3(%arg0: i32) -> (i32, i32) {
    %c0_i32 = arith.constant 0 : i32
    %c0_i32_0 = arith.constant 0 : i32
    return %arg0, %c0_i32 : i32, i32
  }
}

module attributes {stable_mosaic.version = 11 : i64} {
  func.func @_matmul_kernel(%arg0: i32, %arg1: i32, %arg2: memref<32x256xbf16, #tpu.memory_space<vmem>>, %arg3: memref<256x128xbf16, #tpu.memory_space<vmem>>, %arg4: memref<1x128xf32, #tpu.memory_space<vmem>>, %arg5: memref<32x128xf32, #tpu.memory_space<vmem>>, %arg6: memref<32x128xf32, #tpu.memory_space<vmem>>) attributes {dimension_semantics = [#tpu.dimension_semantics<parallel>, #tpu.dimension_semantics<arbitrary>], iteration_bounds = array<i64: 1, 1>, scalar_prefetch = 0 : i64, scratch_operands = 1 : i64, tpu.core_type = #tpu.core_type<tc>, window_params = [{transform_indices = @transform_0, window_bounds = array<i64: 32, 256>}, {transform_indices = @transform_1, window_bounds = array<i64: 256, 128>}, {pipeline_mode = #tpu.pipeline_mode<synchronous>, transform_indices = @transform_2, window_bounds = array<i64: 1, 128>}, {transform_indices = @transform_3, window_bounds = array<i64: 32, 128>}]} {
    %c0_i32 = arith.constant 0 : i32
    %0 = arith.cmpi eq, %arg1, %c0_i32 : i32
    %1 = arith.extui %0 : i1 to i32
    %c0_i32_0 = arith.constant 0 : i32
    %2 = arith.cmpi ne, %1, %c0_i32_0 : i32
    scf.if %2 {
      %cst_12 = arith.constant 0.000000e+00 : f32
      %19 = vector.broadcast %cst_12 : f32 to vector<32x128xf32>
      %c0_13 = arith.constant 0 : index
      %c0_14 = arith.constant 0 : index
      %20 = vector.load %arg6[%c0_13, %c0_14] : memref<32x128xf32, #tpu.memory_space<vmem>>, vector<32x128xf32>
      tpu.vector_store %arg6[%c0_13, %c0_14], %19 {strides = array<i32>} : memref<32x128xf32, #tpu.memory_space<vmem>>, vector<32x128xf32>,
    } else {
    }
    %c0 = arith.constant 0 : index
    %c0_1 = arith.constant 0 : index
    %3 = vector.load %arg2[%c0, %c0_1] : memref<32x256xbf16, #tpu.memory_space<vmem>>, vector<32x256xbf16>
    %4 = arith.extf %3 : vector<32x256xbf16> to vector<32x256xf32>
    %cst = arith.constant 0.000000e+00 : f32
    %5 = vector.broadcast %cst : f32 to vector<32x256xf32>
    %6 = arith.cmpf ogt, %4, %5 : vector<32x256xf32>
    %cst_2 = arith.constant 2.000000e-01 : f32
    %7 = vector.broadcast %cst_2 : f32 to vector<32x256xf32>
    %8 = arith.mulf %7, %4 : vector<32x256xf32>
    %9 = arith.select %6, %4, %8 : vector<32x256xi1>, vector<32x256xf32>
    %c0_3 = arith.constant 0 : index
    %c0_4 = arith.constant 0 : index
    %10 = vector.load %arg6[%c0_3, %c0_4] : memref<32x128xf32, #tpu.memory_space<vmem>>, vector<32x128xf32>
    %11 = arith.truncf %9 : vector<32x256xf32> to vector<32x256xbf16>
    %c0_5 = arith.constant 0 : index
    %c0_6 = arith.constant 0 : index
    %12 = vector.load %arg3[%c0_5, %c0_6] : memref<256x128xbf16, #tpu.memory_space<vmem>>, vector<256x128xbf16>
    %cst_7 = arith.constant dense<0.000000e+00> : vector<32x128xf32>
    %13 = tpu.matmul %11, %12, %cst_7 {dimension_numbers = #tpu.dot_dimension_numbers<[1], [0], [0], [1], [0, 0, 1, 1], [], []>} : vector<32x256xbf16>, vector<256x128xbf16>, vector<32x128xf32> -> vector<32x128xf32>
    %14 = arith.addf %10, %13 : vector<32x128xf32>
    %c0_8 = arith.constant 0 : index
    %c0_9 = arith.constant 0 : index
    %15 = vector.load %arg6[%c0_8, %c0_9] : memref<32x128xf32, #tpu.memory_space<vmem>>, vector<32x128xf32>
    tpu.vector_store %arg6[%c0_8, %c0_9], %14 {strides = array<i32>} : memref<32x128xf32, #tpu.memory_space<vmem>>, vector<32x128xf32>,
    %c0_i32_10 = arith.constant 0 : i32
    %16 = arith.cmpi eq, %arg1, %c0_i32_10 : i32
    %17 = arith.extui %16 : i1 to i32
    %c0_i32_11 = arith.constant 0 : i32
    %18 = arith.cmpi ne, %17, %c0_i32_11 : i32
    scf.if %18 {
      %c0_12 = arith.constant 0 : index
      %c0_13 = arith.constant 0 : index
      %19 = vector.load %arg6[%c0_12, %c0_13] : memref<32x128xf32, #tpu.memory_space<vmem>>, vector<32x128xf32>
      %c0_14 = arith.constant 0 : index
      %c0_15 = arith.constant 0 : index
      %20 = vector.load %arg4[%c0_14, %c0_15] : memref<1x128xf32, #tpu.memory_space<vmem>>, vector<1x128xf32>
      %21 = vector.broadcast %20 : vector<1x128xf32> to vector<32x128xf32>
      %22 = arith.addf %19, %21 : vector<32x128xf32>
      %c0_16 = arith.constant 0 : index
      %c0_17 = arith.constant 0 : index
      %23 = vector.load %arg5[%c0_16, %c0_17] : memref<32x128xf32, #tpu.memory_space<vmem>>, vector<32x128xf32>
      tpu.vector_store %arg5[%c0_16, %c0_17], %22 {strides = array<i32>} : memref<32x128xf32, #tpu.memory_space<vmem>>, vector<32x128xf32>,
    } else {
    }
    return
  }
  func.func @transform_0(%arg0: i32, %arg1: i32) -> (i32, i32) {
    %c0_i32 = arith.constant 0 : i32
    return %arg0, %arg1 : i32, i32
  }
  func.func @transform_1(%arg0: i32, %arg1: i32) -> (i32, i32) {
    %c0_i32 = arith.constant 0 : i32
    %c0_i32_0 = arith.constant 0 : i32
    return %arg1, %c0_i32 : i32, i32
  }
  func.func @transform_2(%arg0: i32, %arg1: i32) -> (i32, i32) {
    %c0_i32 = arith.constant 0 : i32
    %c0_i32_0 = arith.constant 0 : i32
    %c0_i32_1 = arith.constant 0 : i32
    return %c0_i32, %c0_i32_0 : i32, i32
  }
  func.func @transform_3(%arg0: i32, %arg1: i32) -> (i32, i32) {
    %c0_i32 = arith.constant 0 : i32
    %c0_i32_0 = arith.constant 0 : i32
    return %arg0, %c0_i32 : i32, i32
  }
}

module attributes {stable_mosaic.version = 11 : i64} {
  func.func @_affine_kernel(%arg0: i32, %arg1: memref<8x64xf32, #tpu.memory_space<vmem>>, %arg2: memref<1x64xf32, #tpu.memory_space<vmem>>, %arg3: memref<1x64xf32, #tpu.memory_space<vmem>>, %arg4: memref<8x64xf32, #tpu.memory_space<vmem>>) attributes {dimension_semantics = [#tpu.dimension_semantics<parallel>], iteration_bounds = array<i64: 1>, scalar_prefetch = 0 : i64, scratch_operands = 0 : i64, tpu.core_type = #tpu.core_type<tc>, window_params = [{transform_indices = @transform_0, window_bounds = array<i64: 8, 64>}, {pipeline_mode = #tpu.pipeline_mode<synchronous>, transform_indices = @transform_1, window_bounds = array<i64: 1, 64>}, {pipeline_mode = #tpu.pipeline_mode<synchronous>, transform_indices = @transform_2, window_bounds = array<i64: 1, 64>}, {transform_indices = @transform_3, window_bounds = array<i64: 8, 64>}]} {
    %c0 = arith.constant 0 : index
    %c0_0 = arith.constant 0 : index
    %0 = vector.load %arg1[%c0, %c0_0] : memref<8x64xf32, #tpu.memory_space<vmem>>, vector<8x64xf32>
    %c0_1 = arith.constant 0 : index
    %c0_2 = arith.constant 0 : index
    %1 = vector.load %arg2[%c0_1, %c0_2] : memref<1x64xf32, #tpu.memory_space<vmem>>, vector<1x64xf32>
    %2 = vector.broadcast %1 : vector<1x64xf32> to vector<8x64xf32>
    %3 = arith.mulf %0, %2 : vector<8x64xf32>
    %c0_3 = arith.constant 0 : index
    %c0_4 = arith.constant 0 : index
    %4 = vector.load %arg3[%c0_3, %c0_4] : memref<1x64xf32, #tpu.memory_space<vmem>>, vector<1x64xf32>
    %5 = vector.broadcast %4 : vector<1x64xf32> to vector<8x64xf32>
    %6 = arith.addf %3, %5 : vector<8x64xf32>
    %c0_5 = arith.constant 0 : index
    %c0_6 = arith.constant 0 : index
    %7 = vector.load %arg4[%c0_5, %c0_6] : memref<8x64xf32, #tpu.memory_space<vmem>>, vector<8x64xf32>
    tpu.vector_store %arg4[%c0_5, %c0_6], %6 {strides = array<i32>} : memref<8x64xf32, #tpu.memory_space<vmem>>, vector<8x64xf32>,
    return
  }
  func.func @transform_0(%arg0: i32) -> (i32, i32) {
    %c0_i32 = arith.constant 0 : i32
    %c0_i32_0 = arith.constant 0 : i32
    return %arg0, %c0_i32 : i32, i32
  }
  func.func @transform_1(%arg0: i32) -> (i32, i32) {
    %c0_i32 = arith.constant 0 : i32
    %c0_i32_0 = arith.constant 0 : i32
    %c0_i32_1 = arith.constant 0 : i32
    return %c0_i32, %c0_i32_0 : i32, i32
  }
  func.func @transform_2(%arg0: i32) -> (i32, i32) {
    %c0_i32 = arith.constant 0 : i32
    %c0_i32_0 = arith.constant 0 : i32
    %c0_i32_1 = arith.constant 0 : i32
    return %c0_i32, %c0_i32_0 : i32, i32
  }
  func.func @transform_3(%arg0: i32) -> (i32, i32) {
    %c0_i32 = arith.constant 0 : i32
    %c0_i32_0 = arith.constant 0 : i32
    return %arg0, %c0_i32 : i32, i32
  }
}

module attributes {stable_mosaic.version = 11 : i64} {
  func.func @_bn_stats_kernel(%arg0: i32, %arg1: memref<8x64xf32, #tpu.memory_space<vmem>>, %arg2: memref<1x64xf32, #tpu.memory_space<vmem>>, %arg3: memref<1x64xf32, #tpu.memory_space<vmem>>, %arg4: memref<1x64xf32, #tpu.memory_space<vmem>>, %arg5: memref<1x64xf32, #tpu.memory_space<vmem>>) attributes {dimension_semantics = [#tpu.dimension_semantics<arbitrary>], iteration_bounds = array<i64: 1>, scalar_prefetch = 0 : i64, scratch_operands = 2 : i64, tpu.core_type = #tpu.core_type<tc>, window_params = [{transform_indices = @transform_0, window_bounds = array<i64: 8, 64>}, {pipeline_mode = #tpu.pipeline_mode<synchronous>, transform_indices = @transform_1, window_bounds = array<i64: 1, 64>}, {pipeline_mode = #tpu.pipeline_mode<synchronous>, transform_indices = @transform_2, window_bounds = array<i64: 1, 64>}]} {
    %c0_i32 = arith.constant 0 : i32
    %0 = arith.cmpi eq, %arg0, %c0_i32 : i32
    %1 = arith.extui %0 : i1 to i32
    %c0_i32_0 = arith.constant 0 : i32
    %2 = arith.cmpi ne, %1, %c0_i32_0 : i32
    scf.if %2 {
      %cst_13 = arith.constant 0.000000e+00 : f32
      %18 = vector.broadcast %cst_13 : f32 to vector<1x64xf32>
      %c0_14 = arith.constant 0 : index
      %c0_15 = arith.constant 0 : index
      %19 = vector.load %arg4[%c0_14, %c0_15] : memref<1x64xf32, #tpu.memory_space<vmem>>, vector<1x64xf32>
      tpu.vector_store %arg4[%c0_14, %c0_15], %18 {strides = array<i32>} : memref<1x64xf32, #tpu.memory_space<vmem>>, vector<1x64xf32>,
      %cst_16 = arith.constant 0.000000e+00 : f32
      %20 = vector.broadcast %cst_16 : f32 to vector<1x64xf32>
      %c0_17 = arith.constant 0 : index
      %c0_18 = arith.constant 0 : index
      %21 = vector.load %arg5[%c0_17, %c0_18] : memref<1x64xf32, #tpu.memory_space<vmem>>, vector<1x64xf32>
      tpu.vector_store %arg5[%c0_17, %c0_18], %20 {strides = array<i32>} : memref<1x64xf32, #tpu.memory_space<vmem>>, vector<1x64xf32>,
    } else {
    }
    %c0 = arith.constant 0 : index
    %c0_1 = arith.constant 0 : index
    %3 = vector.load %arg1[%c0, %c0_1] : memref<8x64xf32, #tpu.memory_space<vmem>>, vector<8x64xf32>
    %c0_2 = arith.constant 0 : index
    %c0_3 = arith.constant 0 : index
    %4 = vector.load %arg4[%c0_2, %c0_3] : memref<1x64xf32, #tpu.memory_space<vmem>>, vector<1x64xf32>
    %cst = arith.constant dense<0.000000e+00> : vector<64xf32>
    %5 = vector.multi_reduction <add>, %3, %cst [0] : vector<8x64xf32> to vector<64xf32>
    %6 = vector.shape_cast %5 : vector<64xf32> to vector<1x64xf32>
    %7 = arith.addf %4, %6 : vector<1x64xf32>
    %c0_4 = arith.constant 0 : index
    %c0_5 = arith.constant 0 : index
    %8 = vector.load %arg4[%c0_4, %c0_5] : memref<1x64xf32, #tpu.memory_space<vmem>>, vector<1x64xf32>
    tpu.vector_store %arg4[%c0_4, %c0_5], %7 {strides = array<i32>} : memref<1x64xf32, #tpu.memory_space<vmem>>, vector<1x64xf32>,
    %c0_6 = arith.constant 0 : index
    %c0_7 = arith.constant 0 : index
    %9 = vector.load %arg5[%c0_6, %c0_7] : memref<1x64xf32, #tpu.memory_space<vmem>>, vector<1x64xf32>
    %10 = arith.mulf %3, %3 : vector<8x64xf32>
    %cst_8 = arith.constant dense<0.000000e+00> : vector<64xf32>
    %11 = vector.multi_reduction <add>, %10, %cst_8 [0] : vector<8x64xf32> to vector<64xf32>
    %12 = vector.shape_cast %11 : vector<64xf32> to vector<1x64xf32>
    %13 = arith.addf %9, %12 : vector<1x64xf32>
    %c0_9 = arith.constant 0 : index
    %c0_10 = arith.constant 0 : index
    %14 = vector.load %arg5[%c0_9, %c0_10] : memref<1x64xf32, #tpu.memory_space<vmem>>, vector<1x64xf32>
    tpu.vector_store %arg5[%c0_9, %c0_10], %13 {strides = array<i32>} : memref<1x64xf32, #tpu.memory_space<vmem>>, vector<1x64xf32>,
    %c0_i32_11 = arith.constant 0 : i32
    %15 = arith.cmpi eq, %arg0, %c0_i32_11 : i32
    %16 = arith.extui %15 : i1 to i32
    %c0_i32_12 = arith.constant 0 : i32
    %17 = arith.cmpi ne, %16, %c0_i32_12 : i32
    scf.if %17 {
      %c0_13 = arith.constant 0 : index
      %c0_14 = arith.constant 0 : index
      %18 = vector.load %arg4[%c0_13, %c0_14] : memref<1x64xf32, #tpu.memory_space<vmem>>, vector<1x64xf32>
      %c0_15 = arith.constant 0 : index
      %c0_16 = arith.constant 0 : index
      %19 = vector.load %arg2[%c0_15, %c0_16] : memref<1x64xf32, #tpu.memory_space<vmem>>, vector<1x64xf32>
      tpu.vector_store %arg2[%c0_15, %c0_16], %18 {strides = array<i32>} : memref<1x64xf32, #tpu.memory_space<vmem>>, vector<1x64xf32>,
      %c0_17 = arith.constant 0 : index
      %c0_18 = arith.constant 0 : index
      %20 = vector.load %arg5[%c0_17, %c0_18] : memref<1x64xf32, #tpu.memory_space<vmem>>, vector<1x64xf32>
      %c0_19 = arith.constant 0 : index
      %c0_20 = arith.constant 0 : index
      %21 = vector.load %arg3[%c0_19, %c0_20] : memref<1x64xf32, #tpu.memory_space<vmem>>, vector<1x64xf32>
      tpu.vector_store %arg3[%c0_19, %c0_20], %20 {strides = array<i32>} : memref<1x64xf32, #tpu.memory_space<vmem>>, vector<1x64xf32>,
    } else {
    }
    return
  }
  func.func @transform_0(%arg0: i32) -> (i32, i32) {
    %c0_i32 = arith.constant 0 : i32
    %c0_i32_0 = arith.constant 0 : i32
    return %arg0, %c0_i32 : i32, i32
  }
  func.func @transform_1(%arg0: i32) -> (i32, i32) {
    %c0_i32 = arith.constant 0 : i32
    %c0_i32_0 = arith.constant 0 : i32
    %c0_i32_1 = arith.constant 0 : i32
    return %c0_i32, %c0_i32_0 : i32, i32
  }
  func.func @transform_2(%arg0: i32) -> (i32, i32) {
    %c0_i32 = arith.constant 0 : i32
    %c0_i32_0 = arith.constant 0 : i32
    %c0_i32_1 = arith.constant 0 : i32
    return %c0_i32, %c0_i32_0 : i32, i32
  }
}

module attributes {stable_mosaic.version = 11 : i64} {
  func.func @_matmul_kernel(%arg0: i32, %arg1: i32, %arg2: memref<8x512xbf16, #tpu.memory_space<vmem>>, %arg3: memref<512x128xbf16, #tpu.memory_space<vmem>>, %arg4: memref<1x128xf32, #tpu.memory_space<vmem>>, %arg5: memref<8x128xf32, #tpu.memory_space<vmem>>, %arg6: memref<8x128xf32, #tpu.memory_space<vmem>>) attributes {dimension_semantics = [#tpu.dimension_semantics<parallel>, #tpu.dimension_semantics<arbitrary>], iteration_bounds = array<i64: 1, 1>, scalar_prefetch = 0 : i64, scratch_operands = 1 : i64, tpu.core_type = #tpu.core_type<tc>, window_params = [{transform_indices = @transform_0, window_bounds = array<i64: 8, 512>}, {transform_indices = @transform_1, window_bounds = array<i64: 512, 128>}, {pipeline_mode = #tpu.pipeline_mode<synchronous>, transform_indices = @transform_2, window_bounds = array<i64: 1, 128>}, {transform_indices = @transform_3, window_bounds = array<i64: 8, 128>}]} {
    %c0_i32 = arith.constant 0 : i32
    %0 = arith.cmpi eq, %arg1, %c0_i32 : i32
    %1 = arith.extui %0 : i1 to i32
    %c0_i32_0 = arith.constant 0 : i32
    %2 = arith.cmpi ne, %1, %c0_i32_0 : i32
    scf.if %2 {
      %cst_12 = arith.constant 0.000000e+00 : f32
      %19 = vector.broadcast %cst_12 : f32 to vector<8x128xf32>
      %c0_13 = arith.constant 0 : index
      %c0_14 = arith.constant 0 : index
      %20 = vector.load %arg6[%c0_13, %c0_14] : memref<8x128xf32, #tpu.memory_space<vmem>>, vector<8x128xf32>
      tpu.vector_store %arg6[%c0_13, %c0_14], %19 {strides = array<i32>} : memref<8x128xf32, #tpu.memory_space<vmem>>, vector<8x128xf32>,
    } else {
    }
    %c0 = arith.constant 0 : index
    %c0_1 = arith.constant 0 : index
    %3 = vector.load %arg2[%c0, %c0_1] : memref<8x512xbf16, #tpu.memory_space<vmem>>, vector<8x512xbf16>
    %4 = arith.extf %3 : vector<8x512xbf16> to vector<8x512xf32>
    %cst = arith.constant 0.000000e+00 : f32
    %5 = vector.broadcast %cst : f32 to vector<8x512xf32>
    %6 = arith.cmpf ogt, %4, %5 : vector<8x512xf32>
    %cst_2 = arith.constant 2.000000e-01 : f32
    %7 = vector.broadcast %cst_2 : f32 to vector<8x512xf32>
    %8 = arith.mulf %7, %4 : vector<8x512xf32>
    %9 = arith.select %6, %4, %8 : vector<8x512xi1>, vector<8x512xf32>
    %c0_3 = arith.constant 0 : index
    %c0_4 = arith.constant 0 : index
    %10 = vector.load %arg6[%c0_3, %c0_4] : memref<8x128xf32, #tpu.memory_space<vmem>>, vector<8x128xf32>
    %11 = arith.truncf %9 : vector<8x512xf32> to vector<8x512xbf16>
    %c0_5 = arith.constant 0 : index
    %c0_6 = arith.constant 0 : index
    %12 = vector.load %arg3[%c0_5, %c0_6] : memref<512x128xbf16, #tpu.memory_space<vmem>>, vector<512x128xbf16>
    %cst_7 = arith.constant dense<0.000000e+00> : vector<8x128xf32>
    %13 = tpu.matmul %11, %12, %cst_7 {dimension_numbers = #tpu.dot_dimension_numbers<[1], [0], [0], [1], [0, 0, 1, 1], [], []>} : vector<8x512xbf16>, vector<512x128xbf16>, vector<8x128xf32> -> vector<8x128xf32>
    %14 = arith.addf %10, %13 : vector<8x128xf32>
    %c0_8 = arith.constant 0 : index
    %c0_9 = arith.constant 0 : index
    %15 = vector.load %arg6[%c0_8, %c0_9] : memref<8x128xf32, #tpu.memory_space<vmem>>, vector<8x128xf32>
    tpu.vector_store %arg6[%c0_8, %c0_9], %14 {strides = array<i32>} : memref<8x128xf32, #tpu.memory_space<vmem>>, vector<8x128xf32>,
    %c0_i32_10 = arith.constant 0 : i32
    %16 = arith.cmpi eq, %arg1, %c0_i32_10 : i32
    %17 = arith.extui %16 : i1 to i32
    %c0_i32_11 = arith.constant 0 : i32
    %18 = arith.cmpi ne, %17, %c0_i32_11 : i32
    scf.if %18 {
      %c0_12 = arith.constant 0 : index
      %c0_13 = arith.constant 0 : index
      %19 = vector.load %arg6[%c0_12, %c0_13] : memref<8x128xf32, #tpu.memory_space<vmem>>, vector<8x128xf32>
      %c0_14 = arith.constant 0 : index
      %c0_15 = arith.constant 0 : index
      %20 = vector.load %arg4[%c0_14, %c0_15] : memref<1x128xf32, #tpu.memory_space<vmem>>, vector<1x128xf32>
      %21 = vector.broadcast %20 : vector<1x128xf32> to vector<8x128xf32>
      %22 = arith.addf %19, %21 : vector<8x128xf32>
      %c0_16 = arith.constant 0 : index
      %c0_17 = arith.constant 0 : index
      %23 = vector.load %arg5[%c0_16, %c0_17] : memref<8x128xf32, #tpu.memory_space<vmem>>, vector<8x128xf32>
      tpu.vector_store %arg5[%c0_16, %c0_17], %22 {strides = array<i32>} : memref<8x128xf32, #tpu.memory_space<vmem>>, vector<8x128xf32>,
    } else {
    }
    return
  }
  func.func @transform_0(%arg0: i32, %arg1: i32) -> (i32, i32) {
    %c0_i32 = arith.constant 0 : i32
    return %arg0, %arg1 : i32, i32
  }
  func.func @transform_1(%arg0: i32, %arg1: i32) -> (i32, i32) {
    %c0_i32 = arith.constant 0 : i32
    %c0_i32_0 = arith.constant 0 : i32
    return %arg1, %c0_i32 : i32, i32
  }
  func.func @transform_2(%arg0: i32, %arg1: i32) -> (i32, i32) {
    %c0_i32 = arith.constant 0 : i32
    %c0_i32_0 = arith.constant 0 : i32
    %c0_i32_1 = arith.constant 0 : i32
    return %c0_i32, %c0_i32_0 : i32, i32
  }
  func.func @transform_3(%arg0: i32, %arg1: i32) -> (i32, i32) {
    %c0_i32 = arith.constant 0 : i32
    %c0_i32_0 = arith.constant 0 : i32
    return %arg0, %c0_i32 : i32, i32
  }
}

module attributes {stable_mosaic.version = 11 : i64} {
  func.func @_matmul_kernel(%arg0: i32, %arg1: i32, %arg2: memref<2x1024xbf16, #tpu.memory_space<vmem>>, %arg3: memref<1024x128xbf16, #tpu.memory_space<vmem>>, %arg4: memref<1x128xf32, #tpu.memory_space<vmem>>, %arg5: memref<2x128xf32, #tpu.memory_space<vmem>>, %arg6: memref<2x128xf32, #tpu.memory_space<vmem>>) attributes {dimension_semantics = [#tpu.dimension_semantics<parallel>, #tpu.dimension_semantics<arbitrary>], iteration_bounds = array<i64: 1, 1>, scalar_prefetch = 0 : i64, scratch_operands = 1 : i64, tpu.core_type = #tpu.core_type<tc>, window_params = [{transform_indices = @transform_0, window_bounds = array<i64: 2, 1024>}, {transform_indices = @transform_1, window_bounds = array<i64: 1024, 128>}, {pipeline_mode = #tpu.pipeline_mode<synchronous>, transform_indices = @transform_2, window_bounds = array<i64: 1, 128>}, {transform_indices = @transform_3, window_bounds = array<i64: 2, 128>}]} {
    %c0_i32 = arith.constant 0 : i32
    %0 = arith.cmpi eq, %arg1, %c0_i32 : i32
    %1 = arith.extui %0 : i1 to i32
    %c0_i32_0 = arith.constant 0 : i32
    %2 = arith.cmpi ne, %1, %c0_i32_0 : i32
    scf.if %2 {
      %cst_12 = arith.constant 0.000000e+00 : f32
      %19 = vector.broadcast %cst_12 : f32 to vector<2x128xf32>
      %c0_13 = arith.constant 0 : index
      %c0_14 = arith.constant 0 : index
      %20 = vector.load %arg6[%c0_13, %c0_14] : memref<2x128xf32, #tpu.memory_space<vmem>>, vector<2x128xf32>
      tpu.vector_store %arg6[%c0_13, %c0_14], %19 {strides = array<i32>} : memref<2x128xf32, #tpu.memory_space<vmem>>, vector<2x128xf32>,
    } else {
    }
    %c0 = arith.constant 0 : index
    %c0_1 = arith.constant 0 : index
    %3 = vector.load %arg2[%c0, %c0_1] : memref<2x1024xbf16, #tpu.memory_space<vmem>>, vector<2x1024xbf16>
    %4 = arith.extf %3 : vector<2x1024xbf16> to vector<2x1024xf32>
    %cst = arith.constant 0.000000e+00 : f32
    %5 = vector.broadcast %cst : f32 to vector<2x1024xf32>
    %6 = arith.cmpf ogt, %4, %5 : vector<2x1024xf32>
    %cst_2 = arith.constant 2.000000e-01 : f32
    %7 = vector.broadcast %cst_2 : f32 to vector<2x1024xf32>
    %8 = arith.mulf %7, %4 : vector<2x1024xf32>
    %9 = arith.select %6, %4, %8 : vector<2x1024xi1>, vector<2x1024xf32>
    %c0_3 = arith.constant 0 : index
    %c0_4 = arith.constant 0 : index
    %10 = vector.load %arg6[%c0_3, %c0_4] : memref<2x128xf32, #tpu.memory_space<vmem>>, vector<2x128xf32>
    %11 = arith.truncf %9 : vector<2x1024xf32> to vector<2x1024xbf16>
    %c0_5 = arith.constant 0 : index
    %c0_6 = arith.constant 0 : index
    %12 = vector.load %arg3[%c0_5, %c0_6] : memref<1024x128xbf16, #tpu.memory_space<vmem>>, vector<1024x128xbf16>
    %cst_7 = arith.constant dense<0.000000e+00> : vector<2x128xf32>
    %13 = tpu.matmul %11, %12, %cst_7 {dimension_numbers = #tpu.dot_dimension_numbers<[1], [0], [0], [1], [0, 0, 1, 1], [], []>} : vector<2x1024xbf16>, vector<1024x128xbf16>, vector<2x128xf32> -> vector<2x128xf32>
    %14 = arith.addf %10, %13 : vector<2x128xf32>
    %c0_8 = arith.constant 0 : index
    %c0_9 = arith.constant 0 : index
    %15 = vector.load %arg6[%c0_8, %c0_9] : memref<2x128xf32, #tpu.memory_space<vmem>>, vector<2x128xf32>
    tpu.vector_store %arg6[%c0_8, %c0_9], %14 {strides = array<i32>} : memref<2x128xf32, #tpu.memory_space<vmem>>, vector<2x128xf32>,
    %c0_i32_10 = arith.constant 0 : i32
    %16 = arith.cmpi eq, %arg1, %c0_i32_10 : i32
    %17 = arith.extui %16 : i1 to i32
    %c0_i32_11 = arith.constant 0 : i32
    %18 = arith.cmpi ne, %17, %c0_i32_11 : i32
    scf.if %18 {
      %c0_12 = arith.constant 0 : index
      %c0_13 = arith.constant 0 : index
      %19 = vector.load %arg6[%c0_12, %c0_13] : memref<2x128xf32, #tpu.memory_space<vmem>>, vector<2x128xf32>
      %c0_14 = arith.constant 0 : index
      %c0_15 = arith.constant 0 : index
      %20 = vector.load %arg4[%c0_14, %c0_15] : memref<1x128xf32, #tpu.memory_space<vmem>>, vector<1x128xf32>
      %21 = vector.broadcast %20 : vector<1x128xf32> to vector<2x128xf32>
      %22 = arith.addf %19, %21 : vector<2x128xf32>
      %c0_16 = arith.constant 0 : index
      %c0_17 = arith.constant 0 : index
      %23 = vector.load %arg5[%c0_16, %c0_17] : memref<2x128xf32, #tpu.memory_space<vmem>>, vector<2x128xf32>
      tpu.vector_store %arg5[%c0_16, %c0_17], %22 {strides = array<i32>} : memref<2x128xf32, #tpu.memory_space<vmem>>, vector<2x128xf32>,
    } else {
    }
    return
  }
  func.func @transform_0(%arg0: i32, %arg1: i32) -> (i32, i32) {
    %c0_i32 = arith.constant 0 : i32
    return %arg0, %arg1 : i32, i32
  }
  func.func @transform_1(%arg0: i32, %arg1: i32) -> (i32, i32) {
    %c0_i32 = arith.constant 0 : i32
    %c0_i32_0 = arith.constant 0 : i32
    return %arg1, %c0_i32 : i32, i32
  }
  func.func @transform_2(%arg0: i32, %arg1: i32) -> (i32, i32) {
    %c0_i32 = arith.constant 0 : i32
    %c0_i32_0 = arith.constant 0 : i32
    %c0_i32_1 = arith.constant 0 : i32
    return %c0_i32, %c0_i32_0 : i32, i32
  }
  func.func @transform_3(%arg0: i32, %arg1: i32) -> (i32, i32) {
    %c0_i32 = arith.constant 0 : i32
    %c0_i32_0 = arith.constant 0 : i32
    return %arg0, %c0_i32 : i32, i32
  }
}

module attributes {stable_mosaic.version = 11 : i64} {
  func.func @_matmul_kernel(%arg0: i32, %arg1: i32, %arg2: memref<2x576xbf16, #tpu.memory_space<vmem>>, %arg3: memref<576x256xbf16, #tpu.memory_space<vmem>>, %arg4: memref<1x256xf32, #tpu.memory_space<vmem>>, %arg5: memref<2x256xf32, #tpu.memory_space<vmem>>, %arg6: memref<2x256xf32, #tpu.memory_space<vmem>>) attributes {dimension_semantics = [#tpu.dimension_semantics<parallel>, #tpu.dimension_semantics<arbitrary>], iteration_bounds = array<i64: 1, 1>, scalar_prefetch = 0 : i64, scratch_operands = 1 : i64, tpu.core_type = #tpu.core_type<tc>, window_params = [{transform_indices = @transform_0, window_bounds = array<i64: 2, 576>}, {transform_indices = @transform_1, window_bounds = array<i64: 576, 256>}, {pipeline_mode = #tpu.pipeline_mode<synchronous>, transform_indices = @transform_2, window_bounds = array<i64: 1, 256>}, {transform_indices = @transform_3, window_bounds = array<i64: 2, 256>}]} {
    %c0_i32 = arith.constant 0 : i32
    %0 = arith.cmpi eq, %arg1, %c0_i32 : i32
    %1 = arith.extui %0 : i1 to i32
    %c0_i32_0 = arith.constant 0 : i32
    %2 = arith.cmpi ne, %1, %c0_i32_0 : i32
    scf.if %2 {
      %cst_11 = arith.constant 0.000000e+00 : f32
      %16 = vector.broadcast %cst_11 : f32 to vector<2x256xf32>
      %c0_12 = arith.constant 0 : index
      %c0_13 = arith.constant 0 : index
      %17 = vector.load %arg6[%c0_12, %c0_13] : memref<2x256xf32, #tpu.memory_space<vmem>>, vector<2x256xf32>
      tpu.vector_store %arg6[%c0_12, %c0_13], %16 {strides = array<i32>} : memref<2x256xf32, #tpu.memory_space<vmem>>, vector<2x256xf32>,
    } else {
    }
    %c0 = arith.constant 0 : index
    %c0_1 = arith.constant 0 : index
    %3 = vector.load %arg2[%c0, %c0_1] : memref<2x576xbf16, #tpu.memory_space<vmem>>, vector<2x576xbf16>
    %4 = arith.extf %3 : vector<2x576xbf16> to vector<2x576xf32>
    %cst = arith.constant 0.000000e+00 : f32
    %5 = vector.broadcast %cst : f32 to vector<2x576xf32>
    %6 = arith.maximumf %4, %5 : vector<2x576xf32>
    %c0_2 = arith.constant 0 : index
    %c0_3 = arith.constant 0 : index
    %7 = vector.load %arg6[%c0_2, %c0_3] : memref<2x256xf32, #tpu.memory_space<vmem>>, vector<2x256xf32>
    %8 = arith.truncf %6 : vector<2x576xf32> to vector<2x576xbf16>
    %c0_4 = arith.constant 0 : index
    %c0_5 = arith.constant 0 : index
    %9 = vector.load %arg3[%c0_4, %c0_5] : memref<576x256xbf16, #tpu.memory_space<vmem>>, vector<576x256xbf16>
    %cst_6 = arith.constant dense<0.000000e+00> : vector<2x256xf32>
    %10 = tpu.matmul %8, %9, %cst_6 {dimension_numbers = #tpu.dot_dimension_numbers<[1], [0], [0], [1], [0, 0, 1, 1], [], []>} : vector<2x576xbf16>, vector<576x256xbf16>, vector<2x256xf32> -> vector<2x256xf32>
    %11 = arith.addf %7, %10 : vector<2x256xf32>
    %c0_7 = arith.constant 0 : index
    %c0_8 = arith.constant 0 : index
    %12 = vector.load %arg6[%c0_7, %c0_8] : memref<2x256xf32, #tpu.memory_space<vmem>>, vector<2x256xf32>
    tpu.vector_store %arg6[%c0_7, %c0_8], %11 {strides = array<i32>} : memref<2x256xf32, #tpu.memory_space<vmem>>, vector<2x256xf32>,
    %c0_i32_9 = arith.constant 0 : i32
    %13 = arith.cmpi eq, %arg1, %c0_i32_9 : i32
    %14 = arith.extui %13 : i1 to i32
    %c0_i32_10 = arith.constant 0 : i32
    %15 = arith.cmpi ne, %14, %c0_i32_10 : i32
    scf.if %15 {
      %c0_11 = arith.constant 0 : index
      %c0_12 = arith.constant 0 : index
      %16 = vector.load %arg6[%c0_11, %c0_12] : memref<2x256xf32, #tpu.memory_space<vmem>>, vector<2x256xf32>
      %c0_13 = arith.constant 0 : index
      %c0_14 = arith.constant 0 : index
      %17 = vector.load %arg4[%c0_13, %c0_14] : memref<1x256xf32, #tpu.memory_space<vmem>>, vector<1x256xf32>
      %18 = vector.broadcast %17 : vector<1x256xf32> to vector<2x256xf32>
      %19 = arith.addf %16, %18 : vector<2x256xf32>
      %c0_15 = arith.constant 0 : index
      %c0_16 = arith.constant 0 : index
      %20 = vector.load %arg5[%c0_15, %c0_16] : memref<2x256xf32, #tpu.memory_space<vmem>>, vector<2x256xf32>
      tpu.vector_store %arg5[%c0_15, %c0_16], %19 {strides = array<i32>} : memref<2x256xf32, #tpu.memory_space<vmem>>, vector<2x256xf32>,
    } else {
    }
    return
  }
  func.func @transform_0(%arg0: i32, %arg1: i32) -> (i32, i32) {
    %c0_i32 = arith.constant 0 : i32
    return %arg0, %arg1 : i32, i32
  }
  func.func @transform_1(%arg0: i32, %arg1: i32) -> (i32, i32) {
    %c0_i32 = arith.constant 0 : i32
    %c0_i32_0 = arith.constant 0 : i32
    return %arg1, %c0_i32 : i32, i32
  }
  func.func @transform_2(%arg0: i32, %arg1: i32) -> (i32, i32) {
    %c0_i32 = arith.constant 0 : i32
    %c0_i32_0 = arith.constant 0 : i32
    %c0_i32_1 = arith.constant 0 : i32
    return %c0_i32, %c0_i32_0 : i32, i32
  }
  func.func @transform_3(%arg0: i32, %arg1: i32) -> (i32, i32) {
    %c0_i32 = arith.constant 0 : i32
    %c0_i32_0 = arith.constant 0 : i32
    return %arg0, %c0_i32 : i32, i32
  }
}

module attributes {stable_mosaic.version = 11 : i64} {
  func.func @_matmul_kernel(%arg0: i32, %arg1: i32, %arg2: memref<8x1152xbf16, #tpu.memory_space<vmem>>, %arg3: memref<1152x128xbf16, #tpu.memory_space<vmem>>, %arg4: memref<1x128xf32, #tpu.memory_space<vmem>>, %arg5: memref<8x128xf32, #tpu.memory_space<vmem>>, %arg6: memref<8x128xf32, #tpu.memory_space<vmem>>) attributes {dimension_semantics = [#tpu.dimension_semantics<parallel>, #tpu.dimension_semantics<arbitrary>], iteration_bounds = array<i64: 1, 1>, scalar_prefetch = 0 : i64, scratch_operands = 1 : i64, tpu.core_type = #tpu.core_type<tc>, window_params = [{transform_indices = @transform_0, window_bounds = array<i64: 8, 1152>}, {transform_indices = @transform_1, window_bounds = array<i64: 1152, 128>}, {pipeline_mode = #tpu.pipeline_mode<synchronous>, transform_indices = @transform_2, window_bounds = array<i64: 1, 128>}, {transform_indices = @transform_3, window_bounds = array<i64: 8, 128>}]} {
    %c0_i32 = arith.constant 0 : i32
    %0 = arith.cmpi eq, %arg1, %c0_i32 : i32
    %1 = arith.extui %0 : i1 to i32
    %c0_i32_0 = arith.constant 0 : i32
    %2 = arith.cmpi ne, %1, %c0_i32_0 : i32
    scf.if %2 {
      %cst_11 = arith.constant 0.000000e+00 : f32
      %16 = vector.broadcast %cst_11 : f32 to vector<8x128xf32>
      %c0_12 = arith.constant 0 : index
      %c0_13 = arith.constant 0 : index
      %17 = vector.load %arg6[%c0_12, %c0_13] : memref<8x128xf32, #tpu.memory_space<vmem>>, vector<8x128xf32>
      tpu.vector_store %arg6[%c0_12, %c0_13], %16 {strides = array<i32>} : memref<8x128xf32, #tpu.memory_space<vmem>>, vector<8x128xf32>,
    } else {
    }
    %c0 = arith.constant 0 : index
    %c0_1 = arith.constant 0 : index
    %3 = vector.load %arg2[%c0, %c0_1] : memref<8x1152xbf16, #tpu.memory_space<vmem>>, vector<8x1152xbf16>
    %4 = arith.extf %3 : vector<8x1152xbf16> to vector<8x1152xf32>
    %cst = arith.constant 0.000000e+00 : f32
    %5 = vector.broadcast %cst : f32 to vector<8x1152xf32>
    %6 = arith.maximumf %4, %5 : vector<8x1152xf32>
    %c0_2 = arith.constant 0 : index
    %c0_3 = arith.constant 0 : index
    %7 = vector.load %arg6[%c0_2, %c0_3] : memref<8x128xf32, #tpu.memory_space<vmem>>, vector<8x128xf32>
    %8 = arith.truncf %6 : vector<8x1152xf32> to vector<8x1152xbf16>
    %c0_4 = arith.constant 0 : index
    %c0_5 = arith.constant 0 : index
    %9 = vector.load %arg3[%c0_4, %c0_5] : memref<1152x128xbf16, #tpu.memory_space<vmem>>, vector<1152x128xbf16>
    %cst_6 = arith.constant dense<0.000000e+00> : vector<8x128xf32>
    %10 = tpu.matmul %8, %9, %cst_6 {dimension_numbers = #tpu.dot_dimension_numbers<[1], [0], [0], [1], [0, 0, 1, 1], [], []>} : vector<8x1152xbf16>, vector<1152x128xbf16>, vector<8x128xf32> -> vector<8x128xf32>
    %11 = arith.addf %7, %10 : vector<8x128xf32>
    %c0_7 = arith.constant 0 : index
    %c0_8 = arith.constant 0 : index
    %12 = vector.load %arg6[%c0_7, %c0_8] : memref<8x128xf32, #tpu.memory_space<vmem>>, vector<8x128xf32>
    tpu.vector_store %arg6[%c0_7, %c0_8], %11 {strides = array<i32>} : memref<8x128xf32, #tpu.memory_space<vmem>>, vector<8x128xf32>,
    %c0_i32_9 = arith.constant 0 : i32
    %13 = arith.cmpi eq, %arg1, %c0_i32_9 : i32
    %14 = arith.extui %13 : i1 to i32
    %c0_i32_10 = arith.constant 0 : i32
    %15 = arith.cmpi ne, %14, %c0_i32_10 : i32
    scf.if %15 {
      %c0_11 = arith.constant 0 : index
      %c0_12 = arith.constant 0 : index
      %16 = vector.load %arg6[%c0_11, %c0_12] : memref<8x128xf32, #tpu.memory_space<vmem>>, vector<8x128xf32>
      %c0_13 = arith.constant 0 : index
      %c0_14 = arith.constant 0 : index
      %17 = vector.load %arg4[%c0_13, %c0_14] : memref<1x128xf32, #tpu.memory_space<vmem>>, vector<1x128xf32>
      %18 = vector.broadcast %17 : vector<1x128xf32> to vector<8x128xf32>
      %19 = arith.addf %16, %18 : vector<8x128xf32>
      %c0_15 = arith.constant 0 : index
      %c0_16 = arith.constant 0 : index
      %20 = vector.load %arg5[%c0_15, %c0_16] : memref<8x128xf32, #tpu.memory_space<vmem>>, vector<8x128xf32>
      tpu.vector_store %arg5[%c0_15, %c0_16], %19 {strides = array<i32>} : memref<8x128xf32, #tpu.memory_space<vmem>>, vector<8x128xf32>,
    } else {
    }
    return
  }
  func.func @transform_0(%arg0: i32, %arg1: i32) -> (i32, i32) {
    %c0_i32 = arith.constant 0 : i32
    return %arg0, %arg1 : i32, i32
  }
  func.func @transform_1(%arg0: i32, %arg1: i32) -> (i32, i32) {
    %c0_i32 = arith.constant 0 : i32
    %c0_i32_0 = arith.constant 0 : i32
    return %arg1, %c0_i32 : i32, i32
  }
  func.func @transform_2(%arg0: i32, %arg1: i32) -> (i32, i32) {
    %c0_i32 = arith.constant 0 : i32
    %c0_i32_0 = arith.constant 0 : i32
    %c0_i32_1 = arith.constant 0 : i32
    return %c0_i32, %c0_i32_0 : i32, i32
  }
  func.func @transform_3(%arg0: i32, %arg1: i32) -> (i32, i32) {
    %c0_i32 = arith.constant 0 : i32
    %c0_i32_0 = arith.constant 0 : i32
    return %arg0, %c0_i32 : i32, i32
  }
}

module attributes {stable_mosaic.version = 11 : i64} {
  func.func @_matmul_kernel(%arg0: i32, %arg1: i32, %arg2: memref<32x576xbf16, #tpu.memory_space<vmem>>, %arg3: memref<576x128xbf16, #tpu.memory_space<vmem>>, %arg4: memref<1x128xf32, #tpu.memory_space<vmem>>, %arg5: memref<32x128xf32, #tpu.memory_space<vmem>>, %arg6: memref<32x128xf32, #tpu.memory_space<vmem>>) attributes {dimension_semantics = [#tpu.dimension_semantics<parallel>, #tpu.dimension_semantics<arbitrary>], iteration_bounds = array<i64: 1, 1>, scalar_prefetch = 0 : i64, scratch_operands = 1 : i64, tpu.core_type = #tpu.core_type<tc>, window_params = [{transform_indices = @transform_0, window_bounds = array<i64: 32, 576>}, {transform_indices = @transform_1, window_bounds = array<i64: 576, 128>}, {pipeline_mode = #tpu.pipeline_mode<synchronous>, transform_indices = @transform_2, window_bounds = array<i64: 1, 128>}, {transform_indices = @transform_3, window_bounds = array<i64: 32, 128>}]} {
    %c0_i32 = arith.constant 0 : i32
    %0 = arith.cmpi eq, %arg1, %c0_i32 : i32
    %1 = arith.extui %0 : i1 to i32
    %c0_i32_0 = arith.constant 0 : i32
    %2 = arith.cmpi ne, %1, %c0_i32_0 : i32
    scf.if %2 {
      %cst_11 = arith.constant 0.000000e+00 : f32
      %16 = vector.broadcast %cst_11 : f32 to vector<32x128xf32>
      %c0_12 = arith.constant 0 : index
      %c0_13 = arith.constant 0 : index
      %17 = vector.load %arg6[%c0_12, %c0_13] : memref<32x128xf32, #tpu.memory_space<vmem>>, vector<32x128xf32>
      tpu.vector_store %arg6[%c0_12, %c0_13], %16 {strides = array<i32>} : memref<32x128xf32, #tpu.memory_space<vmem>>, vector<32x128xf32>,
    } else {
    }
    %c0 = arith.constant 0 : index
    %c0_1 = arith.constant 0 : index
    %3 = vector.load %arg2[%c0, %c0_1] : memref<32x576xbf16, #tpu.memory_space<vmem>>, vector<32x576xbf16>
    %4 = arith.extf %3 : vector<32x576xbf16> to vector<32x576xf32>
    %cst = arith.constant 0.000000e+00 : f32
    %5 = vector.broadcast %cst : f32 to vector<32x576xf32>
    %6 = arith.maximumf %4, %5 : vector<32x576xf32>
    %c0_2 = arith.constant 0 : index
    %c0_3 = arith.constant 0 : index
    %7 = vector.load %arg6[%c0_2, %c0_3] : memref<32x128xf32, #tpu.memory_space<vmem>>, vector<32x128xf32>
    %8 = arith.truncf %6 : vector<32x576xf32> to vector<32x576xbf16>
    %c0_4 = arith.constant 0 : index
    %c0_5 = arith.constant 0 : index
    %9 = vector.load %arg3[%c0_4, %c0_5] : memref<576x128xbf16, #tpu.memory_space<vmem>>, vector<576x128xbf16>
    %cst_6 = arith.constant dense<0.000000e+00> : vector<32x128xf32>
    %10 = tpu.matmul %8, %9, %cst_6 {dimension_numbers = #tpu.dot_dimension_numbers<[1], [0], [0], [1], [0, 0, 1, 1], [], []>} : vector<32x576xbf16>, vector<576x128xbf16>, vector<32x128xf32> -> vector<32x128xf32>
    %11 = arith.addf %7, %10 : vector<32x128xf32>
    %c0_7 = arith.constant 0 : index
    %c0_8 = arith.constant 0 : index
    %12 = vector.load %arg6[%c0_7, %c0_8] : memref<32x128xf32, #tpu.memory_space<vmem>>, vector<32x128xf32>
    tpu.vector_store %arg6[%c0_7, %c0_8], %11 {strides = array<i32>} : memref<32x128xf32, #tpu.memory_space<vmem>>, vector<32x128xf32>,
    %c0_i32_9 = arith.constant 0 : i32
    %13 = arith.cmpi eq, %arg1, %c0_i32_9 : i32
    %14 = arith.extui %13 : i1 to i32
    %c0_i32_10 = arith.constant 0 : i32
    %15 = arith.cmpi ne, %14, %c0_i32_10 : i32
    scf.if %15 {
      %c0_11 = arith.constant 0 : index
      %c0_12 = arith.constant 0 : index
      %16 = vector.load %arg6[%c0_11, %c0_12] : memref<32x128xf32, #tpu.memory_space<vmem>>, vector<32x128xf32>
      %c0_13 = arith.constant 0 : index
      %c0_14 = arith.constant 0 : index
      %17 = vector.load %arg4[%c0_13, %c0_14] : memref<1x128xf32, #tpu.memory_space<vmem>>, vector<1x128xf32>
      %18 = vector.broadcast %17 : vector<1x128xf32> to vector<32x128xf32>
      %19 = arith.addf %16, %18 : vector<32x128xf32>
      %c0_15 = arith.constant 0 : index
      %c0_16 = arith.constant 0 : index
      %20 = vector.load %arg5[%c0_15, %c0_16] : memref<32x128xf32, #tpu.memory_space<vmem>>, vector<32x128xf32>
      tpu.vector_store %arg5[%c0_15, %c0_16], %19 {strides = array<i32>} : memref<32x128xf32, #tpu.memory_space<vmem>>, vector<32x128xf32>,
    } else {
    }
    return
  }
  func.func @transform_0(%arg0: i32, %arg1: i32) -> (i32, i32) {
    %c0_i32 = arith.constant 0 : i32
    return %arg0, %arg1 : i32, i32
  }
  func.func @transform_1(%arg0: i32, %arg1: i32) -> (i32, i32) {
    %c0_i32 = arith.constant 0 : i32
    %c0_i32_0 = arith.constant 0 : i32
    return %arg1, %c0_i32 : i32, i32
  }
  func.func @transform_2(%arg0: i32, %arg1: i32) -> (i32, i32) {
    %c0_i32 = arith.constant 0 : i32
    %c0_i32_0 = arith.constant 0 : i32
    %c0_i32_1 = arith.constant 0 : i32
    return %c0_i32, %c0_i32_0 : i32, i32
  }
  func.func @transform_3(%arg0: i32, %arg1: i32) -> (i32, i32) {
    %c0_i32 = arith.constant 0 : i32
    %c0_i32_0 = arith.constant 0 : i32
    return %arg0, %c0_i32 : i32, i32
  }
}

module attributes {stable_mosaic.version = 11 : i64} {
  func.func @_matmul_kernel(%arg0: i32, %arg1: i32, %arg2: memref<128x288xbf16, #tpu.memory_space<vmem>>, %arg3: memref<288x128xbf16, #tpu.memory_space<vmem>>, %arg4: memref<1x128xf32, #tpu.memory_space<vmem>>, %arg5: memref<128x128xf32, #tpu.memory_space<vmem>>, %arg6: memref<128x128xf32, #tpu.memory_space<vmem>>) attributes {dimension_semantics = [#tpu.dimension_semantics<parallel>, #tpu.dimension_semantics<arbitrary>], iteration_bounds = array<i64: 1, 1>, scalar_prefetch = 0 : i64, scratch_operands = 1 : i64, tpu.core_type = #tpu.core_type<tc>, window_params = [{transform_indices = @transform_0, window_bounds = array<i64: 128, 288>}, {transform_indices = @transform_1, window_bounds = array<i64: 288, 128>}, {pipeline_mode = #tpu.pipeline_mode<synchronous>, transform_indices = @transform_2, window_bounds = array<i64: 1, 128>}, {transform_indices = @transform_3, window_bounds = array<i64: 128, 128>}]} {
    %c0_i32 = arith.constant 0 : i32
    %0 = arith.cmpi eq, %arg1, %c0_i32 : i32
    %1 = arith.extui %0 : i1 to i32
    %c0_i32_0 = arith.constant 0 : i32
    %2 = arith.cmpi ne, %1, %c0_i32_0 : i32
    scf.if %2 {
      %cst_11 = arith.constant 0.000000e+00 : f32
      %16 = vector.broadcast %cst_11 : f32 to vector<128x128xf32>
      %c0_12 = arith.constant 0 : index
      %c0_13 = arith.constant 0 : index
      %17 = vector.load %arg6[%c0_12, %c0_13] : memref<128x128xf32, #tpu.memory_space<vmem>>, vector<128x128xf32>
      tpu.vector_store %arg6[%c0_12, %c0_13], %16 {strides = array<i32>} : memref<128x128xf32, #tpu.memory_space<vmem>>, vector<128x128xf32>,
    } else {
    }
    %c0 = arith.constant 0 : index
    %c0_1 = arith.constant 0 : index
    %3 = vector.load %arg2[%c0, %c0_1] : memref<128x288xbf16, #tpu.memory_space<vmem>>, vector<128x288xbf16>
    %4 = arith.extf %3 : vector<128x288xbf16> to vector<128x288xf32>
    %cst = arith.constant 0.000000e+00 : f32
    %5 = vector.broadcast %cst : f32 to vector<128x288xf32>
    %6 = arith.maximumf %4, %5 : vector<128x288xf32>
    %c0_2 = arith.constant 0 : index
    %c0_3 = arith.constant 0 : index
    %7 = vector.load %arg6[%c0_2, %c0_3] : memref<128x128xf32, #tpu.memory_space<vmem>>, vector<128x128xf32>
    %8 = arith.truncf %6 : vector<128x288xf32> to vector<128x288xbf16>
    %c0_4 = arith.constant 0 : index
    %c0_5 = arith.constant 0 : index
    %9 = vector.load %arg3[%c0_4, %c0_5] : memref<288x128xbf16, #tpu.memory_space<vmem>>, vector<288x128xbf16>
    %cst_6 = arith.constant dense<0.000000e+00> : vector<128x128xf32>
    %10 = tpu.matmul %8, %9, %cst_6 {dimension_numbers = #tpu.dot_dimension_numbers<[1], [0], [0], [1], [0, 0, 1, 1], [], []>} : vector<128x288xbf16>, vector<288x128xbf16>, vector<128x128xf32> -> vector<128x128xf32>
    %11 = arith.addf %7, %10 : vector<128x128xf32>
    %c0_7 = arith.constant 0 : index
    %c0_8 = arith.constant 0 : index
    %12 = vector.load %arg6[%c0_7, %c0_8] : memref<128x128xf32, #tpu.memory_space<vmem>>, vector<128x128xf32>
    tpu.vector_store %arg6[%c0_7, %c0_8], %11 {strides = array<i32>} : memref<128x128xf32, #tpu.memory_space<vmem>>, vector<128x128xf32>,
    %c0_i32_9 = arith.constant 0 : i32
    %13 = arith.cmpi eq, %arg1, %c0_i32_9 : i32
    %14 = arith.extui %13 : i1 to i32
    %c0_i32_10 = arith.constant 0 : i32
    %15 = arith.cmpi ne, %14, %c0_i32_10 : i32
    scf.if %15 {
      %c0_11 = arith.constant 0 : index
      %c0_12 = arith.constant 0 : index
      %16 = vector.load %arg6[%c0_11, %c0_12] : memref<128x128xf32, #tpu.memory_space<vmem>>, vector<128x128xf32>
      %c0_13 = arith.constant 0 : index
      %c0_14 = arith.constant 0 : index
      %17 = vector.load %arg4[%c0_13, %c0_14] : memref<1x128xf32, #tpu.memory_space<vmem>>, vector<1x128xf32>
      %18 = vector.broadcast %17 : vector<1x128xf32> to vector<128x128xf32>
      %19 = arith.addf %16, %18 : vector<128x128xf32>
      %c0_15 = arith.constant 0 : index
      %c0_16 = arith.constant 0 : index
      %20 = vector.load %arg5[%c0_15, %c0_16] : memref<128x128xf32, #tpu.memory_space<vmem>>, vector<128x128xf32>
      tpu.vector_store %arg5[%c0_15, %c0_16], %19 {strides = array<i32>} : memref<128x128xf32, #tpu.memory_space<vmem>>, vector<128x128xf32>,
    } else {
    }
    return
  }
  func.func @transform_0(%arg0: i32, %arg1: i32) -> (i32, i32) {
    %c0_i32 = arith.constant 0 : i32
    return %arg0, %arg1 : i32, i32
  }
  func.func @transform_1(%arg0: i32, %arg1: i32) -> (i32, i32) {
    %c0_i32 = arith.constant 0 : i32
    %c0_i32_0 = arith.constant 0 : i32
    return %arg1, %c0_i32 : i32, i32
  }
  func.func @transform_2(%arg0: i32, %arg1: i32) -> (i32, i32) {
    %c0_i32 = arith.constant 0 : i32
    %c0_i32_0 = arith.constant 0 : i32
    %c0_i32_1 = arith.constant 0 : i32
    return %c0_i32, %c0_i32_0 : i32, i32
  }
  func.func @transform_3(%arg0: i32, %arg1: i32) -> (i32, i32) {
    %c0_i32 = arith.constant 0 : i32
    %c0_i32_0 = arith.constant 0 : i32
    return %arg0, %c0_i32 : i32, i32
  }
}

module attributes {stable_mosaic.version = 11 : i64} {
  func.func @_bn_stats_kernel(%arg0: i32, %arg1: memref<512x8xf32, #tpu.memory_space<vmem>>, %arg2: memref<1x8xf32, #tpu.memory_space<vmem>>, %arg3: memref<1x8xf32, #tpu.memory_space<vmem>>, %arg4: memref<1x8xf32, #tpu.memory_space<vmem>>, %arg5: memref<1x8xf32, #tpu.memory_space<vmem>>) attributes {dimension_semantics = [#tpu.dimension_semantics<arbitrary>], iteration_bounds = array<i64: 1>, scalar_prefetch = 0 : i64, scratch_operands = 2 : i64, tpu.core_type = #tpu.core_type<tc>, window_params = [{transform_indices = @transform_0, window_bounds = array<i64: 512, 8>}, {pipeline_mode = #tpu.pipeline_mode<synchronous>, transform_indices = @transform_1, window_bounds = array<i64: 1, 8>}, {pipeline_mode = #tpu.pipeline_mode<synchronous>, transform_indices = @transform_2, window_bounds = array<i64: 1, 8>}]} {
    %c0_i32 = arith.constant 0 : i32
    %0 = arith.cmpi eq, %arg0, %c0_i32 : i32
    %1 = arith.extui %0 : i1 to i32
    %c0_i32_0 = arith.constant 0 : i32
    %2 = arith.cmpi ne, %1, %c0_i32_0 : i32
    scf.if %2 {
      %cst_13 = arith.constant 0.000000e+00 : f32
      %18 = vector.broadcast %cst_13 : f32 to vector<1x8xf32>
      %c0_14 = arith.constant 0 : index
      %c0_15 = arith.constant 0 : index
      %19 = vector.load %arg4[%c0_14, %c0_15] : memref<1x8xf32, #tpu.memory_space<vmem>>, vector<1x8xf32>
      tpu.vector_store %arg4[%c0_14, %c0_15], %18 {strides = array<i32>} : memref<1x8xf32, #tpu.memory_space<vmem>>, vector<1x8xf32>,
      %cst_16 = arith.constant 0.000000e+00 : f32
      %20 = vector.broadcast %cst_16 : f32 to vector<1x8xf32>
      %c0_17 = arith.constant 0 : index
      %c0_18 = arith.constant 0 : index
      %21 = vector.load %arg5[%c0_17, %c0_18] : memref<1x8xf32, #tpu.memory_space<vmem>>, vector<1x8xf32>
      tpu.vector_store %arg5[%c0_17, %c0_18], %20 {strides = array<i32>} : memref<1x8xf32, #tpu.memory_space<vmem>>, vector<1x8xf32>,
    } else {
    }
    %c0 = arith.constant 0 : index
    %c0_1 = arith.constant 0 : index
    %3 = vector.load %arg1[%c0, %c0_1] : memref<512x8xf32, #tpu.memory_space<vmem>>, vector<512x8xf32>
    %c0_2 = arith.constant 0 : index
    %c0_3 = arith.constant 0 : index
    %4 = vector.load %arg4[%c0_2, %c0_3] : memref<1x8xf32, #tpu.memory_space<vmem>>, vector<1x8xf32>
    %cst = arith.constant dense<0.000000e+00> : vector<8xf32>
    %5 = vector.multi_reduction <add>, %3, %cst [0] : vector<512x8xf32> to vector<8xf32>
    %6 = vector.shape_cast %5 : vector<8xf32> to vector<1x8xf32>
    %7 = arith.addf %4, %6 : vector<1x8xf32>
    %c0_4 = arith.constant 0 : index
    %c0_5 = arith.constant 0 : index
    %8 = vector.load %arg4[%c0_4, %c0_5] : memref<1x8xf32, #tpu.memory_space<vmem>>, vector<1x8xf32>
    tpu.vector_store %arg4[%c0_4, %c0_5], %7 {strides = array<i32>} : memref<1x8xf32, #tpu.memory_space<vmem>>, vector<1x8xf32>,
    %c0_6 = arith.constant 0 : index
    %c0_7 = arith.constant 0 : index
    %9 = vector.load %arg5[%c0_6, %c0_7] : memref<1x8xf32, #tpu.memory_space<vmem>>, vector<1x8xf32>
    %10 = arith.mulf %3, %3 : vector<512x8xf32>
    %cst_8 = arith.constant dense<0.000000e+00> : vector<8xf32>
    %11 = vector.multi_reduction <add>, %10, %cst_8 [0] : vector<512x8xf32> to vector<8xf32>
    %12 = vector.shape_cast %11 : vector<8xf32> to vector<1x8xf32>
    %13 = arith.addf %9, %12 : vector<1x8xf32>
    %c0_9 = arith.constant 0 : index
    %c0_10 = arith.constant 0 : index
    %14 = vector.load %arg5[%c0_9, %c0_10] : memref<1x8xf32, #tpu.memory_space<vmem>>, vector<1x8xf32>
    tpu.vector_store %arg5[%c0_9, %c0_10], %13 {strides = array<i32>} : memref<1x8xf32, #tpu.memory_space<vmem>>, vector<1x8xf32>,
    %c0_i32_11 = arith.constant 0 : i32
    %15 = arith.cmpi eq, %arg0, %c0_i32_11 : i32
    %16 = arith.extui %15 : i1 to i32
    %c0_i32_12 = arith.constant 0 : i32
    %17 = arith.cmpi ne, %16, %c0_i32_12 : i32
    scf.if %17 {
      %c0_13 = arith.constant 0 : index
      %c0_14 = arith.constant 0 : index
      %18 = vector.load %arg4[%c0_13, %c0_14] : memref<1x8xf32, #tpu.memory_space<vmem>>, vector<1x8xf32>
      %c0_15 = arith.constant 0 : index
      %c0_16 = arith.constant 0 : index
      %19 = vector.load %arg2[%c0_15, %c0_16] : memref<1x8xf32, #tpu.memory_space<vmem>>, vector<1x8xf32>
      tpu.vector_store %arg2[%c0_15, %c0_16], %18 {strides = array<i32>} : memref<1x8xf32, #tpu.memory_space<vmem>>, vector<1x8xf32>,
      %c0_17 = arith.constant 0 : index
      %c0_18 = arith.constant 0 : index
      %20 = vector.load %arg5[%c0_17, %c0_18] : memref<1x8xf32, #tpu.memory_space<vmem>>, vector<1x8xf32>
      %c0_19 = arith.constant 0 : index
      %c0_20 = arith.constant 0 : index
      %21 = vector.load %arg3[%c0_19, %c0_20] : memref<1x8xf32, #tpu.memory_space<vmem>>, vector<1x8xf32>
      tpu.vector_store %arg3[%c0_19, %c0_20], %20 {strides = array<i32>} : memref<1x8xf32, #tpu.memory_space<vmem>>, vector<1x8xf32>,
    } else {
    }
    return
  }
  func.func @transform_0(%arg0: i32) -> (i32, i32) {
    %c0_i32 = arith.constant 0 : i32
    %c0_i32_0 = arith.constant 0 : i32
    return %arg0, %c0_i32 : i32, i32
  }
  func.func @transform_1(%arg0: i32) -> (i32, i32) {
    %c0_i32 = arith.constant 0 : i32
    %c0_i32_0 = arith.constant 0 : i32
    %c0_i32_1 = arith.constant 0 : i32
    return %c0_i32, %c0_i32_0 : i32, i32
  }
  func.func @transform_2(%arg0: i32) -> (i32, i32) {
    %c0_i32 = arith.constant 0 : i32
    %c0_i32_0 = arith.constant 0 : i32
    %c0_i32_1 = arith.constant 0 : i32
    return %c0_i32, %c0_i32_0 : i32, i32
  }
}

module attributes {stable_mosaic.version = 11 : i64} {
  func.func @_affine_kernel(%arg0: i32, %arg1: memref<512x8xf32, #tpu.memory_space<vmem>>, %arg2: memref<1x8xf32, #tpu.memory_space<vmem>>, %arg3: memref<1x8xf32, #tpu.memory_space<vmem>>, %arg4: memref<512x8xf32, #tpu.memory_space<vmem>>) attributes {dimension_semantics = [#tpu.dimension_semantics<parallel>], iteration_bounds = array<i64: 1>, scalar_prefetch = 0 : i64, scratch_operands = 0 : i64, tpu.core_type = #tpu.core_type<tc>, window_params = [{transform_indices = @transform_0, window_bounds = array<i64: 512, 8>}, {pipeline_mode = #tpu.pipeline_mode<synchronous>, transform_indices = @transform_1, window_bounds = array<i64: 1, 8>}, {pipeline_mode = #tpu.pipeline_mode<synchronous>, transform_indices = @transform_2, window_bounds = array<i64: 1, 8>}, {transform_indices = @transform_3, window_bounds = array<i64: 512, 8>}]} {
    %c0 = arith.constant 0 : index
    %c0_0 = arith.constant 0 : index
    %0 = vector.load %arg1[%c0, %c0_0] : memref<512x8xf32, #tpu.memory_space<vmem>>, vector<512x8xf32>
    %c0_1 = arith.constant 0 : index
    %c0_2 = arith.constant 0 : index
    %1 = vector.load %arg2[%c0_1, %c0_2] : memref<1x8xf32, #tpu.memory_space<vmem>>, vector<1x8xf32>
    %2 = vector.broadcast %1 : vector<1x8xf32> to vector<512x8xf32>
    %3 = arith.mulf %0, %2 : vector<512x8xf32>
    %c0_3 = arith.constant 0 : index
    %c0_4 = arith.constant 0 : index
    %4 = vector.load %arg3[%c0_3, %c0_4] : memref<1x8xf32, #tpu.memory_space<vmem>>, vector<1x8xf32>
    %5 = vector.broadcast %4 : vector<1x8xf32> to vector<512x8xf32>
    %6 = arith.addf %3, %5 : vector<512x8xf32>
    %c0_5 = arith.constant 0 : index
    %c0_6 = arith.constant 0 : index
    %7 = vector.load %arg4[%c0_5, %c0_6] : memref<512x8xf32, #tpu.memory_space<vmem>>, vector<512x8xf32>
    tpu.vector_store %arg4[%c0_5, %c0_6], %6 {strides = array<i32>} : memref<512x8xf32, #tpu.memory_space<vmem>>, vector<512x8xf32>,
    return
  }
  func.func @transform_0(%arg0: i32) -> (i32, i32) {
    %c0_i32 = arith.constant 0 : i32
    %c0_i32_0 = arith.constant 0 : i32
    return %arg0, %c0_i32 : i32, i32
  }
  func.func @transform_1(%arg0: i32) -> (i32, i32) {
    %c0_i32 = arith.constant 0 : i32
    %c0_i32_0 = arith.constant 0 : i32
    %c0_i32_1 = arith.constant 0 : i32
    return %c0_i32, %c0_i32_0 : i32, i32
  }
  func.func @transform_2(%arg0: i32) -> (i32, i32) {
    %c0_i32 = arith.constant 0 : i32
    %c0_i32_0 = arith.constant 0 : i32
    %c0_i32_1 = arith.constant 0 : i32
    return %c0_i32, %c0_i32_0 : i32, i32
  }
  func.func @transform_3(%arg0: i32) -> (i32, i32) {
    %c0_i32 = arith.constant 0 : i32
    %c0_i32_0 = arith.constant 0 : i32
    return %arg0, %c0_i32 : i32, i32
  }
}

module attributes {stable_mosaic.version = 11 : i64} {
  func.func @_matmul_kernel(%arg0: i32, %arg1: i32, %arg2: memref<512x144xbf16, #tpu.memory_space<vmem>>, %arg3: memref<144x128xbf16, #tpu.memory_space<vmem>>, %arg4: memref<1x128xf32, #tpu.memory_space<vmem>>, %arg5: memref<512x128xf32, #tpu.memory_space<vmem>>, %arg6: memref<512x128xf32, #tpu.memory_space<vmem>>) attributes {dimension_semantics = [#tpu.dimension_semantics<parallel>, #tpu.dimension_semantics<arbitrary>], iteration_bounds = array<i64: 1, 1>, scalar_prefetch = 0 : i64, scratch_operands = 1 : i64, tpu.core_type = #tpu.core_type<tc>, window_params = [{transform_indices = @transform_0, window_bounds = array<i64: 512, 144>}, {transform_indices = @transform_1, window_bounds = array<i64: 144, 128>}, {pipeline_mode = #tpu.pipeline_mode<synchronous>, transform_indices = @transform_2, window_bounds = array<i64: 1, 128>}, {transform_indices = @transform_3, window_bounds = array<i64: 512, 128>}]} {
    %c0_i32 = arith.constant 0 : i32
    %0 = arith.cmpi eq, %arg1, %c0_i32 : i32
    %1 = arith.extui %0 : i1 to i32
    %c0_i32_0 = arith.constant 0 : i32
    %2 = arith.cmpi ne, %1, %c0_i32_0 : i32
    scf.if %2 {
      %cst_11 = arith.constant 0.000000e+00 : f32
      %16 = vector.broadcast %cst_11 : f32 to vector<512x128xf32>
      %c0_12 = arith.constant 0 : index
      %c0_13 = arith.constant 0 : index
      %17 = vector.load %arg6[%c0_12, %c0_13] : memref<512x128xf32, #tpu.memory_space<vmem>>, vector<512x128xf32>
      tpu.vector_store %arg6[%c0_12, %c0_13], %16 {strides = array<i32>} : memref<512x128xf32, #tpu.memory_space<vmem>>, vector<512x128xf32>,
    } else {
    }
    %c0 = arith.constant 0 : index
    %c0_1 = arith.constant 0 : index
    %3 = vector.load %arg2[%c0, %c0_1] : memref<512x144xbf16, #tpu.memory_space<vmem>>, vector<512x144xbf16>
    %4 = arith.extf %3 : vector<512x144xbf16> to vector<512x144xf32>
    %cst = arith.constant 0.000000e+00 : f32
    %5 = vector.broadcast %cst : f32 to vector<512x144xf32>
    %6 = arith.maximumf %4, %5 : vector<512x144xf32>
    %c0_2 = arith.constant 0 : index
    %c0_3 = arith.constant 0 : index
    %7 = vector.load %arg6[%c0_2, %c0_3] : memref<512x128xf32, #tpu.memory_space<vmem>>, vector<512x128xf32>
    %8 = arith.truncf %6 : vector<512x144xf32> to vector<512x144xbf16>
    %c0_4 = arith.constant 0 : index
    %c0_5 = arith.constant 0 : index
    %9 = vector.load %arg3[%c0_4, %c0_5] : memref<144x128xbf16, #tpu.memory_space<vmem>>, vector<144x128xbf16>
    %cst_6 = arith.constant dense<0.000000e+00> : vector<512x128xf32>
    %10 = tpu.matmul %8, %9, %cst_6 {dimension_numbers = #tpu.dot_dimension_numbers<[1], [0], [0], [1], [0, 0, 1, 1], [], []>} : vector<512x144xbf16>, vector<144x128xbf16>, vector<512x128xf32> -> vector<512x128xf32>
    %11 = arith.addf %7, %10 : vector<512x128xf32>
    %c0_7 = arith.constant 0 : index
    %c0_8 = arith.constant 0 : index
    %12 = vector.load %arg6[%c0_7, %c0_8] : memref<512x128xf32, #tpu.memory_space<vmem>>, vector<512x128xf32>
    tpu.vector_store %arg6[%c0_7, %c0_8], %11 {strides = array<i32>} : memref<512x128xf32, #tpu.memory_space<vmem>>, vector<512x128xf32>,
    %c0_i32_9 = arith.constant 0 : i32
    %13 = arith.cmpi eq, %arg1, %c0_i32_9 : i32
    %14 = arith.extui %13 : i1 to i32
    %c0_i32_10 = arith.constant 0 : i32
    %15 = arith.cmpi ne, %14, %c0_i32_10 : i32
    scf.if %15 {
      %c0_11 = arith.constant 0 : index
      %c0_12 = arith.constant 0 : index
      %16 = vector.load %arg6[%c0_11, %c0_12] : memref<512x128xf32, #tpu.memory_space<vmem>>, vector<512x128xf32>
      %c0_13 = arith.constant 0 : index
      %c0_14 = arith.constant 0 : index
      %17 = vector.load %arg4[%c0_13, %c0_14] : memref<1x128xf32, #tpu.memory_space<vmem>>, vector<1x128xf32>
      %18 = vector.broadcast %17 : vector<1x128xf32> to vector<512x128xf32>
      %19 = arith.addf %16, %18 : vector<512x128xf32>
      %20 = math.tanh %19 : vector<512x128xf32>
      %c0_15 = arith.constant 0 : index
      %c0_16 = arith.constant 0 : index
      %21 = vector.load %arg5[%c0_15, %c0_16] : memref<512x128xf32, #tpu.memory_space<vmem>>, vector<512x128xf32>
      tpu.vector_store %arg5[%c0_15, %c0_16], %20 {strides = array<i32>} : memref<512x128xf32, #tpu.memory_space<vmem>>, vector<512x128xf32>,
    } else {
    }
    return
  }
  func.func @transform_0(%arg0: i32, %arg1: i32) -> (i32, i32) {
    %c0_i32 = arith.constant 0 : i32
    return %arg0, %arg1 : i32, i32
  }
  func.func @transform_1(%arg0: i32, %arg1: i32) -> (i32, i32) {
    %c0_i32 = arith.constant 0 : i32
    %c0_i32_0 = arith.constant 0 : i32
    return %arg1, %c0_i32 : i32, i32
  }
  func.func @transform_2(%arg0: i32, %arg1: i32) -> (i32, i32) {
    %c0_i32 = arith.constant 0 : i32
    %c0_i32_0 = arith.constant 0 : i32
    %c0_i32_1 = arith.constant 0 : i32
    return %c0_i32, %c0_i32_0 : i32, i32
  }
  func.func @transform_3(%arg0: i32, %arg1: i32) -> (i32, i32) {
    %c0_i32 = arith.constant 0 : i32
    %c0_i32_0 = arith.constant 0 : i32
    return %arg0, %c0_i32 : i32, i32
  }
}

</mosaic_0001>

<bundles_post_ra>
// kernel: forward.24
= control target key start
LH: loop header
LB: loop body
LE: loop exit
PB: predicated region body
PF: predicated region fallthrough
CT: control target
= control target key end

     0   :  { %vm395_vm0 = vcmask 392192   ;;  %s1747_s1 = inlined_call_operand.vmem [shape: bf16[48,128], index: 1, kind: input, shape index: {}]   ;;  %s1748_s0 = inlined_call_operand.vmem [shape: bf16[512,48], index: 0, kind: input, shape index: {}]   ;;  %s1749_s2 = inlined_call_operand.vmem [shape: f32[1,128], index: 2, kind: input, shape index: {}]   ;;  %s1750_s3 = inlined_call_operand.vmem [shape: f32[512,128], index: 3, kind: output, shape index: {}]  }
   0x1   :  { %v1294_v0 = vld [vmem:[%s1747_s1] sm:$0xff]   ;;  %v1295_v1 = vld [vmem:[%s1747_s1 + $0x8] sm:$0xff]   ;;  %v1296_v2 = vld [vmem:[%s1747_s1 + $0x10] sm:$0xff]  }
   0x2   :  { %1218 = vmatprep.subr.bf16.mxu0 %v1294_v0  ;;  %1288 = vmatprep.subr.bf16.mxu1 %v1294_v0  ;;  %v1297_v3 = vld [vmem:[%s1748_s0] sm:$0xff]   ;;  %v1299_v5 = vld [vmem:[%s1748_s0 + $0x8] sm:$0xff]   ;;  %v1301_v7 = vld [vmem:[%s1748_s0 + $0x10] sm:$0xff]  }
   0x3   :  { %1219 = vmatpush3.bf16.msra.mxu0 %v1294_v0  ;;  %1291 = vmatpush3.bf16.msra.mxu1 %v1294_v0  ;;  %v1298_v4 = vld [vmem:[%s1748_s0 + $0x80] sm:$0xff]   ;;  %v1300_v6 = vld [vmem:[%s1748_s0 + $0x88] sm:$0xff]   ;;  %v1302_v8 = vld [vmem:[%s1748_s0 + $0x90] sm:$0xff]  }
   0x4   :  { %1220 = vmatprep.subr.bf16.mxu0 %v1295_v1  ;;  %1289 = vmatprep.subr.bf16.mxu1 %v1295_v1  ;;  %v1303_v9 = vld [vmem:[%s1748_s0 + $0x18] sm:$0xff]   ;;  %v1305_v11 = vld [vmem:[%s1748_s0 + $0x20] sm:$0xff]   ;;  %v1307_v13 = vld [vmem:[%s1748_s0 + $0x28] sm:$0xff]  }
   0x5   :  { %1224 = vmatprep.mubr.msk.bf16.mxu0 %vm395_vm0, %v1297_v3  ;;  %1256 = vmatprep.mubr.msk.bf16.mxu1 %vm395_vm0, %v1298_v4  ;;  %v1304_v10 = vld [vmem:[%s1748_s0 + $0x98] sm:$0xff]   ;;  %v1306_v12 = vld [vmem:[%s1748_s0 + $0xa0] sm:$0xff]   ;;  %v1308_v14 = vld [vmem:[%s1748_s0 + $0xa8] sm:$0xff]  }
   0x6   :  { %v1309_v15 = vld [vmem:[%s1748_s0 + $0x30] sm:$0xff]   ;;  %v1311_v17 = vld [vmem:[%s1748_s0 + $0x38] sm:$0xff]   ;;  %v1313_v19 = vld [vmem:[%s1748_s0 + $0x40] sm:$0xff]  }
   0x7   :  { %1221 = vmatpush3.bf16.msra.mxu0 %v1295_v1  ;;  %1292 = vmatpush3.bf16.msra.mxu1 %v1295_v1  ;;  %v1310_v16 = vld [vmem:[%s1748_s0 + $0xb0] sm:$0xff]   ;;  %v1312_v18 = vld [vmem:[%s1748_s0 + $0xb8] sm:$0xff]   ;;  %v1314_v20 = vld [vmem:[%s1748_s0 + $0xc0] sm:$0xff]  }
   0x8   :  { %1222 = vmatprep.subr.bf16.mxu0 %v1296_v2  ;;  %1290 = vmatprep.subr.bf16.mxu1 %v1296_v2  ;;  %v1315_v21 = vld [vmem:[%s1748_s0 + $0x48] sm:$0xff]   ;;  %v1317_v23 = vld [vmem:[%s1748_s0 + $0x50] sm:$0xff]   ;;  %v1319_v25 = vld [vmem:[%s1748_s0 + $0x58] sm:$0xff]  }
   0x9   :  { %v1316_v22 = vld [vmem:[%s1748_s0 + $0xc8] sm:$0xff]   ;;  %v1318_v24 = vld [vmem:[%s1748_s0 + $0xd0] sm:$0xff]   ;;  %v1320_v26 = vld [vmem:[%s1748_s0 + $0xd8] sm:$0xff]  }
   0xa   :  { %v1321_v27 = vld [vmem:[%s1748_s0 + $0x60] sm:$0xff]   ;;  %v1323_v29 = vld [vmem:[%s1748_s0 + $0x68] sm:$0xff]   ;;  %v1325_v31 = vld [vmem:[%s1748_s0 + $0x70] sm:$0xff]  }
   0xb   :  { %1223 = vmatpush3.bf16.msra.mxu0 %v1296_v2  ;;  %1293 = vmatpush3.bf16.msra.mxu1 %v1296_v2  ;;  %v1322_v28 = vld [vmem:[%s1748_s0 + $0xe0] sm:$0xff]   ;;  %v1324_v30 = vld [vmem:[%s1748_s0 + $0xe8] sm:$0xff]   ;;  %v1326_v32 = vld [vmem:[%s1748_s0 + $0xf0] sm:$0xff]  }
   0xc   :  { %v1327_v33 = vld [vmem:[%s1748_s0 + $0x78] sm:$0xff]   ;;  %v1489_v35 = vld [vmem:[%s1749_s2] ss:$0 sm:$0xff] }
   0xd   :  { %v1328_v34 = vld [vmem:[%s1748_s0 + $0xf8] sm:$0xff]  }
   0xe   :  { %1225 = vmatmul.mubr.msk.bf16.vlgmr.msra.gmra.mrb[0].mxu0 %vm395_vm0, %v1299_v5  ;;  %1257 = vmatmul.mubr.msk.bf16.vlgmr.msra.gmra.mrb[0].mxu1 %vm395_vm0, %v1300_v6 }
   0xf   :  { %1228 = vmatprep.mubr.msk.bf16.mxu0 %vm395_vm0, %v1301_v7  ;;  %1260 = vmatprep.mubr.msk.bf16.mxu1 %vm395_vm0, %v1302_v8 }
  0x16   :  { %1229 = vmatmul.mubr.msk.bf16.gmra.mrb[4].mxu0 %vm395_vm0, %v1303_v9  ;;  %1261 = vmatmul.mubr.msk.bf16.gmra.mrb[4].mxu1 %vm395_vm0, %v1304_v10 }
  0x17   :  { %1232 = vmatprep.mubr.msk.bf16.mxu0 %vm395_vm0, %v1305_v11  ;;  %1264 = vmatprep.mubr.msk.bf16.mxu1 %vm395_vm0, %v1306_v12 }
  0x1e   :  { %1233 = vmatmul.mubr.msk.bf16.gmra.mrb[8].mxu0 %vm395_vm0, %v1307_v13  ;;  %1265 = vmatmul.mubr.msk.bf16.gmra.mrb[8].mxu1 %vm395_vm0, %v1308_v14 }
  0x1f   :  { %1236 = vmatprep.mubr.msk.bf16.mxu0 %vm395_vm0, %v1309_v15  ;;  %1268 = vmatprep.mubr.msk.bf16.mxu1 %vm395_vm0, %v1310_v16 }
  0x26   :  { %1237 = vmatmul.mubr.msk.bf16.gmra.mrb[12].mxu0 %vm395_vm0, %v1311_v17  ;;  %1269 = vmatmul.mubr.msk.bf16.gmra.mrb[12].mxu1 %vm395_vm0, %v1312_v18 }
  0x27   :  { %1240 = vmatprep.mubr.msk.bf16.mxu0 %vm395_vm0, %v1313_v19  ;;  %1272 = vmatprep.mubr.msk.bf16.mxu1 %vm395_vm0, %v1314_v20 }
  0x2e   :  { %1241 = vmatmul.mubr.msk.bf16.gmra.mrb[16].mxu0 %vm395_vm0, %v1315_v21  ;;  %1273 = vmatmul.mubr.msk.bf16.gmra.mrb[16].mxu1 %vm395_vm0, %v1316_v22 }
  0x2f   :  { %1244 = vmatprep.mubr.msk.bf16.mxu0 %vm395_vm0, %v1317_v23  ;;  %1276 = vmatprep.mubr.msk.bf16.mxu1 %vm395_vm0, %v1318_v24 }
  0x36   :  { %1245 = vmatmul.mubr.msk.bf16.gmra.mrb[20].mxu0 %vm395_vm0, %v1319_v25  ;;  %1277 = vmatmul.mubr.msk.bf16.gmra.mrb[20].mxu1 %vm395_vm0, %v1320_v26 }
  0x37   :  { %1248 = vmatprep.mubr.msk.bf16.mxu0 %vm395_vm0, %v1321_v27  ;;  %1280 = vmatprep.mubr.msk.bf16.mxu1 %vm395_vm0, %v1322_v28 }
  0x3e   :  { %1249 = vmatmul.mubr.msk.bf16.gmra.mrb[24].mxu0 %vm395_vm0, %v1323_v29  ;;  %1281 = vmatmul.mubr.msk.bf16.gmra.mrb[24].mxu1 %vm395_vm0, %v1324_v30 }
  0x3f   :  { %1252 = vmatprep.mubr.msk.bf16.mxu0 %vm395_vm0, %v1325_v31  ;;  %1284 = vmatprep.mubr.msk.bf16.mxu1 %vm395_vm0, %v1326_v32 }
  0x46   :  { %1253 = vmatmul.mubr.msk.bf16.gmra.mrb[28].mxu0 %vm395_vm0, %v1327_v33  ;;  %1285 = vmatmul.mubr.msk.bf16.gmra.mrb[28].mxu1 %vm395_vm0, %v1328_v34 }
  0xe1   :  { %v1226_v36 = vpop.f32.mrb[0].mxu0  ;;  %v1258_v37 = vpop.f32.mrb[0].mxu1 }
  0xe2   :  { %v985_v38 = vadd.f32 %v1226_v36, %v1489_v35  ;;  %v1017_v39 = vadd.f32 %v1258_v37, %v1489_v35  ;;  %v526_v40 = vpop.f32.mrb[1].mxu0  ;;  %v654_v41 = vpop.f32.mrb[1].mxu1 }
  0xe3   :  { %v983_v42 = vadd.f32 %v1489_v35, %v526_v40  ;;  %v1015_v43 = vadd.f32 %v1489_v35, %v654_v41  ;;  %v1227_v44 = vpop.f32.mrb[2].mxu0  ;;  %v1259_v45 = vpop.f32.mrb[2].mxu1 }
  0xe4   :  { %1049 = vst [vmem:[%s1750_s3 + $0x10] sm:$0xff] %v985_v38  ;;  %1081 = vst [vmem:[%s1750_s3 + $0x110] sm:$0xff] %v1017_v39  ;;  %v986_v46 = vadd.f32 %v1227_v44, %v1489_v35  ;;  %v1018_v47 = vadd.f32 %v1259_v45, %v1489_v35  ;;  %v529_v48 = vpop.f32.mrb[3].mxu0  ;;  %v657_v49 = vpop.f32.mrb[3].mxu1 }
  0xe5   :  { %1047 = vst [vmem:[%s1750_s3] sm:$0xff] %v983_v42  ;;  %1079 = vst [vmem:[%s1750_s3 + $0x100] sm:$0xff] %v1015_v43  ;;  %v984_v50 = vadd.f32 %v1489_v35, %v529_v48  ;;  %v1016_v51 = vadd.f32 %v1489_v35, %v657_v49 }
  0xe6   :  { %1050 = vst [vmem:[%s1750_s3 + $0x18] sm:$0xff] %v986_v46  ;;  %1082 = vst [vmem:[%s1750_s3 + $0x118] sm:$0xff] %v1018_v47 }
  0xe7   :  { %1048 = vst [vmem:[%s1750_s3 + $0x8] sm:$0xff] %v984_v50  ;;  %1080 = vst [vmem:[%s1750_s3 + $0x108] sm:$0xff] %v1016_v51 }
  0xe9   :  { %v1230_v52 = vpop.f32.mrb[4].mxu0  ;;  %v1262_v53 = vpop.f32.mrb[4].mxu1 }
  0xea   :  { %v989_v54 = vadd.f32 %v1230_v52, %v1489_v35  ;;  %v1021_v55 = vadd.f32 %v1262_v53, %v1489_v35  ;;  %v542_v56 = vpop.f32.mrb[5].mxu0  ;;  %v670_v57 = vpop.f32.mrb[5].mxu1 }
  0xeb   :  { %v987_v58 = vadd.f32 %v1489_v35, %v542_v56  ;;  %v1019_v59 = vadd.f32 %v1489_v35, %v670_v57  ;;  %v1231_v60 = vpop.f32.mrb[6].mxu0  ;;  %v1263_v61 = vpop.f32.mrb[6].mxu1 }
  0xec   :  { %1053 = vst [vmem:[%s1750_s3 + $0x30] sm:$0xff] %v989_v54  ;;  %1085 = vst [vmem:[%s1750_s3 + $0x130] sm:$0xff] %v1021_v55  ;;  %v990_v62 = vadd.f32 %v1231_v60, %v1489_v35  ;;  %v1022_v63 = vadd.f32 %v1263_v61, %v1489_v35  ;;  %v545_v0 = vpop.f32.mrb[7].mxu0  ;;  %v673_v1 = vpop.f32.mrb[7].mxu1 }
  0xed   :  { %1051 = vst [vmem:[%s1750_s3 + $0x20] sm:$0xff] %v987_v58  ;;  %1083 = vst [vmem:[%s1750_s3 + $0x120] sm:$0xff] %v1019_v59  ;;  %v988_v2 = vadd.f32 %v1489_v35, %v545_v0  ;;  %v1020_v3 = vadd.f32 %v1489_v35, %v673_v1 }
  0xee   :  { %1054 = vst [vmem:[%s1750_s3 + $0x38] sm:$0xff] %v990_v62  ;;  %1086 = vst [vmem:[%s1750_s3 + $0x138] sm:$0xff] %v1022_v63 }
  0xef   :  { %1052 = vst [vmem:[%s1750_s3 + $0x28] sm:$0xff] %v988_v2  ;;  %1084 = vst [vmem:[%s1750_s3 + $0x128] sm:$0xff] %v1020_v3 }
  0xf1   :  { %v1234_v4 = vpop.f32.mrb[8].mxu0  ;;  %v1266_v5 = vpop.f32.mrb[8].mxu1 }
  0xf2   :  { %v993_v6 = vadd.f32 %v1234_v4, %v1489_v35  ;;  %v1025_v7 = vadd.f32 %v1266_v5, %v1489_v35  ;;  %v558_v8 = vpop.f32.mrb[9].mxu0  ;;  %v686_v9 = vpop.f32.mrb[9].mxu1 }
  0xf3   :  { %v991_v10 = vadd.f32 %v1489_v35, %v558_v8  ;;  %v1023_v11 = vadd.f32 %v1489_v35, %v686_v9  ;;  %v1235_v12 = vpop.f32.mrb[10].mxu0  ;;  %v1267_v13 = vpop.f32.mrb[10].mxu1 }
  0xf4   :  { %1057 = vst [vmem:[%s1750_s3 + $0x50] sm:$0xff] %v993_v6  ;;  %1089 = vst [vmem:[%s1750_s3 + $0x150] sm:$0xff] %v1025_v7  ;;  %v994_v14 = vadd.f32 %v1235_v12, %v1489_v35  ;;  %v1026_v15 = vadd.f32 %v1267_v13, %v1489_v35  ;;  %v561_v16 = vpop.f32.mrb[11].mxu0  ;;  %v689_v17 = vpop.f32.mrb[11].mxu1 }
  0xf5   :  { %1055 = vst [vmem:[%s1750_s3 + $0x40] sm:$0xff] %v991_v10  ;;  %1087 = vst [vmem:[%s1750_s3 + $0x140] sm:$0xff] %v1023_v11  ;;  %v992_v18 = vadd.f32 %v1489_v35, %v561_v16  ;;  %v1024_v19 = vadd.f32 %v1489_v35, %v689_v17 }
  0xf6   :  { %1058 = vst [vmem:[%s1750_s3 + $0x58] sm:$0xff] %v994_v14  ;;  %1090 = vst [vmem:[%s1750_s3 + $0x158] sm:$0xff] %v1026_v15 }
  0xf7   :  { %1056 = vst [vmem:[%s1750_s3 + $0x48] sm:$0xff] %v992_v18  ;;  %1088 = vst [vmem:[%s1750_s3 + $0x148] sm:$0xff] %v1024_v19 }
  0xf9   :  { %v1238_v20 = vpop.f32.mrb[12].mxu0  ;;  %v1270_v21 = vpop.f32.mrb[12].mxu1 }
  0xfa   :  { %v997_v22 = vadd.f32 %v1238_v20, %v1489_v35  ;;  %v1029_v23 = vadd.f32 %v1270_v21, %v1489_v35  ;;  %v574_v24 = vpop.f32.mrb[13].mxu0  ;;  %v702_v25 = vpop.f32.mrb[13].mxu1 }
  0xfb   :  { %v995_v26 = vadd.f32 %v1489_v35, %v574_v24  ;;  %v1027_v27 = vadd.f32 %v1489_v35, %v702_v25  ;;  %v1239_v28 = vpop.f32.mrb[14].mxu0  ;;  %v1271_v29 = vpop.f32.mrb[14].mxu1 }
  0xfc   :  { %1061 = vst [vmem:[%s1750_s3 + $0x70] sm:$0xff] %v997_v22  ;;  %1093 = vst [vmem:[%s1750_s3 + $0x170] sm:$0xff] %v1029_v23  ;;  %v998_v30 = vadd.f32 %v1239_v28, %v1489_v35  ;;  %v1030_v31 = vadd.f32 %v1271_v29, %v1489_v35  ;;  %v577_v32 = vpop.f32.mrb[15].mxu0  ;;  %v705_v33 = vpop.f32.mrb[15].mxu1 }
  0xfd   :  { %1059 = vst [vmem:[%s1750_s3 + $0x60] sm:$0xff] %v995_v26  ;;  %1091 = vst [vmem:[%s1750_s3 + $0x160] sm:$0xff] %v1027_v27  ;;  %v996_v34 = vadd.f32 %v1489_v35, %v577_v32  ;;  %v1028_v36 = vadd.f32 %v1489_v35, %v705_v33 }
  0xfe   :  { %1062 = vst [vmem:[%s1750_s3 + $0x78] sm:$0xff] %v998_v30  ;;  %1094 = vst [vmem:[%s1750_s3 + $0x178] sm:$0xff] %v1030_v31 }
  0xff   :  { %1060 = vst [vmem:[%s1750_s3 + $0x68] sm:$0xff] %v996_v34  ;;  %1092 = vst [vmem:[%s1750_s3 + $0x168] sm:$0xff] %v1028_v36 }
 0x101   :  { %v1242_v37 = vpop.f32.mrb[16].mxu0  ;;  %v1274_v38 = vpop.f32.mrb[16].mxu1 }
 0x102   :  { %v1001_v39 = vadd.f32 %v1242_v37, %v1489_v35  ;;  %v1033_v40 = vadd.f32 %v1274_v38, %v1489_v35  ;;  %v590_v41 = vpop.f32.mrb[17].mxu0  ;;  %v718_v42 = vpop.f32.mrb[17].mxu1 }
 0x103   :  { %v999_v43 = vadd.f32 %v1489_v35, %v590_v41  ;;  %v1031_v44 = vadd.f32 %v1489_v35, %v718_v42  ;;  %v1243_v45 = vpop.f32.mrb[18].mxu0  ;;  %v1275_v46 = vpop.f32.mrb[18].mxu1 }
 0x104   :  { %1065 = vst [vmem:[%s1750_s3 + $0x90] sm:$0xff] %v1001_v39  ;;  %1097 = vst [vmem:[%s1750_s3 + $0x190] sm:$0xff] %v1033_v40  ;;  %v1002_v47 = vadd.f32 %v1243_v45, %v1489_v35  ;;  %v1034_v48 = vadd.f32 %v1275_v46, %v1489_v35  ;;  %v593_v49 = vpop.f32.mrb[19].mxu0  ;;  %v721_v50 = vpop.f32.mrb[19].mxu1 }
 0x105   :  { %1063 = vst [vmem:[%s1750_s3 + $0x80] sm:$0xff] %v999_v43  ;;  %1095 = vst [vmem:[%s1750_s3 + $0x180] sm:$0xff] %v1031_v44  ;;  %v1000_v51 = vadd.f32 %v1489_v35, %v593_v49  ;;  %v1032_v52 = vadd.f32 %v1489_v35, %v721_v50 }
 0x106   :  { %1066 = vst [vmem:[%s1750_s3 + $0x98] sm:$0xff] %v1002_v47  ;;  %1098 = vst [vmem:[%s1750_s3 + $0x198] sm:$0xff] %v1034_v48 }
 0x107   :  { %1064 = vst [vmem:[%s1750_s3 + $0x88] sm:$0xff] %v1000_v51  ;;  %1096 = vst [vmem:[%s1750_s3 + $0x188] sm:$0xff] %v1032_v52 }
 0x109   :  { %v1246_v53 = vpop.f32.mrb[20].mxu0  ;;  %v1278_v54 = vpop.f32.mrb[20].mxu1 }
 0x10a   :  { %v1005_v55 = vadd.f32 %v1246_v53, %v1489_v35  ;;  %v1037_v56 = vadd.f32 %v1278_v54, %v1489_v35  ;;  %v606_v57 = vpop.f32.mrb[21].mxu0  ;;  %v734_v58 = vpop.f32.mrb[21].mxu1 }
 0x10b   :  { %v1003_v59 = vadd.f32 %v1489_v35, %v606_v57  ;;  %v1035_v60 = vadd.f32 %v1489_v35, %v734_v58  ;;  %v1247_v61 = vpop.f32.mrb[22].mxu0  ;;  %v1279_v62 = vpop.f32.mrb[22].mxu1 }
 0x10c   :  { %1069 = vst [vmem:[%s1750_s3 + $0xb0] sm:$0xff] %v1005_v55  ;;  %1101 = vst [vmem:[%s1750_s3 + $0x1b0] sm:$0xff] %v1037_v56  ;;  %v1006_v63 = vadd.f32 %v1247_v61, %v1489_v35  ;;  %v1038_v0 = vadd.f32 %v1279_v62, %v1489_v35  ;;  %v609_v1 = vpop.f32.mrb[23].mxu0  ;;  %v737_v2 = vpop.f32.mrb[23].mxu1 }
 0x10d   :  { %1067 = vst [vmem:[%s1750_s3 + $0xa0] sm:$0xff] %v1003_v59  ;;  %1099 = vst [vmem:[%s1750_s3 + $0x1a0] sm:$0xff] %v1035_v60  ;;  %v1004_v3 = vadd.f32 %v1489_v35, %v609_v1  ;;  %v1036_v4 = vadd.f32 %v1489_v35, %v737_v2 }
 0x10e   :  { %1070 = vst [vmem:[%s1750_s3 + $0xb8] sm:$0xff] %v1006_v63  ;;  %1102 = vst [vmem:[%s1750_s3 + $0x1b8] sm:$0xff] %v1038_v0 }
 0x10f   :  { %1068 = vst [vmem:[%s1750_s3 + $0xa8] sm:$0xff] %v1004_v3  ;;  %1100 = vst [vmem:[%s1750_s3 + $0x1a8] sm:$0xff] %v1036_v4 }
 0x111   :  { %v1250_v5 = vpop.f32.mrb[24].mxu0  ;;  %v1282_v6 = vpop.f32.mrb[24].mxu1 }
 0x112   :  { %v1009_v7 = vadd.f32 %v1250_v5, %v1489_v35  ;;  %v1041_v8 = vadd.f32 %v1282_v6, %v1489_v35  ;;  %v622_v9 = vpop.f32.mrb[25].mxu0  ;;  %v750_v10 = vpop.f32.mrb[25].mxu1 }
 0x113   :  { %v1007_v11 = vadd.f32 %v1489_v35, %v622_v9  ;;  %v1039_v12 = vadd.f32 %v1489_v35, %v750_v10  ;;  %v1251_v13 = vpop.f32.mrb[26].mxu0  ;;  %v1283_v14 = vpop.f32.mrb[26].mxu1 }
 0x114   :  { %1073 = vst [vmem:[%s1750_s3 + $0xd0] sm:$0xff] %v1009_v7  ;;  %1105 = vst [vmem:[%s1750_s3 + $0x1d0] sm:$0xff] %v1041_v8  ;;  %v1010_v15 = vadd.f32 %v1251_v13, %v1489_v35  ;;  %v1042_v16 = vadd.f32 %v1283_v14, %v1489_v35  ;;  %v625_v17 = vpop.f32.mrb[27].mxu0  ;;  %v753_v18 = vpop.f32.mrb[27].mxu1 }
 0x115   :  { %1071 = vst [vmem:[%s1750_s3 + $0xc0] sm:$0xff] %v1007_v11  ;;  %1103 = vst [vmem:[%s1750_s3 + $0x1c0] sm:$0xff] %v1039_v12  ;;  %v1008_v19 = vadd.f32 %v1489_v35, %v625_v17  ;;  %v1040_v20 = vadd.f32 %v1489_v35, %v753_v18 }
 0x116   :  { %1074 = vst [vmem:[%s1750_s3 + $0xd8] sm:$0xff] %v1010_v15  ;;  %1106 = vst [vmem:[%s1750_s3 + $0x1d8] sm:$0xff] %v1042_v16 }
 0x117   :  { %1072 = vst [vmem:[%s1750_s3 + $0xc8] sm:$0xff] %v1008_v19  ;;  %1104 = vst [vmem:[%s1750_s3 + $0x1c8] sm:$0xff] %v1040_v20 }
 0x119   :  { %v1254_v21 = vpop.f32.mrb[28].mxu0  ;;  %v1286_v22 = vpop.f32.mrb[28].mxu1 }
 0x11a   :  { %v1013_v23 = vadd.f32 %v1254_v21, %v1489_v35  ;;  %v1045_v24 = vadd.f32 %v1286_v22, %v1489_v35  ;;  %v638_v25 = vpop.f32.mrb[29].mxu0  ;;  %v766_v26 = vpop.f32.mrb[29].mxu1 }
 0x11b   :  { %v1011_v27 = vadd.f32 %v1489_v35, %v638_v25  ;;  %v1043_v28 = vadd.f32 %v1489_v35, %v766_v26  ;;  %v1255_v29 = vpop.f32.mrb[30].mxu0  ;;  %v1287_v30 = vpop.f32.mrb[30].mxu1 }
 0x11c   :  { %1077 = vst [vmem:[%s1750_s3 + $0xf0] sm:$0xff] %v1013_v23  ;;  %1109 = vst [vmem:[%s1750_s3 + $0x1f0] sm:$0xff] %v1045_v24  ;;  %v1014_v31 = vadd.f32 %v1255_v29, %v1489_v35  ;;  %v1046_v32 = vadd.f32 %v1287_v30, %v1489_v35  ;;  %v641_v33 = vpop.f32.mrb[31].mxu0  ;;  %v769_v34 = vpop.f32.mrb[31].mxu1 }
 0x11d   :  { %1075 = vst [vmem:[%s1750_s3 + $0xe0] sm:$0xff] %v1011_v27  ;;  %1107 = vst [vmem:[%s1750_s3 + $0x1e0] sm:$0xff] %v1043_v28  ;;  %v1012_v36 = vadd.f32 %v1489_v35, %v641_v33  ;;  %v1044_v37 = vadd.f32 %v1489_v35, %v769_v34 }
 0x11e   :  { %1078 = vst [vmem:[%s1750_s3 + $0xf8] sm:$0xff] %v1014_v31  ;;  %1110 = vst [vmem:[%s1750_s3 + $0x1f8] sm:$0xff] %v1046_v32 }
 0x11f   :  { %1076 = vst [vmem:[%s1750_s3 + $0xe8] sm:$0xff] %v1012_v36  ;;  %1108 = vst [vmem:[%s1750_s3 + $0x1e8] sm:$0xff] %v1044_v37 }

// kernel: forward.25
= control target key start
LH: loop header
LB: loop body
LE: loop exit
PB: predicated region body
PF: predicated region fallthrough
CT: control target
= control target key end

     0   :  { %s635_s1 = inlined_call_operand.vmem [shape: bf16[128,128], index: 1, kind: input, shape index: {}]   ;;  %s636_s0 = inlined_call_operand.vmem [shape: bf16[128,128], index: 0, kind: input, shape index: {}]   ;;  %s637_s2 = inlined_call_operand.vmem [shape: f32[1,128], index: 2, kind: input, shape index: {}]   ;;  %s638_s3 = inlined_call_operand.vmem [shape: f32[128,128], index: 3, kind: output, shape index: {}]  }
   0x1   :  { %v506_v0 = vld [vmem:[%s635_s1] sm:$0xff]   ;;  %v507_v1 = vld [vmem:[%s635_s1 + $0x8] sm:$0xff]   ;;  %v508_v2 = vld [vmem:[%s635_s1 + $0x10] sm:$0xff]  }
   0x2   :  { %458 = vmatprep.subr.bf16.mxu0 %v506_v0  ;;  %490 = vmatprep.subr.bf16.mxu1 %v506_v0  ;;  %v509_v3 = vld [vmem:[%s635_s1 + $0x18] sm:$0xff]   ;;  %v404_v4 = vld [vmem:[%s636_s0] sm:$0xff]   ;;  %v435_v20 = vld [vmem:[%s636_s0 + $0x8] sm:$0xff]  }
   0x3   :  { %459 = vmatpush3.bf16.msra.mxu0 %v506_v0  ;;  %498 = vmatpush3.bf16.msra.mxu1 %v506_v0  ;;  %v438_v5 = vld [vmem:[%s636_s0 + $0x20] sm:$0xff]   ;;  %v405_v6 = vunpack.c.l.bf16 %v404_v4  ;;  %v406_v7 = vunpack.c.h.bf16 %v404_v4  ;;  %v439_v22 = vld [vmem:[%s636_s0 + $0x28] sm:$0xff]   ;;  %v436_v23 = vld [vmem:[%s636_s0 + $0x10] sm:$0xff]   ;;  %v409_v25 = vunpack.c.l.bf16 %v435_v20  ;;  %v410_v26 = vunpack.c.h.bf16 %v435_v20 }
   0x4   :  { %460 = vmatprep.subr.bf16.mxu0 %v507_v1  ;;  %491 = vmatprep.subr.bf16.mxu1 %v507_v1  ;;  %v421_v8 = vunpack.c.l.bf16 %v438_v5  ;;  %v422_v9 = vunpack.c.h.bf16 %v438_v5  ;;  %v510_v10 = vld [vmem:[%s635_s1 + $0x20] sm:$0xff]   ;;  %v511_v24 = vld [vmem:[%s635_s1 + $0x28] sm:$0xff]   ;;  %v440_v27 = vld [vmem:[%s636_s0 + $0x30] sm:$0xff]   ;;  %v425_v28 = vunpack.c.l.bf16 %v439_v22  ;;  %v426_v29 = vunpack.c.h.bf16 %v439_v22 }
   0x5   :  { %vm67_vm0 = vcmp.gt.f32.partialorder %v405_v6, 0.0  ;;  %vm68_vm1 = vcmp.gt.f32.partialorder %v406_v7, 0.0  ;;  %v83_v11 = vmul.f32 0.2, %v405_v6  ;;  %v84_v12 = vmul.f32 0.2, %v406_v7 }
   0x6   :  { %vm75_vm2 = vcmp.gt.f32.partialorder %v421_v8, 0.0  ;;  %vm76_vm3 = vcmp.gt.f32.partialorder %v422_v9, 0.0  ;;  %v91_v13 = vmul.f32 0.2, %v421_v8  ;;  %v92_v14 = vmul.f32 0.2, %v422_v9 }
   0x7   :  { %461 = vmatpush3.bf16.msra.mxu0 %v507_v1  ;;  %499 = vmatpush3.bf16.msra.mxu1 %v507_v1  ;;  %v99_v15 = vsel %vm67_vm0, %v405_v6, %v83_v11  ;;  %v100_v16 = vsel %vm68_vm1, %v406_v7, %v84_v12  ;;  %v413_v30 = vunpack.c.l.bf16 %v436_v23  ;;  %v414_v31 = vunpack.c.h.bf16 %v436_v23  ;;  %v512_v32 = vld [vmem:[%s635_s1 + $0x30] sm:$0xff]   ;;  %v513_v37 = vld [vmem:[%s635_s1 + $0x38] sm:$0xff]  }
   0x8   :  { %462 = vmatprep.subr.bf16.mxu0 %v508_v2  ;;  %492 = vmatprep.subr.bf16.mxu1 %v508_v2  ;;  %v131_v17 = vpack.c.bf16 %v100_v16, %v99_v15  ;;  %v107_v18 = vsel %vm75_vm2, %v421_v8, %v91_v13  ;;  %v108_v19 = vsel %vm76_vm3, %v422_v9, %v92_v14  ;;  %v429_v33 = vunpack.c.l.bf16 %v440_v27  ;;  %v437_v42 = vld [vmem:[%s636_s0 + $0x18] sm:$0xff]   ;;  %v402_v8 = vld [vmem:[%s637_s2] ss:$0 sm:$0xff] }
   0x9   :  { %v135_v21 = vpack.c.bf16 %v108_v19, %v107_v18  ;;  %v430_v34 = vunpack.c.h.bf16 %v440_v27  ;;  %vm69_vm4 = vcmp.gt.f32.partialorder %v409_v25, 0.0  ;;  %vm70_vm5 = vcmp.gt.f32.partialorder %v410_v26, 0.0  ;;  %v441_v45 = vld [vmem:[%s636_s0 + $0x38] sm:$0xff]  }
   0xa   :  { %474 = vmatprep.mubr.bf16.mxu0 %v131_v17  ;;  %v85_v35 = vmul.f32 0.2, %v409_v25  ;;  %v86_v36 = vmul.f32 0.2, %v410_v26  ;;  %v93_v38 = vmul.f32 0.2, %v425_v28  ;;  %v417_v51 = vunpack.c.l.bf16 %v437_v42 }
   0xb   :  { %463 = vmatpush3.bf16.msra.mxu0 %v508_v2  ;;  %500 = vmatpush3.bf16.msra.mxu1 %v508_v2  ;;  %v94_v39 = vmul.f32 0.2, %v426_v29  ;;  %v87_v40 = vmul.f32 0.2, %v413_v30  ;;  %vm77_vm6 = vcmp.gt.f32.partialorder %v425_v28, 0.0  ;;  %vm78_vm7 = vcmp.gt.f32.partialorder %v426_v29, 0.0 }
   0xc   :  { %464 = vmatprep.subr.bf16.mxu0 %v509_v3  ;;  %493 = vmatprep.subr.bf16.mxu1 %v509_v3  ;;  %vm71_vm8 = vcmp.gt.f32.partialorder %v413_v30, 0.0  ;;  %v88_v41 = vmul.f32 0.2, %v414_v31  ;;  %vm72_vm9 = vcmp.gt.f32.partialorder %v414_v31, 0.0  ;;  %v95_v43 = vmul.f32 0.2, %v429_v33 }
   0xd   :  { %482 = vmatprep.mubr.bf16.mxu1 %v135_v21  ;;  %v96_v44 = vmul.f32 0.2, %v430_v34  ;;  %v101_v46 = vsel %vm69_vm4, %v409_v25, %v85_v35  ;;  %v102_v47 = vsel %vm70_vm5, %v410_v26, %v86_v36  ;;  %vm79_vm10 = vcmp.gt.f32.partialorder %v429_v33, 0.0 }
   0xe   :  { %vm80_vm11 = vcmp.gt.f32.partialorder %v430_v34, 0.0  ;;  %v109_v48 = vsel %vm77_vm6, %v425_v28, %v93_v38  ;;  %v110_v49 = vsel %vm78_vm7, %v426_v29, %v94_v39  ;;  %v103_v50 = vsel %vm71_vm8, %v413_v30, %v87_v40 }
   0xf   :  { %465 = vmatpush3.bf16.msra.mxu0 %v509_v3  ;;  %501 = vmatpush3.bf16.msra.mxu1 %v509_v3  ;;  %v104_v52 = vsel %vm72_vm9, %v414_v31, %v88_v41  ;;  %v418_v53 = vunpack.c.h.bf16 %v437_v42  ;;  %v433_v54 = vunpack.c.l.bf16 %v441_v45  ;;  %v434_v55 = vunpack.c.h.bf16 %v441_v45 }
  0x10   :  { %466 = vmatprep.subr.bf16.mxu0 %v510_v10  ;;  %494 = vmatprep.subr.bf16.mxu1 %v510_v10  ;;  %v111_v56 = vsel %vm79_vm10, %v429_v33, %v95_v43  ;;  %v112_v57 = vsel %vm80_vm11, %v430_v34, %v96_v44  ;;  %v132_v58 = vpack.c.bf16 %v102_v47, %v101_v46  ;;  %vm73_vm12 = vcmp.gt.f32.partialorder %v417_v51, 0.0 }
  0x11   :  { %v136_v59 = vpack.c.bf16 %v110_v49, %v109_v48  ;;  %v133_v60 = vpack.c.bf16 %v104_v52, %v103_v50  ;;  %v89_v61 = vmul.f32 0.2, %v417_v51  ;;  %v137_v62 = vpack.c.bf16 %v112_v57, %v111_v56 }
  0x12   :  { %v90_v63 = vmul.f32 0.2, %v418_v53  ;;  %v97_v0 = vmul.f32 0.2, %v433_v54  ;;  %v98_v1 = vmul.f32 0.2, %v434_v55 }
  0x13   :  { %467 = vmatpush3.bf16.msra.mxu0 %v510_v10  ;;  %502 = vmatpush3.bf16.msra.mxu1 %v510_v10  ;;  %vm74_vm13 = vcmp.gt.f32.partialorder %v418_v53, 0.0  ;;  %vm81_vm14 = vcmp.gt.f32.partialorder %v433_v54, 0.0  ;;  %vm82_vm15 = vcmp.gt.f32.partialorder %v434_v55, 0.0  ;;  %v105_v2 = vsel %vm73_vm12, %v417_v51, %v89_v61 }
  0x14   :  { %468 = vmatprep.subr.bf16.mxu0 %v511_v24  ;;  %495 = vmatprep.subr.bf16.mxu1 %v511_v24  ;;  %v106_v3 = vsel %vm74_vm13, %v418_v53, %v90_v63  ;;  %v113_v4 = vsel %vm81_vm14, %v433_v54, %v97_v0  ;;  %v114_v5 = vsel %vm82_vm15, %v434_v55, %v98_v1 }
  0x15   :  { %v134_v6 = vpack.c.bf16 %v106_v3, %v105_v2  ;;  %v138_v7 = vpack.c.bf16 %v114_v5, %v113_v4 }
  0x17   :  { %469 = vmatpush3.bf16.msra.mxu0 %v511_v24  ;;  %503 = vmatpush3.bf16.msra.mxu1 %v511_v24 }
  0x18   :  { %470 = vmatprep.subr.bf16.mxu0 %v512_v32  ;;  %496 = vmatprep.subr.bf16.mxu1 %v512_v32 }
  0x1b   :  { %471 = vmatpush3.bf16.msra.mxu0 %v512_v32  ;;  %504 = vmatpush3.bf16.msra.mxu1 %v512_v32 }
  0x1c   :  { %472 = vmatprep.subr.bf16.mxu0 %v513_v37  ;;  %497 = vmatprep.subr.bf16.mxu1 %v513_v37 }
  0x1f   :  { %473 = vmatpush3.bf16.msra.mxu0 %v513_v37  ;;  %505 = vmatpush3.bf16.msra.mxu1 %v513_v37 }
  0x22   :  { %475 = vmatmul.mubr.bf16.vlgmr.msra.gmra.mrb[0].mxu0 %v132_v58  ;;  %483 = vmatmul.mubr.bf16.vlgmr.msra.gmra.mrb[0].mxu1 %v136_v59 }
  0x23   :  { %478 = vmatprep.mubr.bf16.mxu0 %v133_v60  ;;  %486 = vmatprep.mubr.bf16.mxu1 %v137_v62 }
  0x2a   :  { %479 = vmatmul.mubr.bf16.gmra.mrb[4].mxu0 %v134_v6  ;;  %487 = vmatmul.mubr.bf16.gmra.mrb[4].mxu1 %v138_v7 }
  0xf5   :  { %v476_v9 = vpop.f32.mrb[0].mxu0  ;;  %v484_v10 = vpop.f32.mrb[0].mxu1 }
  0xf6   :  { %v360_v11 = vadd.f32 %v476_v9, %v402_v8  ;;  %v368_v12 = vadd.f32 %v484_v10, %v402_v8  ;;  %v237_v13 = vpop.f32.mrb[1].mxu0  ;;  %v269_v14 = vpop.f32.mrb[1].mxu1 }
  0xf7   :  { %v358_v15 = vadd.f32 %v402_v8, %v237_v13  ;;  %v366_v16 = vadd.f32 %v402_v8, %v269_v14  ;;  %v477_v17 = vpop.f32.mrb[2].mxu0  ;;  %v485_v18 = vpop.f32.mrb[2].mxu1 }
  0xf8   :  { %376 = vst [vmem:[%s638_s3 + $0x10] sm:$0xff] %v360_v11  ;;  %384 = vst [vmem:[%s638_s3 + $0x50] sm:$0xff] %v368_v12  ;;  %v361_v19 = vadd.f32 %v477_v17, %v402_v8  ;;  %v369_v20 = vadd.f32 %v485_v18, %v402_v8  ;;  %v240_v21 = vpop.f32.mrb[3].mxu0  ;;  %v272_v22 = vpop.f32.mrb[3].mxu1 }
  0xf9   :  { %374 = vst [vmem:[%s638_s3] sm:$0xff] %v358_v15  ;;  %382 = vst [vmem:[%s638_s3 + $0x40] sm:$0xff] %v366_v16  ;;  %v359_v23 = vadd.f32 %v402_v8, %v240_v21  ;;  %v367_v24 = vadd.f32 %v402_v8, %v272_v22 }
  0xfa   :  { %377 = vst [vmem:[%s638_s3 + $0x18] sm:$0xff] %v361_v19  ;;  %385 = vst [vmem:[%s638_s3 + $0x58] sm:$0xff] %v369_v20 }
  0xfb   :  { %375 = vst [vmem:[%s638_s3 + $0x8] sm:$0xff] %v359_v23  ;;  %383 = vst [vmem:[%s638_s3 + $0x48] sm:$0xff] %v367_v24 }
  0xfd   :  { %v480_v25 = vpop.f32.mrb[4].mxu0  ;;  %v488_v26 = vpop.f32.mrb[4].mxu1 }
  0xfe   :  { %v364_v27 = vadd.f32 %v480_v25, %v402_v8  ;;  %v372_v28 = vadd.f32 %v488_v26, %v402_v8  ;;  %v253_v29 = vpop.f32.mrb[5].mxu0  ;;  %v285_v30 = vpop.f32.mrb[5].mxu1 }
  0xff   :  { %v362_v31 = vadd.f32 %v402_v8, %v253_v29  ;;  %v370_v32 = vadd.f32 %v402_v8, %v285_v30  ;;  %v481_v33 = vpop.f32.mrb[6].mxu0  ;;  %v489_v34 = vpop.f32.mrb[6].mxu1 }
 0x100   :  { %380 = vst [vmem:[%s638_s3 + $0x30] sm:$0xff] %v364_v27  ;;  %388 = vst [vmem:[%s638_s3 + $0x70] sm:$0xff] %v372_v28  ;;  %v365_v35 = vadd.f32 %v481_v33, %v402_v8  ;;  %v373_v36 = vadd.f32 %v489_v34, %v402_v8  ;;  %v256_v37 = vpop.f32.mrb[7].mxu0  ;;  %v288_v38 = vpop.f32.mrb[7].mxu1 }
 0x101   :  { %378 = vst [vmem:[%s638_s3 + $0x20] sm:$0xff] %v362_v31  ;;  %386 = vst [vmem:[%s638_s3 + $0x60] sm:$0xff] %v370_v32  ;;  %v363_v39 = vadd.f32 %v402_v8, %v256_v37  ;;  %v371_v40 = vadd.f32 %v402_v8, %v288_v38 }
 0x102   :  { %381 = vst [vmem:[%s638_s3 + $0x38] sm:$0xff] %v365_v35  ;;  %389 = vst [vmem:[%s638_s3 + $0x78] sm:$0xff] %v373_v36 }
 0x103   :  { %379 = vst [vmem:[%s638_s3 + $0x28] sm:$0xff] %v363_v39  ;;  %387 = vst [vmem:[%s638_s3 + $0x68] sm:$0xff] %v371_v40 }

// kernel: forward.27
= control target key start
LH: loop header
LB: loop body
LE: loop exit
PB: predicated region body
PF: predicated region fallthrough
CT: control target
= control target key end

     0   :  { %vm76_vm0 = vcmask 130048   ;;  %s237_s0 = inlined_call_operand.vmem [shape: f32[128,16], index: 0, kind: input, shape index: {}]   ;;  %s238_s1 = inlined_call_operand.vmem [shape: f32[1,16], index: 1, kind: input, shape index: {}]   ;;  %s239_s2 = inlined_call_operand.vmem [shape: f32[1,16], index: 2, kind: input, shape index: {}]   ;;  %s240_s3 = inlined_call_operand.vmem [shape: f32[128,16], index: 3, kind: output, shape index: {}]  }
   0x1   :  { %v14_v0 = vld [vmem:[%s237_s0] sm:$0xff]  ;;  %v15_v4 = vld [vmem:[%s237_s0 + $0x8] sm:$0xff]  ;;  %v16_v5 = vld [vmem:[%s237_s0 + $0x10] sm:$0xff] }
   0x2   :  { %v97_v1 = vld [vmem:[%s238_s1] ss:$0 sm:$0xff]  ;;  %v17_v6 = vld [vmem:[%s237_s0 + $0x18] sm:$0xff]  ;;  %v19_v11 = vld [vmem:[%s237_s0 + $0x28] sm:$0xff] }
   0x3   :  { %v98_v2 = vld [vmem:[%s239_s2] ss:$0 sm:$0xff]  ;;  %v37_v3 = vmul.f32 %v97_v1, %v14_v0  ;;  %v38_v7 = vmul.f32 %v97_v1, %v15_v4  ;;  %v39_v8 = vmul.f32 %v97_v1, %v16_v5  ;;  %v40_v9 = vmul.f32 %v97_v1, %v17_v6  ;;  %v20_v12 = vld [vmem:[%s237_s0 + $0x30] sm:$0xff]  ;;  %v21_v17 = vld [vmem:[%s237_s0 + $0x38] sm:$0xff] }
   0x4   :  { %v18_v10 = vld [vmem:[%s237_s0 + $0x20] sm:$0xff]  ;;  %v42_v15 = vmul.f32 %v97_v1, %v19_v11  ;;  %v43_v16 = vmul.f32 %v97_v1, %v20_v12  ;;  %v23_v19 = vld [vmem:[%s237_s0 + $0x48] sm:$0xff]  ;;  %v44_v23 = vmul.f32 %v97_v1, %v21_v17  ;;  %v24_v24 = vld [vmem:[%s237_s0 + $0x50] sm:$0xff] }
   0x5   :  { %v60_v13 = vadd.f32 %v98_v2, %v37_v3  ;;  %v41_v14 = vmul.f32 %v97_v1, %v18_v10  ;;  %v22_v18 = vld [vmem:[%s237_s0 + $0x40] sm:$0xff]  ;;  %v61_v20 = vadd.f32 %v98_v2, %v38_v7  ;;  %v62_v21 = vadd.f32 %v98_v2, %v39_v8  ;;  %v25_v25 = vld [vmem:[%s237_s0 + $0x58] sm:$0xff]  ;;  %v27_v31 = vld [vmem:[%s237_s0 + $0x68] sm:$0xff] }
   0x6   :  { %v63_v22 = vadd.f32 %v98_v2, %v40_v9  ;;  %v26_v26 = vld [vmem:[%s237_s0 + $0x60] sm:$0xff]  ;;  %v65_v28 = vadd.f32 %v98_v2, %v42_v15  ;;  %v66_v29 = vadd.f32 %v98_v2, %v43_v16  ;;  %v45_v30 = vmul.f32 %v97_v1, %v22_v18  ;;  %v28_v32 = vld [vmem:[%s237_s0 + $0x70] sm:$0xff]  ;;  %v29_v33 = vld [vmem:[%s237_s0 + $0x78] sm:$0xff] }
   0x7   :  { %77 = vst.msk [vmem:[%s240_s3] sm:$0xff] %vm76_vm0, %v60_v13  ;;  %v64_v27 = vadd.f32 %v98_v2, %v41_v14  ;;  %78 = vst.msk [vmem:[%s240_s3 + $0x8] sm:$0xff] %vm76_vm0, %v61_v20  ;;  %v67_v34 = vadd.f32 %v98_v2, %v44_v23  ;;  %v46_v35 = vmul.f32 %v97_v1, %v23_v19 }
   0x8   :  { %79 = vst.msk [vmem:[%s240_s3 + $0x10] sm:$0xff] %vm76_vm0, %v62_v21  ;;  %80 = vst.msk [vmem:[%s240_s3 + $0x18] sm:$0xff] %vm76_vm0, %v63_v22  ;;  %v47_v36 = vmul.f32 %v97_v1, %v24_v24  ;;  %v48_v37 = vmul.f32 %v97_v1, %v25_v25  ;;  %v68_v38 = vadd.f32 %v98_v2, %v45_v30 }
   0x9   :  { %81 = vst.msk [vmem:[%s240_s3 + $0x20] sm:$0xff] %vm76_vm0, %v64_v27  ;;  %82 = vst.msk [vmem:[%s240_s3 + $0x28] sm:$0xff] %vm76_vm0, %v65_v28  ;;  %v49_v39 = vmul.f32 %v97_v1, %v26_v26  ;;  %v50_v40 = vmul.f32 %v97_v1, %v27_v31  ;;  %v51_v41 = vmul.f32 %v97_v1, %v28_v32 }
   0xa   :  { %83 = vst.msk [vmem:[%s240_s3 + $0x30] sm:$0xff] %vm76_vm0, %v66_v29  ;;  %84 = vst.msk [vmem:[%s240_s3 + $0x38] sm:$0xff] %vm76_vm0, %v67_v34  ;;  %v69_v42 = vadd.f32 %v98_v2, %v46_v35  ;;  %v70_v43 = vadd.f32 %v98_v2, %v47_v36  ;;  %v71_v44 = vadd.f32 %v98_v2, %v48_v37 }
   0xb   :  { %v52_v45 = vmul.f32 %v97_v1, %v29_v33  ;;  %85 = vst.msk [vmem:[%s240_s3 + $0x40] sm:$0xff] %vm76_vm0, %v68_v38  ;;  %v72_v46 = vadd.f32 %v98_v2, %v49_v39  ;;  %v73_v47 = vadd.f32 %v98_v2, %v50_v40  ;;  %v74_v48 = vadd.f32 %v98_v2, %v51_v41 }
   0xc   :  { %86 = vst.msk [vmem:[%s240_s3 + $0x48] sm:$0xff] %vm76_vm0, %v69_v42  ;;  %87 = vst.msk [vmem:[%s240_s3 + $0x50] sm:$0xff] %vm76_vm0, %v70_v43 }
   0xd   :  { %88 = vst.msk [vmem:[%s240_s3 + $0x58] sm:$0xff] %vm76_vm0, %v71_v44  ;;  %v75_v49 = vadd.f32 %v98_v2, %v52_v45  ;;  %89 = vst.msk [vmem:[%s240_s3 + $0x60] sm:$0xff] %vm76_vm0, %v72_v46 }
   0xe   :  { %90 = vst.msk [vmem:[%s240_s3 + $0x68] sm:$0xff] %vm76_vm0, %v73_v47  ;;  %91 = vst.msk [vmem:[%s240_s3 + $0x70] sm:$0xff] %vm76_vm0, %v74_v48 }
   0xf   :  { %92 = vst.msk [vmem:[%s240_s3 + $0x78] sm:$0xff] %vm76_vm0, %v75_v49 }

// kernel: forward.26
= control target key start
LH: loop header
LB: loop body
LE: loop exit
PB: predicated region body
PF: predicated region fallthrough
CT: control target
= control target key end

     0   :  { %vm14_vm0 = vcmask 122880   ;;  %vm34_vm1 = vcmask 130048   ;;  %v147_v0 = vmov 0.0   ;;  %s255_s0 = inlined_call_operand.vmem [shape: f32[128,16], index: 0, kind: input, shape index: {}]   ;;  %s256_s1 = inlined_call_operand.vmem [shape: f32[1,16], index: 1, kind: output, shape index: {0}]   ;;  %s257_s2 = inlined_call_operand.vmem [shape: f32[1,16], index: 2, kind: output, shape index: {1}]  }
   0x1   :  { %15 = vst.msk [vmem:[#allocation2] sm:$0x1] %vm14_vm0, %v147_v0  ;;  %16 = vst.msk [vmem:[#allocation3] sm:$0x1] %vm14_vm0, %v147_v0  ;;  %v17_v1 = vld [vmem:[%s255_s0] sm:$0xff]  ;;  %v18_v2 = vld [vmem:[%s255_s0 + $0x8] sm:$0xff] }
   0x2   :  { %v19_v3 = vld [vmem:[%s255_s0 + $0x10] sm:$0xff]  ;;  %v35_v4 = vsel %vm34_vm1, %v17_v1, 0.0  ;;  %v36_v5 = vsel %vm34_vm1, %v18_v2, 0.0  ;;  %v20_v7 = vld [vmem:[%s255_s0 + $0x18] sm:$0xff]  ;;  %v21_v10 = vld [vmem:[%s255_s0 + $0x20] sm:$0xff]  ;;  %v76_v15 = vmul.f32 %v17_v1, %v17_v1  ;;  %v77_v16 = vmul.f32 %v18_v2, %v18_v2 }
   0x3   :  { %v38_v6 = vsel %vm34_vm1, %v19_v3, 0.0  ;;  %v37_v8 = vadd.f32 %v36_v5, %v35_v4  ;;  %v40_v9 = vsel %vm34_vm1, %v20_v7, 0.0  ;;  %v42_v12 = vsel %vm34_vm1, %v21_v10, 0.0  ;;  %v22_v13 = vld [vmem:[%s255_s0 + $0x28] sm:$0xff]  ;;  %v23_v19 = vld [vmem:[%s255_s0 + $0x30] sm:$0xff]  ;;  %v24_v24 = vld [vmem:[%s255_s0 + $0x38] sm:$0xff] }
   0x4   :  { %v78_v17 = vmul.f32 %v19_v3, %v19_v3  ;;  %v44_v18 = vsel %vm34_vm1, %v22_v13, 0.0  ;;  %v79_v21 = vmul.f32 %v20_v7, %v20_v7  ;;  %v46_v22 = vsel %vm34_vm1, %v23_v19, 0.0  ;;  %v25_v31 = vld [vmem:[%s255_s0 + $0x40] sm:$0xff]  ;;  %v26_v37 = vld [vmem:[%s255_s0 + $0x48] sm:$0xff]  ;;  %v27_v43 = vld [vmem:[%s255_s0 + $0x50] sm:$0xff] }
   0x5   :  { %v39_v11 = vadd.f32 %v38_v6, %v37_v8  ;;  %v80_v23 = vmul.f32 %v21_v10, %v21_v10  ;;  %v92_v26 = vsel %vm34_vm1, %v76_v15, 0.0  ;;  %v93_v27 = vsel %vm34_vm1, %v77_v16, 0.0  ;;  %v28_v49 = vld [vmem:[%s255_s0 + $0x58] sm:$0xff]  ;;  %v29_v55 = vld [vmem:[%s255_s0 + $0x60] sm:$0xff]  ;;  %v30_v61 = vld [vmem:[%s255_s0 + $0x68] sm:$0xff] }
   0x6   :  { %v95_v28 = vsel %vm34_vm1, %v78_v17, 0.0  ;;  %v48_v29 = vsel %vm34_vm1, %v24_v24, 0.0  ;;  %v94_v30 = vadd.f32 %v93_v27, %v92_v26  ;;  %v81_v33 = vmul.f32 %v22_v13, %v22_v13  ;;  %v31_v3 = vld [vmem:[%s255_s0 + $0x70] sm:$0xff] }
   0x7   :  { %v41_v14 = vadd.f32 %v40_v9, %v39_v11  ;;  %v97_v34 = vsel %vm34_vm1, %v79_v21, 0.0  ;;  %v50_v35 = vsel %vm34_vm1, %v25_v31, 0.0  ;;  %v82_v39 = vmul.f32 %v23_v19, %v23_v19  ;;  %v32_v9 = vld [vmem:[%s255_s0 + $0x78] sm:$0xff] }
   0x8   :  { %v96_v36 = vadd.f32 %v95_v28, %v94_v30  ;;  %v99_v40 = vsel %vm34_vm1, %v80_v23, 0.0  ;;  %v52_v41 = vsel %vm34_vm1, %v26_v37, 0.0  ;;  %v83_v45 = vmul.f32 %v24_v24, %v24_v24 }
   0x9   :  { %v43_v20 = vadd.f32 %v42_v12, %v41_v14  ;;  %v101_v46 = vsel %vm34_vm1, %v81_v33, 0.0  ;;  %v54_v47 = vsel %vm34_vm1, %v27_v43, 0.0  ;;  %v84_v51 = vmul.f32 %v25_v31, %v25_v31 }
   0xa   :  { %v98_v42 = vadd.f32 %v97_v34, %v96_v36  ;;  %v103_v52 = vsel %vm34_vm1, %v82_v39, 0.0  ;;  %v56_v53 = vsel %vm34_vm1, %v28_v49, 0.0  ;;  %v85_v57 = vmul.f32 %v26_v37, %v26_v37  ;;  %v33_v36 = vld [vmem:[#allocation2] sm:$0x1] }
   0xb   :  { %v45_v25 = vadd.f32 %v44_v18, %v43_v20  ;;  %v105_v58 = vsel %vm34_vm1, %v83_v45, 0.0  ;;  %v58_v59 = vsel %vm34_vm1, %v29_v55, 0.0  ;;  %v86_v63 = vmul.f32 %v27_v43, %v27_v43 }
   0xc   :  { %v100_v48 = vadd.f32 %v99_v40, %v98_v42  ;;  %v107_v0 = vsel %vm34_vm1, %v84_v51, 0.0  ;;  %v60_v1 = vsel %vm34_vm1, %v30_v61, 0.0  ;;  %v87_v5 = vmul.f32 %v28_v49, %v28_v49 }
   0xd   :  { %v47_v32 = vadd.f32 %v46_v22, %v45_v25  ;;  %v109_v6 = vsel %vm34_vm1, %v85_v57, 0.0  ;;  %v62_v7 = vsel %vm34_vm1, %v31_v3, 0.0  ;;  %v88_v11 = vmul.f32 %v29_v55, %v29_v55 }
   0xe   :  { %v102_v54 = vadd.f32 %v101_v46, %v100_v48  ;;  %v111_v12 = vsel %vm34_vm1, %v86_v63, 0.0  ;;  %v64_v13 = vsel %vm34_vm1, %v32_v9, 0.0  ;;  %v89_v16 = vmul.f32 %v30_v61, %v30_v61 }
   0xf   :  { %v49_v38 = vadd.f32 %v48_v29, %v47_v32  ;;  %v113_v17 = vsel %vm34_vm1, %v87_v5, 0.0  ;;  %v90_v20 = vmul.f32 %v31_v3, %v31_v3  ;;  %v115_v21 = vsel %vm34_vm1, %v88_v11, 0.0 }
  0x10   :  { %v104_v60 = vadd.f32 %v103_v52, %v102_v54  ;;  %v91_v24 = vmul.f32 %v32_v9, %v32_v9  ;;  %v117_v25 = vsel %vm34_vm1, %v89_v16, 0.0 }
  0x11   :  { %v51_v44 = vadd.f32 %v50_v35, %v49_v38  ;;  %v119_v28 = vsel %vm34_vm1, %v90_v20, 0.0 }
  0x12   :  { %v106_v2 = vadd.f32 %v105_v58, %v104_v60  ;;  %v121_v31 = vsel %vm34_vm1, %v91_v24, 0.0 }
  0x13   :  { %v53_v50 = vadd.f32 %v52_v41, %v51_v44  ;;  %v75_v44 = vld [vmem:[#allocation3] sm:$0x1] }
  0x14   :  { %v108_v8 = vadd.f32 %v107_v0, %v106_v2 }
  0x15   :  { %v55_v56 = vadd.f32 %v54_v47, %v53_v50 }
  0x16   :  { %v110_v14 = vadd.f32 %v109_v6, %v108_v8 }
  0x17   :  { %v57_v62 = vadd.f32 %v56_v53, %v55_v56 }
  0x18   :  { %v112_v18 = vadd.f32 %v111_v12, %v110_v14 }
  0x19   :  { %v59_v4 = vadd.f32 %v58_v59, %v57_v62 }
  0x1a   :  { %v114_v22 = vadd.f32 %v113_v17, %v112_v18 }
  0x1b   :  { %v61_v10 = vadd.f32 %v60_v1, %v59_v4 }
  0x1c   :  { %v116_v26 = vadd.f32 %v115_v21, %v114_v22 }
  0x1d   :  { %v63_v15 = vadd.f32 %v62_v7, %v61_v10 }
  0x1e   :  { %v118_v29 = vadd.f32 %v117_v25, %v116_v26 }
  0x1f   :  { %v65_v19 = vadd.f32 %v64_v13, %v63_v15 }
  0x20   :  { %v120_v32 = vadd.f32 %v119_v28, %v118_v29 }
  0x21   :  { %v66_v23 = vrot.slane %v65_v19, 4 }
  0x22   :  { %v122_v34 = vadd.f32 %v121_v31, %v120_v32 }
  0x23   :  { %v67_v27 = vadd.f32 %v66_v23, %v65_v19 }
  0x24   :  { %v123_v37 = vrot.slane %v122_v34, 4 }
  0x25   :  { %v68_v30 = vrot.slane %v67_v27, 2 }
  0x26   :  { %v124_v39 = vadd.f32 %v123_v37, %v122_v34 }
  0x27   :  { %v69_v33 = vadd.f32 %v68_v30, %v67_v27 }
  0x28   :  { %v125_v41 = vrot.slane %v124_v39, 2 }
  0x29   :  { %v70_v35 = vrot.slane %v69_v33, 1 }
  0x2a   :  { %v126_v42 = vadd.f32 %v125_v41, %v124_v39 }
  0x2b   :  { %v71_v38 = vadd.f32 %v70_v35, %v69_v33 }
  0x2c   :  { %v127_v43 = vrot.slane %v126_v42, 1 }
  0x2d   :  { %v72_v40 = vadd.f32 %v71_v38, %v33_v36 }
  0x2e   :  { %v128_v45 = vadd.f32 %v127_v43, %v126_v42 }
  0x2f   :  { %74 = vst.msk [vmem:[#allocation2] sm:$0x1] %vm14_vm0, %v72_v40 }
  0x30   :  { %v129_v46 = vadd.f32 %v128_v45, %v75_v44 }
  0x32   :  { %130 = vst.msk [vmem:[#allocation3] sm:$0x1] %vm14_vm0, %v129_v46 }
  0x36   :  { %v134_v47 = vld [vmem:[#allocation2] sm:$0x1] }
  0x37   :  { %135 = vst.msk [vmem:[%s256_s1] sm:$0x1] %vm14_vm0, %v134_v47 }
  0x39   :  { %v136_v48 = vld [vmem:[#allocation3] sm:$0x1] }
  0x3a   :  { %137 = vst.msk [vmem:[%s257_s2] sm:$0x1] %vm14_vm0, %v136_v48 }

// kernel: forward.29
= control target key start
LH: loop header
LB: loop body
LE: loop exit
PB: predicated region body
PF: predicated region fallthrough
CT: control target
= control target key end

     0   :  { %vm14_vm0 = vcmask 253952   ;;  %vm22_vm1 = vcmask 261120   ;;  %v75_v0 = vmov 0.0   ;;  %s123_s0 = inlined_call_operand.vmem [shape: f32[32,32], index: 0, kind: input, shape index: {}]   ;;  %s124_s1 = inlined_call_operand.vmem [shape: f32[1,32], index: 1, kind: output, shape index: {0}]   ;;  %s125_s2 = inlined_call_operand.vmem [shape: f32[1,32], index: 2, kind: output, shape index: {1}]  }
   0x1   :  { %15 = vst.msk [vmem:[#allocation2] sm:$0x1] %vm14_vm0, %v75_v0  ;;  %16 = vst.msk [vmem:[#allocation3] sm:$0x1] %vm14_vm0, %v75_v0  ;;  %v17_v1 = vld [vmem:[%s123_s0] sm:$0xff]  ;;  %v18_v2 = vld [vmem:[%s123_s0 + $0x8] sm:$0xff] }
   0x2   :  { %v19_v3 = vld [vmem:[%s123_s0 + $0x10] sm:$0xff]  ;;  %v20_v4 = vld [vmem:[%s123_s0 + $0x18] sm:$0xff]  ;;  %v23_v5 = vsel %vm22_vm1, %v17_v1, 0.0  ;;  %v24_v6 = vsel %vm22_vm1, %v18_v2, 0.0  ;;  %v40_v8 = vmul.f32 %v17_v1, %v17_v1  ;;  %v41_v10 = vmul.f32 %v18_v2, %v18_v2 }
   0x3   :  { %v26_v7 = vsel %vm22_vm1, %v19_v3, 0.0  ;;  %v25_v9 = vadd.f32 %v24_v6, %v23_v5  ;;  %v42_v11 = vmul.f32 %v19_v3, %v19_v3  ;;  %v28_v12 = vsel %vm22_vm1, %v20_v4, 0.0 }
   0x4   :  { %v43_v13 = vmul.f32 %v20_v4, %v20_v4  ;;  %v44_v14 = vsel %vm22_vm1, %v40_v8, 0.0  ;;  %v45_v16 = vsel %vm22_vm1, %v41_v10, 0.0 }
   0x5   :  { %v27_v15 = vadd.f32 %v26_v7, %v25_v9  ;;  %v47_v17 = vsel %vm22_vm1, %v42_v11, 0.0  ;;  %v46_v18 = vadd.f32 %v45_v16, %v44_v14 }
   0x6   :  { %v49_v20 = vsel %vm22_vm1, %v43_v13, 0.0 }
   0x7   :  { %v29_v19 = vadd.f32 %v28_v12, %v27_v15  ;;  %v48_v21 = vadd.f32 %v47_v17, %v46_v18 }
   0x8   :  { %v21_v31 = vld [vmem:[#allocation2] sm:$0x1]  ;;  %v39_v36 = vld [vmem:[#allocation3] sm:$0x1] }
   0x9   :  { %v30_v22 = vrot.slane %v29_v19, 4  ;;  %v50_v23 = vadd.f32 %v49_v20, %v48_v21 }
   0xb   :  { %v31_v24 = vadd.f32 %v30_v22, %v29_v19  ;;  %v51_v25 = vrot.slane %v50_v23, 4 }
   0xd   :  { %v32_v26 = vrot.slane %v31_v24, 2  ;;  %v52_v27 = vadd.f32 %v51_v25, %v50_v23 }
   0xf   :  { %v33_v28 = vadd.f32 %v32_v26, %v31_v24  ;;  %v53_v29 = vrot.slane %v52_v27, 2 }
  0x11   :  { %v34_v30 = vrot.slane %v33_v28, 1  ;;  %v54_v32 = vadd.f32 %v53_v29, %v52_v27 }
  0x13   :  { %v35_v33 = vadd.f32 %v34_v30, %v33_v28  ;;  %v55_v34 = vrot.slane %v54_v32, 1 }
  0x15   :  { %v36_v35 = vadd.f32 %v35_v33, %v21_v31  ;;  %v56_v37 = vadd.f32 %v55_v34, %v54_v32 }
  0x17   :  { %38 = vst.msk [vmem:[#allocation2] sm:$0x1] %vm14_vm0, %v36_v35  ;;  %v57_v38 = vadd.f32 %v56_v37, %v39_v36 }
  0x19   :  { %58 = vst.msk [vmem:[#allocation3] sm:$0x1] %vm14_vm0, %v57_v38 }
  0x1e   :  { %v62_v39 = vld [vmem:[#allocation2] sm:$0x1] }
  0x1f   :  { %63 = vst.msk [vmem:[%s124_s1] sm:$0x1] %vm14_vm0, %v62_v39 }
  0x20   :  { %v64_v40 = vld [vmem:[#allocation3] sm:$0x1] }
  0x21   :  { %65 = vst.msk [vmem:[%s125_s2] sm:$0x1] %vm14_vm0, %v64_v40 }

// kernel: forward.30
= control target key start
LH: loop header
LB: loop body
LE: loop exit
PB: predicated region body
PF: predicated region fallthrough
CT: control target
= control target key end

     0   :  { %vm40_vm0 = vcmask 261120   ;;  %s101_s0 = inlined_call_operand.vmem [shape: f32[32,32], index: 0, kind: input, shape index: {}]   ;;  %s102_s1 = inlined_call_operand.vmem [shape: f32[1,32], index: 1, kind: input, shape index: {}]   ;;  %s103_s2 = inlined_call_operand.vmem [shape: f32[1,32], index: 2, kind: input, shape index: {}]   ;;  %s104_s3 = inlined_call_operand.vmem [shape: f32[32,32], index: 3, kind: output, shape index: {}]  }
   0x1   :  { %v14_v0 = vld [vmem:[%s101_s0] sm:$0xff]  ;;  %v15_v4 = vld [vmem:[%s101_s0 + $0x8] sm:$0xff]  ;;  %v16_v5 = vld [vmem:[%s101_s0 + $0x10] sm:$0xff] }
   0x2   :  { %v49_v1 = vld [vmem:[%s102_s1] ss:$0 sm:$0xff]  ;;  %v17_v6 = vld [vmem:[%s101_s0 + $0x18] sm:$0xff] }
   0x3   :  { %v50_v2 = vld [vmem:[%s103_s2] ss:$0 sm:$0xff]  ;;  %v25_v3 = vmul.f32 %v49_v1, %v14_v0  ;;  %v26_v7 = vmul.f32 %v49_v1, %v15_v4  ;;  %v27_v8 = vmul.f32 %v49_v1, %v16_v5  ;;  %v28_v9 = vmul.f32 %v49_v1, %v17_v6 }
   0x5   :  { %v36_v10 = vadd.f32 %v50_v2, %v25_v3  ;;  %v37_v11 = vadd.f32 %v50_v2, %v26_v7  ;;  %v38_v12 = vadd.f32 %v50_v2, %v27_v8  ;;  %v39_v13 = vadd.f32 %v50_v2, %v28_v9 }
   0x7   :  { %41 = vst.msk [vmem:[%s104_s3] sm:$0xff] %vm40_vm0, %v36_v10  ;;  %42 = vst.msk [vmem:[%s104_s3 + $0x8] sm:$0xff] %vm40_vm0, %v37_v11 }
   0x8   :  { %43 = vst.msk [vmem:[%s104_s3 + $0x10] sm:$0xff] %vm40_vm0, %v38_v12  ;;  %44 = vst.msk [vmem:[%s104_s3 + $0x18] sm:$0xff] %vm40_vm0, %v39_v13 }

// kernel: forward.28
= control target key start
LH: loop header
LB: loop body
LE: loop exit
PB: predicated region body
PF: predicated region fallthrough
CT: control target
= control target key end

     0   :  { %s450_s1 = inlined_call_operand.vmem [shape: bf16[256,128], index: 1, kind: input, shape index: {}]   ;;  %s451_s0 = inlined_call_operand.vmem [shape: bf16[32,256], index: 0, kind: input, shape index: {}]   ;;  %s452_s2 = inlined_call_operand.vmem [shape: f32[1,128], index: 2, kind: input, shape index: {}]   ;;  %s453_s3 = inlined_call_operand.vmem [shape: f32[32,128], index: 3, kind: output, shape index: {}]  }
   0x1   :  { %v339_v0 = vld [vmem:[%s450_s1 + $0x40] sm:$0xff]   ;;  %v341_v2 = vld [vmem:[%s450_s1 + $0x48] sm:$0xff]   ;;  %v343_v4 = vld [vmem:[%s450_s1 + $0x50] sm:$0xff]  }
   0x2   :  { %v340_v1 = vld [vmem:[%s450_s1] sm:$0xff]   ;;  %295 = vmatprep.subr.bf16.mxu0 %v339_v0  ;;  %323 = vmatprep.subr.bf16.mxu1 %v339_v0  ;;  %v342_v3 = vld [vmem:[%s450_s1 + $0x8] sm:$0xff]   ;;  %v344_v5 = vld [vmem:[%s450_s1 + $0x10] sm:$0xff]  }
   0x3   :  { %296 = vmatpush3.bf16.msra.mxu0 %v340_v1  ;;  %331 = vmatpush3.bf16.msra.mxu1 %v340_v1  ;;  %v345_v6 = vld [vmem:[%s450_s1 + $0x58] sm:$0xff]   ;;  %v347_v8 = vld [vmem:[%s450_s1 + $0x60] sm:$0xff]   ;;  %v349_v10 = vld [vmem:[%s450_s1 + $0x68] sm:$0xff]  }
   0x4   :  { %297 = vmatprep.subr.bf16.mxu0 %v341_v2  ;;  %324 = vmatprep.subr.bf16.mxu1 %v341_v2  ;;  %v346_v7 = vld [vmem:[%s450_s1 + $0x18] sm:$0xff]   ;;  %v348_v9 = vld [vmem:[%s450_s1 + $0x20] sm:$0xff]   ;;  %v24_v12 = vld [vmem:[%s451_s0 + $0x8] sm:$0xff] }
   0x5   :  { %v23_v11 = vld [vmem:[%s451_s0] sm:$0xff]  ;;  %v25_v13 = vld [vmem:[%s451_s0 + $0x10] sm:$0xff]  ;;  %v29_v16 = vunpack.c.l.bf16 %v24_v12  ;;  %v30_v17 = vunpack.c.h.bf16 %v24_v12  ;;  %v26_v18 = vld [vmem:[%s451_s0 + $0x18] sm:$0xff] }
   0x6   :  { %v27_v14 = vunpack.c.l.bf16 %v23_v11  ;;  %v28_v15 = vunpack.c.h.bf16 %v23_v11  ;;  %v350_v19 = vld [vmem:[%s450_s1 + $0x28] sm:$0xff]   ;;  %v351_v20 = vld [vmem:[%s450_s1 + $0x70] sm:$0xff]   ;;  %v31_v21 = vunpack.c.l.bf16 %v25_v13  ;;  %v32_v22 = vunpack.c.h.bf16 %v25_v13  ;;  %v353_v36 = vld [vmem:[%s450_s1 + $0x78] sm:$0xff]  }
   0x7   :  { %298 = vmatpush3.bf16.msra.mxu0 %v342_v3  ;;  %332 = vmatpush3.bf16.msra.mxu1 %v342_v3  ;;  %v33_v23 = vunpack.c.l.bf16 %v26_v18  ;;  %v34_v24 = vunpack.c.h.bf16 %v26_v18  ;;  %vm38_vm1 = vcmp.gt.f32.partialorder %v30_v17, 0.0  ;;  %v46_v26 = vmul.f32 0.2, %v30_v17  ;;  %v352_v35 = vld [vmem:[%s450_s1 + $0x30] sm:$0xff]   ;;  %v354_v42 = vld [vmem:[%s450_s1 + $0x38] sm:$0xff]  }
   0x8   :  { %299 = vmatprep.subr.bf16.mxu0 %v343_v4  ;;  %325 = vmatprep.subr.bf16.mxu1 %v343_v4  ;;  %vm36_vm0 = vcmp.gt.f32.partialorder %v28_v15, 0.0  ;;  %v44_v25 = vmul.f32 0.2, %v28_v15  ;;  %vm40_vm2 = vcmp.gt.f32.partialorder %v32_v22, 0.0  ;;  %v48_v27 = vmul.f32 0.2, %v32_v22 }
   0x9   :  { %vm42_vm3 = vcmp.gt.f32.partialorder %v34_v24, 0.0  ;;  %v50_v28 = vmul.f32 0.2, %v34_v24  ;;  %v54_v30 = vsel %vm38_vm1, %v30_v17, %v46_v26  ;;  %v43_v34 = vmul.f32 0.2, %v27_v14 }
   0xa   :  { %v52_v29 = vsel %vm36_vm0, %v28_v15, %v44_v25  ;;  %v56_v32 = vsel %vm40_vm2, %v32_v22, %v48_v27  ;;  %vm35_vm4 = vcmp.gt.f32.partialorder %v27_v14, 0.0  ;;  %vm37_vm5 = vcmp.gt.f32.partialorder %v29_v16, 0.0  ;;  %v294_v51 = vld [vmem:[%s452_s2] ss:$0 sm:$0xff] }
   0xb   :  { %300 = vmatpush3.bf16.msra.mxu0 %v344_v5  ;;  %333 = vmatpush3.bf16.msra.mxu1 %v344_v5  ;;  %v64_v31 = vpack.c.bf16 %v54_v30, %v52_v29  ;;  %v58_v33 = vsel %vm42_vm3, %v34_v24, %v50_v28  ;;  %v45_v38 = vmul.f32 0.2, %v29_v16  ;;  %vm39_vm6 = vcmp.gt.f32.partialorder %v31_v21, 0.0 }
   0xc   :  { %301 = vmatprep.subr.bf16.mxu0 %v345_v6  ;;  %326 = vmatprep.subr.bf16.mxu1 %v345_v6  ;;  %v66_v37 = vpack.c.bf16 %v58_v33, %v56_v32  ;;  %vm41_vm7 = vcmp.gt.f32.partialorder %v33_v23, 0.0  ;;  %v47_v39 = vmul.f32 0.2, %v31_v21  ;;  %v49_v40 = vmul.f32 0.2, %v33_v23 }
   0xd   :  { %227 = vmatprep.mubr.bf16.mxu0 %v64_v31  ;;  %v51_v41 = vsel %vm35_vm4, %v27_v14, %v43_v34  ;;  %v53_v43 = vsel %vm37_vm5, %v29_v16, %v45_v38 }
   0xe   :  { %235 = vmatprep.mubr.bf16.mxu1 %v66_v37  ;;  %v55_v44 = vsel %vm39_vm6, %v31_v21, %v47_v39  ;;  %v57_v45 = vsel %vm41_vm7, %v33_v23, %v49_v40  ;;  %v63_v46 = vpack.c.bf16 %v53_v43, %v51_v41 }
   0xf   :  { %302 = vmatpush3.bf16.msra.mxu0 %v346_v7  ;;  %334 = vmatpush3.bf16.msra.mxu1 %v346_v7  ;;  %v65_v47 = vpack.c.bf16 %v57_v45, %v55_v44 }
  0x10   :  { %303 = vmatprep.subr.bf16.mxu0 %v347_v8  ;;  %327 = vmatprep.subr.bf16.mxu1 %v347_v8 }
  0x13   :  { %304 = vmatpush3.bf16.msra.mxu0 %v348_v9  ;;  %335 = vmatpush3.bf16.msra.mxu1 %v348_v9 }
  0x14   :  { %305 = vmatprep.subr.bf16.mxu0 %v349_v10  ;;  %328 = vmatprep.subr.bf16.mxu1 %v349_v10 }
  0x17   :  { %306 = vmatpush3.bf16.msra.mxu0 %v350_v19  ;;  %336 = vmatpush3.bf16.msra.mxu1 %v350_v19 }
  0x18   :  { %307 = vmatprep.subr.bf16.mxu0 %v351_v20  ;;  %329 = vmatprep.subr.bf16.mxu1 %v351_v20 }
  0x1b   :  { %308 = vmatpush3.bf16.msra.mxu0 %v352_v35  ;;  %337 = vmatpush3.bf16.msra.mxu1 %v352_v35 }
  0x1c   :  { %309 = vmatprep.subr.bf16.mxu0 %v353_v36  ;;  %330 = vmatprep.subr.bf16.mxu1 %v353_v36 }
  0x1f   :  { %310 = vmatpush3.bf16.msra.mxu0 %v354_v42  ;;  %338 = vmatpush3.bf16.msra.mxu1 %v354_v42 }
  0x22   :  { %228 = vmatmul.mubr.bf16.vlgmr.msra.gmra.mrb[0].mxu0 %v63_v46  ;;  %236 = vmatmul.mubr.bf16.vlgmr.msra.gmra.mrb[0].mxu1 %v65_v47 }
  0xf5   :  { %v311_v48 = vpop.f32.mrb[0].mxu0  ;;  %v317_v49 = vpop.f32.mrb[0].mxu1 }
  0xf6   :  { %v312_v50 = vpop.f32.mrb[1].mxu0  ;;  %v318_v52 = vpop.f32.mrb[1].mxu1 }
  0xf7   :  { %v313_v53 = vadd.f32 %v312_v50, %v311_v48  ;;  %v319_v54 = vadd.f32 %v318_v52, %v317_v49  ;;  %v314_v55 = vpop.f32.mrb[2].mxu0  ;;  %v320_v56 = vpop.f32.mrb[2].mxu1 }
  0xf8   :  { %v315_v57 = vpop.f32.mrb[3].mxu0  ;;  %v321_v58 = vpop.f32.mrb[3].mxu1 }
  0xf9   :  { %v266_v59 = vadd.f32 %v313_v53, %v294_v51  ;;  %v268_v60 = vadd.f32 %v319_v54, %v294_v51  ;;  %v316_v61 = vadd.f32 %v315_v57, %v314_v55  ;;  %v322_v62 = vadd.f32 %v321_v58, %v320_v56 }
  0xfb   :  { %270 = vst [vmem:[%s453_s3] sm:$0xff] %v266_v59  ;;  %272 = vst [vmem:[%s453_s3 + $0x10] sm:$0xff] %v268_v60  ;;  %v267_v63 = vadd.f32 %v316_v61, %v294_v51  ;;  %v269_v0 = vadd.f32 %v322_v62, %v294_v51 }
  0xfd   :  { %271 = vst [vmem:[%s453_s3 + $0x8] sm:$0xff] %v267_v63  ;;  %273 = vst [vmem:[%s453_s3 + $0x18] sm:$0xff] %v269_v0 }

// kernel: forward.33
= control target key start
LH: loop header
LB: loop body
LE: loop exit
PB: predicated region body
PF: predicated region fallthrough
CT: control target
= control target key end

     0   :  { %vm31_vm0 = vcmask 523264   ;;  %s71_s0 = inlined_call_operand.vmem [shape: f32[8,64], index: 0, kind: input, shape index: {}]   ;;  %s72_s1 = inlined_call_operand.vmem [shape: f32[1,64], index: 1, kind: input, shape index: {}]   ;;  %s73_s2 = inlined_call_operand.vmem [shape: f32[1,64], index: 2, kind: input, shape index: {}]   ;;  %s74_s3 = inlined_call_operand.vmem [shape: f32[8,64], index: 3, kind: output, shape index: {}]  }
   0x1   :  { %v14_v0 = vld [vmem:[%s71_s0] sm:$0xff] }
   0x2   :  { %v37_v1 = vld [vmem:[%s72_s1] ss:$0 sm:$0xff] }
   0x3   :  { %v38_v2 = vld [vmem:[%s73_s2] ss:$0 sm:$0xff]  ;;  %v22_v3 = vmul.f32 %v37_v1, %v14_v0 }
   0x5   :  { %v30_v4 = vadd.f32 %v38_v2, %v22_v3 }
   0x7   :  { %32 = vst.msk [vmem:[%s74_s3] sm:$0xff] %vm31_vm0, %v30_v4 }

// kernel: forward.32
= control target key start
LH: loop header
LB: loop body
LE: loop exit
PB: predicated region body
PF: predicated region fallthrough
CT: control target
= control target key end

     0   :  { %vm14_vm0 = vcmask 516096   ;;  %vm19_vm1 = vcmask 523264   ;;  %v57_v0 = vmov 0.0   ;;  %s88_s0 = inlined_call_operand.vmem [shape: f32[8,64], index: 0, kind: input, shape index: {}]   ;;  %s89_s1 = inlined_call_operand.vmem [shape: f32[1,64], index: 1, kind: output, shape index: {0}]   ;;  %s90_s2 = inlined_call_operand.vmem [shape: f32[1,64], index: 2, kind: output, shape index: {1}]  }
   0x1   :  { %15 = vst.msk [vmem:[#allocation2] sm:$0x1] %vm14_vm0, %v57_v0  ;;  %16 = vst.msk [vmem:[#allocation3] sm:$0x1] %vm14_vm0, %v57_v0  ;;  %v17_v1 = vld [vmem:[%s88_s0] sm:$0xff] }
   0x2   :  { %v20_v2 = vsel %vm19_vm1, %v17_v1, 0.0  ;;  %v31_v3 = vmul.f32 %v17_v1, %v17_v1 }
   0x3   :  { %v21_v4 = vrot.slane %v20_v2, 4 }
   0x4   :  { %v32_v5 = vsel %vm19_vm1, %v31_v3, 0.0 }
   0x5   :  { %v22_v6 = vadd.f32 %v21_v4, %v20_v2  ;;  %v33_v7 = vrot.slane %v32_v5, 4 }
   0x7   :  { %v23_v8 = vrot.slane %v22_v6, 2  ;;  %v34_v9 = vadd.f32 %v33_v7, %v32_v5 }
   0x8   :  { %v18_v14 = vld [vmem:[#allocation2] sm:$0x1]  ;;  %v30_v17 = vld [vmem:[#allocation3] sm:$0x1] }
   0x9   :  { %v24_v10 = vadd.f32 %v23_v8, %v22_v6  ;;  %v35_v11 = vrot.slane %v34_v9, 2 }
   0xb   :  { %v25_v12 = vrot.slane %v24_v10, 1  ;;  %v36_v13 = vadd.f32 %v35_v11, %v34_v9 }
   0xd   :  { %v26_v15 = vadd.f32 %v25_v12, %v24_v10  ;;  %v37_v16 = vrot.slane %v36_v13, 1 }
   0xf   :  { %v27_v18 = vadd.f32 %v26_v15, %v18_v14  ;;  %v38_v19 = vadd.f32 %v37_v16, %v36_v13 }
  0x11   :  { %29 = vst.msk [vmem:[#allocation2] sm:$0x1] %vm14_vm0, %v27_v18  ;;  %v39_v20 = vadd.f32 %v38_v19, %v30_v17 }
  0x13   :  { %40 = vst.msk [vmem:[#allocation3] sm:$0x1] %vm14_vm0, %v39_v20 }
  0x18   :  { %v44_v21 = vld [vmem:[#allocation2] sm:$0x1] }
  0x19   :  { %45 = vst.msk [vmem:[%s89_s1] sm:$0x1] %vm14_vm0, %v44_v21 }
  0x1a   :  { %v46_v22 = vld [vmem:[#allocation3] sm:$0x1] }
  0x1b   :  { %47 = vst.msk [vmem:[%s90_s2] sm:$0x1] %vm14_vm0, %v46_v22 }

// kernel: forward.31
= control target key start
LH: loop header
LB: loop body
LE: loop exit
PB: predicated region body
PF: predicated region fallthrough
CT: control target
= control target key end

     0   :  { %s635_s1 = inlined_call_operand.vmem [shape: bf16[512,128], index: 1, kind: input, shape index: {}]   ;;  %s636_s0 = inlined_call_operand.vmem [shape: bf16[8,512], index: 0, kind: input, shape index: {}]   ;;  %s637_s2 = inlined_call_operand.vmem [shape: f32[1,128], index: 2, kind: input, shape index: {}]   ;;  %s638_s3 = inlined_call_operand.vmem [shape: f32[8,128], index: 3, kind: output, shape index: {}]  }
   0x1   :  { %v475_v0 = vld [vmem:[%s635_s1 + $0x40] sm:$0xff]   ;;  %v479_v4 = vld [vmem:[%s635_s1 + $0x48] sm:$0xff]   ;;  %v483_v8 = vld [vmem:[%s635_s1 + $0x50] sm:$0xff]  }
   0x2   :  { %v476_v1 = vld [vmem:[%s635_s1 + $0xc0] sm:$0xff]   ;;  %431 = vmatprep.subr.bf16.mxu0 %v475_v0  ;;  %v480_v5 = vld [vmem:[%s635_s1 + $0xc8] sm:$0xff]   ;;  %v484_v9 = vld [vmem:[%s635_s1 + $0xd0] sm:$0xff]  }
   0x3   :  { %v477_v2 = vld [vmem:[%s635_s1] sm:$0xff]   ;;  %453 = vmatprep.subr.bf16.mxu1 %v476_v1  ;;  %v481_v6 = vld [vmem:[%s635_s1 + $0x8] sm:$0xff]   ;;  %v485_v10 = vld [vmem:[%s635_s1 + $0x10] sm:$0xff]  }
   0x4   :  { %v478_v3 = vld [vmem:[%s635_s1 + $0x80] sm:$0xff]   ;;  %432 = vmatpush3.bf16.msra.mxu0 %v477_v2  ;;  %v482_v7 = vld [vmem:[%s635_s1 + $0x88] sm:$0xff]   ;;  %v486_v11 = vld [vmem:[%s635_s1 + $0x90] sm:$0xff]  }
   0x5   :  { %454 = vmatpush3.bf16.msra.mxu1 %v478_v3  ;;  %433 = vmatprep.subr.bf16.mxu0 %v479_v4  ;;  %v487_v12 = vld [vmem:[%s635_s1 + $0x58] sm:$0xff]   ;;  %v491_v16 = vld [vmem:[%s635_s1 + $0x60] sm:$0xff]   ;;  %v495_v20 = vld [vmem:[%s635_s1 + $0x68] sm:$0xff]  }
   0x6   :  { %455 = vmatprep.subr.bf16.mxu1 %v480_v5  ;;  %v488_v13 = vld [vmem:[%s635_s1 + $0xd8] sm:$0xff]   ;;  %v492_v17 = vld [vmem:[%s635_s1 + $0xe0] sm:$0xff]   ;;  %v496_v21 = vld [vmem:[%s635_s1 + $0xe8] sm:$0xff]  }
   0x7   :  { %v489_v14 = vld [vmem:[%s635_s1 + $0x18] sm:$0xff]   ;;  %v493_v18 = vld [vmem:[%s635_s1 + $0x20] sm:$0xff]   ;;  %v497_v22 = vld [vmem:[%s635_s1 + $0x28] sm:$0xff]  }
   0x8   :  { %434 = vmatpush3.bf16.msra.mxu0 %v481_v6  ;;  %v490_v15 = vld [vmem:[%s635_s1 + $0x98] sm:$0xff]   ;;  %v494_v19 = vld [vmem:[%s635_s1 + $0xa0] sm:$0xff]   ;;  %v498_v23 = vld [vmem:[%s635_s1 + $0xa8] sm:$0xff]  }
   0x9   :  { %456 = vmatpush3.bf16.msra.mxu1 %v482_v7  ;;  %435 = vmatprep.subr.bf16.mxu0 %v483_v8  ;;  %v499_v24 = vld [vmem:[%s635_s1 + $0x70] sm:$0xff]   ;;  %v503_v28 = vld [vmem:[%s635_s1 + $0x78] sm:$0xff]   ;;  %v20_v32 = vld [vmem:[%s636_s0] sm:$0xff] }
   0xa   :  { %457 = vmatprep.subr.bf16.mxu1 %v484_v9  ;;  %v500_v25 = vld [vmem:[%s635_s1 + $0xf0] sm:$0xff]   ;;  %v504_v29 = vld [vmem:[%s635_s1 + $0xf8] sm:$0xff]   ;;  %v21_v33 = vld [vmem:[%s636_s0 + $0x8] sm:$0xff]  ;;  %v22_v34 = vunpack.c.l.bf16 %v20_v32  ;;  %v23_v35 = vunpack.c.h.bf16 %v20_v32 }
   0xb   :  { %v501_v26 = vld [vmem:[%s635_s1 + $0x30] sm:$0xff]   ;;  %v505_v30 = vld [vmem:[%s635_s1 + $0x38] sm:$0xff]   ;;  %v24_v36 = vunpack.c.l.bf16 %v21_v33  ;;  %v25_v37 = vunpack.c.h.bf16 %v21_v33  ;;  %v430_v58 = vld [vmem:[%s637_s2] ss:$0 sm:$0xff] }
   0xc   :  { %436 = vmatpush3.bf16.msra.mxu0 %v485_v10  ;;  %v502_v27 = vld [vmem:[%s635_s1 + $0xb0] sm:$0xff]   ;;  %v506_v31 = vld [vmem:[%s635_s1 + $0xb8] sm:$0xff]   ;;  %vm27_vm0 = vcmp.gt.f32.partialorder %v23_v35, 0.0  ;;  %v31_v38 = vmul.f32 0.2, %v23_v35  ;;  %vm26_vm2 = vcmp.gt.f32.partialorder %v22_v34, 0.0 }
   0xd   :  { %458 = vmatpush3.bf16.msra.mxu1 %v486_v11  ;;  %437 = vmatprep.subr.bf16.mxu0 %v487_v12  ;;  %vm29_vm1 = vcmp.gt.f32.partialorder %v25_v37, 0.0  ;;  %v33_v39 = vmul.f32 0.2, %v25_v37  ;;  %v30_v40 = vmul.f32 0.2, %v22_v34  ;;  %vm28_vm3 = vcmp.gt.f32.partialorder %v24_v36, 0.0 }
   0xe   :  { %459 = vmatprep.subr.bf16.mxu1 %v488_v13  ;;  %v32_v41 = vmul.f32 0.2, %v24_v36  ;;  %v35_v42 = vsel %vm27_vm0, %v23_v35, %v31_v38 }
   0xf   :  { %v37_v43 = vsel %vm29_vm1, %v25_v37, %v33_v39  ;;  %v40_v44 = vpack.c.bf16 %v35_v42, %v35_v42  ;;  %v34_v46 = vsel %vm26_vm2, %v22_v34, %v30_v40 }
  0x10   :  { %438 = vmatpush3.bf16.msra.mxu0 %v489_v14  ;;  %v42_v45 = vpack.c.bf16 %v37_v43, %v37_v43  ;;  %v36_v47 = vsel %vm28_vm3, %v24_v36, %v32_v41  ;;  %v39_v48 = vpack.c.bf16 %v34_v46, %v34_v46 }
  0x11   :  { %460 = vmatpush3.bf16.msra.mxu1 %v490_v15  ;;  %439 = vmatprep.subr.bf16.mxu0 %v491_v16  ;;  %v41_v49 = vpack.c.bf16 %v36_v47, %v36_v47 }
  0x12   :  { %461 = vmatprep.subr.bf16.mxu1 %v492_v17  ;;  %331 = vmatprep.mubr.bf16.mxu0 %v40_v44 }
  0x13   :  { %371 = vmatprep.mubr.bf16.mxu1 %v42_v45 }
  0x14   :  { %440 = vmatpush3.bf16.msra.mxu0 %v493_v18 }
  0x15   :  { %462 = vmatpush3.bf16.msra.mxu1 %v494_v19  ;;  %441 = vmatprep.subr.bf16.mxu0 %v495_v20 }
  0x16   :  { %463 = vmatprep.subr.bf16.mxu1 %v496_v21 }
  0x18   :  { %442 = vmatpush3.bf16.msra.mxu0 %v497_v22 }
  0x19   :  { %464 = vmatpush3.bf16.msra.mxu1 %v498_v23  ;;  %443 = vmatprep.subr.bf16.mxu0 %v499_v24 }
  0x1a   :  { %465 = vmatprep.subr.bf16.mxu1 %v500_v25 }
  0x1c   :  { %444 = vmatpush3.bf16.msra.mxu0 %v501_v26 }
  0x1d   :  { %466 = vmatpush3.bf16.msra.mxu1 %v502_v27  ;;  %445 = vmatprep.subr.bf16.mxu0 %v503_v28 }
  0x1e   :  { %467 = vmatprep.subr.bf16.mxu1 %v504_v29 }
  0x20   :  { %446 = vmatpush3.bf16.msra.mxu0 %v505_v30 }
  0x21   :  { %468 = vmatpush3.bf16.msra.mxu1 %v506_v31 }
  0x23   :  { %332 = vmatmul.mubr.bf16.vlgmr.msra.gmra.mrb[0].mxu0 %v39_v48 }
  0x24   :  { %372 = vmatmul.mubr.bf16.vlgmr.msra.gmra.mrb[0].mxu1 %v41_v49 }
  0xf6   :  { %v447_v50 = vpop.f32.mrb[0].mxu0 }
  0xf7   :  { %v469_v51 = vpop.f32.mrb[0].mxu1  ;;  %v448_v52 = vpop.f32.mrb[1].mxu0 }
  0xf8   :  { %v470_v53 = vpop.f32.mrb[1].mxu1  ;;  %v449_v54 = vadd.f32 %v448_v52, %v447_v50  ;;  %v450_v56 = vpop.f32.mrb[2].mxu0 }
  0xf9   :  { %v471_v55 = vadd.f32 %v470_v53, %v469_v51  ;;  %v472_v57 = vpop.f32.mrb[2].mxu1  ;;  %v451_v59 = vpop.f32.mrb[3].mxu0 }
  0xfa   :  { %v473_v60 = vpop.f32.mrb[3].mxu1 }
  0xfb   :  { %v374_v61 = vadd.f32 %v471_v55, %v449_v54 }
  0xfd   :  { %v392_v62 = vadd.f32 %v430_v58, %v374_v61 }
  0xff   :  { %393 = vst [vmem:[%s638_s3] sm:$0xff] %v392_v62 }

// kernel: forward.34
= control target key start
LH: loop header
LB: loop body
LE: loop exit
PB: predicated region body
PF: predicated region fallthrough
CT: control target
= control target key end

     0   :  { %v992_v27 = vmov 1983009808   ;;  %v36_v29 = vlaneseq  ;;  %s1221_s1 = inlined_call_operand.vmem [shape: bf16[1024,128], index: 1, kind: input, shape index: {}]   ;;  %s1222_s0 = inlined_call_operand.vmem [shape: bf16[2,1024], index: 0, kind: input, shape index: {}]   ;;  %s1223_s2 = inlined_call_operand.vmem [shape: f32[1,128], index: 2, kind: input, shape index: {}]   ;;  %s1224_s3 = inlined_call_operand.vmem [shape: f32[2,128], index: 3, kind: output, shape index: {}]  }
   0x1   :  { %v928_v0 = vld [vmem:[%s1221_s1 + $0x40] sm:$0xff]   ;;  %v932_v4 = vld [vmem:[%s1221_s1 + $0x48] sm:$0xff]   ;;  %v936_v8 = vld [vmem:[%s1221_s1 + $0x50] sm:$0xff]   ;;  %v34_v28 = vunpack.c.l.s4 %v992_v27 }
   0x2   :  { %v929_v1 = vld [vmem:[%s1221_s1 + $0xc0] sm:$0xff]   ;;  %838 = vmatprep.subr.bf16.mxu0 %v928_v0  ;;  %v933_v5 = vld [vmem:[%s1221_s1 + $0xc8] sm:$0xff]   ;;  %v937_v9 = vld [vmem:[%s1221_s1 + $0xd0] sm:$0xff]   ;;  %v37_v35 = vshrl.u32 %v36_v29, 7 }
   0x3   :  { %v930_v2 = vld [vmem:[%s1221_s1] sm:$0xff]   ;;  %860 = vmatprep.subr.bf16.mxu1 %v929_v1  ;;  %v934_v6 = vld [vmem:[%s1221_s1 + $0x8] sm:$0xff]   ;;  %v938_v10 = vld [vmem:[%s1221_s1 + $0x10] sm:$0xff]   ;;  %v35_v34 = vunpack.c.0.s8 %v34_v28 }
   0x4   :  { %v931_v3 = vld [vmem:[%s1221_s1 + $0x80] sm:$0xff]   ;;  %839 = vmatpush3.bf16.msra.mxu0 %v930_v2  ;;  %v935_v7 = vld [vmem:[%s1221_s1 + $0x88] sm:$0xff]   ;;  %v939_v11 = vld [vmem:[%s1221_s1 + $0x90] sm:$0xff]  }
   0x5   :  { %861 = vmatpush3.bf16.msra.mxu1 %v931_v3  ;;  %840 = vmatprep.subr.bf16.mxu0 %v932_v4  ;;  %v940_v12 = vld [vmem:[%s1221_s1 + $0x58] sm:$0xff]   ;;  %v944_v16 = vld [vmem:[%s1221_s1 + $0x60] sm:$0xff]   ;;  %v948_v20 = vld [vmem:[%s1221_s1 + $0x68] sm:$0xff]   ;;  %v1116_v40 = vsub.s32 %v35_v34, %v37_v35 }
   0x6   :  { %862 = vmatprep.subr.bf16.mxu1 %v933_v5  ;;  %v941_v13 = vld [vmem:[%s1221_s1 + $0xd8] sm:$0xff]   ;;  %v945_v17 = vld [vmem:[%s1221_s1 + $0xe0] sm:$0xff]   ;;  %v949_v21 = vld [vmem:[%s1221_s1 + $0xe8] sm:$0xff]  }
   0x7   :  { %v942_v14 = vld [vmem:[%s1221_s1 + $0x18] sm:$0xff]   ;;  %v946_v18 = vld [vmem:[%s1221_s1 + $0x20] sm:$0xff]   ;;  %v950_v22 = vld [vmem:[%s1221_s1 + $0x28] sm:$0xff]  }
   0x8   :  { %841 = vmatpush3.bf16.msra.mxu0 %v934_v6  ;;  %v943_v15 = vld [vmem:[%s1221_s1 + $0x98] sm:$0xff]   ;;  %v947_v19 = vld [vmem:[%s1221_s1 + $0xa0] sm:$0xff]   ;;  %v951_v23 = vld [vmem:[%s1221_s1 + $0xa8] sm:$0xff]  }
   0x9   :  { %863 = vmatpush3.bf16.msra.mxu1 %v935_v7  ;;  %842 = vmatprep.subr.bf16.mxu0 %v936_v8  ;;  %v952_v24 = vld [vmem:[%s1221_s1 + $0x70] sm:$0xff]   ;;  %v956_v31 = vld [vmem:[%s1221_s1 + $0x78] sm:$0xff]   ;;  %v20_v37 = vld [vmem:[%s1222_s0] sm:$0xff] }
   0xa   :  { %864 = vmatprep.subr.bf16.mxu1 %v937_v9  ;;  %v953_v25 = vld [vmem:[%s1221_s1 + $0xf0] sm:$0xff]   ;;  %v957_v32 = vld [vmem:[%s1221_s1 + $0xf8] sm:$0xff]   ;;  %v21_v38 = vunpack.c.l.bf16 %v20_v37  ;;  %v960_v39 = vld [vmem:[%s1221_s1 + $0x140] sm:$0xff]   ;;  %v22_v6 = vunpack.c.h.bf16 %v20_v37 }
   0xb   :  { %v954_v26 = vld [vmem:[%s1221_s1 + $0x30] sm:$0xff]   ;;  %v958_v33 = vld [vmem:[%s1221_s1 + $0x38] sm:$0xff]   ;;  %v961_v41 = vld [vmem:[%s1221_s1 + $0x1c0] sm:$0xff]  }
   0xc   :  { %843 = vmatpush3.bf16.msra.mxu0 %v938_v10  ;;  %v955_v30 = vld [vmem:[%s1221_s1 + $0xb0] sm:$0xff]   ;;  %v959_v36 = vld [vmem:[%s1221_s1 + $0xb8] sm:$0xff]   ;;  %vm23_vm0 = vcmp.gt.f32.partialorder %v21_v38, 0.0  ;;  %v25_v42 = vmul.f32 0.2, %v21_v38  ;;  %v962_v51 = vld [vmem:[%s1221_s1 + $0x100] sm:$0xff]  }
   0xd   :  { %865 = vmatpush3.bf16.msra.mxu1 %v939_v11  ;;  %844 = vmatprep.subr.bf16.mxu0 %v940_v12  ;;  %v964_v53 = vld [vmem:[%s1221_s1 + $0x148] sm:$0xff]   ;;  %v963_v55 = vld [vmem:[%s1221_s1 + $0x180] sm:$0xff]   ;;  %v968_v58 = vld [vmem:[%s1221_s1 + $0x150] sm:$0xff]   ;;  %vm24_vm1 = vcmp.gt.f32.partialorder %v22_v6, 0.0 }
   0xe   :  { %866 = vmatprep.subr.bf16.mxu1 %v941_v13  ;;  %v27_v43 = vsel %vm23_vm0, %v21_v38, %v25_v42  ;;  %v965_v56 = vld [vmem:[%s1221_s1 + $0x1c8] sm:$0xff]   ;;  %v969_v60 = vld [vmem:[%s1221_s1 + $0x1d0] sm:$0xff]   ;;  %v972_v62 = vld [vmem:[%s1221_s1 + $0x158] sm:$0xff]   ;;  %v26_v13 = vmul.f32 0.2, %v22_v6 }
   0xf   :  { %v39_v44 = vrot.slane %v27_v43, %v1116_v40  ;;  %v32_v45 = vcombine.high %v27_v43, %v27_v43  ;;  %v966_v57 = vld [vmem:[%s1221_s1 + $0x108] sm:$0xff]   ;;  %v970_v61 = vld [vmem:[%s1221_s1 + $0x110] sm:$0xff]   ;;  %v973_v0 = vld [vmem:[%s1221_s1 + $0x1d8] sm:$0xff]  }
  0x10   :  { %845 = vmatpush3.bf16.msra.mxu0 %v942_v14  ;;  %v967_v59 = vld [vmem:[%s1221_s1 + $0x188] sm:$0xff]   ;;  %v971_v63 = vld [vmem:[%s1221_s1 + $0x190] sm:$0xff]   ;;  %v974_v1 = vld [vmem:[%s1221_s1 + $0x118] sm:$0xff]  }
  0x11   :  { %867 = vmatpush3.bf16.msra.mxu1 %v943_v15  ;;  %846 = vmatprep.subr.bf16.mxu0 %v944_v16  ;;  %v47_v46 = vcombine.high %v39_v44, %v39_v44  ;;  %v46_v47 = vrot.slane %v32_v45, %v1116_v40  ;;  %v74_v48 = vpack.c.bf16 %v39_v44, %v39_v44  ;;  %v976_v2 = vld [vmem:[%s1221_s1 + $0x160] sm:$0xff]   ;;  %v975_v3 = vld [vmem:[%s1221_s1 + $0x198] sm:$0xff]   ;;  %v980_v7 = vld [vmem:[%s1221_s1 + $0x168] sm:$0xff]  }
  0x12   :  { %868 = vmatprep.subr.bf16.mxu1 %v945_v17  ;;  %v977_v4 = vld [vmem:[%s1221_s1 + $0x1e0] sm:$0xff]   ;;  %v981_v9 = vld [vmem:[%s1221_s1 + $0x1e8] sm:$0xff]   ;;  %v984_v11 = vld [vmem:[%s1221_s1 + $0x170] sm:$0xff]   ;;  %v28_v16 = vsel %vm24_vm1, %v22_v6, %v26_v13 }
  0x13   :  { %v75_v49 = vpack.c.bf16 %v47_v46, %v47_v46  ;;  %v48_v50 = vcombine.high %v46_v47, %v46_v47  ;;  %v76_v52 = vpack.c.bf16 %v46_v47, %v46_v47  ;;  %v978_v5 = vld [vmem:[%s1221_s1 + $0x120] sm:$0xff]   ;;  %v982_v10 = vld [vmem:[%s1221_s1 + $0x128] sm:$0xff]   ;;  %v985_v14 = vld [vmem:[%s1221_s1 + $0x1f0] sm:$0xff]  }
  0x14   :  { %847 = vmatpush3.bf16.msra.mxu0 %v946_v18  ;;  %v979_v8 = vld [vmem:[%s1221_s1 + $0x1a0] sm:$0xff]   ;;  %v983_v12 = vld [vmem:[%s1221_s1 + $0x1a8] sm:$0xff]   ;;  %v986_v15 = vld [vmem:[%s1221_s1 + $0x130] sm:$0xff]   ;;  %v56_v18 = vrot.slane %v28_v16, %v1116_v40 }
  0x15   :  { %869 = vmatpush3.bf16.msra.mxu1 %v947_v19  ;;  %848 = vmatprep.subr.bf16.mxu0 %v948_v20  ;;  %v77_v54 = vpack.c.bf16 %v48_v50, %v48_v50  ;;  %v988_v17 = vld [vmem:[%s1221_s1 + $0x178] sm:$0xff]   ;;  %v49_v19 = vcombine.high %v28_v16, %v28_v16  ;;  %v987_v20 = vld [vmem:[%s1221_s1 + $0x1b0] sm:$0xff]  }
  0x16   :  { %870 = vmatprep.subr.bf16.mxu1 %v949_v21  ;;  %626 = vmatprep.mubr.bf16.mxu0 %v75_v49  ;;  %v989_v21 = vld [vmem:[%s1221_s1 + $0x1f8] sm:$0xff]   ;;  %v78_v29 = vpack.c.bf16 %v56_v18, %v56_v18 }
  0x17   :  { %666 = vmatprep.mubr.bf16.mxu1 %v77_v54  ;;  %v991_v27 = vld [vmem:[%s1221_s1 + $0x1b8] sm:$0xff]  }
  0x18   :  { %849 = vmatpush3.bf16.msra.mxu0 %v950_v22  ;;  %v64_v22 = vcombine.high %v56_v18, %v56_v18 }
  0x19   :  { %871 = vmatpush3.bf16.msra.mxu1 %v951_v23  ;;  %850 = vmatprep.subr.bf16.mxu0 %v952_v24  ;;  %v63_v23 = vrot.slane %v49_v19, %v1116_v40  ;;  %v990_v24 = vld [vmem:[%s1221_s1 + $0x138] sm:$0xff]  }
  0x1a   :  { %872 = vmatprep.subr.bf16.mxu1 %v953_v25  ;;  %v79_v25 = vpack.c.bf16 %v64_v22, %v64_v22 }
  0x1c   :  { %851 = vmatpush3.bf16.msra.mxu0 %v954_v26  ;;  %v65_v26 = vcombine.high %v63_v23, %v63_v23 }
  0x1d   :  { %873 = vmatpush3.bf16.msra.mxu1 %v955_v30  ;;  %852 = vmatprep.subr.bf16.mxu0 %v956_v31  ;;  %v80_v30 = vpack.c.bf16 %v63_v23, %v63_v23  ;;  %v993_v31 = vmov 0.0  }
  0x1e   :  { %874 = vmatprep.subr.bf16.mxu1 %v957_v32  ;;  %v81_v28 = vpack.c.bf16 %v65_v26, %v65_v26  ;;  %19 = vst [vmem:[#allocation2] sm:$0x3] %v993_v31 }
  0x20   :  { %853 = vmatpush3.bf16.msra.mxu0 %v958_v33 }
  0x21   :  { %875 = vmatpush3.bf16.msra.mxu1 %v959_v36  ;;  %882 = vmatprep.subr.bf16.mxu0 %v960_v39 }
  0x22   :  { %904 = vmatprep.subr.bf16.mxu1 %v961_v41 }
  0x23   :  { %627 = vmatmul.mubr.bf16.vlgmr.msra.gmra.mrb[0].mxu0 %v74_v48 }
  0x24   :  { %883 = vmatpush3.bf16.msra.mxu0 %v962_v51  ;;  %667 = vmatmul.mubr.bf16.vlgmr.msra.gmra.mrb[0].mxu1 %v76_v52 }
  0x25   :  { %884 = vmatprep.subr.bf16.mxu0 %v964_v53  ;;  %905 = vmatpush3.bf16.msra.mxu1 %v963_v55  ;;  %v29_v53 = vld [vmem:[#allocation2] sm:$0x3] }
  0x26   :  { %906 = vmatprep.subr.bf16.mxu1 %v965_v56  ;;  %706 = vmatprep.mubr.bf16.mxu0 %v79_v25 }
  0x27   :  { %746 = vmatprep.mubr.bf16.mxu1 %v81_v28 }
  0x28   :  { %885 = vmatpush3.bf16.msra.mxu0 %v966_v57  ;;  %v837_v57 = vld [vmem:[%s1223_s2] ss:$0 sm:$0xff] }
  0x29   :  { %886 = vmatprep.subr.bf16.mxu0 %v968_v58  ;;  %907 = vmatpush3.bf16.msra.mxu1 %v967_v59 }
  0x2a   :  { %908 = vmatprep.subr.bf16.mxu1 %v969_v60 }
  0x2c   :  { %887 = vmatpush3.bf16.msra.mxu0 %v970_v61 }
  0x2d   :  { %888 = vmatprep.subr.bf16.mxu0 %v972_v62  ;;  %909 = vmatpush3.bf16.msra.mxu1 %v971_v63 }
  0x2e   :  { %910 = vmatprep.subr.bf16.mxu1 %v973_v0 }
  0x30   :  { %889 = vmatpush3.bf16.msra.mxu0 %v974_v1 }
  0x31   :  { %890 = vmatprep.subr.bf16.mxu0 %v976_v2  ;;  %911 = vmatpush3.bf16.msra.mxu1 %v975_v3 }
  0x32   :  { %912 = vmatprep.subr.bf16.mxu1 %v977_v4 }
  0x34   :  { %891 = vmatpush3.bf16.msra.mxu0 %v978_v5 }
  0x35   :  { %892 = vmatprep.subr.bf16.mxu0 %v980_v7  ;;  %913 = vmatpush3.bf16.msra.mxu1 %v979_v8 }
  0x36   :  { %914 = vmatprep.subr.bf16.mxu1 %v981_v9 }
  0x38   :  { %893 = vmatpush3.bf16.msra.mxu0 %v982_v10 }
  0x39   :  { %894 = vmatprep.subr.bf16.mxu0 %v984_v11  ;;  %915 = vmatpush3.bf16.msra.mxu1 %v983_v12 }
  0x3a   :  { %916 = vmatprep.subr.bf16.mxu1 %v985_v14 }
  0x3c   :  { %895 = vmatpush3.bf16.msra.mxu0 %v986_v15 }
  0x3d   :  { %896 = vmatprep.subr.bf16.mxu0 %v988_v17  ;;  %917 = vmatpush3.bf16.msra.mxu1 %v987_v20 }
  0x3e   :  { %918 = vmatprep.subr.bf16.mxu1 %v989_v21 }
  0x40   :  { %897 = vmatpush3.bf16.msra.mxu0 %v990_v24 }
  0x41   :  { %919 = vmatpush3.bf16.msra.mxu1 %v991_v27 }
  0x43   :  { %707 = vmatmul.mubr.bf16.vlgmr.msra.gmra.mrb[4].mxu0 %v78_v29 }
  0x44   :  { %747 = vmatmul.mubr.bf16.vlgmr.msra.gmra.mrb[4].mxu1 %v80_v30 }
  0xf6   :  { %v854_v32 = vpop.f32.mrb[0].mxu0 }
  0xf7   :  { %v855_v33 = vpop.f32.mrb[1].mxu0  ;;  %v876_v34 = vpop.f32.mrb[0].mxu1 }
  0xf8   :  { %v856_v35 = vadd.f32 %v855_v33, %v854_v32  ;;  %v857_v36 = vpop.f32.mrb[2].mxu0  ;;  %v877_v37 = vpop.f32.mrb[1].mxu1 }
  0xf9   :  { %v858_v38 = vpop.f32.mrb[3].mxu0  ;;  %v878_v39 = vadd.f32 %v877_v37, %v876_v34  ;;  %v879_v40 = vpop.f32.mrb[2].mxu1 }
  0xfa   :  { %v880_v41 = vpop.f32.mrb[3].mxu1 }
  0xfb   :  { %v669_v42 = vadd.f32 %v878_v39, %v856_v35 }
 0x116   :  { %v898_v43 = vpop.f32.mrb[4].mxu0 }
 0x117   :  { %v899_v44 = vpop.f32.mrb[5].mxu0  ;;  %v920_v45 = vpop.f32.mrb[4].mxu1 }
 0x118   :  { %v900_v46 = vadd.f32 %v899_v44, %v898_v43  ;;  %v901_v47 = vpop.f32.mrb[6].mxu0  ;;  %v921_v48 = vpop.f32.mrb[5].mxu1 }
 0x119   :  { %v902_v49 = vpop.f32.mrb[7].mxu0  ;;  %v922_v51 = vadd.f32 %v921_v48, %v920_v45  ;;  %v923_v52 = vpop.f32.mrb[6].mxu1 }
 0x11a   :  { %v709_v50 = vadd.f32 %v900_v46, %v669_v42  ;;  %v924_v54 = vpop.f32.mrb[7].mxu1 }
 0x11c   :  { %v749_v55 = vadd.f32 %v922_v51, %v709_v50 }
 0x11e   :  { %v754_v56 = vadd.f32 %v749_v55, %v29_v53 }
 0x120   :  { %755 = vst [vmem:[#allocation2] sm:$0x3] %v754_v56 }
 0x127   :  { %v759_v58 = vld [vmem:[#allocation2] sm:$0x3] }
 0x128   :  { %v767_v59 = vadd.f32 %v837_v57, %v759_v58 }
 0x12a   :  { %768 = vst [vmem:[%s1224_s3] sm:$0x3] %v767_v59 }

// kernel: forward.35
= control target key start
LH: loop header
LB: loop body
LE: loop exit
PB: predicated region body
PF: predicated region fallthrough
CT: control target
= control target key end

     0   :  { %v853_v36 = vmov 1983009808   ;;  %v32_v38 = vlaneseq  ;;  %vm494_vm0 = vcmask 523264   ;;  %s1123_s1 = inlined_call_operand.vmem [shape: bf16[576,256], index: 1, kind: input, shape index: {}]   ;;  %s1124_s0 = inlined_call_operand.vmem [shape: bf16[2,576], index: 0, kind: input, shape index: {}]   ;;  %s1125_s2 = inlined_call_operand.vmem [shape: f32[1,256], index: 2, kind: input, shape index: {}]   ;;  %s1126_s3 = inlined_call_operand.vmem [shape: f32[2,256], index: 3, kind: output, shape index: {}]  }
   0x1   :  { %v745_v0 = vld [vmem:[%s1123_s1 + $0x104] ss:$8 sps:$4 sm:$0xff]   ;;  %v747_v1 = vld [vmem:[%s1123_s1 + $0x100] ss:$8 sps:$4 sm:$0xff]   ;;  %v748_v2 = vld [vmem:[%s1123_s1 + $0x114] ss:$8 sps:$4 sm:$0xff]   ;;  %v30_v37 = vunpack.c.l.s4 %v853_v36 }
   0x2   :  { %539 = vmatprep.subr.bf16.mxu0 %v745_v0  ;;  %v750_v3 = vld [vmem:[%s1123_s1 + $0x110] ss:$8 sps:$4 sm:$0xff]   ;;  %v751_v4 = vld [vmem:[%s1123_s1 + $0x124] ss:$8 sps:$4 sm:$0xff]   ;;  %v759_v6 = vld [vmem:[%s1123_s1] ss:$8 sps:$4 sm:$0xff]  }
   0x3   :  { %540 = vmatpush1.bf16.msra.mxu0 %v747_v1  ;;  %v756_v5 = vld [vmem:[%s1123_s1 + $0x4] ss:$8 sps:$4 sm:$0xff]   ;;  %v753_v7 = vld [vmem:[%s1123_s1 + $0x120] ss:$8 sps:$4 sm:$0xff]   ;;  %v754_v8 = vld [vmem:[%s1123_s1 + $0x134] ss:$8 sps:$4 sm:$0xff]   ;;  %v31_v43 = vunpack.c.0.s8 %v30_v37 }
   0x4   :  { %541 = vmatprep.subr.bf16.mxu0 %v748_v2  ;;  %498 = vmatprep.subr.bf16.mxu1 %v756_v5  ;;  %v762_v9 = vld [vmem:[%s1123_s1 + $0x14] ss:$8 sps:$4 sm:$0xff]   ;;  %v765_v10 = vld [vmem:[%s1123_s1 + $0x10] ss:$8 sps:$4 sm:$0xff]   ;;  %v760_v12 = vld [vmem:[%s1123_s1 + $0x144] ss:$8 sps:$4 sm:$0xff]  }
   0x5   :  { %499 = vmatpush1.bf16.msra.mxu1 %v759_v6  ;;  %v758_v11 = vld [vmem:[%s1123_s1 + $0x130] ss:$8 sps:$4 sm:$0xff]   ;;  %v768_v13 = vld [vmem:[%s1123_s1 + $0x24] ss:$8 sps:$4 sm:$0xff]   ;;  %v771_v14 = vld [vmem:[%s1123_s1 + $0x20] ss:$8 sps:$4 sm:$0xff]  }
   0x6   :  { %500 = vmatprep.subr.bf16.mxu1 %v762_v9  ;;  %v774_v15 = vld [vmem:[%s1123_s1 + $0x34] ss:$8 sps:$4 sm:$0xff]   ;;  %v764_v16 = vld [vmem:[%s1123_s1 + $0x140] ss:$8 sps:$4 sm:$0xff]   ;;  %v777_v18 = vld [vmem:[%s1123_s1 + $0x30] ss:$8 sps:$4 sm:$0xff]  }
   0x7   :  { %542 = vmatpush1.bf16.msra.mxu0 %v750_v3  ;;  %v766_v17 = vld [vmem:[%s1123_s1 + $0x154] ss:$8 sps:$4 sm:$0xff]   ;;  %v780_v19 = vld [vmem:[%s1123_s1 + $0x44] ss:$8 sps:$4 sm:$0xff]   ;;  %v770_v20 = vld [vmem:[%s1123_s1 + $0x150] ss:$8 sps:$4 sm:$0xff]  }
   0x8   :  { %543 = vmatprep.subr.bf16.mxu0 %v751_v4  ;;  %v772_v21 = vld [vmem:[%s1123_s1 + $0x164] ss:$8 sps:$4 sm:$0xff]   ;;  %v783_v22 = vld [vmem:[%s1123_s1 + $0x40] ss:$8 sps:$4 sm:$0xff]   ;;  %v786_v23 = vld [vmem:[%s1123_s1 + $0x54] ss:$8 sps:$4 sm:$0xff]  }
   0x9   :  { %501 = vmatpush1.bf16.msra.mxu1 %v765_v10  ;;  %v776_v24 = vld [vmem:[%s1123_s1 + $0x160] ss:$8 sps:$4 sm:$0xff]   ;;  %v778_v25 = vld [vmem:[%s1123_s1 + $0x174] ss:$8 sps:$4 sm:$0xff]   ;;  %v789_v26 = vld [vmem:[%s1123_s1 + $0x50] ss:$8 sps:$4 sm:$0xff]  }
   0xa   :  { %502 = vmatprep.subr.bf16.mxu1 %v768_v13  ;;  %v792_v27 = vld [vmem:[%s1123_s1 + $0x64] ss:$8 sps:$4 sm:$0xff]   ;;  %v782_v28 = vld [vmem:[%s1123_s1 + $0x170] ss:$8 sps:$4 sm:$0xff]   ;;  %v795_v30 = vld [vmem:[%s1123_s1 + $0x60] ss:$8 sps:$4 sm:$0xff]  }
   0xb   :  { %544 = vmatpush1.bf16.msra.mxu0 %v753_v7  ;;  %v784_v29 = vld [vmem:[%s1123_s1 + $0x184] ss:$8 sps:$4 sm:$0xff]   ;;  %v798_v31 = vld [vmem:[%s1123_s1 + $0x74] ss:$8 sps:$4 sm:$0xff]   ;;  %v788_v32 = vld [vmem:[%s1123_s1 + $0x180] ss:$8 sps:$4 sm:$0xff]  }
   0xc   :  { %545 = vmatprep.subr.bf16.mxu0 %v754_v8  ;;  %v790_v33 = vld [vmem:[%s1123_s1 + $0x194] ss:$8 sps:$4 sm:$0xff]   ;;  %v801_v34 = vld [vmem:[%s1123_s1 + $0x70] ss:$8 sps:$4 sm:$0xff]   ;;  %v804_v35 = vld [vmem:[%s1123_s1 + $0x84] ss:$8 sps:$4 sm:$0xff]  }
   0xd   :  { %503 = vmatpush1.bf16.msra.mxu1 %v771_v14  ;;  %v794_v39 = vld [vmem:[%s1123_s1 + $0x190] ss:$8 sps:$4 sm:$0xff]   ;;  %v796_v40 = vld [vmem:[%s1123_s1 + $0x1a4] ss:$8 sps:$4 sm:$0xff]   ;;  %v807_v41 = vld [vmem:[%s1123_s1 + $0x80] ss:$8 sps:$4 sm:$0xff]  }
   0xe   :  { %504 = vmatprep.subr.bf16.mxu1 %v774_v15  ;;  %v810_v42 = vld [vmem:[%s1123_s1 + $0x94] ss:$8 sps:$4 sm:$0xff]   ;;  %v996_v44 = vshrl.u32 %v32_v38, 7  ;;  %v1001_v45 = vld [vmem:[%s1124_s0] sm:$0x1f] }
   0xf   :  { %546 = vmatpush1.bf16.msra.mxu0 %v758_v11  ;;  %v800_v46 = vld [vmem:[%s1123_s1 + $0x1a0] ss:$8 sps:$4 sm:$0xff]   ;;  %v21_v47 = vunpack.c.l.bf16 %v1001_v45  ;;  %v802_v48 = vld [vmem:[%s1123_s1 + $0x1b4] ss:$8 sps:$4 sm:$0xff]   ;;  %v813_v49 = vld [vmem:[%s1123_s1 + $0x90] ss:$8 sps:$4 sm:$0xff]  }
  0x10   :  { %547 = vmatprep.subr.bf16.mxu0 %v760_v12  ;;  %v816_v50 = vld [vmem:[%s1123_s1 + $0xa4] ss:$8 sps:$4 sm:$0xff]   ;;  %v1017_v52 = vsub.s32 %v31_v43, %v996_v44  ;;  %v806_v53 = vld [vmem:[%s1123_s1 + $0x1b0] ss:$8 sps:$4 sm:$0xff]   ;;  %v819_v57 = vld [vmem:[%s1123_s1 + $0xa0] ss:$8 sps:$4 sm:$0xff]  }
  0x11   :  { %505 = vmatpush1.bf16.msra.mxu1 %v777_v18  ;;  %v23_v51 = vmax.f32 %v21_v47, 0.0  ;;  %v808_v56 = vld [vmem:[%s1123_s1 + $0x1c4] ss:$8 sps:$4 sm:$0xff]   ;;  %v822_v58 = vld [vmem:[%s1123_s1 + $0xb4] ss:$8 sps:$4 sm:$0xff]  }
  0x12   :  { %506 = vmatprep.subr.bf16.mxu1 %v780_v19  ;;  %v812_v61 = vld [vmem:[%s1123_s1 + $0x1c0] ss:$8 sps:$4 sm:$0xff]   ;;  %v814_v0 = vld [vmem:[%s1123_s1 + $0x1d4] ss:$8 sps:$4 sm:$0xff]   ;;  %v825_v1 = vld [vmem:[%s1123_s1 + $0xb0] ss:$8 sps:$4 sm:$0xff]  }
  0x13   :  { %548 = vmatpush1.bf16.msra.mxu0 %v764_v16  ;;  %v28_v54 = vcombine.high %v23_v51, %v23_v51  ;;  %v1023_v55 = vrot.slane %v23_v51, %v1017_v52  ;;  %v828_v2 = vld [vmem:[%s1123_s1 + $0xc4] ss:$8 sps:$4 sm:$0xff]   ;;  %v818_v4 = vld [vmem:[%s1123_s1 + $0x1d0] ss:$8 sps:$4 sm:$0xff]   ;;  %v831_v6 = vld [vmem:[%s1123_s1 + $0xc0] ss:$8 sps:$4 sm:$0xff]  }
  0x14   :  { %549 = vmatprep.subr.bf16.mxu0 %v766_v17  ;;  %v820_v5 = vld [vmem:[%s1123_s1 + $0x1e4] ss:$8 sps:$4 sm:$0xff]   ;;  %v835_v7 = vld [vmem:[%s1123_s1 + $0xd4] ss:$8 sps:$4 sm:$0xff]   ;;  %v824_v8 = vld [vmem:[%s1123_s1 + $0x1e0] ss:$8 sps:$4 sm:$0xff]  }
  0x15   :  { %507 = vmatpush1.bf16.msra.mxu1 %v783_v22  ;;  %v42_v59 = vrot.slane %v28_v54, %v1017_v52  ;;  %v43_v60 = vcombine.high %v1023_v55, %v1023_v55  ;;  %v826_v9 = vld [vmem:[%s1123_s1 + $0x1f4] ss:$8 sps:$4 sm:$0xff]   ;;  %v837_v10 = vld [vmem:[%s1123_s1 + $0xd0] ss:$8 sps:$4 sm:$0xff]   ;;  %v841_v11 = vld [vmem:[%s1123_s1 + $0xe4] ss:$8 sps:$4 sm:$0xff]   ;;  %v57_v22 = vpack.c.bf16 %v1023_v55, %v1023_v55 }
  0x16   :  { %508 = vmatprep.subr.bf16.mxu1 %v786_v23  ;;  %v830_v12 = vld [vmem:[%s1123_s1 + $0x1f0] ss:$8 sps:$4 sm:$0xff]   ;;  %v834_v13 = vld [vmem:[%s1123_s1 + $0x204] ss:$8 sps:$4 sm:$0xff]   ;;  %v843_v14 = vld [vmem:[%s1123_s1 + $0xe0] ss:$8 sps:$4 sm:$0xff]  }
  0x17   :  { %550 = vmatpush1.bf16.msra.mxu0 %v770_v20  ;;  %v44_v62 = vcombine.high %v42_v59, %v42_v59  ;;  %v58_v63 = vpack.c.bf16 %v43_v60, %v43_v60  ;;  %v847_v15 = vld [vmem:[%s1123_s1 + $0xf4] ss:$8 sps:$4 sm:$0xff]   ;;  %v59_v16 = vpack.c.bf16 %v42_v59, %v42_v59  ;;  %v832_v17 = vld [vmem:[%s1123_s1 + $0x200] ss:$8 sps:$4 sm:$0xff]   ;;  %v849_v19 = vld [vmem:[%s1123_s1 + $0xf0] ss:$8 sps:$4 sm:$0xff]   ;;  %v22_v20 = vunpack.c.h.bf16 %v1001_v45 }
  0x18   :  { %551 = vmatprep.subr.bf16.mxu0 %v772_v21  ;;  %v840_v18 = vld [vmem:[%s1123_s1 + $0x214] ss:$8 sps:$4 sm:$0xff]   ;;  %v838_v21 = vld [vmem:[%s1123_s1 + $0x210] ss:$8 sps:$4 sm:$0xff]   ;;  %v854_v23 = vmov 0  }
  0x19   :  { %509 = vmatpush1.bf16.msra.mxu1 %v789_v26  ;;  %v60_v3 = vpack.c.bf16 %v44_v62, %v44_v62  ;;  %530 = vmatprep.mubr.bf16.mxu1 %v58_v63  ;;  %v844_v26 = vld [vmem:[%s1123_s1 + $0x220] ss:$8 sps:$4 sm:$0xff]  }
  0x1a   :  { %510 = vmatprep.subr.bf16.mxu1 %v792_v27  ;;  %v852_v27 = vld [vmem:[%s1123_s1 + $0x234] ss:$8 sps:$4 sm:$0xff]   ;;  %v638_v43 = vld [vmem:[%s1125_s2] sm:$0x3] }
  0x1b   :  { %552 = vmatpush1.bf16.msra.mxu0 %v776_v24  ;;  %571 = vmatprep.mubr.bf16.mxu0 %v60_v3  ;;  %v846_v24 = vld [vmem:[%s1123_s1 + $0x224] ss:$8 sps:$4 sm:$0xff]  }
  0x1c   :  { %553 = vmatprep.subr.bf16.mxu0 %v778_v25  ;;  %v24_v25 = vmax.f32 %v22_v20, 0.0 }
  0x1d   :  { %511 = vmatpush1.bf16.msra.mxu1 %v795_v30 }
  0x1e   :  { %512 = vmatprep.subr.bf16.mxu1 %v798_v31  ;;  %v855_v31 = vmov 0.0  }
  0x1f   :  { %554 = vmatpush1.bf16.msra.mxu0 %v782_v28  ;;  %v51_v28 = vrot.slane %v24_v25, %v1017_v52  ;;  %19 = vst [vmem:[#allocation2] sm:$0xf] %v855_v31 }
  0x20   :  { %555 = vmatprep.subr.bf16.mxu0 %v784_v29  ;;  %v850_v29 = vld [vmem:[%s1123_s1 + $0x230] ss:$8 sps:$4 sm:$0xff]  }
  0x21   :  { %513 = vmatpush1.bf16.msra.mxu1 %v801_v34  ;;  %v61_v30 = vpack.c.bf16 %v51_v28, %v51_v28 }
  0x22   :  { %514 = vmatprep.subr.bf16.mxu1 %v804_v35 }
  0x23   :  { %556 = vmatpush1.bf16.msra.mxu0 %v788_v32 }
  0x24   :  { %557 = vmatprep.subr.bf16.mxu0 %v790_v33 }
  0x25   :  { %515 = vmatpush1.bf16.msra.mxu1 %v807_v41 }
  0x26   :  { %516 = vmatprep.subr.bf16.mxu1 %v810_v42  ;;  %v25_v47 = vld [vmem:[#allocation2] sm:$0xf] }
  0x27   :  { %558 = vmatpush1.bf16.msra.mxu0 %v794_v39  ;;  %v642_v39 = vsub.s32 0, %v996_v44 }
  0x28   :  { %559 = vmatprep.subr.bf16.mxu0 %v796_v40  ;;  %v646_v40 = vsub.s32 1, %v996_v44 }
  0x29   :  { %517 = vmatpush1.bf16.msra.mxu1 %v813_v49 }
  0x2a   :  { %518 = vmatprep.subr.bf16.mxu1 %v816_v50  ;;  %v647_v49 = vrot.slane %v638_v43, %v646_v40 }
  0x2b   :  { %560 = vmatpush1.bf16.msra.mxu0 %v800_v46 }
  0x2c   :  { %561 = vmatprep.subr.bf16.mxu0 %v802_v48  ;;  %v643_v48 = vrot.slane %v638_v43, %v642_v39 }
  0x2d   :  { %519 = vmatpush1.bf16.msra.mxu1 %v819_v57 }
  0x2e   :  { %520 = vmatprep.subr.bf16.mxu1 %v822_v58 }
  0x2f   :  { %562 = vmatpush1.bf16.msra.mxu0 %v806_v53  ;;  %v648_v53 = vcombine.low %v643_v48, %v647_v49 }
  0x30   :  { %563 = vmatprep.subr.bf16.mxu0 %v808_v56 }
  0x31   :  { %521 = vmatpush1.bf16.msra.mxu1 %v825_v1  ;;  %v655_v54 = vrot.slane %v648_v53, %v1017_v52 }
  0x32   :  { %522 = vmatprep.subr.bf16.mxu1 %v828_v2 }
  0x33   :  { %564 = vmatpush1.bf16.msra.mxu0 %v812_v61 }
  0x34   :  { %565 = vmatprep.subr.bf16.mxu0 %v814_v0 }
  0x35   :  { %523 = vmatpush1.bf16.msra.mxu1 %v831_v6 }
  0x36   :  { %524 = vmatprep.subr.bf16.mxu1 %v835_v7 }
  0x37   :  { %566 = vmatpush1.bf16.msra.mxu0 %v818_v4 }
  0x38   :  { %567 = vmatprep.subr.bf16.mxu0 %v820_v5 }
  0x39   :  { %525 = vmatpush1.bf16.msra.mxu1 %v837_v10 }
  0x3a   :  { %526 = vmatprep.subr.bf16.mxu1 %v841_v11 }
  0x3b   :  { %568 = vmatpush1.bf16.msra.mxu0 %v824_v8 }
  0x3c   :  { %569 = vmatprep.subr.bf16.mxu0 %v826_v9 }
  0x3d   :  { %527 = vmatpush1.bf16.msra.mxu1 %v843_v14 }
  0x3e   :  { %528 = vmatprep.subr.bf16.mxu1 %v847_v15 }
  0x3f   :  { %570 = vmatpush1.bf16.msra.mxu0 %v830_v12 }
  0x40   :  { %580 = vmatprep.subr.bf16.mxu0 %v834_v13 }
  0x41   :  { %529 = vmatpush1.bf16.msra.mxu1 %v849_v19 }
  0x42   :  { %572 = vmatmul.mubr.bf16.vlgmr.msra.gmra.mrb[0].mxu0 %v59_v16 }
  0x43   :  { %581 = vmatpush1.bf16.msra.mxu0 %v832_v17  ;;  %612 = vmatprep.mubr.bf16.mxu0 %v854_v23 }
  0x44   :  { %582 = vmatprep.subr.bf16.mxu0 %v840_v18  ;;  %531 = vmatmul.mubr.bf16.vlgmr.msra.gmra.mrb[0].mxu1 %v57_v22 }
  0x47   :  { %583 = vmatpush1.bf16.msra.mxu0 %v838_v21 }
  0x48   :  { %584 = vmatprep.subr.bf16.mxu0 %v846_v24 }
  0x4b   :  { %585 = vmatpush1.bf16.msra.mxu0 %v844_v26 }
  0x4c   :  { %586 = vmatprep.subr.bf16.mxu0 %v852_v27 }
  0x4f   :  { %587 = vmatpush1.bf16.msra.mxu0 %v850_v29 }
  0x52   :  { %735 = vmatmul.mubr.msk.bf16.vlgmr.msra.gmra.mrb[0].mxu0 %vm494_vm0, %v61_v30 }
 0x117   :  { %v532_v32 = vpop.f32.mrb[0].mxu1 }
 0x118   :  { %v534_v33 = vpop.f32.mrb[1].mxu1 }
 0x119   :  { %v536_v34 = vpop.f32.mrb[2].mxu1 }
 0x11a   :  { %v537_v35 = vpop.f32.mrb[3].mxu1 }
 0x125   :  { %v614_v36 = vpop.f32.mrb[0].mxu0 }
 0x126   :  { %v736_v37 = vadd.f32 %v614_v36, %v532_v32  ;;  %v616_v38 = vpop.f32.mrb[1].mxu0 }
 0x127   :  { %v737_v41 = vadd.f32 %v616_v38, %v534_v33  ;;  %v618_v42 = vpop.f32.mrb[2].mxu0 }
 0x128   :  { %v619_v45 = vpop.f32.mrb[3].mxu0 }
 0x129   :  { %v623_v46 = vcombine.low %v736_v37, %v737_v41 }
 0x12b   :  { %v630_v50 = vrot.slane %v623_v46, %v1017_v52 }
 0x12d   :  { %v632_v51 = vadd.f32 %v630_v50, %v25_v47 }
 0x12f   :  { %633 = vst [vmem:[#allocation2] sm:$0xf] %v632_v51 }
 0x136   :  { %v637_v55 = vld [vmem:[#allocation2] sm:$0xf] }
 0x137   :  { %v657_v44 = vadd.f32 %v655_v54, %v637_v55 }
 0x139   :  { %658 = vst [vmem:[%s1126_s3] sm:$0xf] %v657_v44 }

// kernel: forward.38
= control target key start
LH: loop header
LB: loop body
LE: loop exit
PB: predicated region body
PF: predicated region fallthrough
CT: control target
= control target key end

     0   :  { %vm1113_vm0 = vmmov 0   ;;  %s1371_s1 = inlined_call_operand.vmem [shape: bf16[1152,128], index: 1, kind: input, shape index: {}]   ;;  %s1372_s0 = inlined_call_operand.vmem [shape: bf16[8,1152], index: 0, kind: input, shape index: {}]   ;;  %s1373_s2 = inlined_call_operand.vmem [shape: f32[1,128], index: 2, kind: input, shape index: {}]   ;;  %s1374_s3 = inlined_call_operand.vmem [shape: f32[8,128], index: 3, kind: output, shape index: {}]  }
   0x1   :  { %v1040_v0 = vld [vmem:[%s1371_s1 + $0x40] sm:$0xff]   ;;  %v1044_v4 = vld [vmem:[%s1371_s1 + $0x48] sm:$0xff]   ;;  %v1048_v8 = vld [vmem:[%s1371_s1 + $0x50] sm:$0xff]  }
   0x2   :  { %v1041_v1 = vld [vmem:[%s1371_s1 + $0xc0] sm:$0xff]   ;;  %921 = vmatprep.subr.bf16.mxu0 %v1040_v0  ;;  %v1045_v5 = vld [vmem:[%s1371_s1 + $0xc8] sm:$0xff]   ;;  %v1049_v9 = vld [vmem:[%s1371_s1 + $0xd0] sm:$0xff]  }
   0x3   :  { %v1042_v2 = vld [vmem:[%s1371_s1] sm:$0xff]   ;;  %943 = vmatprep.subr.bf16.mxu1 %v1041_v1  ;;  %v1046_v6 = vld [vmem:[%s1371_s1 + $0x8] sm:$0xff]   ;;  %v1050_v10 = vld [vmem:[%s1371_s1 + $0x10] sm:$0xff]  }
   0x4   :  { %v1043_v3 = vld [vmem:[%s1371_s1 + $0x80] sm:$0xff]   ;;  %922 = vmatpush3.bf16.msra.mxu0 %v1042_v2  ;;  %v1047_v7 = vld [vmem:[%s1371_s1 + $0x88] sm:$0xff]   ;;  %v1051_v11 = vld [vmem:[%s1371_s1 + $0x90] sm:$0xff]  }
   0x5   :  { %944 = vmatpush3.bf16.msra.mxu1 %v1043_v3  ;;  %923 = vmatprep.subr.bf16.mxu0 %v1044_v4  ;;  %v1052_v12 = vld [vmem:[%s1371_s1 + $0x58] sm:$0xff]   ;;  %v1056_v16 = vld [vmem:[%s1371_s1 + $0x60] sm:$0xff]   ;;  %v1060_v20 = vld [vmem:[%s1371_s1 + $0x68] sm:$0xff]  }
   0x6   :  { %945 = vmatprep.subr.bf16.mxu1 %v1045_v5  ;;  %v1053_v13 = vld [vmem:[%s1371_s1 + $0xd8] sm:$0xff]   ;;  %v1057_v17 = vld [vmem:[%s1371_s1 + $0xe0] sm:$0xff]   ;;  %v1061_v21 = vld [vmem:[%s1371_s1 + $0xe8] sm:$0xff]  }
   0x7   :  { %v1054_v14 = vld [vmem:[%s1371_s1 + $0x18] sm:$0xff]   ;;  %v1058_v18 = vld [vmem:[%s1371_s1 + $0x20] sm:$0xff]   ;;  %v1062_v22 = vld [vmem:[%s1371_s1 + $0x28] sm:$0xff]  }
   0x8   :  { %924 = vmatpush3.bf16.msra.mxu0 %v1046_v6  ;;  %v1055_v15 = vld [vmem:[%s1371_s1 + $0x98] sm:$0xff]   ;;  %v1059_v19 = vld [vmem:[%s1371_s1 + $0xa0] sm:$0xff]   ;;  %v1063_v23 = vld [vmem:[%s1371_s1 + $0xa8] sm:$0xff]  }
   0x9   :  { %946 = vmatpush3.bf16.msra.mxu1 %v1047_v7  ;;  %925 = vmatprep.subr.bf16.mxu0 %v1048_v8  ;;  %v1064_v24 = vld [vmem:[%s1371_s1 + $0x70] sm:$0xff]   ;;  %v1068_v28 = vld [vmem:[%s1371_s1 + $0x78] sm:$0xff]   ;;  %v20_v32 = vld [vmem:[%s1372_s0] sm:$0xff] }
   0xa   :  { %947 = vmatprep.subr.bf16.mxu1 %v1049_v9  ;;  %v1065_v25 = vld [vmem:[%s1371_s1 + $0xf0] sm:$0xff]   ;;  %v1069_v29 = vld [vmem:[%s1371_s1 + $0xf8] sm:$0xff]   ;;  %v21_v33 = vld [vmem:[%s1372_s0 + $0x8] sm:$0xff]  ;;  %v25_v34 = vunpack.c.l.bf16 %v20_v32  ;;  %v26_v35 = vunpack.c.h.bf16 %v20_v32 }
   0xb   :  { %v1066_v26 = vld [vmem:[%s1371_s1 + $0x30] sm:$0xff]   ;;  %v1070_v30 = vld [vmem:[%s1371_s1 + $0x38] sm:$0xff]   ;;  %v27_v36 = vunpack.c.l.bf16 %v21_v33  ;;  %v28_v37 = vunpack.c.h.bf16 %v21_v33  ;;  %v1072_v38 = vld [vmem:[%s1371_s1 + $0x140] sm:$0xff]  }
   0xc   :  { %926 = vmatpush3.bf16.msra.mxu0 %v1050_v10  ;;  %v1067_v27 = vld [vmem:[%s1371_s1 + $0xb0] sm:$0xff]   ;;  %v1071_v31 = vld [vmem:[%s1371_s1 + $0xb8] sm:$0xff]   ;;  %v34_v39 = vmax.f32 %v25_v34, 0.0  ;;  %v35_v40 = vmax.f32 %v26_v35, 0.0  ;;  %v1073_v43 = vld [vmem:[%s1371_s1 + $0x100] sm:$0xff]  }
   0xd   :  { %948 = vmatpush3.bf16.msra.mxu1 %v1051_v11  ;;  %927 = vmatprep.subr.bf16.mxu0 %v1052_v12  ;;  %v36_v41 = vmax.f32 %v27_v36, 0.0  ;;  %v37_v42 = vmax.f32 %v28_v37, 0.0  ;;  %v1074_v44 = vld [vmem:[%s1371_s1 + $0x1c0] sm:$0xff]   ;;  %v1076_v50 = vld [vmem:[%s1371_s1 + $0x148] sm:$0xff]   ;;  %v1080_v54 = vld [vmem:[%s1371_s1 + $0x150] sm:$0xff]  }
   0xe   :  { %949 = vmatprep.subr.bf16.mxu1 %v1053_v13  ;;  %v45_v45 = vpack.c.bf16 %v35_v40, %v35_v40  ;;  %v44_v47 = vpack.c.bf16 %v34_v39, %v34_v39  ;;  %v1075_v49 = vld [vmem:[%s1371_s1 + $0x180] sm:$0xff]   ;;  %v1077_v51 = vld [vmem:[%s1371_s1 + $0x108] sm:$0xff]   ;;  %v1081_v55 = vld [vmem:[%s1371_s1 + $0x110] sm:$0xff]  }
   0xf   :  { %v47_v46 = vpack.c.bf16 %v37_v42, %v37_v42  ;;  %v46_v48 = vpack.c.bf16 %v36_v41, %v36_v41  ;;  %v1078_v52 = vld [vmem:[%s1371_s1 + $0x1c8] sm:$0xff]   ;;  %v1082_v56 = vld [vmem:[%s1371_s1 + $0x1d0] sm:$0xff]   ;;  %v1084_v58 = vld [vmem:[%s1371_s1 + $0x158] sm:$0xff]  }
  0x10   :  { %928 = vmatpush3.bf16.msra.mxu0 %v1054_v14  ;;  %661 = vmatprep.mubr.bf16.mxu0 %v45_v45  ;;  %v1079_v53 = vld [vmem:[%s1371_s1 + $0x188] sm:$0xff]   ;;  %v1083_v57 = vld [vmem:[%s1371_s1 + $0x190] sm:$0xff]   ;;  %v1085_v59 = vld [vmem:[%s1371_s1 + $0x118] sm:$0xff]  }
  0x11   :  { %950 = vmatpush3.bf16.msra.mxu1 %v1055_v15  ;;  %929 = vmatprep.subr.bf16.mxu0 %v1056_v16  ;;  %v1086_v60 = vld [vmem:[%s1371_s1 + $0x1d8] sm:$0xff]   ;;  %v1088_v62 = vld [vmem:[%s1371_s1 + $0x160] sm:$0xff]   ;;  %v1092_v2 = vld [vmem:[%s1371_s1 + $0x168] sm:$0xff]  }
  0x12   :  { %951 = vmatprep.subr.bf16.mxu1 %v1057_v17  ;;  %701 = vmatprep.mubr.bf16.mxu1 %v47_v46  ;;  %v1087_v61 = vld [vmem:[%s1371_s1 + $0x198] sm:$0xff]   ;;  %v1089_v63 = vld [vmem:[%s1371_s1 + $0x120] sm:$0xff]   ;;  %v1093_v3 = vld [vmem:[%s1371_s1 + $0x128] sm:$0xff]  }
  0x13   :  { %v1090_v0 = vld [vmem:[%s1371_s1 + $0x1e0] sm:$0xff]   ;;  %v1094_v4 = vld [vmem:[%s1371_s1 + $0x1e8] sm:$0xff]   ;;  %v1096_v6 = vld [vmem:[%s1371_s1 + $0x170] sm:$0xff]  }
  0x14   :  { %930 = vmatpush3.bf16.msra.mxu0 %v1058_v18  ;;  %v1091_v1 = vld [vmem:[%s1371_s1 + $0x1a0] sm:$0xff]   ;;  %v1095_v5 = vld [vmem:[%s1371_s1 + $0x1a8] sm:$0xff]   ;;  %v1097_v7 = vld [vmem:[%s1371_s1 + $0x130] sm:$0xff]  }
  0x15   :  { %952 = vmatpush3.bf16.msra.mxu1 %v1059_v19  ;;  %931 = vmatprep.subr.bf16.mxu0 %v1060_v20  ;;  %v1098_v8 = vld [vmem:[%s1371_s1 + $0x1f0] sm:$0xff]   ;;  %v1100_v10 = vld [vmem:[%s1371_s1 + $0x178] sm:$0xff]   ;;  %v1108_v33 = vld [vmem:[%s1371_s1 + $0x220] sm:$0xff]  }
  0x16   :  { %953 = vmatprep.subr.bf16.mxu1 %v1061_v21  ;;  %v1099_v9 = vld [vmem:[%s1371_s1 + $0x1b0] sm:$0xff]   ;;  %v1101_v11 = vld [vmem:[%s1371_s1 + $0x138] sm:$0xff]   ;;  %v1109_v34 = vld [vmem:[%s1371_s1 + $0x228] sm:$0xff]  }
  0x17   :  { %v1102_v12 = vld [vmem:[%s1371_s1 + $0x1f8] sm:$0xff]   ;;  %v22_v13 = vld [vmem:[%s1372_s0 + $0x10] sm:$0xff]  ;;  %v24_v35 = vld [vmem:[%s1372_s0 + $0x20] sm:$0xf] }
  0x18   :  { %932 = vmatpush3.bf16.msra.mxu0 %v1062_v22  ;;  %v29_v14 = vunpack.c.l.bf16 %v22_v13  ;;  %v30_v15 = vunpack.c.h.bf16 %v22_v13  ;;  %v1103_v16 = vld [vmem:[%s1371_s1 + $0x1b8] sm:$0xff]   ;;  %v33_v36 = vunpack.c.l.bf16 %v24_v35  ;;  %v1110_v37 = vld [vmem:[%s1371_s1 + $0x230] sm:$0xff]  }
  0x19   :  { %954 = vmatpush3.bf16.msra.mxu1 %v1063_v23  ;;  %933 = vmatprep.subr.bf16.mxu0 %v1064_v24  ;;  %v23_v17 = vld [vmem:[%s1372_s0 + $0x18] sm:$0xff]  ;;  %v1104_v24 = vld [vmem:[%s1371_s1 + $0x200] sm:$0xff]  }
  0x1a   :  { %955 = vmatprep.subr.bf16.mxu1 %v1065_v25  ;;  %v31_v18 = vunpack.c.l.bf16 %v23_v17  ;;  %v32_v19 = vunpack.c.h.bf16 %v23_v17  ;;  %v38_v20 = vmax.f32 %v29_v14, 0.0  ;;  %v39_v21 = vmax.f32 %v30_v15, 0.0  ;;  %v1107_v32 = vld [vmem:[%s1371_s1 + $0x218] sm:$0xff]  }
  0x1b   :  { %v1111_v39 = vld [vmem:[%s1371_s1 + $0x238] sm:$0xff]  }
  0x1c   :  { %934 = vmatpush3.bf16.msra.mxu0 %v1066_v26  ;;  %v40_v22 = vmax.f32 %v31_v18, 0.0  ;;  %v41_v23 = vmax.f32 %v32_v19, 0.0  ;;  %v49_v25 = vpack.c.bf16 %v39_v21, %v39_v21  ;;  %v48_v26 = vpack.c.bf16 %v38_v20, %v38_v20 }
  0x1d   :  { %956 = vmatpush3.bf16.msra.mxu1 %v1067_v27  ;;  %935 = vmatprep.subr.bf16.mxu0 %v1068_v28  ;;  %v1112_v27 = vmov 0.0  }
  0x1e   :  { %957 = vmatprep.subr.bf16.mxu1 %v1069_v29  ;;  %v51_v28 = vpack.c.bf16 %v41_v23, %v41_v23  ;;  %v50_v29 = vpack.c.bf16 %v40_v22, %v40_v22 }
  0x20   :  { %936 = vmatpush3.bf16.msra.mxu0 %v1070_v30  ;;  %v1105_v30 = vld [vmem:[%s1371_s1 + $0x208] sm:$0xff]  }
  0x21   :  { %958 = vmatpush3.bf16.msra.mxu1 %v1071_v31  ;;  %965 = vmatprep.subr.bf16.mxu0 %v1072_v38  ;;  %v1106_v31 = vld [vmem:[%s1371_s1 + $0x210] sm:$0xff]   ;;  %v42_v38 = vmax.f32 %v33_v36, 0.0 }
  0x22   :  { %987 = vmatprep.subr.bf16.mxu1 %v1074_v44 }
  0x23   :  { %662 = vmatmul.mubr.bf16.vlgmr.msra.gmra.mrb[0].mxu0 %v44_v47  ;;  %v52_v40 = vpack.c.bf16 %v42_v38, %v42_v38 }
  0x24   :  { %702 = vmatmul.mubr.bf16.vlgmr.msra.gmra.mrb[0].mxu1 %v46_v48  ;;  %966 = vmatpush3.bf16.msra.mxu0 %v1073_v43 }
  0x25   :  { %988 = vmatpush3.bf16.msra.mxu1 %v1075_v49  ;;  %967 = vmatprep.subr.bf16.mxu0 %v1076_v50 }
  0x26   :  { %989 = vmatprep.subr.bf16.mxu1 %v1078_v52  ;;  %741 = vmatprep.mubr.bf16.mxu0 %v49_v25 }
  0x27   :  { %781 = vmatprep.mubr.bf16.mxu1 %v51_v28 }
  0x28   :  { %968 = vmatpush3.bf16.msra.mxu0 %v1077_v51 }
  0x29   :  { %990 = vmatpush3.bf16.msra.mxu1 %v1079_v53  ;;  %969 = vmatprep.subr.bf16.mxu0 %v1080_v54 }
  0x2a   :  { %991 = vmatprep.subr.bf16.mxu1 %v1082_v56 }
  0x2c   :  { %970 = vmatpush3.bf16.msra.mxu0 %v1081_v55 }
  0x2d   :  { %992 = vmatpush3.bf16.msra.mxu1 %v1083_v57  ;;  %971 = vmatprep.subr.bf16.mxu0 %v1084_v58 }
  0x2e   :  { %993 = vmatprep.subr.bf16.mxu1 %v1086_v60 }
  0x30   :  { %972 = vmatpush3.bf16.msra.mxu0 %v1085_v59 }
  0x31   :  { %994 = vmatpush3.bf16.msra.mxu1 %v1087_v61  ;;  %973 = vmatprep.subr.bf16.mxu0 %v1088_v62 }
  0x32   :  { %995 = vmatprep.subr.bf16.mxu1 %v1090_v0 }
  0x34   :  { %974 = vmatpush3.bf16.msra.mxu0 %v1089_v63 }
  0x35   :  { %996 = vmatpush3.bf16.msra.mxu1 %v1091_v1  ;;  %975 = vmatprep.subr.bf16.mxu0 %v1092_v2  ;;  %v920_v1 = vld [vmem:[%s1373_s2] ss:$0 sm:$0xff] }
  0x36   :  { %997 = vmatprep.subr.bf16.mxu1 %v1094_v4 }
  0x38   :  { %976 = vmatpush3.bf16.msra.mxu0 %v1093_v3 }
  0x39   :  { %998 = vmatpush3.bf16.msra.mxu1 %v1095_v5  ;;  %977 = vmatprep.subr.bf16.mxu0 %v1096_v6 }
  0x3a   :  { %999 = vmatprep.subr.bf16.mxu1 %v1098_v8 }
  0x3c   :  { %978 = vmatpush3.bf16.msra.mxu0 %v1097_v7 }
  0x3d   :  { %1000 = vmatpush3.bf16.msra.mxu1 %v1099_v9  ;;  %979 = vmatprep.subr.bf16.mxu0 %v1100_v10 }
  0x3e   :  { %1001 = vmatprep.subr.bf16.mxu1 %v1102_v12 }
  0x40   :  { %980 = vmatpush3.bf16.msra.mxu0 %v1101_v11 }
  0x41   :  { %1002 = vmatpush3.bf16.msra.mxu1 %v1103_v16  ;;  %1018 = vmatprep.subr.bf16.mxu0 %v1112_v27 }
  0x43   :  { %742 = vmatmul.mubr.bf16.vlgmr.msra.gmra.mrb[4].mxu0 %v48_v26 }
  0x44   :  { %1019 = vmatpush3.bf16.msra.mxu0 %v1104_v24  ;;  %782 = vmatmul.mubr.bf16.vlgmr.msra.gmra.mrb[4].mxu1 %v50_v29 }
  0x45   :  { %1020 = vmatprep.subr.bf16.mxu0 %v1112_v27  ;;  %1034 = vmatprep.mubr.msk.bf16.mxu0 %vm1113_vm0, %v1112_v27 }
  0x48   :  { %1021 = vmatpush3.bf16.msra.mxu0 %v1105_v30 }
  0x49   :  { %1022 = vmatprep.subr.bf16.mxu0 %v1112_v27 }
  0x4c   :  { %1023 = vmatpush3.bf16.msra.mxu0 %v1106_v31 }
  0x4d   :  { %1024 = vmatprep.subr.bf16.mxu0 %v1112_v27 }
  0x50   :  { %1025 = vmatpush3.bf16.msra.mxu0 %v1107_v32 }
  0x51   :  { %1026 = vmatprep.subr.bf16.mxu0 %v1112_v27 }
  0x54   :  { %1027 = vmatpush3.bf16.msra.mxu0 %v1108_v33 }
  0x55   :  { %1028 = vmatprep.subr.bf16.mxu0 %v1112_v27 }
  0x58   :  { %1029 = vmatpush3.bf16.msra.mxu0 %v1109_v34 }
  0x59   :  { %1030 = vmatprep.subr.bf16.mxu0 %v1112_v27 }
  0x5c   :  { %1031 = vmatpush3.bf16.msra.mxu0 %v1110_v37 }
  0x5d   :  { %1032 = vmatprep.subr.bf16.mxu0 %v1112_v27 }
  0x60   :  { %1033 = vmatpush3.bf16.msra.mxu0 %v1111_v39 }
  0x63   :  { %1035 = vmatmul.mubr.bf16.vlgmr.msra.gmra.mrb[8].mxu0 %v52_v40 }
  0xf6   :  { %v937_v41 = vpop.f32.mrb[0].mxu0 }
  0xf7   :  { %v959_v42 = vpop.f32.mrb[0].mxu1  ;;  %v938_v43 = vpop.f32.mrb[1].mxu0 }
  0xf8   :  { %v960_v44 = vpop.f32.mrb[1].mxu1  ;;  %v939_v45 = vadd.f32 %v938_v43, %v937_v41  ;;  %v940_v47 = vpop.f32.mrb[2].mxu0 }
  0xf9   :  { %v961_v46 = vadd.f32 %v960_v44, %v959_v42  ;;  %v962_v48 = vpop.f32.mrb[2].mxu1  ;;  %v941_v49 = vpop.f32.mrb[3].mxu0 }
  0xfa   :  { %v963_v50 = vpop.f32.mrb[3].mxu1 }
  0xfb   :  { %v704_v51 = vadd.f32 %v961_v46, %v939_v45 }
 0x116   :  { %v981_v52 = vpop.f32.mrb[4].mxu0 }
 0x117   :  { %v982_v53 = vpop.f32.mrb[5].mxu0  ;;  %v1003_v54 = vpop.f32.mrb[4].mxu1 }
 0x118   :  { %v983_v55 = vadd.f32 %v982_v53, %v981_v52  ;;  %v984_v56 = vpop.f32.mrb[6].mxu0  ;;  %v1004_v57 = vpop.f32.mrb[5].mxu1 }
 0x119   :  { %v985_v58 = vpop.f32.mrb[7].mxu0  ;;  %v1005_v59 = vadd.f32 %v1004_v57, %v1003_v54  ;;  %v1006_v60 = vpop.f32.mrb[6].mxu1 }
 0x11a   :  { %v744_v61 = vadd.f32 %v983_v55, %v704_v51  ;;  %v1007_v62 = vpop.f32.mrb[7].mxu1 }
 0x11c   :  { %v784_v63 = vadd.f32 %v1005_v59, %v744_v61 }
 0x136   :  { %v823_v0 = vpop.f32.mrb[8].mxu0 }
 0x137   :  { %v824_v2 = vadd.f32 %v823_v0, %v784_v63  ;;  %v1036_v3 = vpop.f32.mrb[9].mxu0 }
 0x138   :  { %v826_v4 = vpop.f32.mrb[10].mxu0 }
 0x139   :  { %v842_v5 = vadd.f32 %v920_v1, %v824_v2  ;;  %v1037_v6 = vpop.f32.mrb[11].mxu0 }
 0x13b   :  { %843 = vst [vmem:[%s1374_s3] sm:$0xff] %v842_v5 }

// kernel: forward.41
= control target key start
LH: loop header
LB: loop body
LE: loop exit
PB: predicated region body
PF: predicated region fallthrough
CT: control target
= control target key end

     0   :  { %vm377_vm0 = vcmask 523264   ;;  %s887_s1 = inlined_call_operand.vmem [shape: bf16[576,128], index: 1, kind: input, shape index: {}]   ;;  %s888_s0 = inlined_call_operand.vmem [shape: bf16[32,576], index: 0, kind: input, shape index: {}]   ;;  %s889_s2 = inlined_call_operand.vmem [shape: f32[1,128], index: 2, kind: input, shape index: {}]   ;;  %s890_s3 = inlined_call_operand.vmem [shape: f32[32,128], index: 3, kind: output, shape index: {}]  }
   0x1   :  { %v678_v0 = vld [vmem:[%s887_s1 + $0x40] sm:$0xff]   ;;  %v682_v4 = vld [vmem:[%s887_s1 + $0x48] sm:$0xff]   ;;  %v686_v8 = vld [vmem:[%s887_s1 + $0x50] sm:$0xff]  }
   0x2   :  { %v679_v1 = vld [vmem:[%s887_s1 + $0xc0] sm:$0xff]   ;;  %604 = vmatprep.subr.bf16.mxu0 %v678_v0  ;;  %v683_v5 = vld [vmem:[%s887_s1 + $0xc8] sm:$0xff]   ;;  %v687_v9 = vld [vmem:[%s887_s1 + $0xd0] sm:$0xff]  }
   0x3   :  { %v680_v2 = vld [vmem:[%s887_s1] sm:$0xff]   ;;  %632 = vmatprep.subr.bf16.mxu1 %v679_v1  ;;  %v684_v6 = vld [vmem:[%s887_s1 + $0x8] sm:$0xff]   ;;  %v688_v10 = vld [vmem:[%s887_s1 + $0x10] sm:$0xff]  }
   0x4   :  { %v681_v3 = vld [vmem:[%s887_s1 + $0x80] sm:$0xff]   ;;  %605 = vmatpush3.bf16.msra.mxu0 %v680_v2  ;;  %v685_v7 = vld [vmem:[%s887_s1 + $0x88] sm:$0xff]   ;;  %v689_v11 = vld [vmem:[%s887_s1 + $0x90] sm:$0xff]  }
   0x5   :  { %633 = vmatpush3.bf16.msra.mxu1 %v681_v3  ;;  %606 = vmatprep.subr.bf16.mxu0 %v682_v4  ;;  %v690_v12 = vld [vmem:[%s887_s1 + $0x58] sm:$0xff]   ;;  %v694_v16 = vld [vmem:[%s887_s1 + $0x60] sm:$0xff]   ;;  %v698_v20 = vld [vmem:[%s887_s1 + $0x68] sm:$0xff]  }
   0x6   :  { %634 = vmatprep.subr.bf16.mxu1 %v683_v5  ;;  %v691_v13 = vld [vmem:[%s887_s1 + $0xd8] sm:$0xff]   ;;  %v695_v17 = vld [vmem:[%s887_s1 + $0xe0] sm:$0xff]   ;;  %v699_v21 = vld [vmem:[%s887_s1 + $0xe8] sm:$0xff]  }
   0x7   :  { %v692_v14 = vld [vmem:[%s887_s1 + $0x18] sm:$0xff]   ;;  %v696_v18 = vld [vmem:[%s887_s1 + $0x20] sm:$0xff]   ;;  %v700_v22 = vld [vmem:[%s887_s1 + $0x28] sm:$0xff]  }
   0x8   :  { %607 = vmatpush3.bf16.msra.mxu0 %v684_v6  ;;  %v693_v15 = vld [vmem:[%s887_s1 + $0x98] sm:$0xff]   ;;  %v697_v19 = vld [vmem:[%s887_s1 + $0xa0] sm:$0xff]   ;;  %v701_v23 = vld [vmem:[%s887_s1 + $0xa8] sm:$0xff]  }
   0x9   :  { %635 = vmatpush3.bf16.msra.mxu1 %v685_v7  ;;  %608 = vmatprep.subr.bf16.mxu0 %v686_v8  ;;  %v702_v24 = vld [vmem:[%s887_s1 + $0x70] sm:$0xff]   ;;  %v706_v28 = vld [vmem:[%s887_s1 + $0x78] sm:$0xff]   ;;  %v23_v32 = vld [vmem:[%s888_s0] sm:$0xff] }
   0xa   :  { %636 = vmatprep.subr.bf16.mxu1 %v687_v9  ;;  %v703_v25 = vld [vmem:[%s887_s1 + $0xf0] sm:$0xff]   ;;  %v707_v29 = vld [vmem:[%s887_s1 + $0xf8] sm:$0xff]   ;;  %v24_v34 = vld [vmem:[%s888_s0 + $0x8] sm:$0xff]  ;;  %v35_v35 = vunpack.c.l.bf16 %v23_v32  ;;  %v36_v36 = vunpack.c.h.bf16 %v23_v32 }
   0xb   :  { %v704_v26 = vld [vmem:[%s887_s1 + $0x30] sm:$0xff]   ;;  %v708_v30 = vld [vmem:[%s887_s1 + $0x38] sm:$0xff]   ;;  %v37_v40 = vunpack.c.l.bf16 %v24_v34  ;;  %v38_v41 = vunpack.c.h.bf16 %v24_v34  ;;  %v710_v44 = vld [vmem:[%s887_s1 + $0x100] sm:$0xff]  }
   0xc   :  { %609 = vmatpush3.bf16.msra.mxu0 %v688_v10  ;;  %v705_v27 = vld [vmem:[%s887_s1 + $0xb0] sm:$0xff]   ;;  %v709_v31 = vld [vmem:[%s887_s1 + $0xb8] sm:$0xff]   ;;  %v55_v45 = vmax.f32 %v35_v35, 0.0  ;;  %v56_v46 = vmax.f32 %v36_v36, 0.0  ;;  %v29_v49 = vld [vmem:[%s888_s0 + $0x28] sm:$0xff] }
   0xd   :  { %637 = vmatpush3.bf16.msra.mxu1 %v689_v11  ;;  %610 = vmatprep.subr.bf16.mxu0 %v690_v12  ;;  %v26_v33 = vld [vmem:[%s888_s0 + $0x14] sm:$0xff]  ;;  %v27_v39 = vld [vmem:[%s888_s0 + $0x1c] sm:$0xff]  ;;  %v57_v50 = vmax.f32 %v37_v40, 0.0  ;;  %v58_v51 = vmax.f32 %v38_v41, 0.0  ;;  %v46_v58 = vunpack.c.h.bf16 %v29_v49  ;;  %v33_v60 = vld [vmem:[%s888_s0 + $0x44] sm:$0xff]  ;;  %v45_v4 = vunpack.c.l.bf16 %v29_v49 }
   0xe   :  { %638 = vmatprep.subr.bf16.mxu1 %v691_v13  ;;  %v40_v37 = vunpack.c.l.bf16 %v26_v33  ;;  %v41_v38 = vunpack.c.h.bf16 %v26_v33  ;;  %v42_v42 = vunpack.c.l.bf16 %v27_v39  ;;  %v43_v43 = vunpack.c.h.bf16 %v27_v39  ;;  %v32_v54 = vld [vmem:[%s888_s0 + $0x3c] sm:$0xff]  ;;  %v30_v55 = vld [vmem:[%s888_s0 + $0x30] sm:$0xff]  ;;  %v711_v63 = vld [vmem:[%s887_s1 + $0x108] sm:$0xff]  }
   0xf   :  { %v51_v59 = vunpack.c.h.bf16 %v32_v54  ;;  %v48_v0 = vunpack.c.h.bf16 %v30_v55  ;;  %v53_v1 = vunpack.c.h.bf16 %v33_v60  ;;  %v66_v2 = vmax.f32 %v46_v58, 0.0  ;;  %v25_v6 = vld [vmem:[%s888_s0 + $0x10] ss:$20 sps:$4 sm:$0xff]  }
  0x10   :  { %611 = vmatpush3.bf16.msra.mxu0 %v692_v14  ;;  %v60_v47 = vmax.f32 %v40_v37, 0.0  ;;  %v61_v48 = vmax.f32 %v41_v38, 0.0  ;;  %v62_v52 = vmax.f32 %v42_v42, 0.0  ;;  %v63_v53 = vmax.f32 %v43_v43, 0.0 }
  0x11   :  { %639 = vmatpush3.bf16.msra.mxu1 %v693_v15  ;;  %612 = vmatprep.subr.bf16.mxu0 %v694_v16  ;;  %v71_v3 = vmax.f32 %v51_v59, 0.0  ;;  %v50_v5 = vunpack.c.l.bf16 %v32_v54  ;;  %v68_v7 = vmax.f32 %v48_v0, 0.0  ;;  %v73_v8 = vmax.f32 %v53_v1, 0.0  ;;  %v31_v15 = vld [vmem:[%s888_s0 + $0x38] ss:$20 sps:$4 sm:$0xff]  }
  0x12   :  { %640 = vmatprep.subr.bf16.mxu1 %v695_v17  ;;  %v80_v56 = vpack.c.bf16 %v61_v48, %v56_v46  ;;  %v79_v57 = vpack.c.bf16 %v60_v47, %v55_v45  ;;  %v82_v61 = vpack.c.bf16 %v63_v53, %v58_v51  ;;  %v81_v62 = vpack.c.bf16 %v62_v52, %v57_v50 }
  0x13   :  { %v47_v9 = vunpack.c.l.bf16 %v30_v55  ;;  %v52_v10 = vunpack.c.l.bf16 %v33_v60  ;;  %v85_v11 = vpack.c.bf16 %v71_v3, %v66_v2  ;;  %v65_v12 = vmax.f32 %v45_v4, 0.0 }
  0x14   :  { %613 = vmatpush3.bf16.msra.mxu0 %v696_v18  ;;  %416 = vmatprep.mubr.bf16.mxu0 %v80_v56  ;;  %v70_v13 = vmax.f32 %v50_v5, 0.0  ;;  %v39_v14 = vunpack.c.l.bf16 %v25_v6  ;;  %v87_v16 = vpack.c.bf16 %v73_v8, %v68_v7 }
  0x15   :  { %641 = vmatpush3.bf16.msra.mxu1 %v697_v19  ;;  %614 = vmatprep.subr.bf16.mxu0 %v698_v20  ;;  %v67_v17 = vmax.f32 %v47_v9, 0.0  ;;  %v72_v18 = vmax.f32 %v52_v10, 0.0  ;;  %v712_v19 = vld [vmem:[%s887_s1 + $0x110] sm:$0xff]   ;;  %v44_v20 = vunpack.c.h.bf16 %v25_v6 }
  0x16   :  { %642 = vmatprep.subr.bf16.mxu1 %v699_v21  ;;  %465 = vmatprep.mubr.bf16.mxu1 %v82_v61  ;;  %v59_v21 = vmax.f32 %v39_v14, 0.0  ;;  %v603_v61 = vld [vmem:[%s889_s2] ss:$0 sm:$0xff] }
  0x18   :  { %615 = vmatpush3.bf16.msra.mxu0 %v700_v22  ;;  %v84_v22 = vpack.c.bf16 %v70_v13, %v65_v12 }
  0x19   :  { %643 = vmatpush3.bf16.msra.mxu1 %v701_v23  ;;  %616 = vmatprep.subr.bf16.mxu0 %v702_v24  ;;  %v64_v23 = vmax.f32 %v44_v20, 0.0  ;;  %v49_v24 = vunpack.c.l.bf16 %v31_v15 }
  0x1a   :  { %644 = vmatprep.subr.bf16.mxu1 %v703_v25  ;;  %v54_v25 = vunpack.c.h.bf16 %v31_v15 }
  0x1c   :  { %617 = vmatpush3.bf16.msra.mxu0 %v704_v26  ;;  %v86_v26 = vpack.c.bf16 %v72_v18, %v67_v17 }
  0x1d   :  { %645 = vmatpush3.bf16.msra.mxu1 %v705_v27  ;;  %618 = vmatprep.subr.bf16.mxu0 %v706_v28  ;;  %v713_v27 = vld [vmem:[%s887_s1 + $0x118] sm:$0xff]   ;;  %v83_v28 = vpack.c.bf16 %v64_v23, %v59_v21 }
  0x1e   :  { %646 = vmatprep.subr.bf16.mxu1 %v707_v29  ;;  %v69_v29 = vmax.f32 %v49_v24, 0.0 }
  0x20   :  { %619 = vmatpush3.bf16.msra.mxu0 %v708_v30  ;;  %v74_v30 = vmax.f32 %v54_v25, 0.0 }
  0x21   :  { %647 = vmatpush3.bf16.msra.mxu1 %v709_v31  ;;  %666 = vmatprep.subr.bf16.mxu0 %v710_v44 }
  0x22   :  { %v88_v31 = vpack.c.bf16 %v74_v30, %v69_v29 }
  0x23   :  { %417 = vmatmul.mubr.bf16.vlgmr.msra.gmra.mrb[0].mxu0 %v79_v57 }
  0x24   :  { %466 = vmatmul.mubr.bf16.vlgmr.msra.gmra.mrb[0].mxu1 %v81_v62  ;;  %667 = vmatpush3.bf16.msra.mxu0 %v710_v44 }
  0x25   :  { %668 = vmatprep.subr.bf16.mxu0 %v711_v63  ;;  %424 = vmatprep.mubr.bf16.mxu0 %v85_v11 }
  0x26   :  { %473 = vmatprep.mubr.bf16.mxu1 %v87_v16 }
  0x28   :  { %669 = vmatpush3.bf16.msra.mxu0 %v711_v63 }
  0x29   :  { %670 = vmatprep.subr.bf16.mxu0 %v712_v19 }
  0x2b   :  { %425 = vmatmul.mubr.bf16.gmra.mrb[4].mxu0 %v84_v22 }
  0x2c   :  { %474 = vmatmul.mubr.bf16.gmra.mrb[4].mxu1 %v86_v26  ;;  %671 = vmatpush3.bf16.msra.mxu0 %v712_v19 }
  0x2d   :  { %672 = vmatprep.subr.bf16.mxu0 %v713_v27  ;;  %674 = vmatprep.mubr.msk.bf16.mxu0 %vm377_vm0, %v83_v28 }
  0x30   :  { %673 = vmatpush3.bf16.msra.mxu0 %v713_v27 }
  0x33   :  { %675 = vmatmul.mubr.msk.bf16.vlgmr.msra.gmra.mrb[8].mxu0 %vm377_vm0, %v88_v31 }
  0xf6   :  { %v620_v32 = vpop.f32.mrb[0].mxu0 }
  0xf7   :  { %v648_v33 = vpop.f32.mrb[0].mxu1  ;;  %v621_v34 = vpop.f32.mrb[1].mxu0 }
  0xf8   :  { %v622_v35 = vadd.f32 %v621_v34, %v620_v32  ;;  %v649_v36 = vpop.f32.mrb[1].mxu1  ;;  %v623_v37 = vpop.f32.mrb[2].mxu0 }
  0xf9   :  { %v650_v38 = vadd.f32 %v649_v36, %v648_v33  ;;  %v651_v39 = vpop.f32.mrb[2].mxu1  ;;  %v624_v40 = vpop.f32.mrb[3].mxu0 }
  0xfa   :  { %v625_v41 = vadd.f32 %v624_v40, %v623_v37  ;;  %v652_v42 = vpop.f32.mrb[3].mxu1 }
  0xfb   :  { %v653_v43 = vadd.f32 %v652_v42, %v651_v39  ;;  %v468_v44 = vadd.f32 %v650_v38, %v622_v35 }
  0xfd   :  { %v471_v45 = vadd.f32 %v653_v43, %v625_v41 }
  0xfe   :  { %v626_v46 = vpop.f32.mrb[4].mxu0 }
  0xff   :  { %v654_v47 = vpop.f32.mrb[4].mxu1  ;;  %v627_v48 = vpop.f32.mrb[5].mxu0 }
 0x100   :  { %v628_v49 = vadd.f32 %v627_v48, %v626_v46  ;;  %v655_v50 = vpop.f32.mrb[5].mxu1  ;;  %v629_v51 = vpop.f32.mrb[6].mxu0 }
 0x101   :  { %v656_v52 = vadd.f32 %v655_v50, %v654_v47  ;;  %v657_v53 = vpop.f32.mrb[6].mxu1  ;;  %v630_v54 = vpop.f32.mrb[7].mxu0 }
 0x102   :  { %v631_v55 = vadd.f32 %v630_v54, %v629_v51  ;;  %v658_v56 = vpop.f32.mrb[7].mxu1 }
 0x103   :  { %v659_v57 = vadd.f32 %v658_v56, %v657_v53  ;;  %v476_v58 = vadd.f32 %v656_v52, %v628_v49 }
 0x105   :  { %v479_v59 = vadd.f32 %v659_v57, %v631_v55 }
 0x106   :  { %v676_v60 = vpop.f32.mrb[8].mxu0 }
 0x107   :  { %v525_v62 = vadd.f32 %v676_v60, %v476_v58  ;;  %v516_v63 = vpop.f32.mrb[9].mxu0 }
 0x108   :  { %v517_v0 = vadd.f32 %v516_v63, %v468_v44  ;;  %v677_v1 = vpop.f32.mrb[10].mxu0 }
 0x109   :  { %v555_v2 = vadd.f32 %v603_v61, %v525_v62  ;;  %v528_v3 = vadd.f32 %v677_v1, %v479_v59  ;;  %v519_v4 = vpop.f32.mrb[11].mxu0 }
 0x10a   :  { %v553_v5 = vadd.f32 %v603_v61, %v517_v0  ;;  %v520_v6 = vadd.f32 %v519_v4, %v471_v45 }
 0x10b   :  { %559 = vst [vmem:[%s890_s3 + $0x10] sm:$0xff] %v555_v2  ;;  %v556_v7 = vadd.f32 %v603_v61, %v528_v3 }
 0x10c   :  { %557 = vst [vmem:[%s890_s3] sm:$0xff] %v553_v5  ;;  %v554_v8 = vadd.f32 %v603_v61, %v520_v6 }
 0x10d   :  { %560 = vst [vmem:[%s890_s3 + $0x18] sm:$0xff] %v556_v7 }
 0x10e   :  { %558 = vst [vmem:[%s890_s3 + $0x8] sm:$0xff] %v554_v8 }

// kernel: forward.44
= control target key start
LH: loop header
LB: loop body
LE: loop exit
PB: predicated region body
PF: predicated region fallthrough
CT: control target
= control target key end

     0   :  { %vm347_vm0 = vcmask 261120   ;;  %s1050_s1 = inlined_call_operand.vmem [shape: bf16[288,128], index: 1, kind: input, shape index: {}]   ;;  %s1051_s0 = inlined_call_operand.vmem [shape: bf16[128,288], index: 0, kind: input, shape index: {}]   ;;  %s1052_s2 = inlined_call_operand.vmem [shape: f32[1,128], index: 2, kind: input, shape index: {}]   ;;  %s1053_s3 = inlined_call_operand.vmem [shape: f32[128,128], index: 3, kind: output, shape index: {}]  }
   0x1   :  { %v797_v0 = vld [vmem:[%s1050_s1 + $0x40] sm:$0xff]   ;;  %v799_v2 = vld [vmem:[%s1050_s1 + $0x48] sm:$0xff]   ;;  %v801_v4 = vld [vmem:[%s1050_s1 + $0x50] sm:$0xff]  }
   0x2   :  { %v798_v1 = vld [vmem:[%s1050_s1] sm:$0xff]   ;;  %687 = vmatprep.subr.bf16.mxu0 %v797_v0  ;;  %781 = vmatprep.subr.bf16.mxu1 %v797_v0  ;;  %v800_v3 = vld [vmem:[%s1050_s1 + $0x8] sm:$0xff]   ;;  %v802_v5 = vld [vmem:[%s1050_s1 + $0x10] sm:$0xff]  }
   0x3   :  { %688 = vmatpush3.bf16.msra.mxu0 %v798_v1  ;;  %789 = vmatpush3.bf16.msra.mxu1 %v798_v1  ;;  %v803_v6 = vld [vmem:[%s1050_s1 + $0x58] sm:$0xff]   ;;  %v805_v8 = vld [vmem:[%s1050_s1 + $0x60] sm:$0xff]   ;;  %v807_v10 = vld [vmem:[%s1050_s1 + $0x68] sm:$0xff]  }
   0x4   :  { %689 = vmatprep.subr.bf16.mxu0 %v799_v2  ;;  %782 = vmatprep.subr.bf16.mxu1 %v799_v2  ;;  %v804_v7 = vld [vmem:[%s1050_s1 + $0x18] sm:$0xff]   ;;  %v806_v9 = vld [vmem:[%s1050_s1 + $0x20] sm:$0xff]   ;;  %v37_v12 = vld [vmem:[%s1051_s0 + $0xc] sm:$0xff] }
   0x5   :  { %v35_v11 = vld [vmem:[%s1051_s0] sm:$0xff]  ;;  %v59_v13 = vld [vmem:[%s1051_s0 + $0x90] sm:$0xff]  ;;  %v71_v15 = vunpack.c.h.bf16 %v37_v12  ;;  %v808_v19 = vld [vmem:[%s1050_s1 + $0x28] sm:$0xff]   ;;  %v70_v28 = vunpack.c.l.bf16 %v37_v12 }
   0x6   :  { %v68_v14 = vunpack.c.h.bf16 %v35_v11  ;;  %v61_v16 = vld [vmem:[%s1051_s0 + $0x9c] sm:$0xff]  ;;  %v104_v17 = vunpack.c.h.bf16 %v59_v13  ;;  %v809_v20 = vld [vmem:[%s1050_s1 + $0x70] sm:$0xff]   ;;  %v67_v23 = vunpack.c.l.bf16 %v35_v11  ;;  %v41_v27 = vld [vmem:[%s1051_s0 + $0x24] sm:$0xff]  ;;  %v103_v30 = vunpack.c.l.bf16 %v59_v13 }
   0x7   :  { %690 = vmatpush3.bf16.msra.mxu0 %v800_v3  ;;  %790 = vmatpush3.bf16.msra.mxu1 %v800_v3  ;;  %v107_v18 = vunpack.c.h.bf16 %v61_v16  ;;  %v119_v22 = vmax.f32 %v71_v15, 0.0  ;;  %v39_v26 = vld [vmem:[%s1051_s0 + $0x18] sm:$0xff]  ;;  %v106_v31 = vunpack.c.l.bf16 %v61_v16  ;;  %v63_v32 = vld [vmem:[%s1051_s0 + $0xa8] sm:$0xff]  ;;  %v810_v35 = vld [vmem:[%s1050_s1 + $0x30] sm:$0xff]   ;;  %v77_v37 = vunpack.c.h.bf16 %v41_v27 }
   0x8   :  { %691 = vmatprep.subr.bf16.mxu0 %v801_v4  ;;  %783 = vmatprep.subr.bf16.mxu1 %v801_v4  ;;  %v116_v21 = vmax.f32 %v68_v14, 0.0  ;;  %v152_v24 = vmax.f32 %v104_v17, 0.0  ;;  %v65_v33 = vld [vmem:[%s1051_s0 + $0xb4] sm:$0xff]  ;;  %v74_v36 = vunpack.c.h.bf16 %v39_v26  ;;  %v110_v39 = vunpack.c.h.bf16 %v63_v32  ;;  %v45_v49 = vld [vmem:[%s1051_s0 + $0x3c] sm:$0xff]  ;;  %v814_v2 = vld [vmem:[%s1050_s1 + $0x88] sm:$0xff]  }
   0x9   :  { %v155_v25 = vmax.f32 %v107_v18, 0.0  ;;  %v811_v38 = vld [vmem:[%s1050_s1 + $0x78] sm:$0xff]   ;;  %v113_v40 = vunpack.c.h.bf16 %v65_v33  ;;  %v115_v41 = vmax.f32 %v67_v23, 0.0  ;;  %v118_v42 = vmax.f32 %v70_v28, 0.0  ;;  %v43_v48 = vld [vmem:[%s1051_s0 + $0x30] sm:$0xff]  ;;  %v813_v50 = vld [vmem:[%s1050_s1 + $0x80] sm:$0xff]  }
   0xa   :  { %v180_v29 = vpack.c.bf16 %v119_v22, %v116_v21  ;;  %v151_v43 = vmax.f32 %v103_v30, 0.0  ;;  %v154_v44 = vmax.f32 %v106_v31, 0.0  ;;  %v812_v45 = vld [vmem:[%s1050_s1 + $0x38] sm:$0xff]   ;;  %v122_v46 = vmax.f32 %v74_v36, 0.0  ;;  %v36_v53 = vld [vmem:[%s1051_s0 + $0x8] ss:$12 sps:$4 sm:$0xff]  }
   0xb   :  { %692 = vmatpush3.bf16.msra.mxu0 %v802_v5  ;;  %791 = vmatpush3.bf16.msra.mxu1 %v802_v5  ;;  %v198_v34 = vpack.c.bf16 %v155_v25, %v152_v24  ;;  %v125_v47 = vmax.f32 %v77_v37, 0.0  ;;  %v158_v51 = vmax.f32 %v110_v39, 0.0  ;;  %v161_v52 = vmax.f32 %v113_v40, 0.0  ;;  %v47_v12 = vld [vmem:[%s1051_s0 + $0x48] sm:$0xff]  ;;  %v49_v13 = vld [vmem:[%s1051_s0 + $0x54] sm:$0xff]  ;;  %v51_v36 = vld [vmem:[%s1051_s0 + $0x60] sm:$0xff] }
   0xc   :  { %693 = vmatprep.subr.bf16.mxu0 %v803_v6  ;;  %784 = vmatprep.subr.bf16.mxu1 %v803_v6  ;;  %v179_v54 = vpack.c.bf16 %v118_v42, %v115_v41  ;;  %v197_v55 = vpack.c.bf16 %v154_v44, %v151_v43  ;;  %v73_v56 = vunpack.c.l.bf16 %v39_v26  ;;  %v76_v57 = vunpack.c.l.bf16 %v41_v27  ;;  %v44_v14 = vld [vmem:[%s1051_s0 + $0x38] ss:$12 sps:$4 sm:$0xff]   ;;  %v48_v31 = vld [vmem:[%s1051_s0 + $0x50] ss:$12 sps:$4 sm:$0xff]  }
   0xd   :  { %404 = vmatprep.mubr.bf16.mxu0 %v180_v29  ;;  %452 = vmatprep.mubr.bf16.mxu1 %v198_v34  ;;  %v109_v58 = vunpack.c.l.bf16 %v63_v32  ;;  %v112_v59 = vunpack.c.l.bf16 %v65_v33  ;;  %v80_v60 = vunpack.c.h.bf16 %v43_v48  ;;  %v83_v61 = vunpack.c.h.bf16 %v45_v49  ;;  %v53_v37 = vld [vmem:[%s1051_s0 + $0x6c] sm:$0xff] }
   0xe   :  { %v183_v62 = vpack.c.bf16 %v125_v47, %v122_v46  ;;  %v69_v63 = vunpack.c.l.bf16 %v36_v53  ;;  %v72_v0 = vunpack.c.h.bf16 %v36_v53  ;;  %v201_v1 = vpack.c.bf16 %v161_v52, %v158_v51 }
   0xf   :  { %694 = vmatpush3.bf16.msra.mxu0 %v804_v7  ;;  %792 = vmatpush3.bf16.msra.mxu1 %v804_v7  ;;  %v121_v3 = vmax.f32 %v73_v56, 0.0  ;;  %v124_v4 = vmax.f32 %v76_v57, 0.0  ;;  %v157_v5 = vmax.f32 %v109_v58, 0.0  ;;  %v160_v6 = vmax.f32 %v112_v59, 0.0  ;;  %v56_v57 = vld [vmem:[%s1051_s0 + $0x80] ss:$12 sps:$4 sm:$0xff]  }
  0x10   :  { %695 = vmatprep.subr.bf16.mxu0 %v805_v8  ;;  %785 = vmatprep.subr.bf16.mxu1 %v805_v8  ;;  %v128_v7 = vmax.f32 %v80_v60, 0.0  ;;  %v131_v8 = vmax.f32 %v83_v61, 0.0  ;;  %v120_v11 = vmax.f32 %v72_v0, 0.0  ;;  %v79_v15 = vunpack.c.l.bf16 %v43_v48  ;;  %v55_v60 = vld [vmem:[%s1051_s0 + $0x78] sm:$0xff]  ;;  %v57_v61 = vld [vmem:[%s1051_s0 + $0x84] sm:$0xff] }
  0x11   :  { %v82_v16 = vunpack.c.l.bf16 %v45_v49  ;;  %v86_v22 = vunpack.c.h.bf16 %v47_v12  ;;  %v89_v24 = vunpack.c.h.bf16 %v49_v13  ;;  %v81_v25 = vunpack.c.l.bf16 %v44_v14 }
  0x12   :  { %v186_v21 = vpack.c.bf16 %v131_v8, %v128_v7  ;;  %v84_v26 = vunpack.c.h.bf16 %v44_v14  ;;  %v127_v27 = vmax.f32 %v79_v15, 0.0  ;;  %v85_v41 = vunpack.c.l.bf16 %v47_v12 }
  0x13   :  { %696 = vmatpush3.bf16.msra.mxu0 %v806_v9  ;;  %793 = vmatpush3.bf16.msra.mxu1 %v806_v9  ;;  %v40_v9 = vld [vmem:[%s1051_s0 + $0x20] ss:$12 sps:$4 sm:$0xff]   ;;  %v130_v28 = vmax.f32 %v82_v16, 0.0  ;;  %v134_v32 = vmax.f32 %v86_v22, 0.0  ;;  %v137_v33 = vmax.f32 %v89_v24, 0.0  ;;  %v129_v34 = vmax.f32 %v81_v25, 0.0 }
  0x14   :  { %697 = vmatprep.subr.bf16.mxu0 %v807_v10  ;;  %786 = vmatprep.subr.bf16.mxu1 %v807_v10  ;;  %v117_v10 = vmax.f32 %v69_v63, 0.0  ;;  %v75_v17 = vunpack.c.l.bf16 %v40_v9  ;;  %v78_v18 = vunpack.c.h.bf16 %v40_v9  ;;  %v88_v42 = vunpack.c.l.bf16 %v49_v13 }
  0x15   :  { %v185_v39 = vpack.c.bf16 %v130_v28, %v127_v27  ;;  %v87_v43 = vunpack.c.l.bf16 %v48_v31  ;;  %v90_v44 = vunpack.c.h.bf16 %v48_v31  ;;  %v95_v46 = vunpack.c.h.bf16 %v53_v37 }
  0x16   :  { %v181_v23 = vpack.c.bf16 %v120_v11, %v117_v10  ;;  %v123_v29 = vmax.f32 %v75_v17, 0.0  ;;  %v126_v30 = vmax.f32 %v78_v18, 0.0  ;;  %v189_v47 = vpack.c.bf16 %v137_v33, %v134_v32 }
  0x17   :  { %698 = vmatpush3.bf16.msra.mxu0 %v808_v19  ;;  %794 = vmatpush3.bf16.msra.mxu1 %v808_v19  ;;  %v182_v19 = vpack.c.bf16 %v124_v4, %v121_v3  ;;  %v133_v51 = vmax.f32 %v85_v41, 0.0  ;;  %v136_v52 = vmax.f32 %v88_v42, 0.0  ;;  %v135_v53 = vmax.f32 %v87_v43, 0.0 }
  0x18   :  { %699 = vmatprep.subr.bf16.mxu0 %v809_v20  ;;  %787 = vmatprep.subr.bf16.mxu1 %v809_v20  ;;  %v200_v20 = vpack.c.bf16 %v160_v6, %v157_v5  ;;  %v184_v40 = vpack.c.bf16 %v126_v30, %v123_v29  ;;  %v143_v56 = vmax.f32 %v95_v46, 0.0  ;;  %v91_v63 = vunpack.c.l.bf16 %v51_v36 }
  0x19   :  { %v94_v0 = vunpack.c.l.bf16 %v53_v37  ;;  %v188_v3 = vpack.c.bf16 %v136_v52, %v133_v51  ;;  %v98_v6 = vunpack.c.h.bf16 %v55_v60  ;;  %v101_v8 = vunpack.c.h.bf16 %v57_v61 }
  0x1a   :  { %v139_v11 = vmax.f32 %v91_v63, 0.0  ;;  %v97_v22 = vunpack.c.l.bf16 %v55_v60  ;;  %v980_v60 = vld [vmem:[%s1052_s2] ss:$0 sm:$0xff] }
  0x1b   :  { %700 = vmatpush3.bf16.msra.mxu0 %v810_v35  ;;  %795 = vmatpush3.bf16.msra.mxu1 %v810_v35  ;;  %v132_v35 = vmax.f32 %v84_v26, 0.0  ;;  %v142_v12 = vmax.f32 %v94_v0, 0.0  ;;  %v146_v15 = vmax.f32 %v98_v6, 0.0  ;;  %v149_v16 = vmax.f32 %v101_v8, 0.0 }
  0x1c   :  { %701 = vmatprep.subr.bf16.mxu0 %v811_v38  ;;  %788 = vmatprep.subr.bf16.mxu1 %v811_v38  ;;  %v52_v38 = vld [vmem:[%s1051_s0 + $0x68] ss:$12 sps:$4 sm:$0xff]   ;;  %v145_v28 = vmax.f32 %v97_v22, 0.0 }
  0x1d   :  { %v187_v48 = vpack.c.bf16 %v132_v35, %v129_v34  ;;  %v93_v49 = vunpack.c.l.bf16 %v52_v38  ;;  %v195_v26 = vpack.c.bf16 %v149_v16, %v146_v15 }
  0x1f   :  { %702 = vmatpush3.bf16.msra.mxu0 %v812_v45  ;;  %796 = vmatpush3.bf16.msra.mxu1 %v812_v45  ;;  %v92_v45 = vunpack.c.h.bf16 %v51_v36  ;;  %v141_v58 = vmax.f32 %v93_v49, 0.0 }
  0x20   :  { %761 = vmatprep.subr.bf16.mxu1 %v813_v50 }
  0x22   :  { %405 = vmatmul.mubr.bf16.vlgmr.msra.gmra.mrb[0].mxu0 %v179_v54  ;;  %453 = vmatmul.mubr.bf16.vlgmr.msra.gmra.mrb[0].mxu1 %v197_v55  ;;  %v138_v54 = vmax.f32 %v90_v44, 0.0  ;;  %v140_v55 = vmax.f32 %v92_v45, 0.0 }
  0x23   :  { %762 = vmatpush3.bf16.msra.mxu1 %v813_v50  ;;  %412 = vmatprep.mubr.bf16.mxu0 %v183_v62  ;;  %v96_v50 = vunpack.c.h.bf16 %v52_v38  ;;  %v60_v62 = vld [vmem:[%s1051_s0 + $0x98] ss:$12 sps:$4 sm:$0xff]  }
  0x24   :  { %460 = vmatprep.mubr.bf16.mxu1 %v201_v1  ;;  %763 = vmatprep.subr.bf16.mxu1 %v814_v2  ;;  %v99_v1 = vunpack.c.l.bf16 %v56_v57  ;;  %v190_v4 = vpack.c.bf16 %v138_v54, %v135_v53  ;;  %v192_v5 = vpack.c.bf16 %v143_v56, %v140_v55  ;;  %v105_v9 = vunpack.c.l.bf16 %v60_v62 }
  0x25   :  { %v144_v59 = vmax.f32 %v96_v50, 0.0  ;;  %v108_v10 = vunpack.c.h.bf16 %v60_v62 }
  0x26   :  { %v147_v13 = vmax.f32 %v99_v1, 0.0  ;;  %v153_v17 = vmax.f32 %v105_v9, 0.0 }
  0x27   :  { %764 = vmatpush3.bf16.msra.mxu1 %v814_v2  ;;  %v102_v2 = vunpack.c.h.bf16 %v56_v57  ;;  %v193_v7 = vpack.c.bf16 %v144_v59, %v141_v58  ;;  %v156_v18 = vmax.f32 %v108_v10, 0.0 }
  0x29   :  { %v150_v14 = vmax.f32 %v102_v2, 0.0  ;;  %v199_v27 = vpack.c.bf16 %v156_v18, %v153_v17 }
  0x2a   :  { %413 = vmatmul.mubr.bf16.gmra.mrb[4].mxu0 %v182_v19  ;;  %461 = vmatmul.mubr.bf16.gmra.mrb[4].mxu1 %v200_v20  ;;  %v64_v19 = vld [vmem:[%s1051_s0 + $0xb0] ss:$12 sps:$4 sm:$0xff]   ;;  %v191_v20 = vpack.c.bf16 %v142_v12, %v139_v11 }
  0x2b   :  { %420 = vmatprep.mubr.bf16.mxu0 %v186_v21  ;;  %765 = vmatprep.mubr.msk.bf16.mxu1 %vm347_vm0, %v181_v23  ;;  %v196_v21 = vpack.c.bf16 %v150_v14, %v147_v13  ;;  %v100_v23 = vunpack.c.l.bf16 %v57_v61  ;;  %v111_v24 = vunpack.c.l.bf16 %v64_v19  ;;  %v114_v25 = vunpack.c.h.bf16 %v64_v19 }
  0x2d   :  { %v148_v29 = vmax.f32 %v100_v23, 0.0  ;;  %v159_v30 = vmax.f32 %v111_v24, 0.0  ;;  %v162_v31 = vmax.f32 %v114_v25, 0.0 }
  0x2f   :  { %v194_v32 = vpack.c.bf16 %v148_v29, %v145_v28  ;;  %v202_v33 = vpack.c.bf16 %v162_v31, %v159_v30 }
  0x32   :  { %421 = vmatmul.mubr.bf16.gmra.mrb[8].mxu0 %v185_v39  ;;  %766 = vmatmul.mubr.msk.bf16.vlgmr.msra.gmra.mrb[8].mxu1 %vm347_vm0, %v184_v40 }
  0x33   :  { %428 = vmatprep.mubr.bf16.mxu0 %v189_v47  ;;  %769 = vmatprep.mubr.msk.bf16.mxu1 %vm347_vm0, %v187_v48 }
  0x3a   :  { %429 = vmatmul.mubr.bf16.gmra.mrb[12].mxu0 %v188_v3  ;;  %770 = vmatmul.mubr.msk.bf16.gmra.mrb[12].mxu1 %vm347_vm0, %v190_v4 }
  0x3b   :  { %436 = vmatprep.mubr.bf16.mxu0 %v192_v5  ;;  %773 = vmatprep.mubr.msk.bf16.mxu1 %vm347_vm0, %v193_v7 }
  0x42   :  { %437 = vmatmul.mubr.bf16.gmra.mrb[16].mxu0 %v191_v20  ;;  %774 = vmatmul.mubr.msk.bf16.gmra.mrb[16].mxu1 %vm347_vm0, %v196_v21 }
  0x43   :  { %444 = vmatprep.mubr.bf16.mxu0 %v195_v26  ;;  %777 = vmatprep.mubr.msk.bf16.mxu1 %vm347_vm0, %v199_v27 }
  0x4a   :  { %445 = vmatmul.mubr.bf16.gmra.mrb[20].mxu0 %v194_v32  ;;  %778 = vmatmul.mubr.msk.bf16.gmra.mrb[20].mxu1 %vm347_vm0, %v202_v33 }
  0xf5   :  { %v703_v34 = vpop.f32.mrb[0].mxu0  ;;  %v739_v35 = vpop.f32.mrb[0].mxu1 }
  0xf6   :  { %v704_v36 = vpop.f32.mrb[1].mxu0  ;;  %v740_v37 = vpop.f32.mrb[1].mxu1 }
  0xf7   :  { %v705_v38 = vadd.f32 %v704_v36, %v703_v34  ;;  %v969_v39 = vadd.f32 %v740_v37, %v739_v35  ;;  %v706_v40 = vpop.f32.mrb[2].mxu0  ;;  %v742_v41 = vpop.f32.mrb[2].mxu1 }
  0xf8   :  { %v707_v42 = vpop.f32.mrb[3].mxu0  ;;  %v743_v43 = vpop.f32.mrb[3].mxu1 }
  0xf9   :  { %v708_v44 = vadd.f32 %v707_v42, %v706_v40  ;;  %v971_v45 = vadd.f32 %v743_v43, %v742_v41 }
  0xfd   :  { %v709_v46 = vpop.f32.mrb[4].mxu0  ;;  %v745_v47 = vpop.f32.mrb[4].mxu1 }
  0xfe   :  { %v710_v48 = vpop.f32.mrb[5].mxu0  ;;  %v746_v49 = vpop.f32.mrb[5].mxu1 }
  0xff   :  { %v711_v50 = vadd.f32 %v710_v48, %v709_v46  ;;  %v973_v51 = vadd.f32 %v746_v49, %v745_v47  ;;  %v712_v52 = vpop.f32.mrb[6].mxu0  ;;  %v748_v53 = vpop.f32.mrb[6].mxu1 }
 0x100   :  { %v713_v54 = vpop.f32.mrb[7].mxu0  ;;  %v749_v55 = vpop.f32.mrb[7].mxu1 }
 0x101   :  { %v714_v56 = vadd.f32 %v713_v54, %v712_v52  ;;  %v975_v57 = vadd.f32 %v749_v55, %v748_v53 }
 0x105   :  { %v715_v58 = vpop.f32.mrb[8].mxu0  ;;  %v767_v59 = vpop.f32.mrb[8].mxu1 }
 0x106   :  { %v512_v61 = vadd.f32 %v767_v59, %v711_v50  ;;  %v716_v62 = vpop.f32.mrb[9].mxu0  ;;  %v503_v63 = vpop.f32.mrb[9].mxu1 }
 0x107   :  { %v717_v0 = vadd.f32 %v716_v62, %v715_v58  ;;  %v504_v1 = vadd.f32 %v705_v38, %v503_v63  ;;  %v718_v2 = vpop.f32.mrb[10].mxu0  ;;  %v768_v3 = vpop.f32.mrb[10].mxu1 }
 0x108   :  { %v626_v4 = vadd.f32 %v980_v60, %v512_v61  ;;  %v515_v5 = vadd.f32 %v768_v3, %v714_v56  ;;  %v719_v6 = vpop.f32.mrb[11].mxu0  ;;  %v506_v7 = vpop.f32.mrb[11].mxu1 }
 0x109   :  { %v624_v8 = vadd.f32 %v980_v60, %v504_v1  ;;  %v720_v9 = vadd.f32 %v719_v6, %v718_v2  ;;  %v507_v10 = vadd.f32 %v708_v44, %v506_v7 }
 0x10a   :  { %642 = vst [vmem:[%s1053_s3 + $0x10] sm:$0xff] %v626_v4  ;;  %v627_v11 = vadd.f32 %v980_v60, %v515_v5 }
 0x10b   :  { %640 = vst [vmem:[%s1053_s3] sm:$0xff] %v624_v8  ;;  %v625_v12 = vadd.f32 %v980_v60, %v507_v10 }
 0x10c   :  { %643 = vst [vmem:[%s1053_s3 + $0x18] sm:$0xff] %v627_v11 }
 0x10d   :  { %641 = vst [vmem:[%s1053_s3 + $0x8] sm:$0xff] %v625_v12  ;;  %v721_v13 = vpop.f32.mrb[12].mxu0  ;;  %v771_v14 = vpop.f32.mrb[12].mxu1 }
 0x10e   :  { %v722_v15 = vpop.f32.mrb[13].mxu0  ;;  %v519_v16 = vpop.f32.mrb[13].mxu1 }
 0x10f   :  { %v723_v17 = vadd.f32 %v722_v15, %v721_v13  ;;  %v520_v18 = vadd.f32 %v717_v0, %v519_v16  ;;  %v724_v19 = vpop.f32.mrb[14].mxu0  ;;  %v772_v20 = vpop.f32.mrb[14].mxu1 }
 0x110   :  { %v725_v21 = vpop.f32.mrb[15].mxu0  ;;  %v522_v22 = vpop.f32.mrb[15].mxu1 }
 0x111   :  { %v528_v23 = vadd.f32 %v771_v14, %v723_v17  ;;  %v628_v24 = vadd.f32 %v980_v60, %v520_v18  ;;  %v726_v25 = vadd.f32 %v725_v21, %v724_v19  ;;  %v523_v26 = vadd.f32 %v720_v9, %v522_v22 }
 0x113   :  { %v630_v27 = vadd.f32 %v980_v60, %v528_v23  ;;  %644 = vst [vmem:[%s1053_s3 + $0x20] sm:$0xff] %v628_v24  ;;  %v531_v28 = vadd.f32 %v772_v20, %v726_v25  ;;  %v629_v29 = vadd.f32 %v980_v60, %v523_v26 }
 0x115   :  { %646 = vst [vmem:[%s1053_s3 + $0x30] sm:$0xff] %v630_v27  ;;  %v631_v30 = vadd.f32 %v980_v60, %v531_v28  ;;  %645 = vst [vmem:[%s1053_s3 + $0x28] sm:$0xff] %v629_v29  ;;  %v727_v31 = vpop.f32.mrb[16].mxu0  ;;  %v775_v32 = vpop.f32.mrb[16].mxu1 }
 0x116   :  { %v728_v33 = vpop.f32.mrb[17].mxu0  ;;  %v535_v34 = vpop.f32.mrb[17].mxu1 }
 0x117   :  { %647 = vst [vmem:[%s1053_s3 + $0x38] sm:$0xff] %v631_v30  ;;  %v729_v35 = vadd.f32 %v728_v33, %v727_v31  ;;  %v730_v36 = vpop.f32.mrb[18].mxu0  ;;  %v776_v37 = vpop.f32.mrb[18].mxu1 }
 0x118   :  { %v731_v38 = vpop.f32.mrb[19].mxu0  ;;  %v538_v40 = vpop.f32.mrb[19].mxu1 }
 0x119   :  { %v536_v41 = vadd.f32 %v729_v35, %v535_v34  ;;  %v732_v42 = vadd.f32 %v731_v38, %v730_v36 }
 0x11b   :  { %v632_v43 = vadd.f32 %v980_v60, %v536_v41  ;;  %v539_v44 = vadd.f32 %v732_v42, %v538_v40 }
 0x11d   :  { %648 = vst [vmem:[%s1053_s3 + $0x40] sm:$0xff] %v632_v43  ;;  %v633_v46 = vadd.f32 %v980_v60, %v539_v44  ;;  %v733_v47 = vpop.f32.mrb[20].mxu0  ;;  %v779_v48 = vpop.f32.mrb[20].mxu1 }
 0x11e   :  { %v560_v49 = vadd.f32 %v779_v48, %v973_v51  ;;  %v734_v50 = vpop.f32.mrb[21].mxu0  ;;  %v551_v52 = vpop.f32.mrb[21].mxu1 }
 0x11f   :  { %649 = vst [vmem:[%s1053_s3 + $0x48] sm:$0xff] %v633_v46  ;;  %v735_v53 = vadd.f32 %v734_v50, %v733_v47  ;;  %v552_v54 = vadd.f32 %v969_v39, %v551_v52  ;;  %v736_v55 = vpop.f32.mrb[22].mxu0  ;;  %v780_v56 = vpop.f32.mrb[22].mxu1 }
 0x120   :  { %v638_v58 = vadd.f32 %v980_v60, %v560_v49  ;;  %v563_v59 = vadd.f32 %v780_v56, %v975_v57  ;;  %v737_v61 = vpop.f32.mrb[23].mxu0  ;;  %v554_v62 = vpop.f32.mrb[23].mxu1 }
 0x121   :  { %v544_v63 = vadd.f32 %v775_v32, %v735_v53  ;;  %v636_v51 = vadd.f32 %v980_v60, %v552_v54  ;;  %v738_v0 = vadd.f32 %v737_v61, %v736_v55  ;;  %v555_v1 = vadd.f32 %v971_v45, %v554_v62 }
 0x122   :  { %654 = vst [vmem:[%s1053_s3 + $0x70] sm:$0xff] %v638_v58  ;;  %v639_v39 = vadd.f32 %v980_v60, %v563_v59 }
 0x123   :  { %v634_v2 = vadd.f32 %v980_v60, %v544_v63  ;;  %652 = vst [vmem:[%s1053_s3 + $0x60] sm:$0xff] %v636_v51  ;;  %v547_v57 = vadd.f32 %v776_v37, %v738_v0  ;;  %v637_v3 = vadd.f32 %v980_v60, %v555_v1 }
 0x124   :  { %655 = vst [vmem:[%s1053_s3 + $0x78] sm:$0xff] %v639_v39 }
 0x125   :  { %650 = vst [vmem:[%s1053_s3 + $0x50] sm:$0xff] %v634_v2  ;;  %v635_v45 = vadd.f32 %v980_v60, %v547_v57  ;;  %653 = vst [vmem:[%s1053_s3 + $0x68] sm:$0xff] %v637_v3 }
 0x127   :  { %651 = vst [vmem:[%s1053_s3 + $0x58] sm:$0xff] %v635_v45 }

// kernel: forward.45
= control target key start
LH: loop header
LB: loop body
LE: loop exit
PB: predicated region body
PF: predicated region fallthrough
CT: control target
= control target key end

     0   :  { %vm14_vm0 = vcmask 57344   ;;  %vm82_vm1 = vcmask 64512   ;;  %v435_v0 = vmov 0.0   ;;  %s1315_s0 = inlined_call_operand.vmem [shape: f32[512,8], index: 0, kind: input, shape index: {}]   ;;  %s1316_s1 = inlined_call_operand.vmem [shape: f32[1,8], index: 1, kind: output, shape index: {0}]   ;;  %s1317_s2 = inlined_call_operand.vmem [shape: f32[1,8], index: 2, kind: output, shape index: {1}]  }
   0x1   :  { %15 = vst.msk [vmem:[#allocation2] sm:$0x1] %vm14_vm0, %v435_v0  ;;  %16 = vst.msk [vmem:[#allocation3] sm:$0x1] %vm14_vm0, %v435_v0  ;;  %v456_v1 = vld [vmem:[%s1315_s0] sm:$0xff]  ;;  %v461_v2 = vld [vmem:[%s1315_s0 + $0x8] sm:$0xff] }
   0x2   :  { %v466_v3 = vld [vmem:[%s1315_s0 + $0x10] sm:$0xff]  ;;  %v83_v4 = vsel %vm82_vm1, %v456_v1, 0.0  ;;  %v84_v5 = vsel %vm82_vm1, %v461_v2, 0.0  ;;  %v477_v7 = vld [vmem:[%s1315_s0 + $0x18] sm:$0xff]  ;;  %v484_v10 = vld [vmem:[%s1315_s0 + $0x20] sm:$0xff] }
   0x3   :  { %v86_v6 = vsel %vm82_vm1, %v466_v3, 0.0  ;;  %v85_v8 = vadd.f32 %v84_v5, %v83_v4  ;;  %v88_v9 = vsel %vm82_vm1, %v477_v7, 0.0  ;;  %v90_v12 = vsel %vm82_vm1, %v484_v10, 0.0  ;;  %v491_v13 = vld [vmem:[%s1315_s0 + $0x28] sm:$0xff]  ;;  %v498_v16 = vld [vmem:[%s1315_s0 + $0x30] sm:$0xff]  ;;  %v503_v18 = vld [vmem:[%s1315_s0 + $0x38] sm:$0xff] }
   0x4   :  { %v92_v15 = vsel %vm82_vm1, %v491_v13, 0.0  ;;  %v508_v19 = vld [vmem:[%s1315_s0 + $0x40] sm:$0xff]  ;;  %v94_v20 = vsel %vm82_vm1, %v498_v16, 0.0  ;;  %v515_v21 = vld [vmem:[%s1315_s0 + $0x48] sm:$0xff]  ;;  %v520_v22 = vld [vmem:[%s1315_s0 + $0x50] sm:$0xff]  ;;  %v96_v25 = vsel %vm82_vm1, %v503_v18, 0.0 }
   0x5   :  { %v87_v11 = vadd.f32 %v86_v6, %v85_v8  ;;  %v525_v23 = vld [vmem:[%s1315_s0 + $0x58] sm:$0xff]  ;;  %v98_v26 = vsel %vm82_vm1, %v508_v19, 0.0  ;;  %v534_v27 = vld [vmem:[%s1315_s0 + $0x108] sm:$0xff]  ;;  %v539_v28 = vld [vmem:[%s1315_s0 + $0x110] sm:$0xff]  ;;  %v100_v30 = vsel %vm82_vm1, %v515_v21, 0.0  ;;  %v102_v31 = vsel %vm82_vm1, %v520_v22, 0.0 }
   0x6   :  { %v544_v29 = vld [vmem:[%s1315_s0 + $0x118] sm:$0xff]  ;;  %v552_v32 = vsel %vm82_vm1, %v525_v23, 0.0  ;;  %v557_v33 = vld [vmem:[%s1315_s0 + $0x120] sm:$0xff]  ;;  %v562_v34 = vld [vmem:[%s1315_s0 + $0x128] sm:$0xff]  ;;  %v571_v37 = vsel %vm82_vm1, %v534_v27, 0.0  ;;  %v575_v38 = vsel %vm82_vm1, %v539_v28, 0.0 }
   0x7   :  { %v89_v14 = vadd.f32 %v88_v9, %v87_v11  ;;  %v567_v35 = vld [vmem:[%s1315_s0 + $0x130] sm:$0xff]  ;;  %1336 = vst [vmem:[#allocation4_spill] sm:$0xff] %v571_v37  ;;  %1337 = vst [vmem:[#allocation5_spill] sm:$0xff] %v575_v38  ;;  %v579_v39 = vsel %vm82_vm1, %v544_v29, 0.0  ;;  %v584_v40 = vld [vmem:[%s1315_s0 + $0x138] sm:$0xff]  ;;  %v598_v43 = vsel %vm82_vm1, %v557_v33, 0.0  ;;  %v222_v37 = vmul.f32 %v466_v3, %v466_v3 }
   0x8   :  { %1338 = vst [vmem:[#allocation6_spill] sm:$0xff] %v579_v39  ;;  %v589_v41 = vld [vmem:[%s1315_s0 + $0x140] sm:$0xff]  ;;  %v594_v42 = vld [vmem:[%s1315_s0 + $0x148] sm:$0xff]  ;;  %1339 = vst [vmem:[#allocation7_spill] sm:$0xff] %v598_v43  ;;  %v602_v44 = vsel %vm82_vm1, %v562_v34, 0.0  ;;  %v606_v45 = vsel %vm82_vm1, %v567_v35, 0.0 }
   0x9   :  { %v91_v17 = vadd.f32 %v90_v12, %v89_v14  ;;  %1340 = vst [vmem:[#allocation8_spill] sm:$0xff] %v602_v44  ;;  %1341 = vst [vmem:[#allocation9_spill] sm:$0xff] %v606_v45  ;;  %v611_v46 = vld [vmem:[%s1315_s0 + $0x150] sm:$0xff]  ;;  %v616_v47 = vld [vmem:[%s1315_s0 + $0x158] sm:$0xff]  ;;  %v625_v50 = vsel %vm82_vm1, %v584_v40, 0.0  ;;  %v629_v51 = vsel %vm82_vm1, %v589_v41, 0.0 }
   0xa   :  { %v621_v48 = vld [vmem:[%s1315_s0 + $0x160] sm:$0xff]  ;;  %1342 = vst [vmem:[#allocation10_spill] sm:$0xff] %v625_v50  ;;  %1343 = vst [vmem:[#allocation11_spill] sm:$0xff] %v629_v51  ;;  %v633_v52 = vsel %vm82_vm1, %v594_v42, 0.0  ;;  %v638_v53 = vld [vmem:[%s1315_s0 + $0x168] sm:$0xff]  ;;  %v652_v56 = vsel %vm82_vm1, %v611_v46, 0.0 }
   0xb   :  { %v93_v24 = vadd.f32 %v92_v15, %v91_v17  ;;  %1344 = vst [vmem:[#allocation12_spill] sm:$0xff] %v633_v52  ;;  %v643_v54 = vld [vmem:[%s1315_s0 + $0x170] sm:$0xff]  ;;  %v648_v55 = vld [vmem:[%s1315_s0 + $0x178] sm:$0xff]  ;;  %1345 = vst [vmem:[#allocation13_spill] sm:$0xff] %v652_v56  ;;  %v656_v57 = vsel %vm82_vm1, %v616_v47, 0.0  ;;  %v660_v58 = vsel %vm82_vm1, %v621_v48, 0.0 }
   0xc   :  { %1346 = vst [vmem:[#allocation14_spill] sm:$0xff] %v656_v57  ;;  %1347 = vst [vmem:[#allocation15_spill] sm:$0xff] %v660_v58  ;;  %v665_v59 = vld [vmem:[%s1315_s0 + $0x180] sm:$0xff]  ;;  %v670_v60 = vld [vmem:[%s1315_s0 + $0x188] sm:$0xff]  ;;  %v679_v63 = vsel %vm82_vm1, %v638_v53, 0.0  ;;  %v683_v0 = vsel %vm82_vm1, %v643_v54, 0.0 }
   0xd   :  { %v95_v36 = vadd.f32 %v94_v20, %v93_v24  ;;  %v675_v61 = vld [vmem:[%s1315_s0 + $0x190] sm:$0xff]  ;;  %1348 = vst [vmem:[#allocation16_spill] sm:$0xff] %v679_v63  ;;  %1349 = vst [vmem:[#allocation17_spill] sm:$0xff] %v683_v0  ;;  %v687_v4 = vsel %vm82_vm1, %v648_v55, 0.0  ;;  %v692_v5 = vld [vmem:[%s1315_s0 + $0x198] sm:$0xff]  ;;  %v706_v9 = vsel %vm82_vm1, %v665_v59, 0.0 }
   0xe   :  { %1350 = vst [vmem:[#allocation18_spill] sm:$0xff] %v687_v4  ;;  %v697_v6 = vld [vmem:[%s1315_s0 + $0x1a0] sm:$0xff]  ;;  %v702_v8 = vld [vmem:[%s1315_s0 + $0x1a8] sm:$0xff]  ;;  %1351 = vst [vmem:[#allocation19_spill] sm:$0xff] %v706_v9  ;;  %v710_v11 = vsel %vm82_vm1, %v670_v60, 0.0  ;;  %v714_v12 = vsel %vm82_vm1, %v675_v61, 0.0 }
   0xf   :  { %v97_v49 = vadd.f32 %v96_v25, %v95_v36  ;;  %1352 = vst [vmem:[#allocation20_spill] sm:$0xff] %v710_v11  ;;  %1353 = vst [vmem:[#allocation21_spill] sm:$0xff] %v714_v12  ;;  %v719_v14 = vld [vmem:[%s1315_s0 + $0x60] sm:$0xff]  ;;  %v724_v15 = vld [vmem:[%s1315_s0 + $0x1b0] sm:$0xff]  ;;  %v738_v25 = vsel %vm82_vm1, %v692_v5, 0.0  ;;  %v746_v36 = vsel %vm82_vm1, %v702_v8, 0.0 }
  0x10   :  { %v729_v17 = vld [vmem:[%s1315_s0 + $0x1b8] sm:$0xff]  ;;  %v734_v20 = vld [vmem:[%s1315_s0 + $0x1c0] sm:$0xff]  ;;  %1354 = vst [vmem:[#allocation22_spill] sm:$0xff] %v738_v25  ;;  %1356 = vst [vmem:[#allocation24_spill] sm:$0xff] %v746_v36 }
  0x11   :  { %v99_v62 = vadd.f32 %v98_v26, %v97_v49  ;;  %v742_v26 = vsel %vm82_vm1, %v697_v6, 0.0  ;;  %v751_v49 = vld [vmem:[%s1315_s0 + $0x1c8] sm:$0xff]  ;;  %v769_v36 = vsel %vm82_vm1, %v729_v17, 0.0  ;;  %v773_v25 = vsel %vm82_vm1, %v734_v20, 0.0  ;;  %v778_v12 = vld [vmem:[%s1315_s0 + $0x1e0] sm:$0xff]  ;;  %v805_v0 = vld [vmem:[%s1315_s0 + $0x1f8] sm:$0xff] }
  0x12   :  { %1355 = vst [vmem:[#allocation23_spill] sm:$0xff] %v742_v26  ;;  %v765_v26 = vsel %vm82_vm1, %v724_v15, 0.0  ;;  %1358 = vst [vmem:[#allocation26_spill] sm:$0xff] %v769_v36  ;;  %v783_v11 = vld [vmem:[%s1315_s0 + $0x1e8] sm:$0xff]  ;;  %v792_v9 = vsel %vm82_vm1, %v751_v49, 0.0  ;;  %v827_v58 = vsel %vm82_vm1, %v805_v0, 0.0 }
  0x13   :  { %v101_v24 = vadd.f32 %v100_v30, %v99_v62  ;;  %v756_v30 = vld [vmem:[%s1315_s0 + $0x1d0] sm:$0xff]  ;;  %v761_v62 = vld [vmem:[%s1315_s0 + $0x1d8] sm:$0xff]  ;;  %1357 = vst [vmem:[#allocation25_spill] sm:$0xff] %v765_v26  ;;  %1359 = vst [vmem:[#allocation27_spill] sm:$0xff] %v773_v25 }
  0x14   :  { %v788_v26 = vld [vmem:[%s1315_s0 + $0x1f0] sm:$0xff]  ;;  %1361 = vst [vmem:[#allocation29_spill] sm:$0xff] %v792_v9  ;;  %v796_v25 = vsel %vm82_vm1, %v756_v30, 0.0  ;;  %v800_v4 = vsel %vm82_vm1, %v761_v62, 0.0  ;;  %1364 = vst [vmem:[#allocation32_spill] sm:$0xff] %v805_v0  ;;  %v815_v9 = vsel %vm82_vm1, %v783_v11, 0.0 }
  0x15   :  { %1360 = vst [vmem:[#allocation28_spill] sm:$0xff] %v788_v26  ;;  %v103_v36 = vadd.f32 %v102_v31, %v101_v24  ;;  %1362 = vst [vmem:[#allocation30_spill] sm:$0xff] %v796_v25  ;;  %v106_v31 = vsel %vm82_vm1, %v719_v14, 0.0  ;;  %v811_v24 = vsel %vm82_vm1, %v778_v12, 0.0  ;;  %v819_v25 = vsel %vm82_vm1, %v788_v26, 0.0  ;;  %v856_v56 = vld [vmem:[%s1315_s0 + $0x90] sm:$0xff] }
  0x16   :  { %1363 = vst [vmem:[#allocation31_spill] sm:$0xff] %v800_v4  ;;  %1365 = vst [vmem:[#allocation33_spill] sm:$0xff] %v811_v24  ;;  %v30_v4 = vld [vmem:[%s1315_s0 + $0x68] sm:$0xff]  ;;  %v861_v52 = vld [vmem:[%s1315_s0 + $0x98] sm:$0xff] }
  0x17   :  { %1366 = vst [vmem:[#allocation34_spill] sm:$0xff] %v815_v9  ;;  %1367 = vst [vmem:[#allocation35_spill] sm:$0xff] %v819_v25  ;;  %v105_v63 = vadd.f32 %v552_v32, %v103_v36  ;;  %v108_v24 = vsel %vm82_vm1, %v30_v4, 0.0  ;;  %v31_v9 = vld [vmem:[%s1315_s0 + $0x70] sm:$0xff]  ;;  %v836_v25 = vld [vmem:[%s1315_s0 + $0x78] sm:$0xff]  ;;  %v120_v39 = vsel %vm82_vm1, %v861_v52, 0.0 }
  0x18   :  { %1368 = vst [vmem:[#allocation36_spill] sm:$0xff] %v827_v58  ;;  %1369 = vst [vmem:[#allocation37_spill] sm:$0xff] %v836_v25  ;;  %v841_v32 = vld [vmem:[%s1315_s0 + $0x80] sm:$0xff]  ;;  %v846_v36 = vld [vmem:[%s1315_s0 + $0x88] sm:$0xff]  ;;  %v110_v58 = vsel %vm82_vm1, %v31_v9, 0.0 }
  0x19   :  { %v107_v57 = vadd.f32 %v106_v31, %v105_v63  ;;  %1370 = vst [vmem:[#allocation38_spill] sm:$0xff] %v841_v32  ;;  %1371 = vst [vmem:[#allocation39_spill] sm:$0xff] %v846_v36  ;;  %v220_v63 = vmul.f32 %v456_v1, %v456_v1  ;;  %v221_v31 = vmul.f32 %v461_v2, %v461_v2  ;;  %v866_v51 = vld [vmem:[%s1315_s0 + $0xa0] sm:$0xff]  ;;  %v112_v1 = vsel %vm82_vm1, %v836_v25, 0.0  ;;  %v877_v44 = vld [vmem:[%s1315_s0 + $0xa8] sm:$0xff] }
  0x1a   :  { %1372 = vst [vmem:[#allocation40_spill] sm:$0xff] %v856_v56  ;;  %1373 = vst [vmem:[#allocation41_spill] sm:$0xff] %v861_v52  ;;  %v114_v2 = vsel %vm82_vm1, %v841_v32, 0.0  ;;  %v116_v45 = vsel %vm82_vm1, %v846_v36, 0.0  ;;  %v882_v43 = vld [vmem:[%s1315_s0 + $0xb0] sm:$0xff]  ;;  %v122_v38 = vsel %vm82_vm1, %v866_v51, 0.0  ;;  %v223_v25 = vmul.f32 %v477_v7, %v477_v7 }
  0x1b   :  { %1374 = vst [vmem:[#allocation42_spill] sm:$0xff] %v866_v51  ;;  %v109_v50 = vadd.f32 %v108_v24, %v107_v57  ;;  %1375 = vst [vmem:[#allocation43_spill] sm:$0xff] %v877_v44  ;;  %v887_v57 = vld [vmem:[%s1315_s0 + $0xb8] sm:$0xff]  ;;  %v118_v24 = vsel %vm82_vm1, %v856_v56, 0.0  ;;  %v900_v36 = vld [vmem:[%s1315_s0 + $0xc0] sm:$0xff]  ;;  %v124_v51 = vsel %vm82_vm1, %v877_v44, 0.0 }
  0x1c   :  { %1376 = vst [vmem:[#allocation44_spill] sm:$0xff] %v882_v43  ;;  %1377 = vst [vmem:[#allocation45_spill] sm:$0xff] %v887_v57  ;;  %v905_v32 = vld [vmem:[%s1315_s0 + $0xc8] sm:$0xff]  ;;  %v910_v52 = vld [vmem:[%s1315_s0 + $0xd0] sm:$0xff]  ;;  %v916_v3 = vsel %vm82_vm1, %v882_v43, 0.0 }
  0x1d   :  { %1378 = vst [vmem:[#allocation46_spill] sm:$0xff] %v900_v36  ;;  %1379 = vst [vmem:[#allocation47_spill] sm:$0xff] %v905_v32  ;;  %v111_v56 = vadd.f32 %v110_v58, %v109_v50  ;;  %v923_v0 = vld [vmem:[%s1315_s0 + $0xd8] sm:$0xff]  ;;  %v928_v26 = vld [vmem:[%s1315_s0 + $0xe0] sm:$0xff]  ;;  %v932_v50 = vsel %vm82_vm1, %v887_v57, 0.0  ;;  %v936_v58 = vsel %vm82_vm1, %v900_v36, 0.0 }
  0x1e   :  { %1380 = vst [vmem:[#allocation48_spill] sm:$0xff] %v910_v52  ;;  %1381 = vst [vmem:[#allocation49_spill] sm:$0xff] %v923_v0  ;;  %v940_v7 = vsel %vm82_vm1, %v905_v32, 0.0  ;;  %v944_v43 = vsel %vm82_vm1, %v910_v52, 0.0  ;;  %v949_v44 = vld [vmem:[%s1315_s0 + $0xe8] sm:$0xff]  ;;  %v954_v57 = vld [vmem:[%s1315_s0 + $0xf0] sm:$0xff]  ;;  %v224_v52 = vmul.f32 %v484_v10, %v484_v10  ;;  %v228_v10 = vmul.f32 %v508_v19, %v508_v19 }
  0x1f   :  { %1382 = vst [vmem:[#allocation50_spill] sm:$0xff] %v928_v26  ;;  %1383 = vst [vmem:[#allocation51_spill] sm:$0xff] %v936_v58  ;;  %v113_v36 = vadd.f32 %v112_v1, %v111_v56  ;;  %v958_v58 = vsel %vm82_vm1, %v923_v0, 0.0  ;;  %v962_v32 = vsel %vm82_vm1, %v928_v26, 0.0  ;;  %v225_v56 = vmul.f32 %v491_v13, %v491_v13 }
  0x20   :  { %1384 = vst [vmem:[#allocation52_spill] sm:$0xff] %v940_v7  ;;  %1385 = vst [vmem:[#allocation53_spill] sm:$0xff] %v944_v43  ;;  %v968_v43 = vsel %vm82_vm1, %v949_v44, 0.0  ;;  %v972_v7 = vsel %vm82_vm1, %v954_v57, 0.0  ;;  %v226_v1 = vmul.f32 %v498_v16, %v498_v16  ;;  %v227_v26 = vmul.f32 %v503_v18, %v503_v18 }
  0x21   :  { %1386 = vst [vmem:[#allocation54_spill] sm:$0xff] %v949_v44  ;;  %1387 = vst [vmem:[#allocation55_spill] sm:$0xff] %v954_v57  ;;  %v115_v0 = vadd.f32 %v114_v2, %v113_v36  ;;  %v229_v44 = vmul.f32 %v515_v21, %v515_v21  ;;  %v230_v57 = vmul.f32 %v520_v22, %v520_v22 }
  0x22   :  { %1388 = vst [vmem:[#allocation56_spill] sm:$0xff] %v972_v7  ;;  %v231_v7 = vmul.f32 %v525_v23, %v525_v23  ;;  %v232_v13 = vmul.f32 %v719_v14, %v719_v14  ;;  %v990_v16 = vmul.f32 %v30_v4, %v30_v4  ;;  %v992_v2 = vmul.f32 %v31_v9, %v31_v9 }
  0x23   :  { %v117_v36 = vadd.f32 %v116_v45, %v115_v0  ;;  %v253_v18 = vmul.f32 %v534_v27, %v534_v27  ;;  %v254_v19 = vmul.f32 %v539_v28, %v539_v28  ;;  %v255_v21 = vmul.f32 %v544_v29, %v544_v29 }
  0x24   :  { %v256_v22 = vmul.f32 %v557_v33, %v557_v33  ;;  %v257_v23 = vmul.f32 %v562_v34, %v562_v34  ;;  %v258_v45 = vmul.f32 %v567_v35, %v567_v35  ;;  %v259_v4 = vmul.f32 %v584_v40, %v584_v40 }
  0x25   :  { %v119_v0 = vadd.f32 %v118_v24, %v117_v36  ;;  %v260_v27 = vmul.f32 %v589_v41, %v589_v41  ;;  %v261_v28 = vmul.f32 %v594_v42, %v594_v42  ;;  %v262_v29 = vmul.f32 %v611_v46, %v611_v46 }
  0x26   :  { %v263_v33 = vmul.f32 %v616_v47, %v616_v47  ;;  %v284_v34 = vsel %vm82_vm1, %v220_v63, 0.0  ;;  %v285_v35 = vsel %vm82_vm1, %v221_v31, 0.0  ;;  %v264_v40 = vmul.f32 %v621_v48, %v621_v48 }
  0x27   :  { %v121_v9 = vadd.f32 %v120_v39, %v119_v0  ;;  %v286_v14 = vadd.f32 %v285_v35, %v284_v34  ;;  %v287_v41 = vsel %vm82_vm1, %v222_v37, 0.0  ;;  %v265_v42 = vmul.f32 %v638_v53, %v638_v53  ;;  %v1389_v0 = vld [vmem:[#allocation28_spill] sm:$0xff] }
  0x28   :  { %v266_v46 = vmul.f32 %v643_v54, %v643_v54  ;;  %v267_v47 = vmul.f32 %v648_v55, %v648_v55  ;;  %v289_v63 = vsel %vm82_vm1, %v223_v25, 0.0  ;;  %v268_v39 = vmul.f32 %v665_v59, %v665_v59  ;;  %v1390_v34 = vld [vmem:[#allocation32_spill] sm:$0xff] }
  0x29   :  { %v123_v24 = vadd.f32 %v122_v38, %v121_v9  ;;  %v269_v48 = vmul.f32 %v670_v60, %v670_v60  ;;  %v288_v31 = vadd.f32 %v287_v41, %v286_v14  ;;  %v270_v37 = vmul.f32 %v675_v61, %v675_v61  ;;  %v1391_v41 = vld [vmem:[#allocation51_spill] sm:$0xff] }
  0x2a   :  { %v271_v53 = vmul.f32 %v692_v5, %v692_v5  ;;  %v272_v54 = vmul.f32 %v697_v6, %v697_v6  ;;  %v291_v55 = vsel %vm82_vm1, %v224_v52, 0.0  ;;  %v273_v38 = vmul.f32 %v702_v8, %v702_v8 }
  0x2b   :  { %v125_v25 = vadd.f32 %v124_v51, %v123_v24  ;;  %v274_v59 = vmul.f32 %v724_v15, %v724_v15  ;;  %v290_v60 = vadd.f32 %v289_v63, %v288_v31  ;;  %v275_v36 = vmul.f32 %v729_v17, %v729_v17 }
  0x2c   :  { %v276_v61 = vmul.f32 %v734_v20, %v734_v20  ;;  %v277_v5 = vmul.f32 %v751_v49, %v751_v49  ;;  %v293_v6 = vsel %vm82_vm1, %v225_v56, 0.0  ;;  %v278_v52 = vmul.f32 %v756_v30, %v756_v30 }
  0x2d   :  { %v127_v51 = vadd.f32 %v916_v3, %v125_v25  ;;  %v279_v8 = vmul.f32 %v761_v62, %v761_v62  ;;  %v292_v15 = vadd.f32 %v291_v55, %v290_v60  ;;  %v280_v17 = vmul.f32 %v778_v12, %v778_v12  ;;  %v1393_v25 = vld [vmem:[#allocation53_spill] sm:$0xff] }
  0x2e   :  { %v281_v20 = vmul.f32 %v783_v11, %v783_v11  ;;  %v282_v49 = vmul.f32 %v1389_v0, %v1389_v0  ;;  %v295_v56 = vsel %vm82_vm1, %v226_v1, 0.0  ;;  %v283_v30 = vmul.f32 %v1390_v34, %v1390_v34  ;;  %v1395_v34 = vld [vmem:[#allocation56_spill] sm:$0xff] }
  0x2f   :  { %v129_v3 = vadd.f32 %v932_v50, %v127_v51  ;;  %v294_v35 = vadd.f32 %v293_v6, %v292_v15  ;;  %v297_v62 = vsel %vm82_vm1, %v227_v26, 0.0  ;;  %v299_v9 = vsel %vm82_vm1, %v228_v10, 0.0 }
  0x30   :  { %v301_v12 = vsel %vm82_vm1, %v229_v44, 0.0  ;;  %v303_v14 = vsel %vm82_vm1, %v230_v57, 0.0  ;;  %v305_v11 = vsel %vm82_vm1, %v231_v7, 0.0  ;;  %v307_v1 = vsel %vm82_vm1, %v232_v13, 0.0  ;;  %v1392_v7 = vld [vmem:[#allocation52_spill] sm:$0xff] }
  0x31   :  { %v131_v63 = vadd.f32 %v1391_v41, %v129_v3  ;;  %v296_v24 = vadd.f32 %v295_v56, %v294_v35  ;;  %v1073_v50 = vsel %vm82_vm1, %v253_v18, 0.0  ;;  %v1076_v31 = vsel %vm82_vm1, %v254_v19, 0.0  ;;  %v1394_v56 = vld [vmem:[#allocation37_spill] sm:$0xff] }
  0x32   :  { %v1079_v26 = vsel %vm82_vm1, %v255_v21, 0.0  ;;  %v1082_v44 = vsel %vm82_vm1, %v256_v22, 0.0  ;;  %v1085_v57 = vsel %vm82_vm1, %v257_v23, 0.0  ;;  %v1089_v13 = vsel %vm82_vm1, %v258_v45, 0.0 }
  0x33   :  { %v133_v10 = vadd.f32 %v1392_v7, %v131_v63  ;;  %v298_v55 = vadd.f32 %v297_v62, %v296_v24  ;;  %v1092_v18 = vsel %vm82_vm1, %v259_v4, 0.0  ;;  %v1095_v19 = vsel %vm82_vm1, %v260_v27, 0.0  ;;  %v1396_v62 = vld [vmem:[#allocation38_spill] sm:$0xff] }
  0x34   :  { %v1098_v21 = vsel %vm82_vm1, %v261_v28, 0.0  ;;  %v1101_v22 = vsel %vm82_vm1, %v262_v29, 0.0  ;;  %v1104_v23 = vsel %vm82_vm1, %v263_v33, 0.0  ;;  %v1108_v45 = vsel %vm82_vm1, %v264_v40, 0.0 }
  0x35   :  { %v135_v60 = vadd.f32 %v1393_v25, %v133_v10  ;;  %v300_v6 = vadd.f32 %v299_v9, %v298_v55  ;;  %v1111_v4 = vsel %vm82_vm1, %v265_v42, 0.0  ;;  %v1114_v27 = vsel %vm82_vm1, %v266_v46, 0.0  ;;  %v1398_v10 = vld [vmem:[#allocation40_spill] sm:$0xff] }
  0x36   :  { %v1117_v28 = vsel %vm82_vm1, %v267_v47, 0.0  ;;  %v1120_v29 = vsel %vm82_vm1, %v268_v39, 0.0  ;;  %v1123_v33 = vsel %vm82_vm1, %v269_v48, 0.0  ;;  %v1127_v40 = vsel %vm82_vm1, %v270_v37, 0.0  ;;  %v1399_v25 = vld [vmem:[#allocation4_spill] sm:$0xff] }
  0x37   :  { %v137_v51 = vadd.f32 %v958_v58, %v135_v60  ;;  %v302_v15 = vadd.f32 %v301_v12, %v300_v6  ;;  %v1130_v42 = vsel %vm82_vm1, %v271_v53, 0.0  ;;  %v1133_v46 = vsel %vm82_vm1, %v272_v54, 0.0 }
  0x38   :  { %v1136_v47 = vsel %vm82_vm1, %v273_v38, 0.0  ;;  %v1139_v39 = vsel %vm82_vm1, %v274_v59, 0.0  ;;  %v1142_v48 = vsel %vm82_vm1, %v275_v36, 0.0  ;;  %v1146_v37 = vsel %vm82_vm1, %v276_v61, 0.0 }
  0x39   :  { %v139_v58 = vadd.f32 %v962_v32, %v137_v51  ;;  %v304_v0 = vadd.f32 %v303_v14, %v302_v15  ;;  %v1149_v53 = vsel %vm82_vm1, %v277_v5, 0.0  ;;  %v1152_v54 = vsel %vm82_vm1, %v278_v52, 0.0  ;;  %v1166_v32 = vld [vmem:[%s1315_s0 + $0xf8] sm:$0xff]  ;;  %v1400_v51 = vld [vmem:[#allocation41_spill] sm:$0xff] }
  0x3a   :  { %v1155_v38 = vsel %vm82_vm1, %v279_v8, 0.0  ;;  %v1158_v59 = vsel %vm82_vm1, %v280_v17, 0.0  ;;  %v1161_v36 = vsel %vm82_vm1, %v281_v20, 0.0  ;;  %v1170_v52 = vsel %vm82_vm1, %v282_v49, 0.0 }
  0x3b   :  { %v141_v61 = vadd.f32 %v968_v43, %v139_v58  ;;  %v306_v5 = vadd.f32 %v305_v11, %v304_v0  ;;  %v1173_v8 = vsel %vm82_vm1, %v283_v30, 0.0  ;;  %v144_v17 = vsel %vm82_vm1, %v1166_v32, 0.0  ;;  %v1184_v43 = vld [vmem:[%s1315_s0 + $0x100] sm:$0xff]  ;;  %v1401_v58 = vld [vmem:[#allocation5_spill] sm:$0xff] }
  0x3c   :  { %v235_v20 = vmul.f32 %v1394_v56, %v1394_v56  ;;  %v309_v3 = vsel %vm82_vm1, %v990_v16, 0.0  ;;  %v146_v30 = vsel %vm82_vm1, %v1184_v43, 0.0  ;;  %v236_v9 = vmul.f32 %v1396_v62, %v1396_v62  ;;  %v1397_v16 = vld [vmem:[#allocation39_spill] sm:$0xff] }
  0x3d   :  { %v143_v49 = vadd.f32 %v1395_v34, %v141_v61  ;;  %v308_v35 = vadd.f32 %v307_v1, %v306_v5  ;;  %v311_v12 = vsel %vm82_vm1, %v992_v2, 0.0  ;;  %v237_v41 = vmul.f32 %v1397_v16, %v1397_v16  ;;  %v1402_v5 = vld [vmem:[#allocation42_spill] sm:$0xff]  ;;  %v1405_v62 = vld [vmem:[#allocation7_spill] sm:$0xff] }
  0x3e   :  { %v313_v63 = vsel %vm82_vm1, %v235_v20, 0.0  ;;  %v238_v1 = vmul.f32 %v1398_v10, %v1398_v10  ;;  %v315_v55 = vsel %vm82_vm1, %v236_v9, 0.0  ;;  %v239_v2 = vmul.f32 %v1400_v51, %v1400_v51  ;;  %v1403_v20 = vld [vmem:[#allocation6_spill] sm:$0xff] }
  0x3f   :  { %v145_v14 = vadd.f32 %v144_v17, %v143_v49  ;;  %v310_v11 = vadd.f32 %v309_v3, %v308_v35  ;;  %v317_v15 = vsel %vm82_vm1, %v237_v41, 0.0  ;;  %v240_v17 = vmul.f32 %v1402_v5, %v1402_v5  ;;  %v1404_v49 = vld [vmem:[#allocation43_spill] sm:$0xff]  ;;  %v1407_v41 = vld [vmem:[#allocation8_spill] sm:$0xff] }
  0x40   :  { %v319_v56 = vsel %vm82_vm1, %v238_v1, 0.0  ;;  %v241_v35 = vmul.f32 %v1404_v49, %v1404_v49 }
  0x41   :  { %v147_v24 = vadd.f32 %v146_v30, %v145_v14  ;;  %v312_v7 = vadd.f32 %v311_v12, %v310_v11  ;;  %v321_v30 = vsel %vm82_vm1, %v239_v2, 0.0  ;;  %v1406_v14 = vld [vmem:[#allocation44_spill] sm:$0xff]  ;;  %v323_v16 = vsel %vm82_vm1, %v240_v17, 0.0 }
  0x42   :  { %v242_v11 = vmul.f32 %v1406_v14, %v1406_v14  ;;  %v325_v1 = vsel %vm82_vm1, %v241_v35, 0.0 }
  0x43   :  { %v149_v60 = vadd.f32 %v1399_v25, %v147_v24  ;;  %v314_v6 = vadd.f32 %v313_v63, %v312_v7  ;;  %v1408_v7 = vld [vmem:[#allocation45_spill] sm:$0xff] }
  0x44   :  { %v243_v10 = vmul.f32 %v1408_v7, %v1408_v7  ;;  %v327_v2 = vsel %vm82_vm1, %v242_v11, 0.0 }
  0x45   :  { %v151_v0 = vadd.f32 %v1401_v58, %v149_v60  ;;  %v316_v61 = vadd.f32 %v315_v55, %v314_v6  ;;  %v1409_v55 = vld [vmem:[#allocation9_spill] sm:$0xff]  ;;  %v1410_v6 = vld [vmem:[#allocation46_spill] sm:$0xff] }
  0x46   :  { %v244_v51 = vmul.f32 %v1410_v6, %v1410_v6  ;;  %v329_v17 = vsel %vm82_vm1, %v243_v10, 0.0 }
  0x47   :  { %v153_v3 = vadd.f32 %v1403_v20, %v151_v0  ;;  %v318_v34 = vadd.f32 %v317_v15, %v316_v61  ;;  %v1411_v15 = vld [vmem:[#allocation10_spill] sm:$0xff]  ;;  %v1412_v61 = vld [vmem:[#allocation47_spill] sm:$0xff] }
  0x48   :  { %v245_v5 = vmul.f32 %v1412_v61, %v1412_v61  ;;  %v331_v35 = vsel %vm82_vm1, %v244_v51, 0.0 }
  0x49   :  { %v155_v9 = vadd.f32 %v1405_v62, %v153_v3  ;;  %v320_v12 = vadd.f32 %v319_v56, %v318_v34  ;;  %v1413_v56 = vld [vmem:[#allocation11_spill] sm:$0xff]  ;;  %v1414_v34 = vld [vmem:[#allocation48_spill] sm:$0xff] }
  0x4a   :  { %v246_v49 = vmul.f32 %v1414_v34, %v1414_v34  ;;  %v333_v11 = vsel %vm82_vm1, %v245_v5, 0.0 }
  0x4b   :  { %v157_v63 = vadd.f32 %v1407_v41, %v155_v9  ;;  %v322_v24 = vadd.f32 %v321_v30, %v320_v12  ;;  %v1415_v30 = vld [vmem:[#allocation12_spill] sm:$0xff]  ;;  %v1416_v12 = vld [vmem:[#allocation49_spill] sm:$0xff] }
  0x4c   :  { %v247_v14 = vmul.f32 %v1416_v12, %v1416_v12  ;;  %v335_v10 = vsel %vm82_vm1, %v246_v49, 0.0  ;;  %v1424_v49 = vld [vmem:[#allocation17_spill] sm:$0xff]  ;;  %v1425_v12 = vld [vmem:[#allocation18_spill] sm:$0xff] }
  0x4d   :  { %v159_v25 = vadd.f32 %v1409_v55, %v157_v63  ;;  %v324_v60 = vadd.f32 %v323_v16, %v322_v24  ;;  %v1417_v16 = vld [vmem:[#allocation13_spill] sm:$0xff]  ;;  %v1418_v24 = vld [vmem:[#allocation50_spill] sm:$0xff] }
  0x4e   :  { %v248_v7 = vmul.f32 %v1418_v24, %v1418_v24  ;;  %v337_v51 = vsel %vm82_vm1, %v247_v14, 0.0 }
  0x4f   :  { %v161_v58 = vadd.f32 %v1411_v15, %v159_v25  ;;  %v326_v0 = vadd.f32 %v325_v1, %v324_v60  ;;  %v1419_v1 = vld [vmem:[#allocation14_spill] sm:$0xff] }
  0x50   :  { %v1420_v60 = vld [vmem:[#allocation54_spill] sm:$0xff]  ;;  %v339_v5 = vsel %vm82_vm1, %v248_v7, 0.0  ;;  %v1427_v7 = vld [vmem:[#allocation20_spill] sm:$0xff] }
  0x51   :  { %v163_v20 = vadd.f32 %v1413_v56, %v161_v58  ;;  %v328_v3 = vadd.f32 %v327_v2, %v326_v0  ;;  %v249_v6 = vmul.f32 %v1420_v60, %v1420_v60  ;;  %v1421_v2 = vld [vmem:[#allocation15_spill] sm:$0xff] }
  0x52   :  { %v1422_v0 = vld [vmem:[#allocation55_spill] sm:$0xff] }
  0x53   :  { %v165_v62 = vadd.f32 %v1415_v30, %v163_v20  ;;  %v330_v9 = vadd.f32 %v329_v17, %v328_v3  ;;  %v250_v61 = vmul.f32 %v1422_v0, %v1422_v0  ;;  %v1423_v17 = vld [vmem:[#allocation16_spill] sm:$0xff]  ;;  %v251_v3 = vmul.f32 %v1166_v32, %v1166_v32 }
  0x54   :  { %v341_v34 = vsel %vm82_vm1, %v249_v6, 0.0  ;;  %v1429_v6 = vld [vmem:[#allocation22_spill] sm:$0xff]  ;;  %v1431_v0 = vld [vmem:[#allocation24_spill] sm:$0xff] }
  0x55   :  { %v167_v41 = vadd.f32 %v1417_v16, %v165_v62  ;;  %v332_v63 = vadd.f32 %v331_v35, %v330_v9  ;;  %v252_v62 = vmul.f32 %v1184_v43, %v1184_v43  ;;  %v343_v9 = vsel %vm82_vm1, %v250_v61, 0.0 }
  0x56   :  { %v345_v16 = vsel %vm82_vm1, %v251_v3, 0.0  ;;  %v1433_v3 = vld [vmem:[#allocation26_spill] sm:$0xff] }
  0x57   :  { %v169_v55 = vadd.f32 %v1419_v1, %v167_v41  ;;  %v334_v25 = vadd.f32 %v333_v11, %v332_v63  ;;  %v1426_v41 = vld [vmem:[#allocation19_spill] sm:$0xff]  ;;  %v347_v32 = vsel %vm82_vm1, %v252_v62, 0.0  ;;  %v1435_v62 = vld [vmem:[#allocation29_spill] sm:$0xff] }
  0x59   :  { %v171_v15 = vadd.f32 %v1421_v2, %v169_v55  ;;  %v336_v58 = vadd.f32 %v335_v10, %v334_v25  ;;  %v1428_v55 = vld [vmem:[#allocation21_spill] sm:$0xff]  ;;  %v1430_v2 = vld [vmem:[#allocation23_spill] sm:$0xff] }
  0x5b   :  { %v173_v56 = vadd.f32 %v1423_v17, %v171_v15  ;;  %v338_v20 = vadd.f32 %v337_v51, %v336_v58  ;;  %v1432_v17 = vld [vmem:[#allocation25_spill] sm:$0xff] }
  0x5d   :  { %v175_v35 = vadd.f32 %v1424_v49, %v173_v56  ;;  %v340_v30 = vadd.f32 %v339_v5, %v338_v20 }
  0x5f   :  { %v177_v14 = vadd.f32 %v1425_v12, %v175_v35  ;;  %v342_v11 = vadd.f32 %v341_v34, %v340_v30  ;;  %v1434_v35 = vld [vmem:[#allocation27_spill] sm:$0xff]  ;;  %v1436_v12 = vld [vmem:[#allocation30_spill] sm:$0xff] }
  0x61   :  { %v179_v63 = vadd.f32 %v1426_v41, %v177_v14  ;;  %v344_v24 = vadd.f32 %v343_v9, %v342_v11  ;;  %v1437_v11 = vld [vmem:[#allocation31_spill] sm:$0xff]  ;;  %v1438_v41 = vld [vmem:[#allocation33_spill] sm:$0xff] }
  0x63   :  { %v181_v10 = vadd.f32 %v1427_v7, %v179_v63  ;;  %v346_v1 = vadd.f32 %v345_v16, %v344_v24  ;;  %v1439_v24 = vld [vmem:[#allocation34_spill] sm:$0xff]  ;;  %v1440_v7 = vld [vmem:[#allocation35_spill] sm:$0xff] }
  0x65   :  { %v183_v25 = vadd.f32 %v1428_v55, %v181_v10  ;;  %v348_v60 = vadd.f32 %v347_v32, %v346_v1  ;;  %v1441_v1 = vld [vmem:[#allocation36_spill] sm:$0xff] }
  0x67   :  { %v185_v43 = vadd.f32 %v1429_v6, %v183_v25  ;;  %v350_v51 = vadd.f32 %v1073_v50, %v348_v60 }
  0x69   :  { %v187_v15 = vadd.f32 %v1430_v2, %v185_v43  ;;  %v352_v58 = vadd.f32 %v1076_v31, %v350_v51 }
  0x6b   :  { %v189_v61 = vadd.f32 %v1431_v0, %v187_v15  ;;  %v354_v5 = vadd.f32 %v1079_v26, %v352_v58 }
  0x6d   :  { %v191_v56 = vadd.f32 %v1432_v17, %v189_v61  ;;  %v356_v20 = vadd.f32 %v1082_v44, %v354_v5 }
  0x6f   :  { %v193_v34 = vadd.f32 %v1433_v3, %v191_v56  ;;  %v358_v49 = vadd.f32 %v1085_v57, %v356_v20 }
  0x71   :  { %v195_v30 = vadd.f32 %v1434_v35, %v193_v34  ;;  %v360_v50 = vadd.f32 %v1089_v13, %v358_v49  ;;  %v219_v34 = vld [vmem:[#allocation3] sm:$0x1] }
  0x73   :  { %v197_v9 = vadd.f32 %v1435_v62, %v195_v30  ;;  %v362_v31 = vadd.f32 %v1092_v18, %v360_v50 }
  0x75   :  { %v199_v14 = vadd.f32 %v1436_v12, %v197_v9  ;;  %v364_v26 = vadd.f32 %v1095_v19, %v362_v31 }
  0x77   :  { %v201_v16 = vadd.f32 %v1437_v11, %v199_v14  ;;  %v366_v44 = vadd.f32 %v1098_v21, %v364_v26 }
  0x79   :  { %v203_v63 = vadd.f32 %v1438_v41, %v201_v16  ;;  %v368_v57 = vadd.f32 %v1101_v22, %v366_v44 }
  0x7b   :  { %v205_v32 = vadd.f32 %v1439_v24, %v203_v63  ;;  %v370_v13 = vadd.f32 %v1104_v23, %v368_v57 }
  0x7d   :  { %v207_v10 = vadd.f32 %v1440_v7, %v205_v32  ;;  %v372_v18 = vadd.f32 %v1108_v45, %v370_v13  ;;  %v81_v45 = vld [vmem:[#allocation2] sm:$0x1] }
  0x7f   :  { %v209_v55 = vadd.f32 %v1441_v1, %v207_v10  ;;  %v374_v19 = vadd.f32 %v1111_v4, %v372_v18 }
  0x81   :  { %v210_v25 = vrot.slane %v209_v55, 4  ;;  %v376_v60 = vadd.f32 %v1114_v27, %v374_v19 }
  0x83   :  { %v211_v21 = vadd.f32 %v210_v25, %v209_v55  ;;  %v378_v6 = vadd.f32 %v1117_v28, %v376_v60 }
  0x85   :  { %v212_v43 = vrot.slane %v211_v21, 2  ;;  %v380_v22 = vadd.f32 %v1120_v29, %v378_v6 }
  0x87   :  { %v213_v51 = vadd.f32 %v212_v43, %v211_v21  ;;  %v382_v23 = vadd.f32 %v1123_v33, %v380_v22 }
  0x89   :  { %v214_v2 = vrot.slane %v213_v51, 1  ;;  %v384_v15 = vadd.f32 %v1127_v40, %v382_v23 }
  0x8b   :  { %v215_v58 = vadd.f32 %v214_v2, %v213_v51  ;;  %v386_v0 = vadd.f32 %v1130_v42, %v384_v15 }
  0x8d   :  { %v216_v4 = vadd.f32 %v215_v58, %v81_v45  ;;  %v388_v61 = vadd.f32 %v1133_v46, %v386_v0 }
  0x8f   :  { %218 = vst.msk [vmem:[#allocation2] sm:$0x1] %vm14_vm0, %v216_v4  ;;  %v390_v27 = vadd.f32 %v1136_v47, %v388_v61 }
  0x91   :  { %v392_v28 = vadd.f32 %v1139_v39, %v390_v27 }
  0x93   :  { %v394_v29 = vadd.f32 %v1142_v48, %v392_v28 }
  0x95   :  { %v396_v33 = vadd.f32 %v1146_v37, %v394_v29 }
  0x96   :  { %v422_v5 = vld [vmem:[#allocation2] sm:$0x1] }
  0x97   :  { %v398_v40 = vadd.f32 %v1149_v53, %v396_v33  ;;  %423 = vst.msk [vmem:[%s1316_s1] sm:$0x1] %vm14_vm0, %v422_v5 }
  0x99   :  { %v400_v42 = vadd.f32 %v1152_v54, %v398_v40 }
  0x9b   :  { %v402_v46 = vadd.f32 %v1155_v38, %v400_v42 }
  0x9d   :  { %v404_v47 = vadd.f32 %v1158_v59, %v402_v46 }
  0x9f   :  { %v406_v39 = vadd.f32 %v1161_v36, %v404_v47 }
  0xa1   :  { %v408_v48 = vadd.f32 %v1170_v52, %v406_v39 }
  0xa3   :  { %v410_v37 = vadd.f32 %v1173_v8, %v408_v48 }
  0xa5   :  { %v411_v17 = vrot.slane %v410_v37, 4 }
  0xa7   :  { %v412_v56 = vadd.f32 %v411_v17, %v410_v37 }
  0xa9   :  { %v413_v53 = vrot.slane %v412_v56, 2 }
  0xab   :  { %v414_v20 = vadd.f32 %v413_v53, %v412_v56 }
  0xad   :  { %v415_v3 = vrot.slane %v414_v20, 1 }
  0xaf   :  { %v416_v49 = vadd.f32 %v415_v3, %v414_v20 }
  0xb1   :  { %v417_v35 = vadd.f32 %v416_v49, %v219_v34 }
  0xb3   :  { %418 = vst.msk [vmem:[#allocation3] sm:$0x1] %vm14_vm0, %v417_v35 }
  0xba   :  { %v424_v54 = vld [vmem:[#allocation3] sm:$0x1] }
  0xbb   :  { %425 = vst.msk [vmem:[%s1317_s2] sm:$0x1] %vm14_vm0, %v424_v54 }

// kernel: forward.46
= control target key start
LH: loop header
LB: loop body
LE: loop exit
PB: predicated region body
PF: predicated region fallthrough
CT: control target
= control target key end

     0   :  { %vm220_vm0 = vcmask 64512   ;;  %s897_s0 = inlined_call_operand.vmem [shape: f32[512,8], index: 0, kind: input, shape index: {}]   ;;  %s898_s1 = inlined_call_operand.vmem [shape: f32[1,8], index: 1, kind: input, shape index: {}]   ;;  %s899_s2 = inlined_call_operand.vmem [shape: f32[1,8], index: 2, kind: input, shape index: {}]   ;;  %s900_s3 = inlined_call_operand.vmem [shape: f32[512,8], index: 3, kind: output, shape index: {}]  }
   0x1   :  { %v14_v0 = vld [vmem:[%s897_s0] sm:$0xff]  ;;  %v15_v4 = vld [vmem:[%s897_s0 + $0x8] sm:$0xff]  ;;  %v16_v5 = vld [vmem:[%s897_s0 + $0x10] sm:$0xff] }
   0x2   :  { %v317_v1 = vld [vmem:[%s898_s1] ss:$0 sm:$0xff]  ;;  %v17_v6 = vld [vmem:[%s897_s0 + $0x18] sm:$0xff]  ;;  %v19_v11 = vld [vmem:[%s897_s0 + $0x28] sm:$0xff] }
   0x3   :  { %v322_v2 = vld [vmem:[%s899_s2] ss:$0 sm:$0xff]  ;;  %v85_v3 = vmul.f32 %v317_v1, %v14_v0  ;;  %v86_v7 = vmul.f32 %v317_v1, %v15_v4  ;;  %v87_v8 = vmul.f32 %v317_v1, %v16_v5  ;;  %v88_v9 = vmul.f32 %v317_v1, %v17_v6  ;;  %v20_v12 = vld [vmem:[%s897_s0 + $0x30] sm:$0xff]  ;;  %v21_v17 = vld [vmem:[%s897_s0 + $0x38] sm:$0xff] }
   0x4   :  { %v18_v10 = vld [vmem:[%s897_s0 + $0x20] sm:$0xff]  ;;  %v90_v15 = vmul.f32 %v317_v1, %v19_v11  ;;  %v91_v16 = vmul.f32 %v317_v1, %v20_v12  ;;  %v23_v19 = vld [vmem:[%s897_s0 + $0x48] sm:$0xff]  ;;  %v92_v23 = vmul.f32 %v317_v1, %v21_v17  ;;  %v24_v24 = vld [vmem:[%s897_s0 + $0x50] sm:$0xff] }
   0x5   :  { %v156_v13 = vadd.f32 %v322_v2, %v85_v3  ;;  %v89_v14 = vmul.f32 %v317_v1, %v18_v10  ;;  %v22_v18 = vld [vmem:[%s897_s0 + $0x40] sm:$0xff]  ;;  %v157_v20 = vadd.f32 %v322_v2, %v86_v7  ;;  %v158_v21 = vadd.f32 %v322_v2, %v87_v8  ;;  %v25_v25 = vld [vmem:[%s897_s0 + $0x58] sm:$0xff]  ;;  %v27_v31 = vld [vmem:[%s897_s0 + $0x68] sm:$0xff] }
   0x6   :  { %v159_v22 = vadd.f32 %v322_v2, %v88_v9  ;;  %v26_v26 = vld [vmem:[%s897_s0 + $0x60] sm:$0xff]  ;;  %v161_v28 = vadd.f32 %v322_v2, %v90_v15  ;;  %v162_v29 = vadd.f32 %v322_v2, %v91_v16  ;;  %v93_v30 = vmul.f32 %v317_v1, %v22_v18  ;;  %v28_v32 = vld [vmem:[%s897_s0 + $0x70] sm:$0xff]  ;;  %v29_v33 = vld [vmem:[%s897_s0 + $0x78] sm:$0xff] }
   0x7   :  { %221 = vst.msk [vmem:[%s900_s3] sm:$0xff] %vm220_vm0, %v156_v13  ;;  %v160_v27 = vadd.f32 %v322_v2, %v89_v14  ;;  %222 = vst.msk [vmem:[%s900_s3 + $0x8] sm:$0xff] %vm220_vm0, %v157_v20  ;;  %v163_v34 = vadd.f32 %v322_v2, %v92_v23  ;;  %v94_v35 = vmul.f32 %v317_v1, %v23_v19  ;;  %v30_v38 = vld [vmem:[%s897_s0 + $0x80] sm:$0xff]  ;;  %v31_v43 = vld [vmem:[%s897_s0 + $0x88] sm:$0xff] }
   0x8   :  { %223 = vst.msk [vmem:[%s900_s3 + $0x10] sm:$0xff] %vm220_vm0, %v158_v21  ;;  %224 = vst.msk [vmem:[%s900_s3 + $0x18] sm:$0xff] %vm220_vm0, %v159_v22  ;;  %v95_v36 = vmul.f32 %v317_v1, %v24_v24  ;;  %v96_v37 = vmul.f32 %v317_v1, %v25_v25  ;;  %v164_v39 = vadd.f32 %v322_v2, %v93_v30  ;;  %v32_v44 = vld [vmem:[%s897_s0 + $0x90] sm:$0xff]  ;;  %v33_v45 = vld [vmem:[%s897_s0 + $0x98] sm:$0xff] }
   0x9   :  { %225 = vst.msk [vmem:[%s900_s3 + $0x20] sm:$0xff] %vm220_vm0, %v160_v27  ;;  %226 = vst.msk [vmem:[%s900_s3 + $0x28] sm:$0xff] %vm220_vm0, %v161_v28  ;;  %v97_v40 = vmul.f32 %v317_v1, %v26_v26  ;;  %v98_v41 = vmul.f32 %v317_v1, %v27_v31  ;;  %v99_v42 = vmul.f32 %v317_v1, %v28_v32  ;;  %v34_v50 = vld [vmem:[%s897_s0 + $0xa0] sm:$0xff]  ;;  %v35_v51 = vld [vmem:[%s897_s0 + $0xa8] sm:$0xff] }
   0xa   :  { %227 = vst.msk [vmem:[%s900_s3 + $0x30] sm:$0xff] %vm220_vm0, %v162_v29  ;;  %228 = vst.msk [vmem:[%s900_s3 + $0x38] sm:$0xff] %vm220_vm0, %v163_v34  ;;  %v165_v46 = vadd.f32 %v322_v2, %v94_v35  ;;  %v166_v47 = vadd.f32 %v322_v2, %v95_v36  ;;  %v167_v48 = vadd.f32 %v322_v2, %v96_v37  ;;  %v36_v52 = vld [vmem:[%s897_s0 + $0xb0] sm:$0xff]  ;;  %v37_v57 = vld [vmem:[%s897_s0 + $0xb8] sm:$0xff] }
   0xb   :  { %v100_v49 = vmul.f32 %v317_v1, %v29_v33  ;;  %229 = vst.msk [vmem:[%s900_s3 + $0x40] sm:$0xff] %vm220_vm0, %v164_v39  ;;  %v168_v53 = vadd.f32 %v322_v2, %v97_v40  ;;  %v169_v54 = vadd.f32 %v322_v2, %v98_v41  ;;  %v170_v55 = vadd.f32 %v322_v2, %v99_v42  ;;  %v38_v62 = vld [vmem:[%s897_s0 + $0xc0] sm:$0xff]  ;;  %v39_v5 = vld [vmem:[%s897_s0 + $0xc8] sm:$0xff]  ;;  %v40_v6 = vld [vmem:[%s897_s0 + $0xd0] sm:$0xff] }
   0xc   :  { %v101_v56 = vmul.f32 %v317_v1, %v30_v38  ;;  %230 = vst.msk [vmem:[%s900_s3 + $0x48] sm:$0xff] %vm220_vm0, %v165_v46  ;;  %231 = vst.msk [vmem:[%s900_s3 + $0x50] sm:$0xff] %vm220_vm0, %v166_v47  ;;  %v102_v59 = vmul.f32 %v317_v1, %v31_v43  ;;  %v103_v60 = vmul.f32 %v317_v1, %v32_v44  ;;  %v41_v7 = vld [vmem:[%s897_s0 + $0xd8] sm:$0xff]  ;;  %v42_v12 = vld [vmem:[%s897_s0 + $0xe0] sm:$0xff] }
   0xd   :  { %232 = vst.msk [vmem:[%s900_s3 + $0x58] sm:$0xff] %vm220_vm0, %v167_v48  ;;  %v171_v58 = vadd.f32 %v322_v2, %v100_v49  ;;  %v104_v61 = vmul.f32 %v317_v1, %v33_v45  ;;  %233 = vst.msk [vmem:[%s900_s3 + $0x60] sm:$0xff] %vm220_vm0, %v168_v53  ;;  %v105_v0 = vmul.f32 %v317_v1, %v34_v50  ;;  %v43_v13 = vld [vmem:[%s897_s0 + $0xe8] sm:$0xff]  ;;  %v44_v14 = vld [vmem:[%s897_s0 + $0xf0] sm:$0xff] }
   0xe   :  { %234 = vst.msk [vmem:[%s900_s3 + $0x68] sm:$0xff] %vm220_vm0, %v169_v54  ;;  %235 = vst.msk [vmem:[%s900_s3 + $0x70] sm:$0xff] %vm220_vm0, %v170_v55  ;;  %v172_v63 = vadd.f32 %v322_v2, %v101_v56  ;;  %v106_v3 = vmul.f32 %v317_v1, %v35_v51  ;;  %v107_v4 = vmul.f32 %v317_v1, %v36_v52  ;;  %v45_v19 = vld [vmem:[%s897_s0 + $0xf8] sm:$0xff]  ;;  %v46_v24 = vld [vmem:[%s897_s0 + $0x100] sm:$0xff] }
   0xf   :  { %236 = vst.msk [vmem:[%s900_s3 + $0x78] sm:$0xff] %vm220_vm0, %v171_v58  ;;  %v173_v8 = vadd.f32 %v322_v2, %v102_v59  ;;  %v174_v9 = vadd.f32 %v322_v2, %v103_v60  ;;  %v175_v10 = vadd.f32 %v322_v2, %v104_v61  ;;  %v108_v11 = vmul.f32 %v317_v1, %v37_v57  ;;  %v47_v29 = vld [vmem:[%s897_s0 + $0x108] sm:$0xff]  ;;  %v48_v30 = vld [vmem:[%s897_s0 + $0x110] sm:$0xff]  ;;  %v49_v31 = vld [vmem:[%s897_s0 + $0x118] sm:$0xff] }
  0x10   :  { %237 = vst.msk [vmem:[%s900_s3 + $0x80] sm:$0xff] %vm220_vm0, %v172_v63  ;;  %v176_v15 = vadd.f32 %v322_v2, %v105_v0  ;;  %v177_v16 = vadd.f32 %v322_v2, %v106_v3  ;;  %v178_v17 = vadd.f32 %v322_v2, %v107_v4  ;;  %v109_v18 = vmul.f32 %v317_v1, %v38_v62  ;;  %v50_v36 = vld [vmem:[%s897_s0 + $0x120] sm:$0xff]  ;;  %v51_v37 = vld [vmem:[%s897_s0 + $0x128] sm:$0xff]  ;;  %v52_v38 = vld [vmem:[%s897_s0 + $0x130] sm:$0xff] }
  0x11   :  { %238 = vst.msk [vmem:[%s900_s3 + $0x88] sm:$0xff] %vm220_vm0, %v173_v8  ;;  %239 = vst.msk [vmem:[%s900_s3 + $0x90] sm:$0xff] %vm220_vm0, %v174_v9  ;;  %v179_v20 = vadd.f32 %v322_v2, %v108_v11  ;;  %v110_v21 = vmul.f32 %v317_v1, %v39_v5  ;;  %v111_v22 = vmul.f32 %v317_v1, %v40_v6  ;;  %v53_v43 = vld [vmem:[%s897_s0 + $0x138] sm:$0xff]  ;;  %v54_v48 = vld [vmem:[%s897_s0 + $0x140] sm:$0xff] }
  0x12   :  { %240 = vst.msk [vmem:[%s900_s3 + $0x98] sm:$0xff] %vm220_vm0, %v175_v10  ;;  %v112_v23 = vmul.f32 %v317_v1, %v41_v7  ;;  %241 = vst.msk [vmem:[%s900_s3 + $0xa0] sm:$0xff] %vm220_vm0, %v176_v15  ;;  %v180_v25 = vadd.f32 %v322_v2, %v109_v18  ;;  %v113_v26 = vmul.f32 %v317_v1, %v42_v12  ;;  %v55_v53 = vld [vmem:[%s897_s0 + $0x148] sm:$0xff]  ;;  %v56_v54 = vld [vmem:[%s897_s0 + $0x150] sm:$0xff] }
  0x13   :  { %242 = vst.msk [vmem:[%s900_s3 + $0xa8] sm:$0xff] %vm220_vm0, %v177_v16  ;;  %243 = vst.msk [vmem:[%s900_s3 + $0xb0] sm:$0xff] %vm220_vm0, %v178_v17  ;;  %v114_v27 = vmul.f32 %v317_v1, %v43_v13  ;;  %v115_v28 = vmul.f32 %v317_v1, %v44_v14  ;;  %v181_v32 = vadd.f32 %v322_v2, %v110_v21  ;;  %v57_v55 = vld [vmem:[%s897_s0 + $0x158] sm:$0xff]  ;;  %v58_v60 = vld [vmem:[%s897_s0 + $0x160] sm:$0xff] }
  0x14   :  { %244 = vst.msk [vmem:[%s900_s3 + $0xb8] sm:$0xff] %vm220_vm0, %v179_v20  ;;  %v182_v33 = vadd.f32 %v322_v2, %v111_v22  ;;  %v183_v34 = vadd.f32 %v322_v2, %v112_v23  ;;  %v116_v35 = vmul.f32 %v317_v1, %v45_v19  ;;  %245 = vst.msk [vmem:[%s900_s3 + $0xc0] sm:$0xff] %vm220_vm0, %v180_v25  ;;  %v59_v61 = vld [vmem:[%s897_s0 + $0x168] sm:$0xff]  ;;  %v60_v62 = vld [vmem:[%s897_s0 + $0x170] sm:$0xff] }
  0x15   :  { %v184_v39 = vadd.f32 %v322_v2, %v113_v26  ;;  %v185_v40 = vadd.f32 %v322_v2, %v114_v27  ;;  %v186_v41 = vadd.f32 %v322_v2, %v115_v28  ;;  %v117_v42 = vmul.f32 %v317_v1, %v46_v24  ;;  %246 = vst.msk [vmem:[%s900_s3 + $0xc8] sm:$0xff] %vm220_vm0, %v181_v32  ;;  %v61_v5 = vld [vmem:[%s897_s0 + $0x178] sm:$0xff]  ;;  %v62_v10 = vld [vmem:[%s897_s0 + $0x180] sm:$0xff]  ;;  %v63_v15 = vld [vmem:[%s897_s0 + $0x188] sm:$0xff] }
  0x16   :  { %247 = vst.msk [vmem:[%s900_s3 + $0xd0] sm:$0xff] %vm220_vm0, %v182_v33  ;;  %248 = vst.msk [vmem:[%s900_s3 + $0xd8] sm:$0xff] %vm220_vm0, %v183_v34  ;;  %v187_v44 = vadd.f32 %v322_v2, %v116_v35  ;;  %v118_v45 = vmul.f32 %v317_v1, %v47_v29  ;;  %v119_v46 = vmul.f32 %v317_v1, %v48_v30  ;;  %v64_v16 = vld [vmem:[%s897_s0 + $0x190] sm:$0xff]  ;;  %v65_v17 = vld [vmem:[%s897_s0 + $0x198] sm:$0xff] }
  0x17   :  { %v120_v47 = vmul.f32 %v317_v1, %v49_v31  ;;  %249 = vst.msk [vmem:[%s900_s3 + $0xe0] sm:$0xff] %vm220_vm0, %v184_v39  ;;  %250 = vst.msk [vmem:[%s900_s3 + $0xe8] sm:$0xff] %vm220_vm0, %v185_v40  ;;  %v188_v49 = vadd.f32 %v322_v2, %v117_v42  ;;  %v121_v50 = vmul.f32 %v317_v1, %v50_v36  ;;  %v66_v22 = vld [vmem:[%s897_s0 + $0x1a0] sm:$0xff]  ;;  %v67_v23 = vld [vmem:[%s897_s0 + $0x1a8] sm:$0xff] }
  0x18   :  { %251 = vst.msk [vmem:[%s900_s3 + $0xf0] sm:$0xff] %vm220_vm0, %v186_v41  ;;  %v122_v51 = vmul.f32 %v317_v1, %v51_v37  ;;  %v123_v52 = vmul.f32 %v317_v1, %v52_v38  ;;  %252 = vst.msk [vmem:[%s900_s3 + $0xf8] sm:$0xff] %vm220_vm0, %v187_v44  ;;  %v189_v56 = vadd.f32 %v322_v2, %v118_v45  ;;  %v68_v24 = vld [vmem:[%s897_s0 + $0x1b0] sm:$0xff]  ;;  %v69_v29 = vld [vmem:[%s897_s0 + $0x1b8] sm:$0xff] }
  0x19   :  { %v190_v57 = vadd.f32 %v322_v2, %v119_v46  ;;  %v191_v58 = vadd.f32 %v322_v2, %v120_v47  ;;  %v124_v59 = vmul.f32 %v317_v1, %v53_v43  ;;  %253 = vst.msk [vmem:[%s900_s3 + $0x100] sm:$0xff] %vm220_vm0, %v188_v49  ;;  %v192_v63 = vadd.f32 %v322_v2, %v121_v50  ;;  %v70_v34 = vld [vmem:[%s897_s0 + $0x1c0] sm:$0xff]  ;;  %v71_v39 = vld [vmem:[%s897_s0 + $0x1c8] sm:$0xff]  ;;  %v72_v40 = vld [vmem:[%s897_s0 + $0x1d0] sm:$0xff] }
  0x1a   :  { %v193_v0 = vadd.f32 %v322_v2, %v122_v51  ;;  %v194_v3 = vadd.f32 %v322_v2, %v123_v52  ;;  %v125_v4 = vmul.f32 %v317_v1, %v54_v48  ;;  %254 = vst.msk [vmem:[%s900_s3 + $0x108] sm:$0xff] %vm220_vm0, %v189_v56  ;;  %v126_v7 = vmul.f32 %v317_v1, %v55_v53  ;;  %v73_v41 = vld [vmem:[%s897_s0 + $0x1d8] sm:$0xff]  ;;  %v74_v46 = vld [vmem:[%s897_s0 + $0x1e0] sm:$0xff]  ;;  %v75_v47 = vld [vmem:[%s897_s0 + $0x1e8] sm:$0xff] }
  0x1b   :  { %255 = vst.msk [vmem:[%s900_s3 + $0x110] sm:$0xff] %vm220_vm0, %v190_v57  ;;  %256 = vst.msk [vmem:[%s900_s3 + $0x118] sm:$0xff] %vm220_vm0, %v191_v58  ;;  %v195_v6 = vadd.f32 %v322_v2, %v124_v59  ;;  %v127_v8 = vmul.f32 %v317_v1, %v56_v54  ;;  %v128_v9 = vmul.f32 %v317_v1, %v57_v55  ;;  %v76_v48 = vld [vmem:[%s897_s0 + $0x1f0] sm:$0xff]  ;;  %v77_v53 = vld [vmem:[%s897_s0 + $0x1f8] sm:$0xff] }
  0x1c   :  { %257 = vst.msk [vmem:[%s900_s3 + $0x120] sm:$0xff] %vm220_vm0, %v192_v63  ;;  %258 = vst.msk [vmem:[%s900_s3 + $0x128] sm:$0xff] %vm220_vm0, %v193_v0  ;;  %v196_v11 = vadd.f32 %v322_v2, %v125_v4  ;;  %v129_v12 = vmul.f32 %v317_v1, %v58_v60  ;;  %v130_v13 = vmul.f32 %v317_v1, %v59_v61 }
  0x1d   :  { %259 = vst.msk [vmem:[%s900_s3 + $0x130] sm:$0xff] %vm220_vm0, %v194_v3  ;;  %v131_v14 = vmul.f32 %v317_v1, %v60_v62  ;;  %260 = vst.msk [vmem:[%s900_s3 + $0x138] sm:$0xff] %vm220_vm0, %v195_v6  ;;  %v197_v18 = vadd.f32 %v322_v2, %v126_v7  ;;  %v198_v19 = vadd.f32 %v322_v2, %v127_v8 }
  0x1e   :  { %v199_v20 = vadd.f32 %v322_v2, %v128_v9  ;;  %v132_v21 = vmul.f32 %v317_v1, %v61_v5  ;;  %261 = vst.msk [vmem:[%s900_s3 + $0x140] sm:$0xff] %vm220_vm0, %v196_v11  ;;  %v200_v25 = vadd.f32 %v322_v2, %v129_v12  ;;  %v201_v26 = vadd.f32 %v322_v2, %v130_v13 }
  0x1f   :  { %v202_v27 = vadd.f32 %v322_v2, %v131_v14  ;;  %v133_v28 = vmul.f32 %v317_v1, %v62_v10  ;;  %262 = vst.msk [vmem:[%s900_s3 + $0x148] sm:$0xff] %vm220_vm0, %v197_v18  ;;  %263 = vst.msk [vmem:[%s900_s3 + $0x150] sm:$0xff] %vm220_vm0, %v198_v19  ;;  %v134_v31 = vmul.f32 %v317_v1, %v63_v15 }
  0x20   :  { %264 = vst.msk [vmem:[%s900_s3 + $0x158] sm:$0xff] %vm220_vm0, %v199_v20  ;;  %v203_v30 = vadd.f32 %v322_v2, %v132_v21  ;;  %v135_v32 = vmul.f32 %v317_v1, %v64_v16  ;;  %v136_v33 = vmul.f32 %v317_v1, %v65_v17  ;;  %265 = vst.msk [vmem:[%s900_s3 + $0x160] sm:$0xff] %vm220_vm0, %v200_v25 }
  0x21   :  { %266 = vst.msk [vmem:[%s900_s3 + $0x168] sm:$0xff] %vm220_vm0, %v201_v26  ;;  %267 = vst.msk [vmem:[%s900_s3 + $0x170] sm:$0xff] %vm220_vm0, %v202_v27  ;;  %v204_v35 = vadd.f32 %v322_v2, %v133_v28  ;;  %v137_v36 = vmul.f32 %v317_v1, %v66_v22  ;;  %v138_v37 = vmul.f32 %v317_v1, %v67_v23 }
  0x22   :  { %v139_v38 = vmul.f32 %v317_v1, %v68_v24  ;;  %268 = vst.msk [vmem:[%s900_s3 + $0x178] sm:$0xff] %vm220_vm0, %v203_v30  ;;  %v205_v42 = vadd.f32 %v322_v2, %v134_v31  ;;  %v206_v43 = vadd.f32 %v322_v2, %v135_v32  ;;  %v207_v44 = vadd.f32 %v322_v2, %v136_v33 }
  0x23   :  { %v140_v45 = vmul.f32 %v317_v1, %v69_v29  ;;  %269 = vst.msk [vmem:[%s900_s3 + $0x180] sm:$0xff] %vm220_vm0, %v204_v35  ;;  %v208_v49 = vadd.f32 %v322_v2, %v137_v36  ;;  %v209_v50 = vadd.f32 %v322_v2, %v138_v37  ;;  %v141_v52 = vmul.f32 %v317_v1, %v70_v34 }
  0x24   :  { %v210_v51 = vadd.f32 %v322_v2, %v139_v38  ;;  %270 = vst.msk [vmem:[%s900_s3 + $0x188] sm:$0xff] %vm220_vm0, %v205_v42  ;;  %271 = vst.msk [vmem:[%s900_s3 + $0x190] sm:$0xff] %vm220_vm0, %v206_v43  ;;  %v142_v55 = vmul.f32 %v317_v1, %v71_v39  ;;  %v143_v56 = vmul.f32 %v317_v1, %v72_v40 }
  0x25   :  { %272 = vst.msk [vmem:[%s900_s3 + $0x198] sm:$0xff] %vm220_vm0, %v207_v44  ;;  %v211_v54 = vadd.f32 %v322_v2, %v140_v45  ;;  %v144_v57 = vmul.f32 %v317_v1, %v73_v41  ;;  %273 = vst.msk [vmem:[%s900_s3 + $0x1a0] sm:$0xff] %vm220_vm0, %v208_v49  ;;  %v212_v58 = vadd.f32 %v322_v2, %v141_v52 }
  0x26   :  { %274 = vst.msk [vmem:[%s900_s3 + $0x1a8] sm:$0xff] %vm220_vm0, %v209_v50  ;;  %275 = vst.msk [vmem:[%s900_s3 + $0x1b0] sm:$0xff] %vm220_vm0, %v210_v51  ;;  %v145_v59 = vmul.f32 %v317_v1, %v74_v46  ;;  %v146_v60 = vmul.f32 %v317_v1, %v75_v47  ;;  %v147_v61 = vmul.f32 %v317_v1, %v76_v48 }
  0x27   :  { %276 = vst.msk [vmem:[%s900_s3 + $0x1b8] sm:$0xff] %vm220_vm0, %v211_v54  ;;  %v213_v62 = vadd.f32 %v322_v2, %v142_v55  ;;  %v214_v63 = vadd.f32 %v322_v2, %v143_v56  ;;  %v215_v0 = vadd.f32 %v322_v2, %v144_v57  ;;  %v148_v3 = vmul.f32 %v317_v1, %v77_v53 }
  0x28   :  { %277 = vst.msk [vmem:[%s900_s3 + $0x1c0] sm:$0xff] %vm220_vm0, %v212_v58  ;;  %v216_v4 = vadd.f32 %v322_v2, %v145_v59  ;;  %v217_v5 = vadd.f32 %v322_v2, %v146_v60  ;;  %v218_v6 = vadd.f32 %v322_v2, %v147_v61 }
  0x29   :  { %278 = vst.msk [vmem:[%s900_s3 + $0x1c8] sm:$0xff] %vm220_vm0, %v213_v62  ;;  %279 = vst.msk [vmem:[%s900_s3 + $0x1d0] sm:$0xff] %vm220_vm0, %v214_v63  ;;  %v219_v1 = vadd.f32 %v322_v2, %v148_v3 }
  0x2a   :  { %280 = vst.msk [vmem:[%s900_s3 + $0x1d8] sm:$0xff] %vm220_vm0, %v215_v0  ;;  %281 = vst.msk [vmem:[%s900_s3 + $0x1e0] sm:$0xff] %vm220_vm0, %v216_v4 }
  0x2b   :  { %282 = vst.msk [vmem:[%s900_s3 + $0x1e8] sm:$0xff] %vm220_vm0, %v217_v5  ;;  %283 = vst.msk [vmem:[%s900_s3 + $0x1f0] sm:$0xff] %vm220_vm0, %v218_v6 }
  0x2c   :  { %284 = vst.msk [vmem:[%s900_s3 + $0x1f8] sm:$0xff] %vm220_vm0, %v219_v1 }

// kernel: forward.47
= control target key start
LH: loop header
LB: loop body
LE: loop exit
PB: predicated region body
PF: predicated region fallthrough
CT: control target
= control target key end

     0   :  { %v1585_v0 = vmov 0   ;;  %vm603_vm0 = vcmask 130048   ;;  %s2136_s1 = inlined_call_operand.vmem [shape: bf16[144,128], index: 1, kind: input, shape index: {}]   ;;  %s2137_s0 = inlined_call_operand.vmem [shape: bf16[512,144], index: 0, kind: input, shape index: {}]   ;;  %s2138_s2 = inlined_call_operand.vmem [shape: f32[1,128], index: 2, kind: input, shape index: {}]   ;;  %s2139_s3 = inlined_call_operand.vmem [shape: f32[512,128], index: 3, kind: output, shape index: {}]  }
   0x1   :  { %700 = vmatprep.subr.bf16.mxu0 %v1585_v0  ;;  %1429 = vmatprep.subr.bf16.mxu1 %v1585_v0  ;;  %v1448_v1 = vld [vmem:[%s2136_s1] sm:$0xff]   ;;  %v1449_v2 = vld [vmem:[%s2136_s1 + $0x8] sm:$0xff]   ;;  %v1450_v3 = vld [vmem:[%s2136_s1 + $0x10] sm:$0xff]  }
   0x2   :  { %701 = vmatpush1.bf16.msra.mxu0 %v1448_v1  ;;  %1438 = vmatpush1.bf16.msra.mxu1 %v1448_v1  ;;  %v83_v4 = vld [vmem:[%s2137_s0] sm:$0xff]  ;;  %v84_v5 = vld [vmem:[%s2137_s0 + $0x8] sm:$0xff]  ;;  %v1451_v7 = vld [vmem:[%s2136_s1 + $0x18] sm:$0xff]  }
   0x3   :  { %702 = vmatprep.subr.bf16.mxu0 %v1585_v0  ;;  %1430 = vmatprep.subr.bf16.mxu1 %v1585_v0  ;;  %v115_v6 = vld [vmem:[%s2137_s0 + $0x100] sm:$0xff]  ;;  %v148_v8 = vunpack.c.h.bf16 %v83_v4  ;;  %v150_v9 = vunpack.c.h.bf16 %v84_v5  ;;  %v116_v10 = vld [vmem:[%s2137_s0 + $0x108] sm:$0xff]  ;;  %v1454_v21 = vld [vmem:[%s2136_s1 + $0x30] sm:$0xff]   ;;  %v147_v26 = vunpack.c.l.bf16 %v83_v4  ;;  %v149_v27 = vunpack.c.l.bf16 %v84_v5 }
   0x4   :  { %v212_v11 = vunpack.c.h.bf16 %v115_v6  ;;  %v214_v12 = vunpack.c.h.bf16 %v116_v10  ;;  %v1452_v17 = vld [vmem:[%s2136_s1 + $0x20] sm:$0xff]   ;;  %v1453_v20 = vld [vmem:[%s2136_s1 + $0x28] sm:$0xff]   ;;  %v85_v22 = vld [vmem:[%s2137_s0 + $0x10] sm:$0xff]  ;;  %v211_v28 = vunpack.c.l.bf16 %v115_v6  ;;  %v213_v29 = vunpack.c.l.bf16 %v116_v10 }
   0x5   :  { %v276_v13 = vmax.f32 %v148_v8, 0.0  ;;  %v278_v14 = vmax.f32 %v150_v9, 0.0  ;;  %v86_v23 = vld [vmem:[%s2137_s0 + $0x18] sm:$0xff]  ;;  %v117_v24 = vld [vmem:[%s2137_s0 + $0x110] sm:$0xff]  ;;  %v152_v31 = vunpack.c.h.bf16 %v85_v22  ;;  %v275_v35 = vmax.f32 %v147_v26, 0.0  ;;  %v1456_v39 = vld [vmem:[%s2136_s1 + $0x40] sm:$0xff]  }
   0x6   :  { %703 = vmatpush1.bf16.msra.mxu0 %v1449_v2  ;;  %1439 = vmatpush1.bf16.msra.mxu1 %v1449_v2  ;;  %v340_v15 = vmax.f32 %v212_v11, 0.0  ;;  %v342_v16 = vmax.f32 %v214_v12, 0.0  ;;  %v118_v25 = vld [vmem:[%s2137_s0 + $0x118] sm:$0xff]  ;;  %v154_v32 = vunpack.c.h.bf16 %v86_v23  ;;  %v216_v33 = vunpack.c.h.bf16 %v117_v24  ;;  %v87_v44 = vld [vmem:[%s2137_s0 + $0x20] sm:$0xff]  ;;  %v88_v45 = vld [vmem:[%s2137_s0 + $0x28] sm:$0xff] }
   0x7   :  { %704 = vmatprep.subr.bf16.mxu0 %v1585_v0  ;;  %1431 = vmatprep.subr.bf16.mxu1 %v1585_v0  ;;  %v468_v18 = vpack.c.bf16 %v278_v14, %v276_v13  ;;  %v1455_v30 = vld [vmem:[%s2136_s1 + $0x38] sm:$0xff]   ;;  %v218_v34 = vunpack.c.h.bf16 %v118_v25  ;;  %v277_v36 = vmax.f32 %v149_v27, 0.0  ;;  %v339_v37 = vmax.f32 %v211_v28, 0.0  ;;  %v119_v46 = vld [vmem:[%s2137_s0 + $0x120] sm:$0xff]  ;;  %v120_v47 = vld [vmem:[%s2137_s0 + $0x128] sm:$0xff] }
   0x8   :  { %v500_v19 = vpack.c.bf16 %v342_v16, %v340_v15  ;;  %v341_v38 = vmax.f32 %v213_v29, 0.0  ;;  %v280_v40 = vmax.f32 %v152_v31, 0.0  ;;  %v282_v41 = vmax.f32 %v154_v32, 0.0  ;;  %v89_v4 = vld [vmem:[%s2137_s0 + $0x30] sm:$0xff]  ;;  %v90_v5 = vld [vmem:[%s2137_s0 + $0x38] sm:$0xff]  ;;  %v91_v28 = vld [vmem:[%s2137_s0 + $0x40] sm:$0xff] }
   0x9   :  { %1396 = vmatprep.mubr.msk.bf16.mxu0 %vm603_vm0, %v468_v18  ;;  %v344_v42 = vmax.f32 %v216_v33, 0.0  ;;  %v346_v43 = vmax.f32 %v218_v34, 0.0  ;;  %v467_v48 = vpack.c.bf16 %v277_v36, %v275_v35  ;;  %v151_v50 = vunpack.c.l.bf16 %v85_v22  ;;  %v121_v6 = vld [vmem:[%s2137_s0 + $0x130] sm:$0xff]  ;;  %v92_v29 = vld [vmem:[%s2137_s0 + $0x48] sm:$0xff] }
   0xa   :  { %705 = vmatpush1.bf16.msra.mxu0 %v1450_v3  ;;  %1440 = vmatpush1.bf16.msra.mxu1 %v1450_v3  ;;  %v499_v49 = vpack.c.bf16 %v341_v38, %v339_v37  ;;  %v153_v51 = vunpack.c.l.bf16 %v86_v23  ;;  %v215_v52 = vunpack.c.l.bf16 %v117_v24  ;;  %v217_v53 = vunpack.c.l.bf16 %v118_v25  ;;  %v124_v31 = vld [vmem:[%s2137_s0 + $0x148] sm:$0xff] }
   0xb   :  { %706 = vmatprep.subr.bf16.mxu0 %v1585_v0  ;;  %1432 = vmatprep.subr.bf16.mxu1 %v1585_v0  ;;  %v156_v54 = vunpack.c.h.bf16 %v87_v44  ;;  %v158_v55 = vunpack.c.h.bf16 %v88_v45  ;;  %v470_v56 = vpack.c.bf16 %v282_v41, %v280_v40  ;;  %v502_v57 = vpack.c.bf16 %v346_v43, %v344_v42 }
   0xc   :  { %1412 = vmatprep.mubr.msk.bf16.mxu1 %vm603_vm0, %v500_v19  ;;  %v220_v58 = vunpack.c.h.bf16 %v119_v46  ;;  %v222_v59 = vunpack.c.h.bf16 %v120_v47  ;;  %v279_v60 = vmax.f32 %v151_v50, 0.0  ;;  %v281_v61 = vmax.f32 %v153_v51, 0.0 }
   0xd   :  { %v343_v62 = vmax.f32 %v215_v52, 0.0  ;;  %v345_v63 = vmax.f32 %v217_v53, 0.0  ;;  %v286_v1 = vmax.f32 %v158_v55, 0.0  ;;  %v155_v8 = vunpack.c.l.bf16 %v87_v44  ;;  %v93_v52 = vld [vmem:[%s2137_s0 + $0x50] sm:$0xff]  ;;  %v94_v53 = vld [vmem:[%s2137_s0 + $0x58] sm:$0xff] }
   0xe   :  { %707 = vmatpush1.bf16.msra.mxu0 %v1451_v7  ;;  %1441 = vmatpush1.bf16.msra.mxu1 %v1451_v7  ;;  %v348_v2 = vmax.f32 %v220_v58, 0.0  ;;  %v350_v3 = vmax.f32 %v222_v59, 0.0  ;;  %v122_v7 = vld [vmem:[%s2137_s0 + $0x138] sm:$0xff]  ;;  %v157_v9 = vunpack.c.l.bf16 %v88_v45  ;;  %v219_v10 = vunpack.c.l.bf16 %v119_v46 }
   0xf   :  { %708 = vmatprep.subr.bf16.mxu0 %v1585_v0  ;;  %1433 = vmatprep.subr.bf16.mxu1 %v1585_v0  ;;  %v221_v11 = vunpack.c.l.bf16 %v120_v47  ;;  %v469_v12 = vpack.c.bf16 %v281_v61, %v279_v60  ;;  %v501_v13 = vpack.c.bf16 %v345_v63, %v343_v62  ;;  %v160_v15 = vunpack.c.h.bf16 %v89_v4  ;;  %v126_v55 = vld [vmem:[%s2137_s0 + $0x158] sm:$0xff] }
  0x10   :  { %v504_v16 = vpack.c.bf16 %v350_v3, %v348_v2  ;;  %v224_v18 = vunpack.c.h.bf16 %v121_v6  ;;  %v226_v19 = vunpack.c.h.bf16 %v122_v7  ;;  %v347_v22 = vmax.f32 %v219_v10, 0.0 }
  0x11   :  { %v349_v23 = vmax.f32 %v221_v11, 0.0  ;;  %v288_v24 = vmax.f32 %v160_v15, 0.0  ;;  %v159_v34 = vunpack.c.l.bf16 %v89_v4  ;;  %v161_v35 = vunpack.c.l.bf16 %v90_v5  ;;  %v128_v15 = vld [vmem:[%s2137_s0 + $0x168] sm:$0xff] }
  0x12   :  { %709 = vmatpush1.bf16.msra.mxu0 %v1452_v17  ;;  %1442 = vmatpush1.bf16.msra.mxu1 %v1452_v17  ;;  %v162_v17 = vunpack.c.h.bf16 %v90_v5  ;;  %v352_v26 = vmax.f32 %v224_v18, 0.0  ;;  %v354_v27 = vmax.f32 %v226_v19, 0.0  ;;  %v223_v36 = vunpack.c.l.bf16 %v121_v6 }
  0x13   :  { %710 = vmatprep.subr.bf16.mxu0 %v1585_v0  ;;  %1434 = vmatprep.subr.bf16.mxu1 %v1585_v0  ;;  %v503_v33 = vpack.c.bf16 %v349_v23, %v347_v22  ;;  %v225_v37 = vunpack.c.l.bf16 %v122_v7  ;;  %v164_v38 = vunpack.c.h.bf16 %v91_v28  ;;  %v230_v43 = vunpack.c.h.bf16 %v124_v31 }
  0x14   :  { %v290_v25 = vmax.f32 %v162_v17, 0.0  ;;  %v506_v41 = vpack.c.bf16 %v354_v27, %v352_v26  ;;  %v287_v44 = vmax.f32 %v159_v34, 0.0  ;;  %v289_v45 = vmax.f32 %v161_v35, 0.0 }
  0x15   :  { %v351_v46 = vmax.f32 %v223_v36, 0.0  ;;  %v353_v47 = vmax.f32 %v225_v37, 0.0  ;;  %v358_v51 = vmax.f32 %v230_v43, 0.0  ;;  %v229_v59 = vunpack.c.l.bf16 %v124_v31  ;;  %v97_v36 = vld [vmem:[%s2137_s0 + $0x70] sm:$0xff]  ;;  %v98_v37 = vld [vmem:[%s2137_s0 + $0x78] sm:$0xff] }
  0x16   :  { %711 = vmatpush1.bf16.msra.mxu0 %v1453_v20  ;;  %1443 = vmatpush1.bf16.msra.mxu1 %v1453_v20  ;;  %v283_v20 = vmax.f32 %v155_v8, 0.0  ;;  %v474_v40 = vpack.c.bf16 %v290_v25, %v288_v24  ;;  %v473_v60 = vpack.c.bf16 %v289_v45, %v287_v44  ;;  %v168_v63 = vunpack.c.h.bf16 %v93_v52 }
  0x17   :  { %712 = vmatprep.subr.bf16.mxu0 %v1585_v0  ;;  %1435 = vmatprep.subr.bf16.mxu1 %v1585_v0  ;;  %v505_v61 = vpack.c.bf16 %v353_v47, %v351_v46  ;;  %v234_v3 = vunpack.c.h.bf16 %v126_v55  ;;  %v357_v7 = vmax.f32 %v229_v59, 0.0  ;;  %v167_v18 = vunpack.c.l.bf16 %v93_v52 }
  0x18   :  { %v296_v8 = vmax.f32 %v168_v63, 0.0  ;;  %v169_v19 = vunpack.c.l.bf16 %v94_v53  ;;  %v238_v27 = vunpack.c.h.bf16 %v128_v15  ;;  %v237_v43 = vunpack.c.l.bf16 %v128_v15  ;;  %v132_v63 = vld [vmem:[%s2137_s0 + $0x188] sm:$0xff] }
  0x19   :  { %v362_v11 = vmax.f32 %v234_v3, 0.0  ;;  %v176_v47 = vunpack.c.h.bf16 %v97_v36  ;;  %v177_v3 = vunpack.c.l.bf16 %v98_v37 }
  0x1a   :  { %713 = vmatpush1.bf16.msra.mxu0 %v1454_v21  ;;  %1444 = vmatpush1.bf16.msra.mxu1 %v1454_v21  ;;  %v285_v21 = vmax.f32 %v157_v9, 0.0  ;;  %v366_v35 = vmax.f32 %v238_v27, 0.0  ;;  %v245_v27 = vunpack.c.l.bf16 %v132_v63 }
  0x1b   :  { %714 = vmatprep.subr.bf16.mxu0 %v1585_v0  ;;  %1436 = vmatprep.subr.bf16.mxu1 %v1585_v0 }
  0x1c   :  { %v471_v32 = vpack.c.bf16 %v285_v21, %v283_v20  ;;  %v233_v21 = vunpack.c.l.bf16 %v126_v55  ;;  %v365_v55 = vmax.f32 %v237_v43, 0.0 }
  0x1e   :  { %715 = vmatpush1.bf16.msra.mxu0 %v1455_v30  ;;  %1445 = vmatpush1.bf16.msra.mxu1 %v1455_v30  ;;  %v123_v30 = vld [vmem:[%s2137_s0 + $0x140] sm:$0xff]  ;;  %v361_v31 = vmax.f32 %v233_v21, 0.0  ;;  %v102_v21 = vld [vmem:[%s2137_s0 + $0x98] sm:$0xff] }
  0x1f   :  { %716 = vmatprep.subr.bf16.mxu0 %v1585_v0  ;;  %1437 = vmatprep.subr.bf16.mxu1 %v1585_v0  ;;  %v284_v0 = vmax.f32 %v156_v54, 0.0  ;;  %v228_v42 = vunpack.c.h.bf16 %v123_v30  ;;  %v125_v54 = vld [vmem:[%s2137_s0 + $0x150] sm:$0xff]  ;;  %v227_v58 = vunpack.c.l.bf16 %v123_v30 }
  0x20   :  { %v232_v2 = vunpack.c.h.bf16 %v125_v54  ;;  %v231_v20 = vunpack.c.l.bf16 %v125_v54 }
  0x21   :  { %v472_v14 = vpack.c.bf16 %v286_v1, %v284_v0  ;;  %v356_v50 = vmax.f32 %v228_v42, 0.0  ;;  %v170_v1 = vunpack.c.h.bf16 %v94_v53  ;;  %v355_v6 = vmax.f32 %v227_v58, 0.0 }
  0x22   :  { %717 = vmatpush1.bf16.msra.mxu0 %v1456_v39  ;;  %1446 = vmatpush1.bf16.msra.mxu1 %v1456_v39  ;;  %v166_v39 = vunpack.c.h.bf16 %v92_v29  ;;  %v360_v10 = vmax.f32 %v232_v2, 0.0  ;;  %v359_v30 = vmax.f32 %v231_v20, 0.0  ;;  %v175_v2 = vunpack.c.l.bf16 %v97_v36  ;;  %v101_v20 = vld [vmem:[%s2137_s0 + $0x90] sm:$0xff] }
  0x23   :  { %v508_v0 = vpack.c.bf16 %v358_v51, %v356_v50  ;;  %v298_v9 = vmax.f32 %v170_v1, 0.0  ;;  %v507_v17 = vpack.c.bf16 %v357_v7, %v355_v6 }
  0x24   :  { %v510_v25 = vpack.c.bf16 %v362_v11, %v360_v10  ;;  %v509_v45 = vpack.c.bf16 %v361_v31, %v359_v30  ;;  %v246_v11 = vunpack.c.h.bf16 %v132_v63  ;;  %v184_v31 = vunpack.c.h.bf16 %v101_v20 }
  0x25   :  { %733 = vmatmul.mubr.bf16.vlgmr.msra.gmra.mrb[0].mxu0 %v467_v48  ;;  %861 = vmatmul.mubr.bf16.vlgmr.msra.gmra.mrb[0].mxu1 %v499_v49  ;;  %v292_v48 = vmax.f32 %v164_v38, 0.0  ;;  %v294_v49 = vmax.f32 %v166_v39, 0.0  ;;  %v478_v24 = vpack.c.bf16 %v298_v9, %v296_v8  ;;  %v129_v38 = vld [vmem:[%s2137_s0 + $0x170] sm:$0xff]  ;;  %v130_v39 = vld [vmem:[%s2137_s0 + $0x178] sm:$0xff] }
  0x26   :  { %1397 = vmatprep.mubr.msk.bf16.mxu0 %vm603_vm0, %v470_v56  ;;  %1413 = vmatprep.mubr.msk.bf16.mxu1 %vm603_vm0, %v502_v57  ;;  %v163_v56 = vunpack.c.l.bf16 %v91_v28  ;;  %v165_v57 = vunpack.c.l.bf16 %v92_v29  ;;  %v295_v28 = vmax.f32 %v167_v18, 0.0  ;;  %v297_v29 = vmax.f32 %v169_v19, 0.0 }
  0x27   :  { %v476_v62 = vpack.c.bf16 %v294_v49, %v292_v48  ;;  %v178_v49 = vunpack.c.h.bf16 %v98_v37  ;;  %v240_v50 = vunpack.c.h.bf16 %v129_v38  ;;  %v242_v51 = vunpack.c.h.bf16 %v130_v39 }
  0x28   :  { %v291_v4 = vmax.f32 %v163_v56, 0.0  ;;  %v293_v5 = vmax.f32 %v165_v57, 0.0  ;;  %v477_v44 = vpack.c.bf16 %v297_v29, %v295_v28  ;;  %v304_v56 = vmax.f32 %v176_v47, 0.0  ;;  %v136_v47 = vld [vmem:[%s2137_s0 + $0x1a8] sm:$0xff] }
  0x29   :  { %v306_v57 = vmax.f32 %v178_v49, 0.0  ;;  %v368_v58 = vmax.f32 %v240_v50, 0.0  ;;  %v370_v59 = vmax.f32 %v242_v51, 0.0  ;;  %v374_v19 = vmax.f32 %v246_v11, 0.0 }
  0x2a   :  { %v183_v50 = vunpack.c.l.bf16 %v101_v20  ;;  %v185_v51 = vunpack.c.l.bf16 %v102_v21  ;;  %v253_v11 = vunpack.c.l.bf16 %v136_v47 }
  0x2b   :  { %v482_v8 = vpack.c.bf16 %v306_v57, %v304_v56  ;;  %v514_v9 = vpack.c.bf16 %v370_v59, %v368_v58  ;;  %v254_v59 = vunpack.c.h.bf16 %v136_v47 }
  0x2d   :  { %741 = vmatmul.mubr.bf16.gmra.mrb[4].mxu0 %v469_v12  ;;  %869 = vmatmul.mubr.bf16.gmra.mrb[4].mxu1 %v501_v13  ;;  %v95_v12 = vld [vmem:[%s2137_s0 + $0x60] sm:$0xff]  ;;  %v96_v13 = vld [vmem:[%s2137_s0 + $0x68] sm:$0xff] }
  0x2e   :  { %1398 = vmatprep.mubr.msk.bf16.mxu0 %vm603_vm0, %v472_v14  ;;  %1414 = vmatprep.mubr.msk.bf16.mxu1 %vm603_vm0, %v504_v16  ;;  %v127_v14 = vld [vmem:[%s2137_s0 + $0x160] sm:$0xff]  ;;  %v475_v16 = vpack.c.bf16 %v293_v5, %v291_v4  ;;  %v172_v22 = vunpack.c.h.bf16 %v95_v12  ;;  %v174_v23 = vunpack.c.h.bf16 %v96_v13  ;;  %v239_v4 = vunpack.c.l.bf16 %v129_v38 }
  0x2f   :  { %v236_v26 = vunpack.c.h.bf16 %v127_v14  ;;  %v235_v42 = vunpack.c.l.bf16 %v127_v14  ;;  %v241_v5 = vunpack.c.l.bf16 %v130_v39  ;;  %v373_v39 = vmax.f32 %v245_v27, 0.0 }
  0x30   :  { %v367_v14 = vmax.f32 %v239_v4, 0.0  ;;  %v105_v4 = vld [vmem:[%s2137_s0 + $0xb0] sm:$0xff] }
  0x31   :  { %v364_v34 = vmax.f32 %v236_v26, 0.0  ;;  %v363_v54 = vmax.f32 %v235_v42, 0.0  ;;  %v369_v15 = vmax.f32 %v241_v5, 0.0  ;;  %v106_v5 = vld [vmem:[%s2137_s0 + $0xb8] sm:$0xff] }
  0x33   :  { %v512_v48 = vpack.c.bf16 %v366_v35, %v364_v34  ;;  %v511_v1 = vpack.c.bf16 %v365_v55, %v363_v54  ;;  %v513_v29 = vpack.c.bf16 %v369_v15, %v367_v14  ;;  %v192_v15 = vunpack.c.h.bf16 %v105_v4 }
  0x35   :  { %749 = vmatmul.mubr.bf16.gmra.mrb[8].mxu0 %v471_v32  ;;  %877 = vmatmul.mubr.bf16.gmra.mrb[8].mxu1 %v503_v33  ;;  %v300_v32 = vmax.f32 %v172_v22, 0.0  ;;  %v302_v33 = vmax.f32 %v174_v23, 0.0  ;;  %v133_v22 = vld [vmem:[%s2137_s0 + $0x190] sm:$0xff]  ;;  %v134_v23 = vld [vmem:[%s2137_s0 + $0x198] sm:$0xff] }
  0x36   :  { %1399 = vmatprep.mubr.msk.bf16.mxu0 %vm603_vm0, %v474_v40  ;;  %1415 = vmatprep.mubr.msk.bf16.mxu1 %vm603_vm0, %v506_v41  ;;  %v171_v40 = vunpack.c.l.bf16 %v95_v12  ;;  %v173_v41 = vunpack.c.l.bf16 %v96_v13  ;;  %v303_v12 = vmax.f32 %v175_v2, 0.0  ;;  %v305_v13 = vmax.f32 %v177_v3, 0.0 }
  0x37   :  { %v480_v46 = vpack.c.bf16 %v302_v33, %v300_v32  ;;  %v186_v33 = vunpack.c.h.bf16 %v102_v21  ;;  %v248_v34 = vunpack.c.h.bf16 %v133_v22  ;;  %v250_v35 = vunpack.c.h.bf16 %v134_v23 }
  0x38   :  { %v299_v52 = vmax.f32 %v171_v40, 0.0  ;;  %v301_v53 = vmax.f32 %v173_v41, 0.0  ;;  %v481_v28 = vpack.c.bf16 %v305_v13, %v303_v12  ;;  %v312_v40 = vmax.f32 %v184_v31, 0.0  ;;  %v140_v31 = vld [vmem:[%s2137_s0 + $0x1c8] sm:$0xff] }
  0x39   :  { %v314_v41 = vmax.f32 %v186_v33, 0.0  ;;  %v376_v42 = vmax.f32 %v248_v34, 0.0  ;;  %v378_v43 = vmax.f32 %v250_v35, 0.0  ;;  %v382_v3 = vmax.f32 %v254_v59, 0.0 }
  0x3a   :  { %v191_v34 = vunpack.c.l.bf16 %v105_v4  ;;  %v193_v35 = vunpack.c.l.bf16 %v106_v5  ;;  %v261_v59 = vunpack.c.l.bf16 %v140_v31 }
  0x3b   :  { %v486_v56 = vpack.c.bf16 %v314_v41, %v312_v40  ;;  %v518_v57 = vpack.c.bf16 %v378_v43, %v376_v42  ;;  %v262_v43 = vunpack.c.h.bf16 %v140_v31 }
  0x3d   :  { %757 = vmatmul.mubr.bf16.gmra.mrb[12].mxu0 %v473_v60  ;;  %885 = vmatmul.mubr.bf16.gmra.mrb[12].mxu1 %v505_v61  ;;  %v99_v60 = vld [vmem:[%s2137_s0 + $0x80] sm:$0xff]  ;;  %v100_v61 = vld [vmem:[%s2137_s0 + $0x88] sm:$0xff] }
  0x3e   :  { %1400 = vmatprep.mubr.msk.bf16.mxu0 %vm603_vm0, %v476_v62  ;;  %1416 = vmatprep.mubr.msk.bf16.mxu1 %vm603_vm0, %v508_v0  ;;  %v131_v62 = vld [vmem:[%s2137_s0 + $0x180] sm:$0xff]  ;;  %v479_v0 = vpack.c.bf16 %v301_v53, %v299_v52  ;;  %v180_v6 = vunpack.c.h.bf16 %v99_v60  ;;  %v182_v7 = vunpack.c.h.bf16 %v100_v61  ;;  %v247_v52 = vunpack.c.l.bf16 %v133_v22 }
  0x3f   :  { %v244_v10 = vunpack.c.h.bf16 %v131_v62  ;;  %v243_v26 = vunpack.c.l.bf16 %v131_v62  ;;  %v249_v53 = vunpack.c.l.bf16 %v134_v23  ;;  %v381_v23 = vmax.f32 %v253_v11, 0.0 }
  0x40   :  { %v375_v62 = vmax.f32 %v247_v52, 0.0  ;;  %v109_v52 = vld [vmem:[%s2137_s0 + $0xd0] sm:$0xff] }
  0x41   :  { %v372_v18 = vmax.f32 %v244_v10, 0.0  ;;  %v371_v38 = vmax.f32 %v243_v26, 0.0  ;;  %v377_v63 = vmax.f32 %v249_v53, 0.0  ;;  %v110_v53 = vld [vmem:[%s2137_s0 + $0xd8] sm:$0xff] }
  0x43   :  { %v516_v32 = vpack.c.bf16 %v374_v19, %v372_v18  ;;  %v515_v49 = vpack.c.bf16 %v373_v39, %v371_v38  ;;  %v517_v13 = vpack.c.bf16 %v377_v63, %v375_v62  ;;  %v200_v63 = vunpack.c.h.bf16 %v109_v52 }
  0x45   :  { %765 = vmatmul.mubr.bf16.gmra.mrb[16].mxu0 %v475_v16  ;;  %893 = vmatmul.mubr.bf16.gmra.mrb[16].mxu1 %v507_v17  ;;  %v308_v16 = vmax.f32 %v180_v6, 0.0  ;;  %v310_v17 = vmax.f32 %v182_v7, 0.0  ;;  %v137_v6 = vld [vmem:[%s2137_s0 + $0x1b0] sm:$0xff]  ;;  %v138_v7 = vld [vmem:[%s2137_s0 + $0x1b8] sm:$0xff] }
  0x46   :  { %1401 = vmatprep.mubr.msk.bf16.mxu0 %vm603_vm0, %v478_v24  ;;  %1417 = vmatprep.mubr.msk.bf16.mxu1 %vm603_vm0, %v510_v25  ;;  %v179_v24 = vunpack.c.l.bf16 %v99_v60  ;;  %v181_v25 = vunpack.c.l.bf16 %v100_v61  ;;  %v311_v60 = vmax.f32 %v183_v50, 0.0  ;;  %v313_v61 = vmax.f32 %v185_v51, 0.0 }
  0x47   :  { %v484_v30 = vpack.c.bf16 %v310_v17, %v308_v16  ;;  %v194_v17 = vunpack.c.h.bf16 %v106_v5  ;;  %v256_v18 = vunpack.c.h.bf16 %v137_v6  ;;  %v258_v19 = vunpack.c.h.bf16 %v138_v7 }
  0x48   :  { %v307_v36 = vmax.f32 %v179_v24, 0.0  ;;  %v309_v37 = vmax.f32 %v181_v25, 0.0  ;;  %v485_v12 = vpack.c.bf16 %v313_v61, %v311_v60  ;;  %v320_v24 = vmax.f32 %v192_v15, 0.0  ;;  %v144_v15 = vld [vmem:[%s2137_s0 + $0x1e8] sm:$0xff] }
  0x49   :  { %v322_v25 = vmax.f32 %v194_v17, 0.0  ;;  %v384_v26 = vmax.f32 %v256_v18, 0.0  ;;  %v386_v27 = vmax.f32 %v258_v19, 0.0  ;;  %v390_v51 = vmax.f32 %v262_v43, 0.0 }
  0x4a   :  { %v199_v18 = vunpack.c.l.bf16 %v109_v52  ;;  %v201_v19 = vunpack.c.l.bf16 %v110_v53  ;;  %v269_v43 = vunpack.c.l.bf16 %v144_v15 }
  0x4b   :  { %v490_v40 = vpack.c.bf16 %v322_v25, %v320_v24  ;;  %v522_v41 = vpack.c.bf16 %v386_v27, %v384_v26  ;;  %v270_v27 = vunpack.c.h.bf16 %v144_v15 }
  0x4d   :  { %773 = vmatmul.mubr.bf16.gmra.mrb[20].mxu0 %v477_v44  ;;  %901 = vmatmul.mubr.bf16.gmra.mrb[20].mxu1 %v509_v45  ;;  %v103_v44 = vld [vmem:[%s2137_s0 + $0xa0] sm:$0xff]  ;;  %v104_v45 = vld [vmem:[%s2137_s0 + $0xa8] sm:$0xff] }
  0x4e   :  { %1402 = vmatprep.mubr.msk.bf16.mxu0 %vm603_vm0, %v480_v46  ;;  %1418 = vmatprep.mubr.msk.bf16.mxu1 %vm603_vm0, %v512_v48  ;;  %v135_v46 = vld [vmem:[%s2137_s0 + $0x1a0] sm:$0xff]  ;;  %v483_v48 = vpack.c.bf16 %v309_v37, %v307_v36  ;;  %v188_v54 = vunpack.c.h.bf16 %v103_v44  ;;  %v190_v55 = vunpack.c.h.bf16 %v104_v45  ;;  %v255_v36 = vunpack.c.l.bf16 %v137_v6 }
  0x4f   :  { %v252_v58 = vunpack.c.h.bf16 %v135_v46  ;;  %v251_v10 = vunpack.c.l.bf16 %v135_v46  ;;  %v257_v37 = vunpack.c.l.bf16 %v138_v7  ;;  %v389_v7 = vmax.f32 %v261_v59, 0.0 }
  0x50   :  { %v383_v46 = vmax.f32 %v255_v36, 0.0  ;;  %v113_v36 = vld [vmem:[%s2137_s0 + $0xf0] sm:$0xff] }
  0x51   :  { %v380_v2 = vmax.f32 %v252_v58, 0.0  ;;  %v379_v22 = vmax.f32 %v251_v10, 0.0  ;;  %v385_v47 = vmax.f32 %v257_v37, 0.0  ;;  %v114_v37 = vld [vmem:[%s2137_s0 + $0xf8] sm:$0xff] }
  0x53   :  { %v520_v16 = vpack.c.bf16 %v382_v3, %v380_v2  ;;  %v519_v33 = vpack.c.bf16 %v381_v23, %v379_v22  ;;  %v521_v61 = vpack.c.bf16 %v385_v47, %v383_v46  ;;  %v208_v47 = vunpack.c.h.bf16 %v113_v36 }
  0x55   :  { %781 = vmatmul.mubr.bf16.gmra.mrb[24].mxu0 %v479_v0  ;;  %909 = vmatmul.mubr.bf16.gmra.mrb[24].mxu1 %v511_v1  ;;  %v316_v0 = vmax.f32 %v188_v54, 0.0  ;;  %v318_v1 = vmax.f32 %v190_v55, 0.0  ;;  %v141_v54 = vld [vmem:[%s2137_s0 + $0x1d0] sm:$0xff]  ;;  %v142_v55 = vld [vmem:[%s2137_s0 + $0x1d8] sm:$0xff] }
  0x56   :  { %1403 = vmatprep.mubr.msk.bf16.mxu0 %vm603_vm0, %v482_v8  ;;  %1419 = vmatprep.mubr.msk.bf16.mxu1 %vm603_vm0, %v514_v9  ;;  %v187_v8 = vunpack.c.l.bf16 %v103_v44  ;;  %v189_v9 = vunpack.c.l.bf16 %v104_v45  ;;  %v319_v44 = vmax.f32 %v191_v34, 0.0  ;;  %v321_v45 = vmax.f32 %v193_v35, 0.0 }
  0x57   :  { %v488_v14 = vpack.c.bf16 %v318_v1, %v316_v0  ;;  %v202_v1 = vunpack.c.h.bf16 %v110_v53  ;;  %v264_v2 = vunpack.c.h.bf16 %v141_v54  ;;  %v266_v3 = vunpack.c.h.bf16 %v142_v55 }
  0x58   :  { %v315_v20 = vmax.f32 %v187_v8, 0.0  ;;  %v317_v21 = vmax.f32 %v189_v9, 0.0  ;;  %v489_v60 = vpack.c.bf16 %v321_v45, %v319_v44  ;;  %v328_v8 = vmax.f32 %v200_v63, 0.0 }
  0x59   :  { %v330_v9 = vmax.f32 %v202_v1, 0.0  ;;  %v392_v10 = vmax.f32 %v264_v2, 0.0  ;;  %v394_v11 = vmax.f32 %v266_v3, 0.0  ;;  %v398_v35 = vmax.f32 %v270_v27, 0.0 }
  0x5a   :  { %v209_v63 = vunpack.c.l.bf16 %v114_v37 }
  0x5b   :  { %v494_v24 = vpack.c.bf16 %v330_v9, %v328_v8  ;;  %v526_v25 = vpack.c.bf16 %v394_v11, %v392_v10  ;;  %v1878_v10 = vld [vmem:[%s2138_s2] ss:$0 sm:$0xff] }
  0x5d   :  { %789 = vmatmul.mubr.bf16.gmra.mrb[28].mxu0 %v481_v28  ;;  %917 = vmatmul.mubr.bf16.gmra.mrb[28].mxu1 %v513_v29  ;;  %v107_v28 = vld [vmem:[%s2137_s0 + $0xc0] sm:$0xff]  ;;  %v108_v29 = vld [vmem:[%s2137_s0 + $0xc8] sm:$0xff] }
  0x5e   :  { %1404 = vmatprep.mubr.msk.bf16.mxu0 %vm603_vm0, %v484_v30  ;;  %1420 = vmatprep.mubr.msk.bf16.mxu1 %vm603_vm0, %v516_v32  ;;  %v139_v30 = vld [vmem:[%s2137_s0 + $0x1c0] sm:$0xff]  ;;  %v487_v32 = vpack.c.bf16 %v317_v21, %v315_v20  ;;  %v196_v38 = vunpack.c.h.bf16 %v107_v28  ;;  %v198_v39 = vunpack.c.h.bf16 %v108_v29  ;;  %v263_v20 = vunpack.c.l.bf16 %v141_v54 }
  0x5f   :  { %v260_v42 = vunpack.c.h.bf16 %v139_v30  ;;  %v259_v58 = vunpack.c.l.bf16 %v139_v30  ;;  %v265_v21 = vunpack.c.l.bf16 %v142_v55  ;;  %v397_v55 = vmax.f32 %v269_v43, 0.0 }
  0x60   :  { %v391_v30 = vmax.f32 %v263_v20, 0.0 }
  0x61   :  { %v388_v50 = vmax.f32 %v260_v42, 0.0  ;;  %v387_v6 = vmax.f32 %v259_v58, 0.0  ;;  %v393_v31 = vmax.f32 %v265_v21, 0.0 }
  0x63   :  { %v524_v0 = vpack.c.bf16 %v390_v51, %v388_v50  ;;  %v523_v17 = vpack.c.bf16 %v389_v7, %v387_v6  ;;  %v525_v45 = vpack.c.bf16 %v393_v31, %v391_v30 }
  0x65   :  { %797 = vmatmul.mubr.bf16.gmra.mrb[32].mxu0 %v483_v48  ;;  %925 = vmatmul.mubr.bf16.gmra.mrb[32].mxu1 %v515_v49  ;;  %v324_v48 = vmax.f32 %v196_v38, 0.0  ;;  %v326_v49 = vmax.f32 %v198_v39, 0.0  ;;  %v145_v38 = vld [vmem:[%s2137_s0 + $0x1f0] sm:$0xff]  ;;  %v146_v39 = vld [vmem:[%s2137_s0 + $0x1f8] sm:$0xff] }
  0x66   :  { %1405 = vmatprep.mubr.msk.bf16.mxu0 %vm603_vm0, %v486_v56  ;;  %1421 = vmatprep.mubr.msk.bf16.mxu1 %vm603_vm0, %v518_v57  ;;  %v195_v56 = vunpack.c.l.bf16 %v107_v28  ;;  %v197_v57 = vunpack.c.l.bf16 %v108_v29  ;;  %v327_v28 = vmax.f32 %v199_v18, 0.0  ;;  %v329_v29 = vmax.f32 %v201_v19, 0.0 }
  0x67   :  { %v492_v62 = vpack.c.bf16 %v326_v49, %v324_v48  ;;  %v210_v49 = vunpack.c.h.bf16 %v114_v37  ;;  %v272_v50 = vunpack.c.h.bf16 %v145_v38  ;;  %v274_v51 = vunpack.c.h.bf16 %v146_v39 }
  0x68   :  { %v323_v4 = vmax.f32 %v195_v56, 0.0  ;;  %v325_v5 = vmax.f32 %v197_v57, 0.0  ;;  %v493_v44 = vpack.c.bf16 %v329_v29, %v327_v28  ;;  %v336_v56 = vmax.f32 %v208_v47, 0.0 }
  0x69   :  { %v338_v57 = vmax.f32 %v210_v49, 0.0  ;;  %v400_v58 = vmax.f32 %v272_v50, 0.0  ;;  %v402_v59 = vmax.f32 %v274_v51, 0.0  ;;  %v273_v1 = vunpack.c.l.bf16 %v146_v39 }
  0x6b   :  { %v498_v2 = vpack.c.bf16 %v338_v57, %v336_v56  ;;  %v530_v3 = vpack.c.bf16 %v402_v59, %v400_v58  ;;  %v401_v7 = vmax.f32 %v273_v1, 0.0 }
  0x6d   :  { %805 = vmatmul.mubr.bf16.gmra.mrb[36].mxu0 %v485_v12  ;;  %933 = vmatmul.mubr.bf16.gmra.mrb[36].mxu1 %v517_v13  ;;  %v111_v12 = vld [vmem:[%s2137_s0 + $0xe0] sm:$0xff]  ;;  %v112_v13 = vld [vmem:[%s2137_s0 + $0xe8] sm:$0xff] }
  0x6e   :  { %1406 = vmatprep.mubr.msk.bf16.mxu0 %vm603_vm0, %v488_v14  ;;  %1422 = vmatprep.mubr.msk.bf16.mxu1 %vm603_vm0, %v520_v16  ;;  %v143_v14 = vld [vmem:[%s2137_s0 + $0x1e0] sm:$0xff]  ;;  %v491_v16 = vpack.c.bf16 %v325_v5, %v323_v4  ;;  %v204_v22 = vunpack.c.h.bf16 %v111_v12  ;;  %v206_v23 = vunpack.c.h.bf16 %v112_v13  ;;  %v337_v5 = vmax.f32 %v209_v63, 0.0 }
  0x6f   :  { %v268_v26 = vunpack.c.h.bf16 %v143_v14  ;;  %v267_v42 = vunpack.c.l.bf16 %v143_v14 }
  0x71   :  { %v396_v34 = vmax.f32 %v268_v26, 0.0  ;;  %v395_v54 = vmax.f32 %v267_v42, 0.0 }
  0x73   :  { %v528_v48 = vpack.c.bf16 %v398_v35, %v396_v34 }
  0x75   :  { %813 = vmatmul.mubr.bf16.gmra.mrb[40].mxu0 %v487_v32  ;;  %941 = vmatmul.mubr.bf16.gmra.mrb[40].mxu1 %v519_v33  ;;  %v332_v32 = vmax.f32 %v204_v22, 0.0  ;;  %v334_v33 = vmax.f32 %v206_v23, 0.0 }
  0x76   :  { %1407 = vmatprep.mubr.msk.bf16.mxu0 %vm603_vm0, %v490_v40  ;;  %1423 = vmatprep.mubr.msk.bf16.mxu1 %vm603_vm0, %v522_v41  ;;  %v203_v40 = vunpack.c.l.bf16 %v111_v12  ;;  %v205_v41 = vunpack.c.l.bf16 %v112_v13 }
  0x77   :  { %v496_v46 = vpack.c.bf16 %v334_v33, %v332_v32 }
  0x78   :  { %v331_v52 = vmax.f32 %v203_v40, 0.0  ;;  %v333_v53 = vmax.f32 %v205_v41, 0.0 }
  0x7d   :  { %821 = vmatmul.mubr.bf16.gmra.mrb[44].mxu0 %v489_v60  ;;  %949 = vmatmul.mubr.bf16.gmra.mrb[44].mxu1 %v521_v61  ;;  %v495_v60 = vpack.c.bf16 %v333_v53, %v331_v52  ;;  %v527_v61 = vpack.c.bf16 %v397_v55, %v395_v54 }
  0x7e   :  { %1408 = vmatprep.mubr.msk.bf16.mxu0 %vm603_vm0, %v492_v62  ;;  %1424 = vmatprep.mubr.msk.bf16.mxu1 %vm603_vm0, %v524_v0  ;;  %v207_v62 = vunpack.c.l.bf16 %v113_v36  ;;  %v271_v0 = vunpack.c.l.bf16 %v145_v38 }
  0x80   :  { %v335_v4 = vmax.f32 %v207_v62, 0.0  ;;  %v399_v6 = vmax.f32 %v271_v0, 0.0 }
  0x82   :  { %v497_v8 = vpack.c.bf16 %v337_v5, %v335_v4  ;;  %v529_v9 = vpack.c.bf16 %v401_v7, %v399_v6 }
  0x85   :  { %829 = vmatmul.mubr.bf16.gmra.mrb[48].mxu0 %v491_v16  ;;  %957 = vmatmul.mubr.bf16.gmra.mrb[48].mxu1 %v523_v17 }
  0x86   :  { %1409 = vmatprep.mubr.msk.bf16.mxu0 %vm603_vm0, %v494_v24  ;;  %1425 = vmatprep.mubr.msk.bf16.mxu1 %vm603_vm0, %v526_v25 }
  0x8d   :  { %837 = vmatmul.mubr.bf16.gmra.mrb[52].mxu0 %v493_v44  ;;  %965 = vmatmul.mubr.bf16.gmra.mrb[52].mxu1 %v525_v45 }
  0x8e   :  { %1410 = vmatprep.mubr.msk.bf16.mxu0 %vm603_vm0, %v496_v46  ;;  %1426 = vmatprep.mubr.msk.bf16.mxu1 %vm603_vm0, %v528_v48 }
  0x95   :  { %845 = vmatmul.mubr.bf16.gmra.mrb[56].mxu0 %v495_v60  ;;  %973 = vmatmul.mubr.bf16.gmra.mrb[56].mxu1 %v527_v61 }
  0x96   :  { %1411 = vmatprep.mubr.msk.bf16.mxu0 %vm603_vm0, %v498_v2  ;;  %1427 = vmatprep.mubr.msk.bf16.mxu1 %vm603_vm0, %v530_v3 }
  0x9d   :  { %853 = vmatmul.mubr.bf16.gmra.mrb[60].mxu0 %v497_v8  ;;  %981 = vmatmul.mubr.bf16.gmra.mrb[60].mxu1 %v529_v9 }
  0xf8   :  { %v734_v11 = vpop.f32.mrb[0].mxu0  ;;  %v862_v12 = vpop.f32.mrb[0].mxu1 }
  0xf9   :  { %v1191_v13 = vadd.f32 %v1878_v10, %v734_v11  ;;  %v1223_v14 = vadd.f32 %v1878_v10, %v862_v12  ;;  %v736_v15 = vpop.f32.mrb[1].mxu0  ;;  %v864_v16 = vpop.f32.mrb[1].mxu1 }
  0xfa   :  { %v737_v17 = vpop.f32.mrb[2].mxu0  ;;  %v865_v18 = vpop.f32.mrb[2].mxu1 }
  0xfb   :  { %1457 = vtanh.f32 %v1191_v13  ;;  %v1192_v19 = vadd.f32 %v1878_v10, %v737_v17  ;;  %v1224_v20 = vadd.f32 %v1878_v10, %v865_v18  ;;  %v739_v21 = vpop.f32.mrb[3].mxu0  ;;  %v867_v22 = vpop.f32.mrb[3].mxu1 }
  0xfc   :  { %1459 = vtanh.f32 %v1223_v14 }
  0xfd   :  { %1461 = vtanh.f32 %v1192_v19 }
  0xfe   :  { %1463 = vtanh.f32 %v1224_v20 }
 0x100   :  { %v742_v23 = vpop.f32.mrb[4].mxu0  ;;  %v870_v24 = vpop.f32.mrb[4].mxu1 }
 0x101   :  { %v1193_v25 = vadd.f32 %v1878_v10, %v742_v23  ;;  %v1225_v26 = vadd.f32 %v1878_v10, %v870_v24  ;;  %v744_v27 = vpop.f32.mrb[5].mxu0  ;;  %v872_v28 = vpop.f32.mrb[5].mxu1 }
 0x102   :  { %v745_v29 = vpop.f32.mrb[6].mxu0  ;;  %v873_v30 = vpop.f32.mrb[6].mxu1 }
 0x103   :  { %1465 = vtanh.f32 %v1193_v25  ;;  %v1194_v31 = vadd.f32 %v1878_v10, %v745_v29  ;;  %v1226_v32 = vadd.f32 %v1878_v10, %v873_v30  ;;  %v747_v33 = vpop.f32.mrb[7].mxu0  ;;  %v875_v34 = vpop.f32.mrb[7].mxu1 }
 0x104   :  { %1467 = vtanh.f32 %v1225_v26 }
 0x105   :  { %v1458_v35 = vpop.eup %1457  ;;  %1469 = vtanh.f32 %v1194_v31 }
 0x106   :  { %v1460_v36 = vpop.eup %1459  ;;  %1319 = vst [vmem:[%s2139_s3] sm:$0xff] %v1458_v35  ;;  %1471 = vtanh.f32 %v1226_v32 }
 0x107   :  { %v1462_v37 = vpop.eup %1461  ;;  %1351 = vst [vmem:[%s2139_s3 + $0x100] sm:$0xff] %v1460_v36 }
 0x108   :  { %v1464_v38 = vpop.eup %1463  ;;  %1320 = vst [vmem:[%s2139_s3 + $0x8] sm:$0xff] %v1462_v37  ;;  %v750_v39 = vpop.f32.mrb[8].mxu0 }
 0x109   :  { %v878_v40 = vpop.f32.mrb[8].mxu1  ;;  %1352 = vst [vmem:[%s2139_s3 + $0x108] sm:$0xff] %v1464_v38  ;;  %v1195_v41 = vadd.f32 %v1878_v10, %v750_v39  ;;  %v752_v43 = vpop.f32.mrb[9].mxu0 }
 0x10a   :  { %v1227_v42 = vadd.f32 %v1878_v10, %v878_v40  ;;  %v880_v44 = vpop.f32.mrb[9].mxu1  ;;  %v753_v45 = vpop.f32.mrb[10].mxu0 }
 0x10b   :  { %v881_v46 = vpop.f32.mrb[10].mxu1  ;;  %1473 = vtanh.f32 %v1195_v41  ;;  %v1196_v47 = vadd.f32 %v1878_v10, %v753_v45  ;;  %v755_v49 = vpop.f32.mrb[11].mxu0 }
 0x10c   :  { %v1228_v48 = vadd.f32 %v1878_v10, %v881_v46  ;;  %v883_v50 = vpop.f32.mrb[11].mxu1  ;;  %1475 = vtanh.f32 %v1227_v42 }
 0x10d   :  { %v1466_v51 = vpop.eup %1465  ;;  %1477 = vtanh.f32 %v1196_v47 }
 0x10e   :  { %v1468_v52 = vpop.eup %1467  ;;  %1321 = vst [vmem:[%s2139_s3 + $0x10] sm:$0xff] %v1466_v51  ;;  %1479 = vtanh.f32 %v1228_v48 }
 0x10f   :  { %v1470_v53 = vpop.eup %1469  ;;  %1353 = vst [vmem:[%s2139_s3 + $0x110] sm:$0xff] %v1468_v52 }
 0x110   :  { %v1472_v54 = vpop.eup %1471  ;;  %1322 = vst [vmem:[%s2139_s3 + $0x18] sm:$0xff] %v1470_v53  ;;  %v758_v55 = vpop.f32.mrb[12].mxu0 }
 0x111   :  { %v886_v56 = vpop.f32.mrb[12].mxu1  ;;  %1354 = vst [vmem:[%s2139_s3 + $0x118] sm:$0xff] %v1472_v54  ;;  %v1197_v57 = vadd.f32 %v1878_v10, %v758_v55  ;;  %v760_v59 = vpop.f32.mrb[13].mxu0 }
 0x112   :  { %v1229_v58 = vadd.f32 %v1878_v10, %v886_v56  ;;  %v888_v60 = vpop.f32.mrb[13].mxu1  ;;  %v761_v61 = vpop.f32.mrb[14].mxu0 }
 0x113   :  { %v889_v62 = vpop.f32.mrb[14].mxu1  ;;  %1481 = vtanh.f32 %v1197_v57  ;;  %v1198_v63 = vadd.f32 %v1878_v10, %v761_v61  ;;  %v763_v1 = vpop.f32.mrb[15].mxu0 }
 0x114   :  { %v1230_v0 = vadd.f32 %v1878_v10, %v889_v62  ;;  %v891_v2 = vpop.f32.mrb[15].mxu1  ;;  %1483 = vtanh.f32 %v1229_v58 }
 0x115   :  { %v1474_v3 = vpop.eup %1473  ;;  %1485 = vtanh.f32 %v1198_v63 }
 0x116   :  { %v1476_v4 = vpop.eup %1475  ;;  %1323 = vst [vmem:[%s2139_s3 + $0x20] sm:$0xff] %v1474_v3  ;;  %1487 = vtanh.f32 %v1230_v0 }
 0x117   :  { %v1478_v5 = vpop.eup %1477  ;;  %1355 = vst [vmem:[%s2139_s3 + $0x120] sm:$0xff] %v1476_v4 }
 0x118   :  { %v1480_v6 = vpop.eup %1479  ;;  %1324 = vst [vmem:[%s2139_s3 + $0x28] sm:$0xff] %v1478_v5  ;;  %v766_v7 = vpop.f32.mrb[16].mxu0 }
 0x119   :  { %v894_v8 = vpop.f32.mrb[16].mxu1  ;;  %1356 = vst [vmem:[%s2139_s3 + $0x128] sm:$0xff] %v1480_v6  ;;  %v1199_v9 = vadd.f32 %v1878_v10, %v766_v7  ;;  %v768_v12 = vpop.f32.mrb[17].mxu0 }
 0x11a   :  { %v1231_v11 = vadd.f32 %v1878_v10, %v894_v8  ;;  %v896_v13 = vpop.f32.mrb[17].mxu1  ;;  %v769_v14 = vpop.f32.mrb[18].mxu0 }
 0x11b   :  { %v897_v15 = vpop.f32.mrb[18].mxu1  ;;  %1489 = vtanh.f32 %v1199_v9  ;;  %v1200_v16 = vadd.f32 %v1878_v10, %v769_v14  ;;  %v771_v18 = vpop.f32.mrb[19].mxu0 }
 0x11c   :  { %v1232_v17 = vadd.f32 %v1878_v10, %v897_v15  ;;  %v899_v19 = vpop.f32.mrb[19].mxu1  ;;  %1491 = vtanh.f32 %v1231_v11 }
 0x11d   :  { %v1482_v20 = vpop.eup %1481  ;;  %1493 = vtanh.f32 %v1200_v16 }
 0x11e   :  { %v1484_v21 = vpop.eup %1483  ;;  %1325 = vst [vmem:[%s2139_s3 + $0x30] sm:$0xff] %v1482_v20  ;;  %1495 = vtanh.f32 %v1232_v17 }
 0x11f   :  { %v1486_v22 = vpop.eup %1485  ;;  %1357 = vst [vmem:[%s2139_s3 + $0x130] sm:$0xff] %v1484_v21 }
 0x120   :  { %v1488_v23 = vpop.eup %1487  ;;  %1326 = vst [vmem:[%s2139_s3 + $0x38] sm:$0xff] %v1486_v22  ;;  %v774_v24 = vpop.f32.mrb[20].mxu0 }
 0x121   :  { %v902_v25 = vpop.f32.mrb[20].mxu1  ;;  %1358 = vst [vmem:[%s2139_s3 + $0x138] sm:$0xff] %v1488_v23  ;;  %v1201_v26 = vadd.f32 %v1878_v10, %v774_v24  ;;  %v776_v28 = vpop.f32.mrb[21].mxu0 }
 0x122   :  { %v1233_v27 = vadd.f32 %v1878_v10, %v902_v25  ;;  %v904_v29 = vpop.f32.mrb[21].mxu1  ;;  %v777_v30 = vpop.f32.mrb[22].mxu0 }
 0x123   :  { %v905_v31 = vpop.f32.mrb[22].mxu1  ;;  %1497 = vtanh.f32 %v1201_v26  ;;  %v1202_v32 = vadd.f32 %v1878_v10, %v777_v30  ;;  %v779_v34 = vpop.f32.mrb[23].mxu0 }
 0x124   :  { %v1234_v33 = vadd.f32 %v1878_v10, %v905_v31  ;;  %v907_v35 = vpop.f32.mrb[23].mxu1  ;;  %1499 = vtanh.f32 %v1233_v27 }
 0x125   :  { %v1490_v36 = vpop.eup %1489  ;;  %1501 = vtanh.f32 %v1202_v32 }
 0x126   :  { %v1492_v37 = vpop.eup %1491  ;;  %1327 = vst [vmem:[%s2139_s3 + $0x40] sm:$0xff] %v1490_v36  ;;  %1503 = vtanh.f32 %v1234_v33 }
 0x127   :  { %v1494_v38 = vpop.eup %1493  ;;  %1359 = vst [vmem:[%s2139_s3 + $0x140] sm:$0xff] %v1492_v37 }
 0x128   :  { %v1496_v39 = vpop.eup %1495  ;;  %1328 = vst [vmem:[%s2139_s3 + $0x48] sm:$0xff] %v1494_v38  ;;  %v782_v40 = vpop.f32.mrb[24].mxu0 }
 0x129   :  { %v910_v41 = vpop.f32.mrb[24].mxu1  ;;  %1360 = vst [vmem:[%s2139_s3 + $0x148] sm:$0xff] %v1496_v39  ;;  %v1203_v42 = vadd.f32 %v1878_v10, %v782_v40  ;;  %v784_v44 = vpop.f32.mrb[25].mxu0 }
 0x12a   :  { %v1235_v43 = vadd.f32 %v1878_v10, %v910_v41  ;;  %v912_v45 = vpop.f32.mrb[25].mxu1  ;;  %v785_v46 = vpop.f32.mrb[26].mxu0 }
 0x12b   :  { %v913_v47 = vpop.f32.mrb[26].mxu1  ;;  %1505 = vtanh.f32 %v1203_v42  ;;  %v1204_v48 = vadd.f32 %v1878_v10, %v785_v46  ;;  %v787_v50 = vpop.f32.mrb[27].mxu0 }
 0x12c   :  { %v1236_v49 = vadd.f32 %v1878_v10, %v913_v47  ;;  %v915_v51 = vpop.f32.mrb[27].mxu1  ;;  %1507 = vtanh.f32 %v1235_v43 }
 0x12d   :  { %v1498_v52 = vpop.eup %1497  ;;  %1509 = vtanh.f32 %v1204_v48 }
 0x12e   :  { %v1500_v53 = vpop.eup %1499  ;;  %1329 = vst [vmem:[%s2139_s3 + $0x50] sm:$0xff] %v1498_v52  ;;  %1511 = vtanh.f32 %v1236_v49 }
 0x12f   :  { %v1502_v54 = vpop.eup %1501  ;;  %1361 = vst [vmem:[%s2139_s3 + $0x150] sm:$0xff] %v1500_v53 }
 0x130   :  { %v1504_v55 = vpop.eup %1503  ;;  %1330 = vst [vmem:[%s2139_s3 + $0x58] sm:$0xff] %v1502_v54  ;;  %v790_v56 = vpop.f32.mrb[28].mxu0 }
 0x131   :  { %v918_v57 = vpop.f32.mrb[28].mxu1  ;;  %1362 = vst [vmem:[%s2139_s3 + $0x158] sm:$0xff] %v1504_v55  ;;  %v1205_v58 = vadd.f32 %v1878_v10, %v790_v56  ;;  %v792_v60 = vpop.f32.mrb[29].mxu0 }
 0x132   :  { %v1237_v59 = vadd.f32 %v1878_v10, %v918_v57  ;;  %v920_v61 = vpop.f32.mrb[29].mxu1  ;;  %v793_v62 = vpop.f32.mrb[30].mxu0 }
 0x133   :  { %v921_v63 = vpop.f32.mrb[30].mxu1  ;;  %1513 = vtanh.f32 %v1205_v58  ;;  %v1206_v0 = vadd.f32 %v1878_v10, %v793_v62  ;;  %v795_v2 = vpop.f32.mrb[31].mxu0 }
 0x134   :  { %v1238_v1 = vadd.f32 %v1878_v10, %v921_v63  ;;  %v923_v3 = vpop.f32.mrb[31].mxu1  ;;  %1515 = vtanh.f32 %v1237_v59 }
 0x135   :  { %v1506_v4 = vpop.eup %1505  ;;  %1517 = vtanh.f32 %v1206_v0 }
 0x136   :  { %v1508_v5 = vpop.eup %1507  ;;  %1331 = vst [vmem:[%s2139_s3 + $0x60] sm:$0xff] %v1506_v4  ;;  %1519 = vtanh.f32 %v1238_v1 }
 0x137   :  { %v1510_v6 = vpop.eup %1509  ;;  %1363 = vst [vmem:[%s2139_s3 + $0x160] sm:$0xff] %v1508_v5 }
 0x138   :  { %v1512_v7 = vpop.eup %1511  ;;  %1332 = vst [vmem:[%s2139_s3 + $0x68] sm:$0xff] %v1510_v6  ;;  %v798_v8 = vpop.f32.mrb[32].mxu0 }
 0x139   :  { %v926_v9 = vpop.f32.mrb[32].mxu1  ;;  %1364 = vst [vmem:[%s2139_s3 + $0x168] sm:$0xff] %v1512_v7  ;;  %v1207_v11 = vadd.f32 %v1878_v10, %v798_v8  ;;  %v800_v13 = vpop.f32.mrb[33].mxu0 }
 0x13a   :  { %v1239_v12 = vadd.f32 %v1878_v10, %v926_v9  ;;  %v928_v14 = vpop.f32.mrb[33].mxu1  ;;  %v801_v15 = vpop.f32.mrb[34].mxu0 }
 0x13b   :  { %v929_v16 = vpop.f32.mrb[34].mxu1  ;;  %1521 = vtanh.f32 %v1207_v11  ;;  %v1208_v17 = vadd.f32 %v1878_v10, %v801_v15  ;;  %v803_v19 = vpop.f32.mrb[35].mxu0 }
 0x13c   :  { %v1240_v18 = vadd.f32 %v1878_v10, %v929_v16  ;;  %v931_v20 = vpop.f32.mrb[35].mxu1  ;;  %1523 = vtanh.f32 %v1239_v12 }
 0x13d   :  { %v1514_v21 = vpop.eup %1513  ;;  %1525 = vtanh.f32 %v1208_v17 }
 0x13e   :  { %v1516_v22 = vpop.eup %1515  ;;  %1333 = vst [vmem:[%s2139_s3 + $0x70] sm:$0xff] %v1514_v21  ;;  %1527 = vtanh.f32 %v1240_v18 }
 0x13f   :  { %v1518_v23 = vpop.eup %1517  ;;  %1365 = vst [vmem:[%s2139_s3 + $0x170] sm:$0xff] %v1516_v22 }
 0x140   :  { %v1520_v24 = vpop.eup %1519  ;;  %1334 = vst [vmem:[%s2139_s3 + $0x78] sm:$0xff] %v1518_v23  ;;  %v806_v25 = vpop.f32.mrb[36].mxu0 }
 0x141   :  { %v934_v26 = vpop.f32.mrb[36].mxu1  ;;  %1366 = vst [vmem:[%s2139_s3 + $0x178] sm:$0xff] %v1520_v24  ;;  %v1209_v27 = vadd.f32 %v1878_v10, %v806_v25  ;;  %v808_v29 = vpop.f32.mrb[37].mxu0 }
 0x142   :  { %v1241_v28 = vadd.f32 %v1878_v10, %v934_v26  ;;  %v936_v30 = vpop.f32.mrb[37].mxu1  ;;  %v809_v31 = vpop.f32.mrb[38].mxu0 }
 0x143   :  { %v937_v32 = vpop.f32.mrb[38].mxu1  ;;  %1529 = vtanh.f32 %v1209_v27  ;;  %v1210_v33 = vadd.f32 %v1878_v10, %v809_v31  ;;  %v811_v35 = vpop.f32.mrb[39].mxu0 }
 0x144   :  { %v1242_v34 = vadd.f32 %v1878_v10, %v937_v32  ;;  %v939_v36 = vpop.f32.mrb[39].mxu1  ;;  %1531 = vtanh.f32 %v1241_v28 }
 0x145   :  { %v1522_v37 = vpop.eup %1521  ;;  %1533 = vtanh.f32 %v1210_v33 }
 0x146   :  { %v1524_v38 = vpop.eup %1523  ;;  %1335 = vst [vmem:[%s2139_s3 + $0x80] sm:$0xff] %v1522_v37  ;;  %1535 = vtanh.f32 %v1242_v34 }
 0x147   :  { %v1526_v39 = vpop.eup %1525  ;;  %1367 = vst [vmem:[%s2139_s3 + $0x180] sm:$0xff] %v1524_v38 }
 0x148   :  { %v1528_v40 = vpop.eup %1527  ;;  %1336 = vst [vmem:[%s2139_s3 + $0x88] sm:$0xff] %v1526_v39  ;;  %v814_v41 = vpop.f32.mrb[40].mxu0 }
 0x149   :  { %v942_v42 = vpop.f32.mrb[40].mxu1  ;;  %1368 = vst [vmem:[%s2139_s3 + $0x188] sm:$0xff] %v1528_v40  ;;  %v1211_v43 = vadd.f32 %v1878_v10, %v814_v41  ;;  %v816_v45 = vpop.f32.mrb[41].mxu0 }
 0x14a   :  { %v1243_v44 = vadd.f32 %v1878_v10, %v942_v42  ;;  %v944_v46 = vpop.f32.mrb[41].mxu1  ;;  %v817_v47 = vpop.f32.mrb[42].mxu0 }
 0x14b   :  { %v945_v48 = vpop.f32.mrb[42].mxu1  ;;  %1537 = vtanh.f32 %v1211_v43  ;;  %v1212_v49 = vadd.f32 %v1878_v10, %v817_v47  ;;  %v819_v51 = vpop.f32.mrb[43].mxu0 }
 0x14c   :  { %v1244_v50 = vadd.f32 %v1878_v10, %v945_v48  ;;  %v947_v52 = vpop.f32.mrb[43].mxu1  ;;  %1539 = vtanh.f32 %v1243_v44 }
 0x14d   :  { %v1530_v53 = vpop.eup %1529  ;;  %1541 = vtanh.f32 %v1212_v49 }
 0x14e   :  { %v1532_v54 = vpop.eup %1531  ;;  %1337 = vst [vmem:[%s2139_s3 + $0x90] sm:$0xff] %v1530_v53  ;;  %1543 = vtanh.f32 %v1244_v50 }
 0x14f   :  { %v1534_v55 = vpop.eup %1533  ;;  %1369 = vst [vmem:[%s2139_s3 + $0x190] sm:$0xff] %v1532_v54 }
 0x150   :  { %v1536_v56 = vpop.eup %1535  ;;  %1338 = vst [vmem:[%s2139_s3 + $0x98] sm:$0xff] %v1534_v55  ;;  %v822_v57 = vpop.f32.mrb[44].mxu0 }
 0x151   :  { %v950_v58 = vpop.f32.mrb[44].mxu1  ;;  %1370 = vst [vmem:[%s2139_s3 + $0x198] sm:$0xff] %v1536_v56  ;;  %v1213_v59 = vadd.f32 %v1878_v10, %v822_v57  ;;  %v824_v61 = vpop.f32.mrb[45].mxu0 }
 0x152   :  { %v1245_v60 = vadd.f32 %v1878_v10, %v950_v58  ;;  %v952_v62 = vpop.f32.mrb[45].mxu1  ;;  %v825_v63 = vpop.f32.mrb[46].mxu0 }
 0x153   :  { %v953_v0 = vpop.f32.mrb[46].mxu1  ;;  %1545 = vtanh.f32 %v1213_v59  ;;  %v1214_v1 = vadd.f32 %v1878_v10, %v825_v63  ;;  %v827_v3 = vpop.f32.mrb[47].mxu0 }
 0x154   :  { %v1246_v2 = vadd.f32 %v1878_v10, %v953_v0  ;;  %v955_v4 = vpop.f32.mrb[47].mxu1  ;;  %1547 = vtanh.f32 %v1245_v60 }
 0x155   :  { %v1538_v5 = vpop.eup %1537  ;;  %1549 = vtanh.f32 %v1214_v1 }
 0x156   :  { %v1540_v6 = vpop.eup %1539  ;;  %1339 = vst [vmem:[%s2139_s3 + $0xa0] sm:$0xff] %v1538_v5  ;;  %1551 = vtanh.f32 %v1246_v2 }
 0x157   :  { %v1542_v7 = vpop.eup %1541  ;;  %1371 = vst [vmem:[%s2139_s3 + $0x1a0] sm:$0xff] %v1540_v6 }
 0x158   :  { %v1544_v8 = vpop.eup %1543  ;;  %1340 = vst [vmem:[%s2139_s3 + $0xa8] sm:$0xff] %v1542_v7  ;;  %v830_v9 = vpop.f32.mrb[48].mxu0 }
 0x159   :  { %v958_v11 = vpop.f32.mrb[48].mxu1  ;;  %1372 = vst [vmem:[%s2139_s3 + $0x1a8] sm:$0xff] %v1544_v8  ;;  %v1215_v12 = vadd.f32 %v1878_v10, %v830_v9  ;;  %v832_v14 = vpop.f32.mrb[49].mxu0 }
 0x15a   :  { %v1247_v13 = vadd.f32 %v1878_v10, %v958_v11  ;;  %v960_v15 = vpop.f32.mrb[49].mxu1  ;;  %v833_v16 = vpop.f32.mrb[50].mxu0 }
 0x15b   :  { %v961_v17 = vpop.f32.mrb[50].mxu1  ;;  %1553 = vtanh.f32 %v1215_v12  ;;  %v1216_v18 = vadd.f32 %v1878_v10, %v833_v16  ;;  %v835_v20 = vpop.f32.mrb[51].mxu0 }
 0x15c   :  { %v1248_v19 = vadd.f32 %v1878_v10, %v961_v17  ;;  %v963_v21 = vpop.f32.mrb[51].mxu1  ;;  %1555 = vtanh.f32 %v1247_v13 }
 0x15d   :  { %v1546_v22 = vpop.eup %1545  ;;  %1557 = vtanh.f32 %v1216_v18 }
 0x15e   :  { %v1548_v23 = vpop.eup %1547  ;;  %1341 = vst [vmem:[%s2139_s3 + $0xb0] sm:$0xff] %v1546_v22  ;;  %1559 = vtanh.f32 %v1248_v19 }
 0x15f   :  { %v1550_v24 = vpop.eup %1549  ;;  %1373 = vst [vmem:[%s2139_s3 + $0x1b0] sm:$0xff] %v1548_v23 }
 0x160   :  { %v1552_v25 = vpop.eup %1551  ;;  %1342 = vst [vmem:[%s2139_s3 + $0xb8] sm:$0xff] %v1550_v24  ;;  %v838_v26 = vpop.f32.mrb[52].mxu0 }
 0x161   :  { %v966_v27 = vpop.f32.mrb[52].mxu1  ;;  %1374 = vst [vmem:[%s2139_s3 + $0x1b8] sm:$0xff] %v1552_v25  ;;  %v1217_v28 = vadd.f32 %v1878_v10, %v838_v26  ;;  %v840_v30 = vpop.f32.mrb[53].mxu0 }
 0x162   :  { %v1249_v29 = vadd.f32 %v1878_v10, %v966_v27  ;;  %v968_v31 = vpop.f32.mrb[53].mxu1  ;;  %v841_v32 = vpop.f32.mrb[54].mxu0 }
 0x163   :  { %v969_v33 = vpop.f32.mrb[54].mxu1  ;;  %1561 = vtanh.f32 %v1217_v28  ;;  %v1218_v34 = vadd.f32 %v1878_v10, %v841_v32  ;;  %v843_v36 = vpop.f32.mrb[55].mxu0 }
 0x164   :  { %v1250_v35 = vadd.f32 %v1878_v10, %v969_v33  ;;  %v971_v37 = vpop.f32.mrb[55].mxu1  ;;  %1563 = vtanh.f32 %v1249_v29 }
 0x165   :  { %v1554_v38 = vpop.eup %1553  ;;  %1565 = vtanh.f32 %v1218_v34 }
 0x166   :  { %v1556_v39 = vpop.eup %1555  ;;  %1343 = vst [vmem:[%s2139_s3 + $0xc0] sm:$0xff] %v1554_v38  ;;  %1567 = vtanh.f32 %v1250_v35 }
 0x167   :  { %v1558_v40 = vpop.eup %1557  ;;  %1375 = vst [vmem:[%s2139_s3 + $0x1c0] sm:$0xff] %v1556_v39 }
 0x168   :  { %v1560_v41 = vpop.eup %1559  ;;  %1344 = vst [vmem:[%s2139_s3 + $0xc8] sm:$0xff] %v1558_v40  ;;  %v846_v42 = vpop.f32.mrb[56].mxu0 }
 0x169   :  { %v974_v43 = vpop.f32.mrb[56].mxu1  ;;  %1376 = vst [vmem:[%s2139_s3 + $0x1c8] sm:$0xff] %v1560_v41  ;;  %v1219_v44 = vadd.f32 %v1878_v10, %v846_v42  ;;  %v848_v46 = vpop.f32.mrb[57].mxu0 }
 0x16a   :  { %v1251_v45 = vadd.f32 %v1878_v10, %v974_v43  ;;  %v976_v47 = vpop.f32.mrb[57].mxu1  ;;  %v849_v48 = vpop.f32.mrb[58].mxu0 }
 0x16b   :  { %v977_v49 = vpop.f32.mrb[58].mxu1  ;;  %1569 = vtanh.f32 %v1219_v44  ;;  %v1220_v50 = vadd.f32 %v1878_v10, %v849_v48  ;;  %v851_v52 = vpop.f32.mrb[59].mxu0 }
 0x16c   :  { %v1252_v51 = vadd.f32 %v1878_v10, %v977_v49  ;;  %v979_v53 = vpop.f32.mrb[59].mxu1  ;;  %1571 = vtanh.f32 %v1251_v45 }
 0x16d   :  { %v1562_v54 = vpop.eup %1561  ;;  %1573 = vtanh.f32 %v1220_v50 }
 0x16e   :  { %v1564_v55 = vpop.eup %1563  ;;  %1345 = vst [vmem:[%s2139_s3 + $0xd0] sm:$0xff] %v1562_v54  ;;  %1575 = vtanh.f32 %v1252_v51 }
 0x16f   :  { %v1566_v56 = vpop.eup %1565  ;;  %1377 = vst [vmem:[%s2139_s3 + $0x1d0] sm:$0xff] %v1564_v55 }
 0x170   :  { %v1568_v57 = vpop.eup %1567  ;;  %1346 = vst [vmem:[%s2139_s3 + $0xd8] sm:$0xff] %v1566_v56  ;;  %v854_v58 = vpop.f32.mrb[60].mxu0 }
 0x171   :  { %v982_v59 = vpop.f32.mrb[60].mxu1  ;;  %1378 = vst [vmem:[%s2139_s3 + $0x1d8] sm:$0xff] %v1568_v57  ;;  %v1221_v60 = vadd.f32 %v1878_v10, %v854_v58  ;;  %v856_v62 = vpop.f32.mrb[61].mxu0 }
 0x172   :  { %v1253_v61 = vadd.f32 %v1878_v10, %v982_v59  ;;  %v984_v63 = vpop.f32.mrb[61].mxu1  ;;  %v857_v0 = vpop.f32.mrb[62].mxu0 }
 0x173   :  { %v985_v1 = vpop.f32.mrb[62].mxu1  ;;  %1577 = vtanh.f32 %v1221_v60  ;;  %v1222_v2 = vadd.f32 %v1878_v10, %v857_v0  ;;  %v859_v4 = vpop.f32.mrb[63].mxu0 }
 0x174   :  { %v1254_v3 = vadd.f32 %v1878_v10, %v985_v1  ;;  %v987_v5 = vpop.f32.mrb[63].mxu1  ;;  %1579 = vtanh.f32 %v1253_v61 }
 0x175   :  { %v1570_v6 = vpop.eup %1569  ;;  %1581 = vtanh.f32 %v1222_v2 }
 0x176   :  { %v1572_v7 = vpop.eup %1571  ;;  %1347 = vst [vmem:[%s2139_s3 + $0xe0] sm:$0xff] %v1570_v6  ;;  %1583 = vtanh.f32 %v1254_v3 }
 0x177   :  { %v1574_v8 = vpop.eup %1573  ;;  %1379 = vst [vmem:[%s2139_s3 + $0x1e0] sm:$0xff] %v1572_v7 }
 0x178   :  { %v1576_v9 = vpop.eup %1575  ;;  %1348 = vst [vmem:[%s2139_s3 + $0xe8] sm:$0xff] %v1574_v8 }
 0x179   :  { %1380 = vst [vmem:[%s2139_s3 + $0x1e8] sm:$0xff] %v1576_v9 }
 0x17d   :  { %v1578_v10 = vpop.eup %1577 }
 0x17e   :  { %v1580_v11 = vpop.eup %1579  ;;  %1349 = vst [vmem:[%s2139_s3 + $0xf0] sm:$0xff] %v1578_v10 }
 0x17f   :  { %v1582_v12 = vpop.eup %1581  ;;  %1381 = vst [vmem:[%s2139_s3 + $0x1f0] sm:$0xff] %v1580_v11 }
 0x180   :  { %v1584_v13 = vpop.eup %1583  ;;  %1350 = vst [vmem:[%s2139_s3 + $0xf8] sm:$0xff] %v1582_v12 }
 0x181   :  { %1382 = vst [vmem:[%s2139_s3 + $0x1f8] sm:$0xff] %v1584_v13 }

</bundles_post_ra>
